<compile_context>
chip_gen: v7x
topology: tpu7x:2x2x1
jax: 0.10.0
libtpu: 0.0.40
codegen_flags: <defaults>
</compile_context>

<pallas_src>
import functools

import jax
import jax.numpy as jnp
from jax.experimental import pallas as pl
from jax.experimental.pallas import tpu as pltpu

_SUB = 8      # f32 sublane tile
_LANE = 128   # lane tile


def _round_up(v, m):
    return (v + m - 1) // m * m


def attention_lstm_kernel(x_ref, wih0_ref, whh0_ref, b0_ref,
                          wihr_ref, whhr_ref, br_ref,
                          fcw_ref, fcb_ref,
                          out_ref, gates_buf, seq_buf,
                          *, BP, T, H, L):
    """Whole forward pass in one kernel invocation (everything fits in VMEM).

    x_ref     : (T*BP, E)     time-major, batch-padded, flattened input
    wih0_ref  : (E, 4H)       layer-0 input weights (pre-transposed)
    whh0_ref  : (H, 4H)       layer-0 recurrent weights (pre-transposed)
    b0_ref    : (1, 4H)       layer-0 bias (b_ih + b_hh)
    wihr_ref  : (L-1, H, 4H)  layers 1..L-1 input weights
    whhr_ref  : (L-1, H, 4H)  layers 1..L-1 recurrent weights
    br_ref    : (L-1, 1, 4H)  layers 1..L-1 biases
    fcw_ref   : (H, NP)       fc weight (pre-transposed, lane-padded)
    fcb_ref   : (1, NP)       fc bias (lane-padded)
    out_ref   : (BP, NP)      logits (padded; wrapper slices to (B, N))
    gates_buf : (T*BP, 4H)    VMEM scratch, hoisted input-projection gates
    seq_buf   : (T*BP, H)     VMEM scratch, current layer's full output sequence
    """

    def run_layer(in2d, wih_t, whh_t, bias, is_last):
        # --- hoisted, non-recurrent input projection: ONE matmul for all T steps ---
        gates_buf[...] = (
            jnp.dot(in2d, wih_t, preferred_element_type=jnp.float32) + bias)

        h = jnp.zeros((BP, H), jnp.float32)
        c = jnp.zeros((BP, H), jnp.float32)
        hs = []
        # Static unroll over time: constant, sublane-tile-aligned offsets and full
        # scheduler visibility across the serial recurrence.
        for t in range(T):
            g = gates_buf[t * BP:(t + 1) * BP, :] + jnp.dot(
                h, whh_t, preferred_element_type=jnp.float32)       # (BP, 4H)

            # Full-width activations (2 EUP pushes instead of 4 partial ones).
            # sigmoid(x) == 0.5 * (1 + tanh(0.5 * x))  -- exact identity.
            sig = 0.5 + 0.5 * jnp.tanh(0.5 * g)                     # (BP, 4H)
            tah = jnp.tanh(g)                                       # (BP, 4H)

            # PyTorch gate order: i, f, g, o
            i_g = sig[:, 0 * H:1 * H]
            f_g = sig[:, 1 * H:2 * H]
            g_g = tah[:, 2 * H:3 * H]
            o_g = sig[:, 3 * H:4 * H]

            c = f_g * c + i_g * g_g
            h = o_g * jnp.tanh(c)

            if is_last:
                hs.append(h)                          # keep last layer's outputs as values
            else:
                seq_buf[t * BP:(t + 1) * BP, :] = h   # one full-tile store per step
        return hs, h

    # ---- stacked LSTM (layer 0 has input size E, the rest have H) ----
    hs, h_last = run_layer(x_ref[...], wih0_ref[...], whh0_ref[...],
                           b0_ref[...], is_last=(L == 1))
    for l in range(1, L):
        hs, h_last = run_layer(seq_buf[...], wihr_ref[l - 1], whhr_ref[l - 1],
                               br_ref[l - 1], is_last=(l == L - 1))

    # ---- self-attention, last query only ----
    # logits only need attn[:, -1, :]:
    #   scores[b, t] = <lstm_out[b, T-1], lstm_out[b, t]> = <h_last[b], h_t[b]>
    #   attn[b]      = sum_t softmax_t(scores[b, :])[t] * h_t[b]
    scores = [jnp.sum(hs[t] * h_last, axis=-1, keepdims=True)       # (BP, 1) each
              for t in range(T)]
    m = scores[0]
    for t in range(1, T):
        m = jnp.maximum(m, scores[t])
    es = [jnp.exp(s - m) for s in scores]
    denom = es[0]
    for t in range(1, T):
        denom = denom + es[t]
    inv = pl.reciprocal(denom, approx=True)                          # (BP, 1)

    attn = es[0] * hs[0]
    for t in range(1, T):
        attn = attn + es[t] * hs[t]
    attn = attn * inv                                                # (BP, H)

    # ---- fc: one batched matmul, one unmasked lane-dense output store ----
    out_ref[...] = (jnp.dot(attn, fcw_ref[...],
                            preferred_element_type=jnp.float32) + fcb_ref[...])


def attention_lstm_forward(x, params):
    """x: (B, T, E) float32 -> logits (B, num_labels) float32."""
    B, T, E = x.shape
    H = params["whh0"].shape[1]
    L = params["num_layers"]
    N = params["fc_w"].shape[0]

    BP = _round_up(B, _SUB)     # pad batch to the 8-row sublane tile
    NP = _round_up(N, _LANE)    # pad logits to a lane-dense 128-wide slab

    # glue: layout / padding / transpose / bias-combining done in plain JAX
    x_pad = jnp.zeros((BP, T, E), jnp.float32).at[:B].set(x.astype(jnp.float32))
    x_flat = jnp.transpose(x_pad, (1, 0, 2)).reshape(T * BP, E)    # time-major

    wih0_t = params["wih0"].T                                      # (E, 4H)
    whh0_t = params["whh0"].T                                      # (H, 4H)
    b0 = (params["bih0"] + params["bhh0"]).reshape(1, 4 * H)       # (1, 4H)
    wihr_t = jnp.transpose(params["wih_rest"], (0, 2, 1))          # (L-1, H, 4H)
    whhr_t = jnp.transpose(params["whh_rest"], (0, 2, 1))          # (L-1, H, 4H)
    br = (params["bih_rest"] + params["bhh_rest"]).reshape(L - 1, 1, 4 * H)
    fcw_t = jnp.zeros((H, NP), jnp.float32).at[:, :N].set(params["fc_w"].T)
    fcb = jnp.zeros((1, NP), jnp.float32).at[:, :N].set(params["fc_b"].reshape(1, N))

    kernel = functools.partial(attention_lstm_kernel, BP=BP, T=T, H=H, L=L)
    vmem = pltpu.MemorySpace.VMEM
    out = pl.pallas_call(
        kernel,
        out_shape=jax.ShapeDtypeStruct((BP, NP), jnp.float32),
        in_specs=[pl.BlockSpec(memory_space=vmem)] * 9,
        out_specs=pl.BlockSpec(memory_space=vmem),
        scratch_shapes=[pltpu.VMEM((T * BP, 4 * H), jnp.float32),  # gates (lane-dense)
                        pltpu.VMEM((T * BP, H), jnp.float32)],     # layer outputs
    )(x_flat, wih0_t, whh0_t, b0, wihr_t, whhr_t, br, fcw_t, fcb)
    return out[:B, :N]


def init_params(key, E, H, L, N):
    """Deterministic PyTorch-style uniform(-1/sqrt(H), 1/sqrt(H)) init."""
    k_lstm = float(1.0 / (H ** 0.5))
    k_fc = float(1.0 / (H ** 0.5))
    keys = jax.random.split(key, 10)

    def u(k_, shape, bound):
        return jax.random.uniform(k_, shape, jnp.float32, -bound, bound)

    return {
        "num_layers": L,
        "wih0": u(keys[0], (4 * H, E), k_lstm),
        "whh0": u(keys[1], (4 * H, H), k_lstm),
        "bih0": u(keys[2], (4 * H,), k_lstm),
        "bhh0": u(keys[3], (4 * H,), k_lstm),
        "wih_rest": u(keys[4], (L - 1, 4 * H, H), k_lstm),
        "whh_rest": u(keys[5], (L - 1, 4 * H, H), k_lstm),
        "bih_rest": u(keys[6], (L - 1, 4 * H), k_lstm),
        "bhh_rest": u(keys[7], (L - 1, 4 * H), k_lstm),
        "fc_w": u(keys[8], (N, H), k_fc),
        "fc_b": u(keys[9], (N,), k_fc),
    }


def _sigmoid(x):
    return 1.0 / (1.0 + jnp.exp(-x))


def reference_forward(x, params):
    """Pure-JAX reference matching PyTorch nn.LSTM / attention / fc semantics."""
    B, T, E = x.shape
    H = params["whh0"].shape[1]
    L = params["num_layers"]

    def layer(inp, wih, whh, bih, bhh):
        h = jnp.zeros((B, H), jnp.float32)
        c = jnp.zeros((B, H), jnp.float32)
        outs = []
        for t in range(T):
            gates = inp[:, t, :] @ wih.T + h @ whh.T + bih + bhh
            i = _sigmoid(gates[:, :H])
            f = _sigmoid(gates[:, H:2 * H])
            g = jnp.tanh(gates[:, 2 * H:3 * H])
            o = _sigmoid(gates[:, 3 * H:])
            c = f * c + i * g
            h = o * jnp.tanh(c)
            outs.append(h)
        return jnp.stack(outs, axis=1)

    out = layer(x, params["wih0"], params["whh0"], params["bih0"], params["bhh0"])
    for l in range(1, L):
        out = layer(out, params["wih_rest"][l - 1], params["whh_rest"][l - 1],
                    params["bih_rest"][l - 1], params["bhh_rest"][l - 1])

    attn_w = jnp.einsum('bth,bsh->bts', out, out)
    attn_w = jax.nn.softmax(attn_w, axis=-1)
    attn = jnp.einsum('bts,bsh->bth', attn_w, out)
    last = attn[:, -1, :]
    return last @ params["fc_w"].T + params["fc_b"]


if __name__ == "__main__":
    jax.config.update("jax_default_matmul_precision", "highest")

    # Small shapes consistent with the module: x (B, T, embedding_dim)
    B, T, E, H, L, N = 2, 8, 32, 32, 4, 10

    key = jax.random.PRNGKey(0)
    pkey, xkey = jax.random.split(key)
    params = init_params(pkey, E, H, L, N)
    x = jax.random.normal(xkey, (B, T, E), jnp.float32)

    out = attention_lstm_forward(x, params)
    out = jax.block_until_ready(out)

    ref = reference_forward(x, params)
    assert out.shape == (B, N), (out.shape, (B, N))
    assert bool(jnp.all(jnp.isfinite(out)))
    if not jnp.allclose(out, ref, atol=1e-2, rtol=1e-2):
        raise AssertionError(
            f"kernel/reference mismatch: max abs err "
            f"{float(jnp.max(jnp.abs(out - ref)))}")
    print("KERNEL_OK")
</pallas_src>

<mosaic_0001>
module attributes {stable_mosaic.version = 11 : i64} {
  func.func @attention_lstm_kernel(%arg0: memref<64x32xf32, #tpu.memory_space<vmem>>, %arg1: memref<32x128xf32, #tpu.memory_space<vmem>>, %arg2: memref<32x128xf32, #tpu.memory_space<vmem>>, %arg3: memref<1x128xf32, #tpu.memory_space<vmem>>, %arg4: memref<3x32x128xf32, #tpu.memory_space<vmem>>, %arg5: memref<3x32x128xf32, #tpu.memory_space<vmem>>, %arg6: memref<3x1x128xf32, #tpu.memory_space<vmem>>, %arg7: memref<32x128xf32, #tpu.memory_space<vmem>>, %arg8: memref<1x128xf32, #tpu.memory_space<vmem>>, %arg9: memref<8x128xf32, #tpu.memory_space<vmem>>, %arg10: memref<64x128xf32, #tpu.memory_space<vmem>>, %arg11: memref<64x32xf32, #tpu.memory_space<vmem>>) attributes {dimension_semantics = [], scalar_prefetch = 0 : i64, scratch_operands = 2 : i64, tpu.core_type = #tpu.core_type<tc>} {
    %c0 = arith.constant 0 : index
    %c0_0 = arith.constant 0 : index
    %0 = vector.load %arg0[%c0, %c0_0] : memref<64x32xf32, #tpu.memory_space<vmem>>, vector<64x32xf32>
    %c0_1 = arith.constant 0 : index
    %c0_2 = arith.constant 0 : index
    %1 = vector.load %arg1[%c0_1, %c0_2] : memref<32x128xf32, #tpu.memory_space<vmem>>, vector<32x128xf32>
    %c0_3 = arith.constant 0 : index
    %c0_4 = arith.constant 0 : index
    %2 = vector.load %arg2[%c0_3, %c0_4] : memref<32x128xf32, #tpu.memory_space<vmem>>, vector<32x128xf32>
    %c0_5 = arith.constant 0 : index
    %c0_6 = arith.constant 0 : index
    %3 = vector.load %arg3[%c0_5, %c0_6] : memref<1x128xf32, #tpu.memory_space<vmem>>, vector<1x128xf32>
    %cst = arith.constant dense<0.000000e+00> : vector<64x128xf32>
    %4 = tpu.matmul %0, %1, %cst {dimension_numbers = #tpu.dot_dimension_numbers<[1], [0], [0], [1], [0, 0, 1, 1], [], []>, precision = #tpu.contract_precision<fp32>} : vector<64x32xf32>, vector<32x128xf32>, vector<64x128xf32> -> vector<64x128xf32>
    %5 = vector.broadcast %3 : vector<1x128xf32> to vector<64x128xf32>
    %6 = arith.addf %4, %5 : vector<64x128xf32>
    %c0_7 = arith.constant 0 : index
    %c0_8 = arith.constant 0 : index
    %7 = vector.load %arg10[%c0_7, %c0_8] : memref<64x128xf32, #tpu.memory_space<vmem>>, vector<64x128xf32>
    tpu.vector_store %arg10[%c0_7, %c0_8], %6 {strides = array<i32>} : memref<64x128xf32, #tpu.memory_space<vmem>>, vector<64x128xf32>,
    %cst_9 = arith.constant 0.000000e+00 : f32
    %8 = vector.broadcast %cst_9 : f32 to vector<8x32xf32>
    %cst_10 = arith.constant 0.000000e+00 : f32
    %9 = vector.broadcast %cst_10 : f32 to vector<8x32xf32>
    %c0_11 = arith.constant 0 : index
    %c0_12 = arith.constant 0 : index
    %10 = vector.load %arg10[%c0_11, %c0_12] : memref<64x128xf32, #tpu.memory_space<vmem>>, vector<8x128xf32>
    %cst_13 = arith.constant dense<0.000000e+00> : vector<8x128xf32>
    %11 = tpu.matmul %8, %2, %cst_13 {dimension_numbers = #tpu.dot_dimension_numbers<[1], [0], [0], [1], [0, 0, 1, 1], [], []>, precision = #tpu.contract_precision<fp32>} : vector<8x32xf32>, vector<32x128xf32>, vector<8x128xf32> -> vector<8x128xf32>
    %12 = arith.addf %10, %11 : vector<8x128xf32>
    %cst_14 = arith.constant 5.000000e-01 : f32
    %13 = vector.broadcast %cst_14 : f32 to vector<8x128xf32>
    %14 = arith.mulf %13, %12 : vector<8x128xf32>
    %15 = math.tanh %14 : vector<8x128xf32>
    %cst_15 = arith.constant 5.000000e-01 : f32
    %16 = vector.broadcast %cst_15 : f32 to vector<8x128xf32>
    %17 = arith.mulf %16, %15 : vector<8x128xf32>
    %cst_16 = arith.constant 5.000000e-01 : f32
    %18 = vector.broadcast %cst_16 : f32 to vector<8x128xf32>
    %19 = arith.addf %18, %17 : vector<8x128xf32>
    %20 = math.tanh %12 : vector<8x128xf32>
    %21 = vector.extract_strided_slice %19 {offsets = [0, 0], sizes = [8, 32], strides = [1, 1]} : vector<8x128xf32> to vector<8x32xf32>
    %22 = vector.extract_strided_slice %19 {offsets = [0, 32], sizes = [8, 32], strides = [1, 1]} : vector<8x128xf32> to vector<8x32xf32>
    %23 = vector.extract_strided_slice %20 {offsets = [0, 64], sizes = [8, 32], strides = [1, 1]} : vector<8x128xf32> to vector<8x32xf32>
    %24 = vector.extract_strided_slice %19 {offsets = [0, 96], sizes = [8, 32], strides = [1, 1]} : vector<8x128xf32> to vector<8x32xf32>
    %25 = arith.mulf %22, %9 : vector<8x32xf32>
    %26 = arith.mulf %21, %23 : vector<8x32xf32>
    %27 = arith.addf %25, %26 : vector<8x32xf32>
    %28 = math.tanh %27 : vector<8x32xf32>
    %29 = arith.mulf %24, %28 : vector<8x32xf32>
    %c0_17 = arith.constant 0 : index
    %c0_18 = arith.constant 0 : index
    %30 = vector.load %arg11[%c0_17, %c0_18] : memref<64x32xf32, #tpu.memory_space<vmem>>, vector<8x32xf32>
    tpu.vector_store %arg11[%c0_17, %c0_18], %29 {strides = array<i32>} : memref<64x32xf32, #tpu.memory_space<vmem>>, vector<8x32xf32>,
    %c8 = arith.constant 8 : index
    %c0_19 = arith.constant 0 : index
    %31 = vector.load %arg10[%c8, %c0_19] : memref<64x128xf32, #tpu.memory_space<vmem>>, vector<8x128xf32>
    %cst_20 = arith.constant dense<0.000000e+00> : vector<8x128xf32>
    %32 = tpu.matmul %29, %2, %cst_20 {dimension_numbers = #tpu.dot_dimension_numbers<[1], [0], [0], [1], [0, 0, 1, 1], [], []>, precision = #tpu.contract_precision<fp32>} : vector<8x32xf32>, vector<32x128xf32>, vector<8x128xf32> -> vector<8x128xf32>
    %33 = arith.addf %31, %32 : vector<8x128xf32>
    %cst_21 = arith.constant 5.000000e-01 : f32
    %34 = vector.broadcast %cst_21 : f32 to vector<8x128xf32>
    %35 = arith.mulf %34, %33 : vector<8x128xf32>
    %36 = math.tanh %35 : vector<8x128xf32>
    %cst_22 = arith.constant 5.000000e-01 : f32
    %37 = vector.broadcast %cst_22 : f32 to vector<8x128xf32>
    %38 = arith.mulf %37, %36 : vector<8x128xf32>
    %cst_23 = arith.constant 5.000000e-01 : f32
    %39 = vector.broadcast %cst_23 : f32 to vector<8x128xf32>
    %40 = arith.addf %39, %38 : vector<8x128xf32>
    %41 = math.tanh %33 : vector<8x128xf32>
    %42 = vector.extract_strided_slice %40 {offsets = [0, 0], sizes = [8, 32], strides = [1, 1]} : vector<8x128xf32> to vector<8x32xf32>
    %43 = vector.extract_strided_slice %40 {offsets = [0, 32], sizes = [8, 32], strides = [1, 1]} : vector<8x128xf32> to vector<8x32xf32>
    %44 = vector.extract_strided_slice %41 {offsets = [0, 64], sizes = [8, 32], strides = [1, 1]} : vector<8x128xf32> to vector<8x32xf32>
    %45 = vector.extract_strided_slice %40 {offsets = [0, 96], sizes = [8, 32], strides = [1, 1]} : vector<8x128xf32> to vector<8x32xf32>
    %46 = arith.mulf %43, %27 : vector<8x32xf32>
    %47 = arith.mulf %42, %44 : vector<8x32xf32>
    %48 = arith.addf %46, %47 : vector<8x32xf32>
    %49 = math.tanh %48 : vector<8x32xf32>
    %50 = arith.mulf %45, %49 : vector<8x32xf32>
    %c8_24 = arith.constant 8 : index
    %c0_25 = arith.constant 0 : index
    %51 = vector.load %arg11[%c8_24, %c0_25] : memref<64x32xf32, #tpu.memory_space<vmem>>, vector<8x32xf32>
    tpu.vector_store %arg11[%c8_24, %c0_25], %50 {strides = array<i32>} : memref<64x32xf32, #tpu.memory_space<vmem>>, vector<8x32xf32>,
    %c16 = arith.constant 16 : index
    %c0_26 = arith.constant 0 : index
    %52 = vector.load %arg10[%c16, %c0_26] : memref<64x128xf32, #tpu.memory_space<vmem>>, vector<8x128xf32>
    %cst_27 = arith.constant dense<0.000000e+00> : vector<8x128xf32>
    %53 = tpu.matmul %50, %2, %cst_27 {dimension_numbers = #tpu.dot_dimension_numbers<[1], [0], [0], [1], [0, 0, 1, 1], [], []>, precision = #tpu.contract_precision<fp32>} : vector<8x32xf32>, vector<32x128xf32>, vector<8x128xf32> -> vector<8x128xf32>
    %54 = arith.addf %52, %53 : vector<8x128xf32>
    %cst_28 = arith.constant 5.000000e-01 : f32
    %55 = vector.broadcast %cst_28 : f32 to vector<8x128xf32>
    %56 = arith.mulf %55, %54 : vector<8x128xf32>
    %57 = math.tanh %56 : vector<8x128xf32>
    %cst_29 = arith.constant 5.000000e-01 : f32
    %58 = vector.broadcast %cst_29 : f32 to vector<8x128xf32>
    %59 = arith.mulf %58, %57 : vector<8x128xf32>
    %cst_30 = arith.constant 5.000000e-01 : f32
    %60 = vector.broadcast %cst_30 : f32 to vector<8x128xf32>
    %61 = arith.addf %60, %59 : vector<8x128xf32>
    %62 = math.tanh %54 : vector<8x128xf32>
    %63 = vector.extract_strided_slice %61 {offsets = [0, 0], sizes = [8, 32], strides = [1, 1]} : vector<8x128xf32> to vector<8x32xf32>
    %64 = vector.extract_strided_slice %61 {offsets = [0, 32], sizes = [8, 32], strides = [1, 1]} : vector<8x128xf32> to vector<8x32xf32>
    %65 = vector.extract_strided_slice %62 {offsets = [0, 64], sizes = [8, 32], strides = [1, 1]} : vector<8x128xf32> to vector<8x32xf32>
    %66 = vector.extract_strided_slice %61 {offsets = [0, 96], sizes = [8, 32], strides = [1, 1]} : vector<8x128xf32> to vector<8x32xf32>
    %67 = arith.mulf %64, %48 : vector<8x32xf32>
    %68 = arith.mulf %63, %65 : vector<8x32xf32>
    %69 = arith.addf %67, %68 : vector<8x32xf32>
    %70 = math.tanh %69 : vector<8x32xf32>
    %71 = arith.mulf %66, %70 : vector<8x32xf32>
    %c16_31 = arith.constant 16 : index
    %c0_32 = arith.constant 0 : index
    %72 = vector.load %arg11[%c16_31, %c0_32] : memref<64x32xf32, #tpu.memory_space<vmem>>, vector<8x32xf32>
    tpu.vector_store %arg11[%c16_31, %c0_32], %71 {strides = array<i32>} : memref<64x32xf32, #tpu.memory_space<vmem>>, vector<8x32xf32>,
    %c24 = arith.constant 24 : index
    %c0_33 = arith.constant 0 : index
    %73 = vector.load %arg10[%c24, %c0_33] : memref<64x128xf32, #tpu.memory_space<vmem>>, vector<8x128xf32>
    %cst_34 = arith.constant dense<0.000000e+00> : vector<8x128xf32>
    %74 = tpu.matmul %71, %2, %cst_34 {dimension_numbers = #tpu.dot_dimension_numbers<[1], [0], [0], [1], [0, 0, 1, 1], [], []>, precision = #tpu.contract_precision<fp32>} : vector<8x32xf32>, vector<32x128xf32>, vector<8x128xf32> -> vector<8x128xf32>
    %75 = arith.addf %73, %74 : vector<8x128xf32>
    %cst_35 = arith.constant 5.000000e-01 : f32
    %76 = vector.broadcast %cst_35 : f32 to vector<8x128xf32>
    %77 = arith.mulf %76, %75 : vector<8x128xf32>
    %78 = math.tanh %77 : vector<8x128xf32>
    %cst_36 = arith.constant 5.000000e-01 : f32
    %79 = vector.broadcast %cst_36 : f32 to vector<8x128xf32>
    %80 = arith.mulf %79, %78 : vector<8x128xf32>
    %cst_37 = arith.constant 5.000000e-01 : f32
    %81 = vector.broadcast %cst_37 : f32 to vector<8x128xf32>
    %82 = arith.addf %81, %80 : vector<8x128xf32>
    %83 = math.tanh %75 : vector<8x128xf32>
    %84 = vector.extract_strided_slice %82 {offsets = [0, 0], sizes = [8, 32], strides = [1, 1]} : vector<8x128xf32> to vector<8x32xf32>
    %85 = vector.extract_strided_slice %82 {offsets = [0, 32], sizes = [8, 32], strides = [1, 1]} : vector<8x128xf32> to vector<8x32xf32>
    %86 = vector.extract_strided_slice %83 {offsets = [0, 64], sizes = [8, 32], strides = [1, 1]} : vector<8x128xf32> to vector<8x32xf32>
    %87 = vector.extract_strided_slice %82 {offsets = [0, 96], sizes = [8, 32], strides = [1, 1]} : vector<8x128xf32> to vector<8x32xf32>
    %88 = arith.mulf %85, %69 : vector<8x32xf32>
    %89 = arith.mulf %84, %86 : vector<8x32xf32>
    %90 = arith.addf %88, %89 : vector<8x32xf32>
    %91 = math.tanh %90 : vector<8x32xf32>
    %92 = arith.mulf %87, %91 : vector<8x32xf32>
    %c24_38 = arith.constant 24 : index
    %c0_39 = arith.constant 0 : index
    %93 = vector.load %arg11[%c24_38, %c0_39] : memref<64x32xf32, #tpu.memory_space<vmem>>, vector<8x32xf32>
    tpu.vector_store %arg11[%c24_38, %c0_39], %92 {strides = array<i32>} : memref<64x32xf32, #tpu.memory_space<vmem>>, vector<8x32xf32>,
    %c32 = arith.constant 32 : index
    %c0_40 = arith.constant 0 : index
    %94 = vector.load %arg10[%c32, %c0_40] : memref<64x128xf32, #tpu.memory_space<vmem>>, vector<8x128xf32>
    %cst_41 = arith.constant dense<0.000000e+00> : vector<8x128xf32>
    %95 = tpu.matmul %92, %2, %cst_41 {dimension_numbers = #tpu.dot_dimension_numbers<[1], [0], [0], [1], [0, 0, 1, 1], [], []>, precision = #tpu.contract_precision<fp32>} : vector<8x32xf32>, vector<32x128xf32>, vector<8x128xf32> -> vector<8x128xf32>
    %96 = arith.addf %94, %95 : vector<8x128xf32>
    %cst_42 = arith.constant 5.000000e-01 : f32
    %97 = vector.broadcast %cst_42 : f32 to vector<8x128xf32>
    %98 = arith.mulf %97, %96 : vector<8x128xf32>
    %99 = math.tanh %98 : vector<8x128xf32>
    %cst_43 = arith.constant 5.000000e-01 : f32
    %100 = vector.broadcast %cst_43 : f32 to vector<8x128xf32>
    %101 = arith.mulf %100, %99 : vector<8x128xf32>
    %cst_44 = arith.constant 5.000000e-01 : f32
    %102 = vector.broadcast %cst_44 : f32 to vector<8x128xf32>
    %103 = arith.addf %102, %101 : vector<8x128xf32>
    %104 = math.tanh %96 : vector<8x128xf32>
    %105 = vector.extract_strided_slice %103 {offsets = [0, 0], sizes = [8, 32], strides = [1, 1]} : vector<8x128xf32> to vector<8x32xf32>
    %106 = vector.extract_strided_slice %103 {offsets = [0, 32], sizes = [8, 32], strides = [1, 1]} : vector<8x128xf32> to vector<8x32xf32>
    %107 = vector.extract_strided_slice %104 {offsets = [0, 64], sizes = [8, 32], strides = [1, 1]} : vector<8x128xf32> to vector<8x32xf32>
    %108 = vector.extract_strided_slice %103 {offsets = [0, 96], sizes = [8, 32], strides = [1, 1]} : vector<8x128xf32> to vector<8x32xf32>
    %109 = arith.mulf %106, %90 : vector<8x32xf32>
    %110 = arith.mulf %105, %107 : vector<8x32xf32>
    %111 = arith.addf %109, %110 : vector<8x32xf32>
    %112 = math.tanh %111 : vector<8x32xf32>
    %113 = arith.mulf %108, %112 : vector<8x32xf32>
    %c32_45 = arith.constant 32 : index
    %c0_46 = arith.constant 0 : index
    %114 = vector.load %arg11[%c32_45, %c0_46] : memref<64x32xf32, #tpu.memory_space<vmem>>, vector<8x32xf32>
    tpu.vector_store %arg11[%c32_45, %c0_46], %113 {strides = array<i32>} : memref<64x32xf32, #tpu.memory_space<vmem>>, vector<8x32xf32>,
    %c40 = arith.constant 40 : index
    %c0_47 = arith.constant 0 : index
    %115 = vector.load %arg10[%c40, %c0_47] : memref<64x128xf32, #tpu.memory_space<vmem>>, vector<8x128xf32>
    %cst_48 = arith.constant dense<0.000000e+00> : vector<8x128xf32>
    %116 = tpu.matmul %113, %2, %cst_48 {dimension_numbers = #tpu.dot_dimension_numbers<[1], [0], [0], [1], [0, 0, 1, 1], [], []>, precision = #tpu.contract_precision<fp32>} : vector<8x32xf32>, vector<32x128xf32>, vector<8x128xf32> -> vector<8x128xf32>
    %117 = arith.addf %115, %116 : vector<8x128xf32>
    %cst_49 = arith.constant 5.000000e-01 : f32
    %118 = vector.broadcast %cst_49 : f32 to vector<8x128xf32>
    %119 = arith.mulf %118, %117 : vector<8x128xf32>
    %120 = math.tanh %119 : vector<8x128xf32>
    %cst_50 = arith.constant 5.000000e-01 : f32
    %121 = vector.broadcast %cst_50 : f32 to vector<8x128xf32>
    %122 = arith.mulf %121, %120 : vector<8x128xf32>
    %cst_51 = arith.constant 5.000000e-01 : f32
    %123 = vector.broadcast %cst_51 : f32 to vector<8x128xf32>
    %124 = arith.addf %123, %122 : vector<8x128xf32>
    %125 = math.tanh %117 : vector<8x128xf32>
    %126 = vector.extract_strided_slice %124 {offsets = [0, 0], sizes = [8, 32], strides = [1, 1]} : vector<8x128xf32> to vector<8x32xf32>
    %127 = vector.extract_strided_slice %124 {offsets = [0, 32], sizes = [8, 32], strides = [1, 1]} : vector<8x128xf32> to vector<8x32xf32>
    %128 = vector.extract_strided_slice %125 {offsets = [0, 64], sizes = [8, 32], strides = [1, 1]} : vector<8x128xf32> to vector<8x32xf32>
    %129 = vector.extract_strided_slice %124 {offsets = [0, 96], sizes = [8, 32], strides = [1, 1]} : vector<8x128xf32> to vector<8x32xf32>
    %130 = arith.mulf %127, %111 : vector<8x32xf32>
    %131 = arith.mulf %126, %128 : vector<8x32xf32>
    %132 = arith.addf %130, %131 : vector<8x32xf32>
    %133 = math.tanh %132 : vector<8x32xf32>
    %134 = arith.mulf %129, %133 : vector<8x32xf32>
    %c40_52 = arith.constant 40 : index
    %c0_53 = arith.constant 0 : index
    %135 = vector.load %arg11[%c40_52, %c0_53] : memref<64x32xf32, #tpu.memory_space<vmem>>, vector<8x32xf32>
    tpu.vector_store %arg11[%c40_52, %c0_53], %134 {strides = array<i32>} : memref<64x32xf32, #tpu.memory_space<vmem>>, vector<8x32xf32>,
    %c48 = arith.constant 48 : index
    %c0_54 = arith.constant 0 : index
    %136 = vector.load %arg10[%c48, %c0_54] : memref<64x128xf32, #tpu.memory_space<vmem>>, vector<8x128xf32>
    %cst_55 = arith.constant dense<0.000000e+00> : vector<8x128xf32>
    %137 = tpu.matmul %134, %2, %cst_55 {dimension_numbers = #tpu.dot_dimension_numbers<[1], [0], [0], [1], [0, 0, 1, 1], [], []>, precision = #tpu.contract_precision<fp32>} : vector<8x32xf32>, vector<32x128xf32>, vector<8x128xf32> -> vector<8x128xf32>
    %138 = arith.addf %136, %137 : vector<8x128xf32>
    %cst_56 = arith.constant 5.000000e-01 : f32
    %139 = vector.broadcast %cst_56 : f32 to vector<8x128xf32>
    %140 = arith.mulf %139, %138 : vector<8x128xf32>
    %141 = math.tanh %140 : vector<8x128xf32>
    %cst_57 = arith.constant 5.000000e-01 : f32
    %142 = vector.broadcast %cst_57 : f32 to vector<8x128xf32>
    %143 = arith.mulf %142, %141 : vector<8x128xf32>
    %cst_58 = arith.constant 5.000000e-01 : f32
    %144 = vector.broadcast %cst_58 : f32 to vector<8x128xf32>
    %145 = arith.addf %144, %143 : vector<8x128xf32>
    %146 = math.tanh %138 : vector<8x128xf32>
    %147 = vector.extract_strided_slice %145 {offsets = [0, 0], sizes = [8, 32], strides = [1, 1]} : vector<8x128xf32> to vector<8x32xf32>
    %148 = vector.extract_strided_slice %145 {offsets = [0, 32], sizes = [8, 32], strides = [1, 1]} : vector<8x128xf32> to vector<8x32xf32>
    %149 = vector.extract_strided_slice %146 {offsets = [0, 64], sizes = [8, 32], strides = [1, 1]} : vector<8x128xf32> to vector<8x32xf32>
    %150 = vector.extract_strided_slice %145 {offsets = [0, 96], sizes = [8, 32], strides = [1, 1]} : vector<8x128xf32> to vector<8x32xf32>
    %151 = arith.mulf %148, %132 : vector<8x32xf32>
    %152 = arith.mulf %147, %149 : vector<8x32xf32>
    %153 = arith.addf %151, %152 : vector<8x32xf32>
    %154 = math.tanh %153 : vector<8x32xf32>
    %155 = arith.mulf %150, %154 : vector<8x32xf32>
    %c48_59 = arith.constant 48 : index
    %c0_60 = arith.constant 0 : index
    %156 = vector.load %arg11[%c48_59, %c0_60] : memref<64x32xf32, #tpu.memory_space<vmem>>, vector<8x32xf32>
    tpu.vector_store %arg11[%c48_59, %c0_60], %155 {strides = array<i32>} : memref<64x32xf32, #tpu.memory_space<vmem>>, vector<8x32xf32>,
    %c56 = arith.constant 56 : index
    %c0_61 = arith.constant 0 : index
    %157 = vector.load %arg10[%c56, %c0_61] : memref<64x128xf32, #tpu.memory_space<vmem>>, vector<8x128xf32>
    %cst_62 = arith.constant dense<0.000000e+00> : vector<8x128xf32>
    %158 = tpu.matmul %155, %2, %cst_62 {dimension_numbers = #tpu.dot_dimension_numbers<[1], [0], [0], [1], [0, 0, 1, 1], [], []>, precision = #tpu.contract_precision<fp32>} : vector<8x32xf32>, vector<32x128xf32>, vector<8x128xf32> -> vector<8x128xf32>
    %159 = arith.addf %157, %158 : vector<8x128xf32>
    %cst_63 = arith.constant 5.000000e-01 : f32
    %160 = vector.broadcast %cst_63 : f32 to vector<8x128xf32>
    %161 = arith.mulf %160, %159 : vector<8x128xf32>
    %162 = math.tanh %161 : vector<8x128xf32>
    %cst_64 = arith.constant 5.000000e-01 : f32
    %163 = vector.broadcast %cst_64 : f32 to vector<8x128xf32>
    %164 = arith.mulf %163, %162 : vector<8x128xf32>
    %cst_65 = arith.constant 5.000000e-01 : f32
    %165 = vector.broadcast %cst_65 : f32 to vector<8x128xf32>
    %166 = arith.addf %165, %164 : vector<8x128xf32>
    %167 = math.tanh %159 : vector<8x128xf32>
    %168 = vector.extract_strided_slice %166 {offsets = [0, 0], sizes = [8, 32], strides = [1, 1]} : vector<8x128xf32> to vector<8x32xf32>
    %169 = vector.extract_strided_slice %166 {offsets = [0, 32], sizes = [8, 32], strides = [1, 1]} : vector<8x128xf32> to vector<8x32xf32>
    %170 = vector.extract_strided_slice %167 {offsets = [0, 64], sizes = [8, 32], strides = [1, 1]} : vector<8x128xf32> to vector<8x32xf32>
    %171 = vector.extract_strided_slice %166 {offsets = [0, 96], sizes = [8, 32], strides = [1, 1]} : vector<8x128xf32> to vector<8x32xf32>
    %172 = arith.mulf %169, %153 : vector<8x32xf32>
    %173 = arith.mulf %168, %170 : vector<8x32xf32>
    %174 = arith.addf %172, %173 : vector<8x32xf32>
    %175 = math.tanh %174 : vector<8x32xf32>
    %176 = arith.mulf %171, %175 : vector<8x32xf32>
    %c56_66 = arith.constant 56 : index
    %c0_67 = arith.constant 0 : index
    %177 = vector.load %arg11[%c56_66, %c0_67] : memref<64x32xf32, #tpu.memory_space<vmem>>, vector<8x32xf32>
    tpu.vector_store %arg11[%c56_66, %c0_67], %176 {strides = array<i32>} : memref<64x32xf32, #tpu.memory_space<vmem>>, vector<8x32xf32>,
    %c0_68 = arith.constant 0 : index
    %c0_69 = arith.constant 0 : index
    %178 = vector.load %arg11[%c0_68, %c0_69] : memref<64x32xf32, #tpu.memory_space<vmem>>, vector<64x32xf32>
    %c0_70 = arith.constant 0 : index
    %c0_71 = arith.constant 0 : index
    %c0_72 = arith.constant 0 : index
    %179 = vector.load %arg4[%c0_70, %c0_71, %c0_72] : memref<3x32x128xf32, #tpu.memory_space<vmem>>, vector<1x32x128xf32>
    %180 = vector.shape_cast %179 : vector<1x32x128xf32> to vector<32x128xf32>
    %c0_73 = arith.constant 0 : index
    %c0_74 = arith.constant 0 : index
    %c0_75 = arith.constant 0 : index
    %181 = vector.load %arg5[%c0_73, %c0_74, %c0_75] : memref<3x32x128xf32, #tpu.memory_space<vmem>>, vector<1x32x128xf32>
    %182 = vector.shape_cast %181 : vector<1x32x128xf32> to vector<32x128xf32>
    %c0_76 = arith.constant 0 : index
    %c0_77 = arith.constant 0 : index
    %c0_78 = arith.constant 0 : index
    %183 = vector.load %arg6[%c0_76, %c0_77, %c0_78] : memref<3x1x128xf32, #tpu.memory_space<vmem>>, vector<1x1x128xf32>
    %184 = vector.shape_cast %183 : vector<1x1x128xf32> to vector<1x128xf32>
    %cst_79 = arith.constant dense<0.000000e+00> : vector<64x128xf32>
    %185 = tpu.matmul %178, %180, %cst_79 {dimension_numbers = #tpu.dot_dimension_numbers<[1], [0], [0], [1], [0, 0, 1, 1], [], []>, precision = #tpu.contract_precision<fp32>} : vector<64x32xf32>, vector<32x128xf32>, vector<64x128xf32> -> vector<64x128xf32>
    %186 = vector.broadcast %184 : vector<1x128xf32> to vector<64x128xf32>
    %187 = arith.addf %185, %186 : vector<64x128xf32>
    %c0_80 = arith.constant 0 : index
    %c0_81 = arith.constant 0 : index
    %188 = vector.load %arg10[%c0_80, %c0_81] : memref<64x128xf32, #tpu.memory_space<vmem>>, vector<64x128xf32>
    tpu.vector_store %arg10[%c0_80, %c0_81], %187 {strides = array<i32>} : memref<64x128xf32, #tpu.memory_space<vmem>>, vector<64x128xf32>,
    %cst_82 = arith.constant 0.000000e+00 : f32
    %189 = vector.broadcast %cst_82 : f32 to vector<8x32xf32>
    %cst_83 = arith.constant 0.000000e+00 : f32
    %190 = vector.broadcast %cst_83 : f32 to vector<8x32xf32>
    %c0_84 = arith.constant 0 : index
    %c0_85 = arith.constant 0 : index
    %191 = vector.load %arg10[%c0_84, %c0_85] : memref<64x128xf32, #tpu.memory_space<vmem>>, vector<8x128xf32>
    %cst_86 = arith.constant dense<0.000000e+00> : vector<8x128xf32>
    %192 = tpu.matmul %189, %182, %cst_86 {dimension_numbers = #tpu.dot_dimension_numbers<[1], [0], [0], [1], [0, 0, 1, 1], [], []>, precision = #tpu.contract_precision<fp32>} : vector<8x32xf32>, vector<32x128xf32>, vector<8x128xf32> -> vector<8x128xf32>
    %193 = arith.addf %191, %192 : vector<8x128xf32>
    %cst_87 = arith.constant 5.000000e-01 : f32
    %194 = vector.broadcast %cst_87 : f32 to vector<8x128xf32>
    %195 = arith.mulf %194, %193 : vector<8x128xf32>
    %196 = math.tanh %195 : vector<8x128xf32>
    %cst_88 = arith.constant 5.000000e-01 : f32
    %197 = vector.broadcast %cst_88 : f32 to vector<8x128xf32>
    %198 = arith.mulf %197, %196 : vector<8x128xf32>
    %cst_89 = arith.constant 5.000000e-01 : f32
    %199 = vector.broadcast %cst_89 : f32 to vector<8x128xf32>
    %200 = arith.addf %199, %198 : vector<8x128xf32>
    %201 = math.tanh %193 : vector<8x128xf32>
    %202 = vector.extract_strided_slice %200 {offsets = [0, 0], sizes = [8, 32], strides = [1, 1]} : vector<8x128xf32> to vector<8x32xf32>
    %203 = vector.extract_strided_slice %200 {offsets = [0, 32], sizes = [8, 32], strides = [1, 1]} : vector<8x128xf32> to vector<8x32xf32>
    %204 = vector.extract_strided_slice %201 {offsets = [0, 64], sizes = [8, 32], strides = [1, 1]} : vector<8x128xf32> to vector<8x32xf32>
    %205 = vector.extract_strided_slice %200 {offsets = [0, 96], sizes = [8, 32], strides = [1, 1]} : vector<8x128xf32> to vector<8x32xf32>
    %206 = arith.mulf %203, %190 : vector<8x32xf32>
    %207 = arith.mulf %202, %204 : vector<8x32xf32>
    %208 = arith.addf %206, %207 : vector<8x32xf32>
    %209 = math.tanh %208 : vector<8x32xf32>
    %210 = arith.mulf %205, %209 : vector<8x32xf32>
    %c0_90 = arith.constant 0 : index
    %c0_91 = arith.constant 0 : index
    %211 = vector.load %arg11[%c0_90, %c0_91] : memref<64x32xf32, #tpu.memory_space<vmem>>, vector<8x32xf32>
    tpu.vector_store %arg11[%c0_90, %c0_91], %210 {strides = array<i32>} : memref<64x32xf32, #tpu.memory_space<vmem>>, vector<8x32xf32>,
    %c8_92 = arith.constant 8 : index
    %c0_93 = arith.constant 0 : index
    %212 = vector.load %arg10[%c8_92, %c0_93] : memref<64x128xf32, #tpu.memory_space<vmem>>, vector<8x128xf32>
    %cst_94 = arith.constant dense<0.000000e+00> : vector<8x128xf32>
    %213 = tpu.matmul %210, %182, %cst_94 {dimension_numbers = #tpu.dot_dimension_numbers<[1], [0], [0], [1], [0, 0, 1, 1], [], []>, precision = #tpu.contract_precision<fp32>} : vector<8x32xf32>, vector<32x128xf32>, vector<8x128xf32> -> vector<8x128xf32>
    %214 = arith.addf %212, %213 : vector<8x128xf32>
    %cst_95 = arith.constant 5.000000e-01 : f32
    %215 = vector.broadcast %cst_95 : f32 to vector<8x128xf32>
    %216 = arith.mulf %215, %214 : vector<8x128xf32>
    %217 = math.tanh %216 : vector<8x128xf32>
    %cst_96 = arith.constant 5.000000e-01 : f32
    %218 = vector.broadcast %cst_96 : f32 to vector<8x128xf32>
    %219 = arith.mulf %218, %217 : vector<8x128xf32>
    %cst_97 = arith.constant 5.000000e-01 : f32
    %220 = vector.broadcast %cst_97 : f32 to vector<8x128xf32>
    %221 = arith.addf %220, %219 : vector<8x128xf32>
    %222 = math.tanh %214 : vector<8x128xf32>
    %223 = vector.extract_strided_slice %221 {offsets = [0, 0], sizes = [8, 32], strides = [1, 1]} : vector<8x128xf32> to vector<8x32xf32>
    %224 = vector.extract_strided_slice %221 {offsets = [0, 32], sizes = [8, 32], strides = [1, 1]} : vector<8x128xf32> to vector<8x32xf32>
    %225 = vector.extract_strided_slice %222 {offsets = [0, 64], sizes = [8, 32], strides = [1, 1]} : vector<8x128xf32> to vector<8x32xf32>
    %226 = vector.extract_strided_slice %221 {offsets = [0, 96], sizes = [8, 32], strides = [1, 1]} : vector<8x128xf32> to vector<8x32xf32>
    %227 = arith.mulf %224, %208 : vector<8x32xf32>
    %228 = arith.mulf %223, %225 : vector<8x32xf32>
    %229 = arith.addf %227, %228 : vector<8x32xf32>
    %230 = math.tanh %229 : vector<8x32xf32>
    %231 = arith.mulf %226, %230 : vector<8x32xf32>
    %c8_98 = arith.constant 8 : index
    %c0_99 = arith.constant 0 : index
    %232 = vector.load %arg11[%c8_98, %c0_99] : memref<64x32xf32, #tpu.memory_space<vmem>>, vector<8x32xf32>
    tpu.vector_store %arg11[%c8_98, %c0_99], %231 {strides = array<i32>} : memref<64x32xf32, #tpu.memory_space<vmem>>, vector<8x32xf32>,
    %c16_100 = arith.constant 16 : index
    %c0_101 = arith.constant 0 : index
    %233 = vector.load %arg10[%c16_100, %c0_101] : memref<64x128xf32, #tpu.memory_space<vmem>>, vector<8x128xf32>
    %cst_102 = arith.constant dense<0.000000e+00> : vector<8x128xf32>
    %234 = tpu.matmul %231, %182, %cst_102 {dimension_numbers = #tpu.dot_dimension_numbers<[1], [0], [0], [1], [0, 0, 1, 1], [], []>, precision = #tpu.contract_precision<fp32>} : vector<8x32xf32>, vector<32x128xf32>, vector<8x128xf32> -> vector<8x128xf32>
    %235 = arith.addf %233, %234 : vector<8x128xf32>
    %cst_103 = arith.constant 5.000000e-01 : f32
    %236 = vector.broadcast %cst_103 : f32 to vector<8x128xf32>
    %237 = arith.mulf %236, %235 : vector<8x128xf32>
    %238 = math.tanh %237 : vector<8x128xf32>
    %cst_104 = arith.constant 5.000000e-01 : f32
    %239 = vector.broadcast %cst_104 : f32 to vector<8x128xf32>
    %240 = arith.mulf %239, %238 : vector<8x128xf32>
    %cst_105 = arith.constant 5.000000e-01 : f32
    %241 = vector.broadcast %cst_105 : f32 to vector<8x128xf32>
    %242 = arith.addf %241, %240 : vector<8x128xf32>
    %243 = math.tanh %235 : vector<8x128xf32>
    %244 = vector.extract_strided_slice %242 {offsets = [0, 0], sizes = [8, 32], strides = [1, 1]} : vector<8x128xf32> to vector<8x32xf32>
    %245 = vector.extract_strided_slice %242 {offsets = [0, 32], sizes = [8, 32], strides = [1, 1]} : vector<8x128xf32> to vector<8x32xf32>
    %246 = vector.extract_strided_slice %243 {offsets = [0, 64], sizes = [8, 32], strides = [1, 1]} : vector<8x128xf32> to vector<8x32xf32>
    %247 = vector.extract_strided_slice %242 {offsets = [0, 96], sizes = [8, 32], strides = [1, 1]} : vector<8x128xf32> to vector<8x32xf32>
    %248 = arith.mulf %245, %229 : vector<8x32xf32>
    %249 = arith.mulf %244, %246 : vector<8x32xf32>
    %250 = arith.addf %248, %249 : vector<8x32xf32>
    %251 = math.tanh %250 : vector<8x32xf32>
    %252 = arith.mulf %247, %251 : vector<8x32xf32>
    %c16_106 = arith.constant 16 : index
    %c0_107 = arith.constant 0 : index
    %253 = vector.load %arg11[%c16_106, %c0_107] : memref<64x32xf32, #tpu.memory_space<vmem>>, vector<8x32xf32>
    tpu.vector_store %arg11[%c16_106, %c0_107], %252 {strides = array<i32>} : memref<64x32xf32, #tpu.memory_space<vmem>>, vector<8x32xf32>,
    %c24_108 = arith.constant 24 : index
    %c0_109 = arith.constant 0 : index
    %254 = vector.load %arg10[%c24_108, %c0_109] : memref<64x128xf32, #tpu.memory_space<vmem>>, vector<8x128xf32>
    %cst_110 = arith.constant dense<0.000000e+00> : vector<8x128xf32>
    %255 = tpu.matmul %252, %182, %cst_110 {dimension_numbers = #tpu.dot_dimension_numbers<[1], [0], [0], [1], [0, 0, 1, 1], [], []>, precision = #tpu.contract_precision<fp32>} : vector<8x32xf32>, vector<32x128xf32>, vector<8x128xf32> -> vector<8x128xf32>
    %256 = arith.addf %254, %255 : vector<8x128xf32>
    %cst_111 = arith.constant 5.000000e-01 : f32
    %257 = vector.broadcast %cst_111 : f32 to vector<8x128xf32>
    %258 = arith.mulf %257, %256 : vector<8x128xf32>
    %259 = math.tanh %258 : vector<8x128xf32>
    %cst_112 = arith.constant 5.000000e-01 : f32
    %260 = vector.broadcast %cst_112 : f32 to vector<8x128xf32>
    %261 = arith.mulf %260, %259 : vector<8x128xf32>
    %cst_113 = arith.constant 5.000000e-01 : f32
    %262 = vector.broadcast %cst_113 : f32 to vector<8x128xf32>
    %263 = arith.addf %262, %261 : vector<8x128xf32>
    %264 = math.tanh %256 : vector<8x128xf32>
    %265 = vector.extract_strided_slice %263 {offsets = [0, 0], sizes = [8, 32], strides = [1, 1]} : vector<8x128xf32> to vector<8x32xf32>
    %266 = vector.extract_strided_slice %263 {offsets = [0, 32], sizes = [8, 32], strides = [1, 1]} : vector<8x128xf32> to vector<8x32xf32>
    %267 = vector.extract_strided_slice %264 {offsets = [0, 64], sizes = [8, 32], strides = [1, 1]} : vector<8x128xf32> to vector<8x32xf32>
    %268 = vector.extract_strided_slice %263 {offsets = [0, 96], sizes = [8, 32], strides = [1, 1]} : vector<8x128xf32> to vector<8x32xf32>
    %269 = arith.mulf %266, %250 : vector<8x32xf32>
    %270 = arith.mulf %265, %267 : vector<8x32xf32>
    %271 = arith.addf %269, %270 : vector<8x32xf32>
    %272 = math.tanh %271 : vector<8x32xf32>
    %273 = arith.mulf %268, %272 : vector<8x32xf32>
    %c24_114 = arith.constant 24 : index
    %c0_115 = arith.constant 0 : index
    %274 = vector.load %arg11[%c24_114, %c0_115] : memref<64x32xf32, #tpu.memory_space<vmem>>, vector<8x32xf32>
    tpu.vector_store %arg11[%c24_114, %c0_115], %273 {strides = array<i32>} : memref<64x32xf32, #tpu.memory_space<vmem>>, vector<8x32xf32>,
    %c32_116 = arith.constant 32 : index
    %c0_117 = arith.constant 0 : index
    %275 = vector.load %arg10[%c32_116, %c0_117] : memref<64x128xf32, #tpu.memory_space<vmem>>, vector<8x128xf32>
    %cst_118 = arith.constant dense<0.000000e+00> : vector<8x128xf32>
    %276 = tpu.matmul %273, %182, %cst_118 {dimension_numbers = #tpu.dot_dimension_numbers<[1], [0], [0], [1], [0, 0, 1, 1], [], []>, precision = #tpu.contract_precision<fp32>} : vector<8x32xf32>, vector<32x128xf32>, vector<8x128xf32> -> vector<8x128xf32>
    %277 = arith.addf %275, %276 : vector<8x128xf32>
    %cst_119 = arith.constant 5.000000e-01 : f32
    %278 = vector.broadcast %cst_119 : f32 to vector<8x128xf32>
    %279 = arith.mulf %278, %277 : vector<8x128xf32>
    %280 = math.tanh %279 : vector<8x128xf32>
    %cst_120 = arith.constant 5.000000e-01 : f32
    %281 = vector.broadcast %cst_120 : f32 to vector<8x128xf32>
    %282 = arith.mulf %281, %280 : vector<8x128xf32>
    %cst_121 = arith.constant 5.000000e-01 : f32
    %283 = vector.broadcast %cst_121 : f32 to vector<8x128xf32>
    %284 = arith.addf %283, %282 : vector<8x128xf32>
    %285 = math.tanh %277 : vector<8x128xf32>
    %286 = vector.extract_strided_slice %284 {offsets = [0, 0], sizes = [8, 32], strides = [1, 1]} : vector<8x128xf32> to vector<8x32xf32>
    %287 = vector.extract_strided_slice %284 {offsets = [0, 32], sizes = [8, 32], strides = [1, 1]} : vector<8x128xf32> to vector<8x32xf32>
    %288 = vector.extract_strided_slice %285 {offsets = [0, 64], sizes = [8, 32], strides = [1, 1]} : vector<8x128xf32> to vector<8x32xf32>
    %289 = vector.extract_strided_slice %284 {offsets = [0, 96], sizes = [8, 32], strides = [1, 1]} : vector<8x128xf32> to vector<8x32xf32>
    %290 = arith.mulf %287, %271 : vector<8x32xf32>
    %291 = arith.mulf %286, %288 : vector<8x32xf32>
    %292 = arith.addf %290, %291 : vector<8x32xf32>
    %293 = math.tanh %292 : vector<8x32xf32>
    %294 = arith.mulf %289, %293 : vector<8x32xf32>
    %c32_122 = arith.constant 32 : index
    %c0_123 = arith.constant 0 : index
    %295 = vector.load %arg11[%c32_122, %c0_123] : memref<64x32xf32, #tpu.memory_space<vmem>>, vector<8x32xf32>
    tpu.vector_store %arg11[%c32_122, %c0_123], %294 {strides = array<i32>} : memref<64x32xf32, #tpu.memory_space<vmem>>, vector<8x32xf32>,
    %c40_124 = arith.constant 40 : index
    %c0_125 = arith.constant 0 : index
    %296 = vector.load %arg10[%c40_124, %c0_125] : memref<64x128xf32, #tpu.memory_space<vmem>>, vector<8x128xf32>
    %cst_126 = arith.constant dense<0.000000e+00> : vector<8x128xf32>
    %297 = tpu.matmul %294, %182, %cst_126 {dimension_numbers = #tpu.dot_dimension_numbers<[1], [0], [0], [1], [0, 0, 1, 1], [], []>, precision = #tpu.contract_precision<fp32>} : vector<8x32xf32>, vector<32x128xf32>, vector<8x128xf32> -> vector<8x128xf32>
    %298 = arith.addf %296, %297 : vector<8x128xf32>
    %cst_127 = arith.constant 5.000000e-01 : f32
    %299 = vector.broadcast %cst_127 : f32 to vector<8x128xf32>
    %300 = arith.mulf %299, %298 : vector<8x128xf32>
    %301 = math.tanh %300 : vector<8x128xf32>
    %cst_128 = arith.constant 5.000000e-01 : f32
    %302 = vector.broadcast %cst_128 : f32 to vector<8x128xf32>
    %303 = arith.mulf %302, %301 : vector<8x128xf32>
    %cst_129 = arith.constant 5.000000e-01 : f32
    %304 = vector.broadcast %cst_129 : f32 to vector<8x128xf32>
    %305 = arith.addf %304, %303 : vector<8x128xf32>
    %306 = math.tanh %298 : vector<8x128xf32>
    %307 = vector.extract_strided_slice %305 {offsets = [0, 0], sizes = [8, 32], strides = [1, 1]} : vector<8x128xf32> to vector<8x32xf32>
    %308 = vector.extract_strided_slice %305 {offsets = [0, 32], sizes = [8, 32], strides = [1, 1]} : vector<8x128xf32> to vector<8x32xf32>
    %309 = vector.extract_strided_slice %306 {offsets = [0, 64], sizes = [8, 32], strides = [1, 1]} : vector<8x128xf32> to vector<8x32xf32>
    %310 = vector.extract_strided_slice %305 {offsets = [0, 96], sizes = [8, 32], strides = [1, 1]} : vector<8x128xf32> to vector<8x32xf32>
    %311 = arith.mulf %308, %292 : vector<8x32xf32>
    %312 = arith.mulf %307, %309 : vector<8x32xf32>
    %313 = arith.addf %311, %312 : vector<8x32xf32>
    %314 = math.tanh %313 : vector<8x32xf32>
    %315 = arith.mulf %310, %314 : vector<8x32xf32>
    %c40_130 = arith.constant 40 : index
    %c0_131 = arith.constant 0 : index
    %316 = vector.load %arg11[%c40_130, %c0_131] : memref<64x32xf32, #tpu.memory_space<vmem>>, vector<8x32xf32>
    tpu.vector_store %arg11[%c40_130, %c0_131], %315 {strides = array<i32>} : memref<64x32xf32, #tpu.memory_space<vmem>>, vector<8x32xf32>,
    %c48_132 = arith.constant 48 : index
    %c0_133 = arith.constant 0 : index
    %317 = vector.load %arg10[%c48_132, %c0_133] : memref<64x128xf32, #tpu.memory_space<vmem>>, vector<8x128xf32>
    %cst_134 = arith.constant dense<0.000000e+00> : vector<8x128xf32>
    %318 = tpu.matmul %315, %182, %cst_134 {dimension_numbers = #tpu.dot_dimension_numbers<[1], [0], [0], [1], [0, 0, 1, 1], [], []>, precision = #tpu.contract_precision<fp32>} : vector<8x32xf32>, vector<32x128xf32>, vector<8x128xf32> -> vector<8x128xf32>
    %319 = arith.addf %317, %318 : vector<8x128xf32>
    %cst_135 = arith.constant 5.000000e-01 : f32
    %320 = vector.broadcast %cst_135 : f32 to vector<8x128xf32>
    %321 = arith.mulf %320, %319 : vector<8x128xf32>
    %322 = math.tanh %321 : vector<8x128xf32>
    %cst_136 = arith.constant 5.000000e-01 : f32
    %323 = vector.broadcast %cst_136 : f32 to vector<8x128xf32>
    %324 = arith.mulf %323, %322 : vector<8x128xf32>
    %cst_137 = arith.constant 5.000000e-01 : f32
    %325 = vector.broadcast %cst_137 : f32 to vector<8x128xf32>
    %326 = arith.addf %325, %324 : vector<8x128xf32>
    %327 = math.tanh %319 : vector<8x128xf32>
    %328 = vector.extract_strided_slice %326 {offsets = [0, 0], sizes = [8, 32], strides = [1, 1]} : vector<8x128xf32> to vector<8x32xf32>
    %329 = vector.extract_strided_slice %326 {offsets = [0, 32], sizes = [8, 32], strides = [1, 1]} : vector<8x128xf32> to vector<8x32xf32>
    %330 = vector.extract_strided_slice %327 {offsets = [0, 64], sizes = [8, 32], strides = [1, 1]} : vector<8x128xf32> to vector<8x32xf32>
    %331 = vector.extract_strided_slice %326 {offsets = [0, 96], sizes = [8, 32], strides = [1, 1]} : vector<8x128xf32> to vector<8x32xf32>
    %332 = arith.mulf %329, %313 : vector<8x32xf32>
    %333 = arith.mulf %328, %330 : vector<8x32xf32>
    %334 = arith.addf %332, %333 : vector<8x32xf32>
    %335 = math.tanh %334 : vector<8x32xf32>
    %336 = arith.mulf %331, %335 : vector<8x32xf32>
    %c48_138 = arith.constant 48 : index
    %c0_139 = arith.constant 0 : index
    %337 = vector.load %arg11[%c48_138, %c0_139] : memref<64x32xf32, #tpu.memory_space<vmem>>, vector<8x32xf32>
    tpu.vector_store %arg11[%c48_138, %c0_139], %336 {strides = array<i32>} : memref<64x32xf32, #tpu.memory_space<vmem>>, vector<8x32xf32>,
    %c56_140 = arith.constant 56 : index
    %c0_141 = arith.constant 0 : index
    %338 = vector.load %arg10[%c56_140, %c0_141] : memref<64x128xf32, #tpu.memory_space<vmem>>, vector<8x128xf32>
    %cst_142 = arith.constant dense<0.000000e+00> : vector<8x128xf32>
    %339 = tpu.matmul %336, %182, %cst_142 {dimension_numbers = #tpu.dot_dimension_numbers<[1], [0], [0], [1], [0, 0, 1, 1], [], []>, precision = #tpu.contract_precision<fp32>} : vector<8x32xf32>, vector<32x128xf32>, vector<8x128xf32> -> vector<8x128xf32>
    %340 = arith.addf %338, %339 : vector<8x128xf32>
    %cst_143 = arith.constant 5.000000e-01 : f32
    %341 = vector.broadcast %cst_143 : f32 to vector<8x128xf32>
    %342 = arith.mulf %341, %340 : vector<8x128xf32>
    %343 = math.tanh %342 : vector<8x128xf32>
    %cst_144 = arith.constant 5.000000e-01 : f32
    %344 = vector.broadcast %cst_144 : f32 to vector<8x128xf32>
    %345 = arith.mulf %344, %343 : vector<8x128xf32>
    %cst_145 = arith.constant 5.000000e-01 : f32
    %346 = vector.broadcast %cst_145 : f32 to vector<8x128xf32>
    %347 = arith.addf %346, %345 : vector<8x128xf32>
    %348 = math.tanh %340 : vector<8x128xf32>
    %349 = vector.extract_strided_slice %347 {offsets = [0, 0], sizes = [8, 32], strides = [1, 1]} : vector<8x128xf32> to vector<8x32xf32>
    %350 = vector.extract_strided_slice %347 {offsets = [0, 32], sizes = [8, 32], strides = [1, 1]} : vector<8x128xf32> to vector<8x32xf32>
    %351 = vector.extract_strided_slice %348 {offsets = [0, 64], sizes = [8, 32], strides = [1, 1]} : vector<8x128xf32> to vector<8x32xf32>
    %352 = vector.extract_strided_slice %347 {offsets = [0, 96], sizes = [8, 32], strides = [1, 1]} : vector<8x128xf32> to vector<8x32xf32>
    %353 = arith.mulf %350, %334 : vector<8x32xf32>
    %354 = arith.mulf %349, %351 : vector<8x32xf32>
    %355 = arith.addf %353, %354 : vector<8x32xf32>
    %356 = math.tanh %355 : vector<8x32xf32>
    %357 = arith.mulf %352, %356 : vector<8x32xf32>
    %c56_146 = arith.constant 56 : index
    %c0_147 = arith.constant 0 : index
    %358 = vector.load %arg11[%c56_146, %c0_147] : memref<64x32xf32, #tpu.memory_space<vmem>>, vector<8x32xf32>
    tpu.vector_store %arg11[%c56_146, %c0_147], %357 {strides = array<i32>} : memref<64x32xf32, #tpu.memory_space<vmem>>, vector<8x32xf32>,
    %c0_148 = arith.constant 0 : index
    %c0_149 = arith.constant 0 : index
    %359 = vector.load %arg11[%c0_148, %c0_149] : memref<64x32xf32, #tpu.memory_space<vmem>>, vector<64x32xf32>
    %c1 = arith.constant 1 : index
    %c0_150 = arith.constant 0 : index
    %c0_151 = arith.constant 0 : index
    %360 = vector.load %arg4[%c1, %c0_150, %c0_151] : memref<3x32x128xf32, #tpu.memory_space<vmem>>, vector<1x32x128xf32>
    %361 = vector.shape_cast %360 : vector<1x32x128xf32> to vector<32x128xf32>
    %c1_152 = arith.constant 1 : index
    %c0_153 = arith.constant 0 : index
    %c0_154 = arith.constant 0 : index
    %362 = vector.load %arg5[%c1_152, %c0_153, %c0_154] : memref<3x32x128xf32, #tpu.memory_space<vmem>>, vector<1x32x128xf32>
    %363 = vector.shape_cast %362 : vector<1x32x128xf32> to vector<32x128xf32>
    %c1_155 = arith.constant 1 : index
    %c0_156 = arith.constant 0 : index
    %c0_157 = arith.constant 0 : index
    %364 = vector.load %arg6[%c1_155, %c0_156, %c0_157] : memref<3x1x128xf32, #tpu.memory_space<vmem>>, vector<1x1x128xf32>
    %365 = vector.shape_cast %364 : vector<1x1x128xf32> to vector<1x128xf32>
    %cst_158 = arith.constant dense<0.000000e+00> : vector<64x128xf32>
    %366 = tpu.matmul %359, %361, %cst_158 {dimension_numbers = #tpu.dot_dimension_numbers<[1], [0], [0], [1], [0, 0, 1, 1], [], []>, precision = #tpu.contract_precision<fp32>} : vector<64x32xf32>, vector<32x128xf32>, vector<64x128xf32> -> vector<64x128xf32>
    %367 = vector.broadcast %365 : vector<1x128xf32> to vector<64x128xf32>
    %368 = arith.addf %366, %367 : vector<64x128xf32>
    %c0_159 = arith.constant 0 : index
    %c0_160 = arith.constant 0 : index
    %369 = vector.load %arg10[%c0_159, %c0_160] : memref<64x128xf32, #tpu.memory_space<vmem>>, vector<64x128xf32>
    tpu.vector_store %arg10[%c0_159, %c0_160], %368 {strides = array<i32>} : memref<64x128xf32, #tpu.memory_space<vmem>>, vector<64x128xf32>,
    %cst_161 = arith.constant 0.000000e+00 : f32
    %370 = vector.broadcast %cst_161 : f32 to vector<8x32xf32>
    %cst_162 = arith.constant 0.000000e+00 : f32
    %371 = vector.broadcast %cst_162 : f32 to vector<8x32xf32>
    %c0_163 = arith.constant 0 : index
    %c0_164 = arith.constant 0 : index
    %372 = vector.load %arg10[%c0_163, %c0_164] : memref<64x128xf32, #tpu.memory_space<vmem>>, vector<8x128xf32>
    %cst_165 = arith.constant dense<0.000000e+00> : vector<8x128xf32>
    %373 = tpu.matmul %370, %363, %cst_165 {dimension_numbers = #tpu.dot_dimension_numbers<[1], [0], [0], [1], [0, 0, 1, 1], [], []>, precision = #tpu.contract_precision<fp32>} : vector<8x32xf32>, vector<32x128xf32>, vector<8x128xf32> -> vector<8x128xf32>
    %374 = arith.addf %372, %373 : vector<8x128xf32>
    %cst_166 = arith.constant 5.000000e-01 : f32
    %375 = vector.broadcast %cst_166 : f32 to vector<8x128xf32>
    %376 = arith.mulf %375, %374 : vector<8x128xf32>
    %377 = math.tanh %376 : vector<8x128xf32>
    %cst_167 = arith.constant 5.000000e-01 : f32
    %378 = vector.broadcast %cst_167 : f32 to vector<8x128xf32>
    %379 = arith.mulf %378, %377 : vector<8x128xf32>
    %cst_168 = arith.constant 5.000000e-01 : f32
    %380 = vector.broadcast %cst_168 : f32 to vector<8x128xf32>
    %381 = arith.addf %380, %379 : vector<8x128xf32>
    %382 = math.tanh %374 : vector<8x128xf32>
    %383 = vector.extract_strided_slice %381 {offsets = [0, 0], sizes = [8, 32], strides = [1, 1]} : vector<8x128xf32> to vector<8x32xf32>
    %384 = vector.extract_strided_slice %381 {offsets = [0, 32], sizes = [8, 32], strides = [1, 1]} : vector<8x128xf32> to vector<8x32xf32>
    %385 = vector.extract_strided_slice %382 {offsets = [0, 64], sizes = [8, 32], strides = [1, 1]} : vector<8x128xf32> to vector<8x32xf32>
    %386 = vector.extract_strided_slice %381 {offsets = [0, 96], sizes = [8, 32], strides = [1, 1]} : vector<8x128xf32> to vector<8x32xf32>
    %387 = arith.mulf %384, %371 : vector<8x32xf32>
    %388 = arith.mulf %383, %385 : vector<8x32xf32>
    %389 = arith.addf %387, %388 : vector<8x32xf32>
    %390 = math.tanh %389 : vector<8x32xf32>
    %391 = arith.mulf %386, %390 : vector<8x32xf32>
    %c0_169 = arith.constant 0 : index
    %c0_170 = arith.constant 0 : index
    %392 = vector.load %arg11[%c0_169, %c0_170] : memref<64x32xf32, #tpu.memory_space<vmem>>, vector<8x32xf32>
    tpu.vector_store %arg11[%c0_169, %c0_170], %391 {strides = array<i32>} : memref<64x32xf32, #tpu.memory_space<vmem>>, vector<8x32xf32>,
    %c8_171 = arith.constant 8 : index
    %c0_172 = arith.constant 0 : index
    %393 = vector.load %arg10[%c8_171, %c0_172] : memref<64x128xf32, #tpu.memory_space<vmem>>, vector<8x128xf32>
    %cst_173 = arith.constant dense<0.000000e+00> : vector<8x128xf32>
    %394 = tpu.matmul %391, %363, %cst_173 {dimension_numbers = #tpu.dot_dimension_numbers<[1], [0], [0], [1], [0, 0, 1, 1], [], []>, precision = #tpu.contract_precision<fp32>} : vector<8x32xf32>, vector<32x128xf32>, vector<8x128xf32> -> vector<8x128xf32>
    %395 = arith.addf %393, %394 : vector<8x128xf32>
    %cst_174 = arith.constant 5.000000e-01 : f32
    %396 = vector.broadcast %cst_174 : f32 to vector<8x128xf32>
    %397 = arith.mulf %396, %395 : vector<8x128xf32>
    %398 = math.tanh %397 : vector<8x128xf32>
    %cst_175 = arith.constant 5.000000e-01 : f32
    %399 = vector.broadcast %cst_175 : f32 to vector<8x128xf32>
    %400 = arith.mulf %399, %398 : vector<8x128xf32>
    %cst_176 = arith.constant 5.000000e-01 : f32
    %401 = vector.broadcast %cst_176 : f32 to vector<8x128xf32>
    %402 = arith.addf %401, %400 : vector<8x128xf32>
    %403 = math.tanh %395 : vector<8x128xf32>
    %404 = vector.extract_strided_slice %402 {offsets = [0, 0], sizes = [8, 32], strides = [1, 1]} : vector<8x128xf32> to vector<8x32xf32>
    %405 = vector.extract_strided_slice %402 {offsets = [0, 32], sizes = [8, 32], strides = [1, 1]} : vector<8x128xf32> to vector<8x32xf32>
    %406 = vector.extract_strided_slice %403 {offsets = [0, 64], sizes = [8, 32], strides = [1, 1]} : vector<8x128xf32> to vector<8x32xf32>
    %407 = vector.extract_strided_slice %402 {offsets = [0, 96], sizes = [8, 32], strides = [1, 1]} : vector<8x128xf32> to vector<8x32xf32>
    %408 = arith.mulf %405, %389 : vector<8x32xf32>
    %409 = arith.mulf %404, %406 : vector<8x32xf32>
    %410 = arith.addf %408, %409 : vector<8x32xf32>
    %411 = math.tanh %410 : vector<8x32xf32>
    %412 = arith.mulf %407, %411 : vector<8x32xf32>
    %c8_177 = arith.constant 8 : index
    %c0_178 = arith.constant 0 : index
    %413 = vector.load %arg11[%c8_177, %c0_178] : memref<64x32xf32, #tpu.memory_space<vmem>>, vector<8x32xf32>
    tpu.vector_store %arg11[%c8_177, %c0_178], %412 {strides = array<i32>} : memref<64x32xf32, #tpu.memory_space<vmem>>, vector<8x32xf32>,
    %c16_179 = arith.constant 16 : index
    %c0_180 = arith.constant 0 : index
    %414 = vector.load %arg10[%c16_179, %c0_180] : memref<64x128xf32, #tpu.memory_space<vmem>>, vector<8x128xf32>
    %cst_181 = arith.constant dense<0.000000e+00> : vector<8x128xf32>
    %415 = tpu.matmul %412, %363, %cst_181 {dimension_numbers = #tpu.dot_dimension_numbers<[1], [0], [0], [1], [0, 0, 1, 1], [], []>, precision = #tpu.contract_precision<fp32>} : vector<8x32xf32>, vector<32x128xf32>, vector<8x128xf32> -> vector<8x128xf32>
    %416 = arith.addf %414, %415 : vector<8x128xf32>
    %cst_182 = arith.constant 5.000000e-01 : f32
    %417 = vector.broadcast %cst_182 : f32 to vector<8x128xf32>
    %418 = arith.mulf %417, %416 : vector<8x128xf32>
    %419 = math.tanh %418 : vector<8x128xf32>
    %cst_183 = arith.constant 5.000000e-01 : f32
    %420 = vector.broadcast %cst_183 : f32 to vector<8x128xf32>
    %421 = arith.mulf %420, %419 : vector<8x128xf32>
    %cst_184 = arith.constant 5.000000e-01 : f32
    %422 = vector.broadcast %cst_184 : f32 to vector<8x128xf32>
    %423 = arith.addf %422, %421 : vector<8x128xf32>
    %424 = math.tanh %416 : vector<8x128xf32>
    %425 = vector.extract_strided_slice %423 {offsets = [0, 0], sizes = [8, 32], strides = [1, 1]} : vector<8x128xf32> to vector<8x32xf32>
    %426 = vector.extract_strided_slice %423 {offsets = [0, 32], sizes = [8, 32], strides = [1, 1]} : vector<8x128xf32> to vector<8x32xf32>
    %427 = vector.extract_strided_slice %424 {offsets = [0, 64], sizes = [8, 32], strides = [1, 1]} : vector<8x128xf32> to vector<8x32xf32>
    %428 = vector.extract_strided_slice %423 {offsets = [0, 96], sizes = [8, 32], strides = [1, 1]} : vector<8x128xf32> to vector<8x32xf32>
    %429 = arith.mulf %426, %410 : vector<8x32xf32>
    %430 = arith.mulf %425, %427 : vector<8x32xf32>
    %431 = arith.addf %429, %430 : vector<8x32xf32>
    %432 = math.tanh %431 : vector<8x32xf32>
    %433 = arith.mulf %428, %432 : vector<8x32xf32>
    %c16_185 = arith.constant 16 : index
    %c0_186 = arith.constant 0 : index
    %434 = vector.load %arg11[%c16_185, %c0_186] : memref<64x32xf32, #tpu.memory_space<vmem>>, vector<8x32xf32>
    tpu.vector_store %arg11[%c16_185, %c0_186], %433 {strides = array<i32>} : memref<64x32xf32, #tpu.memory_space<vmem>>, vector<8x32xf32>,
    %c24_187 = arith.constant 24 : index
    %c0_188 = arith.constant 0 : index
    %435 = vector.load %arg10[%c24_187, %c0_188] : memref<64x128xf32, #tpu.memory_space<vmem>>, vector<8x128xf32>
    %cst_189 = arith.constant dense<0.000000e+00> : vector<8x128xf32>
    %436 = tpu.matmul %433, %363, %cst_189 {dimension_numbers = #tpu.dot_dimension_numbers<[1], [0], [0], [1], [0, 0, 1, 1], [], []>, precision = #tpu.contract_precision<fp32>} : vector<8x32xf32>, vector<32x128xf32>, vector<8x128xf32> -> vector<8x128xf32>
    %437 = arith.addf %435, %436 : vector<8x128xf32>
    %cst_190 = arith.constant 5.000000e-01 : f32
    %438 = vector.broadcast %cst_190 : f32 to vector<8x128xf32>
    %439 = arith.mulf %438, %437 : vector<8x128xf32>
    %440 = math.tanh %439 : vector<8x128xf32>
    %cst_191 = arith.constant 5.000000e-01 : f32
    %441 = vector.broadcast %cst_191 : f32 to vector<8x128xf32>
    %442 = arith.mulf %441, %440 : vector<8x128xf32>
    %cst_192 = arith.constant 5.000000e-01 : f32
    %443 = vector.broadcast %cst_192 : f32 to vector<8x128xf32>
    %444 = arith.addf %443, %442 : vector<8x128xf32>
    %445 = math.tanh %437 : vector<8x128xf32>
    %446 = vector.extract_strided_slice %444 {offsets = [0, 0], sizes = [8, 32], strides = [1, 1]} : vector<8x128xf32> to vector<8x32xf32>
    %447 = vector.extract_strided_slice %444 {offsets = [0, 32], sizes = [8, 32], strides = [1, 1]} : vector<8x128xf32> to vector<8x32xf32>
    %448 = vector.extract_strided_slice %445 {offsets = [0, 64], sizes = [8, 32], strides = [1, 1]} : vector<8x128xf32> to vector<8x32xf32>
    %449 = vector.extract_strided_slice %444 {offsets = [0, 96], sizes = [8, 32], strides = [1, 1]} : vector<8x128xf32> to vector<8x32xf32>
    %450 = arith.mulf %447, %431 : vector<8x32xf32>
    %451 = arith.mulf %446, %448 : vector<8x32xf32>
    %452 = arith.addf %450, %451 : vector<8x32xf32>
    %453 = math.tanh %452 : vector<8x32xf32>
    %454 = arith.mulf %449, %453 : vector<8x32xf32>
    %c24_193 = arith.constant 24 : index
    %c0_194 = arith.constant 0 : index
    %455 = vector.load %arg11[%c24_193, %c0_194] : memref<64x32xf32, #tpu.memory_space<vmem>>, vector<8x32xf32>
    tpu.vector_store %arg11[%c24_193, %c0_194], %454 {strides = array<i32>} : memref<64x32xf32, #tpu.memory_space<vmem>>, vector<8x32xf32>,
    %c32_195 = arith.constant 32 : index
    %c0_196 = arith.constant 0 : index
    %456 = vector.load %arg10[%c32_195, %c0_196] : memref<64x128xf32, #tpu.memory_space<vmem>>, vector<8x128xf32>
    %cst_197 = arith.constant dense<0.000000e+00> : vector<8x128xf32>
    %457 = tpu.matmul %454, %363, %cst_197 {dimension_numbers = #tpu.dot_dimension_numbers<[1], [0], [0], [1], [0, 0, 1, 1], [], []>, precision = #tpu.contract_precision<fp32>} : vector<8x32xf32>, vector<32x128xf32>, vector<8x128xf32> -> vector<8x128xf32>
    %458 = arith.addf %456, %457 : vector<8x128xf32>
    %cst_198 = arith.constant 5.000000e-01 : f32
    %459 = vector.broadcast %cst_198 : f32 to vector<8x128xf32>
    %460 = arith.mulf %459, %458 : vector<8x128xf32>
    %461 = math.tanh %460 : vector<8x128xf32>
    %cst_199 = arith.constant 5.000000e-01 : f32
    %462 = vector.broadcast %cst_199 : f32 to vector<8x128xf32>
    %463 = arith.mulf %462, %461 : vector<8x128xf32>
    %cst_200 = arith.constant 5.000000e-01 : f32
    %464 = vector.broadcast %cst_200 : f32 to vector<8x128xf32>
    %465 = arith.addf %464, %463 : vector<8x128xf32>
    %466 = math.tanh %458 : vector<8x128xf32>
    %467 = vector.extract_strided_slice %465 {offsets = [0, 0], sizes = [8, 32], strides = [1, 1]} : vector<8x128xf32> to vector<8x32xf32>
    %468 = vector.extract_strided_slice %465 {offsets = [0, 32], sizes = [8, 32], strides = [1, 1]} : vector<8x128xf32> to vector<8x32xf32>
    %469 = vector.extract_strided_slice %466 {offsets = [0, 64], sizes = [8, 32], strides = [1, 1]} : vector<8x128xf32> to vector<8x32xf32>
    %470 = vector.extract_strided_slice %465 {offsets = [0, 96], sizes = [8, 32], strides = [1, 1]} : vector<8x128xf32> to vector<8x32xf32>
    %471 = arith.mulf %468, %452 : vector<8x32xf32>
    %472 = arith.mulf %467, %469 : vector<8x32xf32>
    %473 = arith.addf %471, %472 : vector<8x32xf32>
    %474 = math.tanh %473 : vector<8x32xf32>
    %475 = arith.mulf %470, %474 : vector<8x32xf32>
    %c32_201 = arith.constant 32 : index
    %c0_202 = arith.constant 0 : index
    %476 = vector.load %arg11[%c32_201, %c0_202] : memref<64x32xf32, #tpu.memory_space<vmem>>, vector<8x32xf32>
    tpu.vector_store %arg11[%c32_201, %c0_202], %475 {strides = array<i32>} : memref<64x32xf32, #tpu.memory_space<vmem>>, vector<8x32xf32>,
    %c40_203 = arith.constant 40 : index
    %c0_204 = arith.constant 0 : index
    %477 = vector.load %arg10[%c40_203, %c0_204] : memref<64x128xf32, #tpu.memory_space<vmem>>, vector<8x128xf32>
    %cst_205 = arith.constant dense<0.000000e+00> : vector<8x128xf32>
    %478 = tpu.matmul %475, %363, %cst_205 {dimension_numbers = #tpu.dot_dimension_numbers<[1], [0], [0], [1], [0, 0, 1, 1], [], []>, precision = #tpu.contract_precision<fp32>} : vector<8x32xf32>, vector<32x128xf32>, vector<8x128xf32> -> vector<8x128xf32>
    %479 = arith.addf %477, %478 : vector<8x128xf32>
    %cst_206 = arith.constant 5.000000e-01 : f32
    %480 = vector.broadcast %cst_206 : f32 to vector<8x128xf32>
    %481 = arith.mulf %480, %479 : vector<8x128xf32>
    %482 = math.tanh %481 : vector<8x128xf32>
    %cst_207 = arith.constant 5.000000e-01 : f32
    %483 = vector.broadcast %cst_207 : f32 to vector<8x128xf32>
    %484 = arith.mulf %483, %482 : vector<8x128xf32>
    %cst_208 = arith.constant 5.000000e-01 : f32
    %485 = vector.broadcast %cst_208 : f32 to vector<8x128xf32>
    %486 = arith.addf %485, %484 : vector<8x128xf32>
    %487 = math.tanh %479 : vector<8x128xf32>
    %488 = vector.extract_strided_slice %486 {offsets = [0, 0], sizes = [8, 32], strides = [1, 1]} : vector<8x128xf32> to vector<8x32xf32>
    %489 = vector.extract_strided_slice %486 {offsets = [0, 32], sizes = [8, 32], strides = [1, 1]} : vector<8x128xf32> to vector<8x32xf32>
    %490 = vector.extract_strided_slice %487 {offsets = [0, 64], sizes = [8, 32], strides = [1, 1]} : vector<8x128xf32> to vector<8x32xf32>
    %491 = vector.extract_strided_slice %486 {offsets = [0, 96], sizes = [8, 32], strides = [1, 1]} : vector<8x128xf32> to vector<8x32xf32>
    %492 = arith.mulf %489, %473 : vector<8x32xf32>
    %493 = arith.mulf %488, %490 : vector<8x32xf32>
    %494 = arith.addf %492, %493 : vector<8x32xf32>
    %495 = math.tanh %494 : vector<8x32xf32>
    %496 = arith.mulf %491, %495 : vector<8x32xf32>
    %c40_209 = arith.constant 40 : index
    %c0_210 = arith.constant 0 : index
    %497 = vector.load %arg11[%c40_209, %c0_210] : memref<64x32xf32, #tpu.memory_space<vmem>>, vector<8x32xf32>
    tpu.vector_store %arg11[%c40_209, %c0_210], %496 {strides = array<i32>} : memref<64x32xf32, #tpu.memory_space<vmem>>, vector<8x32xf32>,
    %c48_211 = arith.constant 48 : index
    %c0_212 = arith.constant 0 : index
    %498 = vector.load %arg10[%c48_211, %c0_212] : memref<64x128xf32, #tpu.memory_space<vmem>>, vector<8x128xf32>
    %cst_213 = arith.constant dense<0.000000e+00> : vector<8x128xf32>
    %499 = tpu.matmul %496, %363, %cst_213 {dimension_numbers = #tpu.dot_dimension_numbers<[1], [0], [0], [1], [0, 0, 1, 1], [], []>, precision = #tpu.contract_precision<fp32>} : vector<8x32xf32>, vector<32x128xf32>, vector<8x128xf32> -> vector<8x128xf32>
    %500 = arith.addf %498, %499 : vector<8x128xf32>
    %cst_214 = arith.constant 5.000000e-01 : f32
    %501 = vector.broadcast %cst_214 : f32 to vector<8x128xf32>
    %502 = arith.mulf %501, %500 : vector<8x128xf32>
    %503 = math.tanh %502 : vector<8x128xf32>
    %cst_215 = arith.constant 5.000000e-01 : f32
    %504 = vector.broadcast %cst_215 : f32 to vector<8x128xf32>
    %505 = arith.mulf %504, %503 : vector<8x128xf32>
    %cst_216 = arith.constant 5.000000e-01 : f32
    %506 = vector.broadcast %cst_216 : f32 to vector<8x128xf32>
    %507 = arith.addf %506, %505 : vector<8x128xf32>
    %508 = math.tanh %500 : vector<8x128xf32>
    %509 = vector.extract_strided_slice %507 {offsets = [0, 0], sizes = [8, 32], strides = [1, 1]} : vector<8x128xf32> to vector<8x32xf32>
    %510 = vector.extract_strided_slice %507 {offsets = [0, 32], sizes = [8, 32], strides = [1, 1]} : vector<8x128xf32> to vector<8x32xf32>
    %511 = vector.extract_strided_slice %508 {offsets = [0, 64], sizes = [8, 32], strides = [1, 1]} : vector<8x128xf32> to vector<8x32xf32>
    %512 = vector.extract_strided_slice %507 {offsets = [0, 96], sizes = [8, 32], strides = [1, 1]} : vector<8x128xf32> to vector<8x32xf32>
    %513 = arith.mulf %510, %494 : vector<8x32xf32>
    %514 = arith.mulf %509, %511 : vector<8x32xf32>
    %515 = arith.addf %513, %514 : vector<8x32xf32>
    %516 = math.tanh %515 : vector<8x32xf32>
    %517 = arith.mulf %512, %516 : vector<8x32xf32>
    %c48_217 = arith.constant 48 : index
    %c0_218 = arith.constant 0 : index
    %518 = vector.load %arg11[%c48_217, %c0_218] : memref<64x32xf32, #tpu.memory_space<vmem>>, vector<8x32xf32>
    tpu.vector_store %arg11[%c48_217, %c0_218], %517 {strides = array<i32>} : memref<64x32xf32, #tpu.memory_space<vmem>>, vector<8x32xf32>,
    %c56_219 = arith.constant 56 : index
    %c0_220 = arith.constant 0 : index
    %519 = vector.load %arg10[%c56_219, %c0_220] : memref<64x128xf32, #tpu.memory_space<vmem>>, vector<8x128xf32>
    %cst_221 = arith.constant dense<0.000000e+00> : vector<8x128xf32>
    %520 = tpu.matmul %517, %363, %cst_221 {dimension_numbers = #tpu.dot_dimension_numbers<[1], [0], [0], [1], [0, 0, 1, 1], [], []>, precision = #tpu.contract_precision<fp32>} : vector<8x32xf32>, vector<32x128xf32>, vector<8x128xf32> -> vector<8x128xf32>
    %521 = arith.addf %519, %520 : vector<8x128xf32>
    %cst_222 = arith.constant 5.000000e-01 : f32
    %522 = vector.broadcast %cst_222 : f32 to vector<8x128xf32>
    %523 = arith.mulf %522, %521 : vector<8x128xf32>
    %524 = math.tanh %523 : vector<8x128xf32>
    %cst_223 = arith.constant 5.000000e-01 : f32
    %525 = vector.broadcast %cst_223 : f32 to vector<8x128xf32>
    %526 = arith.mulf %525, %524 : vector<8x128xf32>
    %cst_224 = arith.constant 5.000000e-01 : f32
    %527 = vector.broadcast %cst_224 : f32 to vector<8x128xf32>
    %528 = arith.addf %527, %526 : vector<8x128xf32>
    %529 = math.tanh %521 : vector<8x128xf32>
    %530 = vector.extract_strided_slice %528 {offsets = [0, 0], sizes = [8, 32], strides = [1, 1]} : vector<8x128xf32> to vector<8x32xf32>
    %531 = vector.extract_strided_slice %528 {offsets = [0, 32], sizes = [8, 32], strides = [1, 1]} : vector<8x128xf32> to vector<8x32xf32>
    %532 = vector.extract_strided_slice %529 {offsets = [0, 64], sizes = [8, 32], strides = [1, 1]} : vector<8x128xf32> to vector<8x32xf32>
    %533 = vector.extract_strided_slice %528 {offsets = [0, 96], sizes = [8, 32], strides = [1, 1]} : vector<8x128xf32> to vector<8x32xf32>
    %534 = arith.mulf %531, %515 : vector<8x32xf32>
    %535 = arith.mulf %530, %532 : vector<8x32xf32>
    %536 = arith.addf %534, %535 : vector<8x32xf32>
    %537 = math.tanh %536 : vector<8x32xf32>
    %538 = arith.mulf %533, %537 : vector<8x32xf32>
    %c56_225 = arith.constant 56 : index
    %c0_226 = arith.constant 0 : index
    %539 = vector.load %arg11[%c56_225, %c0_226] : memref<64x32xf32, #tpu.memory_space<vmem>>, vector<8x32xf32>
    tpu.vector_store %arg11[%c56_225, %c0_226], %538 {strides = array<i32>} : memref<64x32xf32, #tpu.memory_space<vmem>>, vector<8x32xf32>,
    %c0_227 = arith.constant 0 : index
    %c0_228 = arith.constant 0 : index
    %540 = vector.load %arg11[%c0_227, %c0_228] : memref<64x32xf32, #tpu.memory_space<vmem>>, vector<64x32xf32>
    %c2 = arith.constant 2 : index
    %c0_229 = arith.constant 0 : index
    %c0_230 = arith.constant 0 : index
    %541 = vector.load %arg4[%c2, %c0_229, %c0_230] : memref<3x32x128xf32, #tpu.memory_space<vmem>>, vector<1x32x128xf32>
    %542 = vector.shape_cast %541 : vector<1x32x128xf32> to vector<32x128xf32>
    %c2_231 = arith.constant 2 : index
    %c0_232 = arith.constant 0 : index
    %c0_233 = arith.constant 0 : index
    %543 = vector.load %arg5[%c2_231, %c0_232, %c0_233] : memref<3x32x128xf32, #tpu.memory_space<vmem>>, vector<1x32x128xf32>
    %544 = vector.shape_cast %543 : vector<1x32x128xf32> to vector<32x128xf32>
    %c2_234 = arith.constant 2 : index
    %c0_235 = arith.constant 0 : index
    %c0_236 = arith.constant 0 : index
    %545 = vector.load %arg6[%c2_234, %c0_235, %c0_236] : memref<3x1x128xf32, #tpu.memory_space<vmem>>, vector<1x1x128xf32>
    %546 = vector.shape_cast %545 : vector<1x1x128xf32> to vector<1x128xf32>
    %cst_237 = arith.constant dense<0.000000e+00> : vector<64x128xf32>
    %547 = tpu.matmul %540, %542, %cst_237 {dimension_numbers = #tpu.dot_dimension_numbers<[1], [0], [0], [1], [0, 0, 1, 1], [], []>, precision = #tpu.contract_precision<fp32>} : vector<64x32xf32>, vector<32x128xf32>, vector<64x128xf32> -> vector<64x128xf32>
    %548 = vector.broadcast %546 : vector<1x128xf32> to vector<64x128xf32>
    %549 = arith.addf %547, %548 : vector<64x128xf32>
    %c0_238 = arith.constant 0 : index
    %c0_239 = arith.constant 0 : index
    %550 = vector.load %arg10[%c0_238, %c0_239] : memref<64x128xf32, #tpu.memory_space<vmem>>, vector<64x128xf32>
    tpu.vector_store %arg10[%c0_238, %c0_239], %549 {strides = array<i32>} : memref<64x128xf32, #tpu.memory_space<vmem>>, vector<64x128xf32>,
    %cst_240 = arith.constant 0.000000e+00 : f32
    %551 = vector.broadcast %cst_240 : f32 to vector<8x32xf32>
    %cst_241 = arith.constant 0.000000e+00 : f32
    %552 = vector.broadcast %cst_241 : f32 to vector<8x32xf32>
    %c0_242 = arith.constant 0 : index
    %c0_243 = arith.constant 0 : index
    %553 = vector.load %arg10[%c0_242, %c0_243] : memref<64x128xf32, #tpu.memory_space<vmem>>, vector<8x128xf32>
    %cst_244 = arith.constant dense<0.000000e+00> : vector<8x128xf32>
    %554 = tpu.matmul %551, %544, %cst_244 {dimension_numbers = #tpu.dot_dimension_numbers<[1], [0], [0], [1], [0, 0, 1, 1], [], []>, precision = #tpu.contract_precision<fp32>} : vector<8x32xf32>, vector<32x128xf32>, vector<8x128xf32> -> vector<8x128xf32>
    %555 = arith.addf %553, %554 : vector<8x128xf32>
    %cst_245 = arith.constant 5.000000e-01 : f32
    %556 = vector.broadcast %cst_245 : f32 to vector<8x128xf32>
    %557 = arith.mulf %556, %555 : vector<8x128xf32>
    %558 = math.tanh %557 : vector<8x128xf32>
    %cst_246 = arith.constant 5.000000e-01 : f32
    %559 = vector.broadcast %cst_246 : f32 to vector<8x128xf32>
    %560 = arith.mulf %559, %558 : vector<8x128xf32>
    %cst_247 = arith.constant 5.000000e-01 : f32
    %561 = vector.broadcast %cst_247 : f32 to vector<8x128xf32>
    %562 = arith.addf %561, %560 : vector<8x128xf32>
    %563 = math.tanh %555 : vector<8x128xf32>
    %564 = vector.extract_strided_slice %562 {offsets = [0, 0], sizes = [8, 32], strides = [1, 1]} : vector<8x128xf32> to vector<8x32xf32>
    %565 = vector.extract_strided_slice %562 {offsets = [0, 32], sizes = [8, 32], strides = [1, 1]} : vector<8x128xf32> to vector<8x32xf32>
    %566 = vector.extract_strided_slice %563 {offsets = [0, 64], sizes = [8, 32], strides = [1, 1]} : vector<8x128xf32> to vector<8x32xf32>
    %567 = vector.extract_strided_slice %562 {offsets = [0, 96], sizes = [8, 32], strides = [1, 1]} : vector<8x128xf32> to vector<8x32xf32>
    %568 = arith.mulf %565, %552 : vector<8x32xf32>
    %569 = arith.mulf %564, %566 : vector<8x32xf32>
    %570 = arith.addf %568, %569 : vector<8x32xf32>
    %571 = math.tanh %570 : vector<8x32xf32>
    %572 = arith.mulf %567, %571 : vector<8x32xf32>
    %c8_248 = arith.constant 8 : index
    %c0_249 = arith.constant 0 : index
    %573 = vector.load %arg10[%c8_248, %c0_249] : memref<64x128xf32, #tpu.memory_space<vmem>>, vector<8x128xf32>
    %cst_250 = arith.constant dense<0.000000e+00> : vector<8x128xf32>
    %574 = tpu.matmul %572, %544, %cst_250 {dimension_numbers = #tpu.dot_dimension_numbers<[1], [0], [0], [1], [0, 0, 1, 1], [], []>, precision = #tpu.contract_precision<fp32>} : vector<8x32xf32>, vector<32x128xf32>, vector<8x128xf32> -> vector<8x128xf32>
    %575 = arith.addf %573, %574 : vector<8x128xf32>
    %cst_251 = arith.constant 5.000000e-01 : f32
    %576 = vector.broadcast %cst_251 : f32 to vector<8x128xf32>
    %577 = arith.mulf %576, %575 : vector<8x128xf32>
    %578 = math.tanh %577 : vector<8x128xf32>
    %cst_252 = arith.constant 5.000000e-01 : f32
    %579 = vector.broadcast %cst_252 : f32 to vector<8x128xf32>
    %580 = arith.mulf %579, %578 : vector<8x128xf32>
    %cst_253 = arith.constant 5.000000e-01 : f32
    %581 = vector.broadcast %cst_253 : f32 to vector<8x128xf32>
    %582 = arith.addf %581, %580 : vector<8x128xf32>
    %583 = math.tanh %575 : vector<8x128xf32>
    %584 = vector.extract_strided_slice %582 {offsets = [0, 0], sizes = [8, 32], strides = [1, 1]} : vector<8x128xf32> to vector<8x32xf32>
    %585 = vector.extract_strided_slice %582 {offsets = [0, 32], sizes = [8, 32], strides = [1, 1]} : vector<8x128xf32> to vector<8x32xf32>
    %586 = vector.extract_strided_slice %583 {offsets = [0, 64], sizes = [8, 32], strides = [1, 1]} : vector<8x128xf32> to vector<8x32xf32>
    %587 = vector.extract_strided_slice %582 {offsets = [0, 96], sizes = [8, 32], strides = [1, 1]} : vector<8x128xf32> to vector<8x32xf32>
    %588 = arith.mulf %585, %570 : vector<8x32xf32>
    %589 = arith.mulf %584, %586 : vector<8x32xf32>
    %590 = arith.addf %588, %589 : vector<8x32xf32>
    %591 = math.tanh %590 : vector<8x32xf32>
    %592 = arith.mulf %587, %591 : vector<8x32xf32>
    %c16_254 = arith.constant 16 : index
    %c0_255 = arith.constant 0 : index
    %593 = vector.load %arg10[%c16_254, %c0_255] : memref<64x128xf32, #tpu.memory_space<vmem>>, vector<8x128xf32>
    %cst_256 = arith.constant dense<0.000000e+00> : vector<8x128xf32>
    %594 = tpu.matmul %592, %544, %cst_256 {dimension_numbers = #tpu.dot_dimension_numbers<[1], [0], [0], [1], [0, 0, 1, 1], [], []>, precision = #tpu.contract_precision<fp32>} : vector<8x32xf32>, vector<32x128xf32>, vector<8x128xf32> -> vector<8x128xf32>
    %595 = arith.addf %593, %594 : vector<8x128xf32>
    %cst_257 = arith.constant 5.000000e-01 : f32
    %596 = vector.broadcast %cst_257 : f32 to vector<8x128xf32>
    %597 = arith.mulf %596, %595 : vector<8x128xf32>
    %598 = math.tanh %597 : vector<8x128xf32>
    %cst_258 = arith.constant 5.000000e-01 : f32
    %599 = vector.broadcast %cst_258 : f32 to vector<8x128xf32>
    %600 = arith.mulf %599, %598 : vector<8x128xf32>
    %cst_259 = arith.constant 5.000000e-01 : f32
    %601 = vector.broadcast %cst_259 : f32 to vector<8x128xf32>
    %602 = arith.addf %601, %600 : vector<8x128xf32>
    %603 = math.tanh %595 : vector<8x128xf32>
    %604 = vector.extract_strided_slice %602 {offsets = [0, 0], sizes = [8, 32], strides = [1, 1]} : vector<8x128xf32> to vector<8x32xf32>
    %605 = vector.extract_strided_slice %602 {offsets = [0, 32], sizes = [8, 32], strides = [1, 1]} : vector<8x128xf32> to vector<8x32xf32>
    %606 = vector.extract_strided_slice %603 {offsets = [0, 64], sizes = [8, 32], strides = [1, 1]} : vector<8x128xf32> to vector<8x32xf32>
    %607 = vector.extract_strided_slice %602 {offsets = [0, 96], sizes = [8, 32], strides = [1, 1]} : vector<8x128xf32> to vector<8x32xf32>
    %608 = arith.mulf %605, %590 : vector<8x32xf32>
    %609 = arith.mulf %604, %606 : vector<8x32xf32>
    %610 = arith.addf %608, %609 : vector<8x32xf32>
    %611 = math.tanh %610 : vector<8x32xf32>
    %612 = arith.mulf %607, %611 : vector<8x32xf32>
    %c24_260 = arith.constant 24 : index
    %c0_261 = arith.constant 0 : index
    %613 = vector.load %arg10[%c24_260, %c0_261] : memref<64x128xf32, #tpu.memory_space<vmem>>, vector<8x128xf32>
    %cst_262 = arith.constant dense<0.000000e+00> : vector<8x128xf32>
    %614 = tpu.matmul %612, %544, %cst_262 {dimension_numbers = #tpu.dot_dimension_numbers<[1], [0], [0], [1], [0, 0, 1, 1], [], []>, precision = #tpu.contract_precision<fp32>} : vector<8x32xf32>, vector<32x128xf32>, vector<8x128xf32> -> vector<8x128xf32>
    %615 = arith.addf %613, %614 : vector<8x128xf32>
    %cst_263 = arith.constant 5.000000e-01 : f32
    %616 = vector.broadcast %cst_263 : f32 to vector<8x128xf32>
    %617 = arith.mulf %616, %615 : vector<8x128xf32>
    %618 = math.tanh %617 : vector<8x128xf32>
    %cst_264 = arith.constant 5.000000e-01 : f32
    %619 = vector.broadcast %cst_264 : f32 to vector<8x128xf32>
    %620 = arith.mulf %619, %618 : vector<8x128xf32>
    %cst_265 = arith.constant 5.000000e-01 : f32
    %621 = vector.broadcast %cst_265 : f32 to vector<8x128xf32>
    %622 = arith.addf %621, %620 : vector<8x128xf32>
    %623 = math.tanh %615 : vector<8x128xf32>
    %624 = vector.extract_strided_slice %622 {offsets = [0, 0], sizes = [8, 32], strides = [1, 1]} : vector<8x128xf32> to vector<8x32xf32>
    %625 = vector.extract_strided_slice %622 {offsets = [0, 32], sizes = [8, 32], strides = [1, 1]} : vector<8x128xf32> to vector<8x32xf32>
    %626 = vector.extract_strided_slice %623 {offsets = [0, 64], sizes = [8, 32], strides = [1, 1]} : vector<8x128xf32> to vector<8x32xf32>
    %627 = vector.extract_strided_slice %622 {offsets = [0, 96], sizes = [8, 32], strides = [1, 1]} : vector<8x128xf32> to vector<8x32xf32>
    %628 = arith.mulf %625, %610 : vector<8x32xf32>
    %629 = arith.mulf %624, %626 : vector<8x32xf32>
    %630 = arith.addf %628, %629 : vector<8x32xf32>
    %631 = math.tanh %630 : vector<8x32xf32>
    %632 = arith.mulf %627, %631 : vector<8x32xf32>
    %c32_266 = arith.constant 32 : index
    %c0_267 = arith.constant 0 : index
    %633 = vector.load %arg10[%c32_266, %c0_267] : memref<64x128xf32, #tpu.memory_space<vmem>>, vector<8x128xf32>
    %cst_268 = arith.constant dense<0.000000e+00> : vector<8x128xf32>
    %634 = tpu.matmul %632, %544, %cst_268 {dimension_numbers = #tpu.dot_dimension_numbers<[1], [0], [0], [1], [0, 0, 1, 1], [], []>, precision = #tpu.contract_precision<fp32>} : vector<8x32xf32>, vector<32x128xf32>, vector<8x128xf32> -> vector<8x128xf32>
    %635 = arith.addf %633, %634 : vector<8x128xf32>
    %cst_269 = arith.constant 5.000000e-01 : f32
    %636 = vector.broadcast %cst_269 : f32 to vector<8x128xf32>
    %637 = arith.mulf %636, %635 : vector<8x128xf32>
    %638 = math.tanh %637 : vector<8x128xf32>
    %cst_270 = arith.constant 5.000000e-01 : f32
    %639 = vector.broadcast %cst_270 : f32 to vector<8x128xf32>
    %640 = arith.mulf %639, %638 : vector<8x128xf32>
    %cst_271 = arith.constant 5.000000e-01 : f32
    %641 = vector.broadcast %cst_271 : f32 to vector<8x128xf32>
    %642 = arith.addf %641, %640 : vector<8x128xf32>
    %643 = math.tanh %635 : vector<8x128xf32>
    %644 = vector.extract_strided_slice %642 {offsets = [0, 0], sizes = [8, 32], strides = [1, 1]} : vector<8x128xf32> to vector<8x32xf32>
    %645 = vector.extract_strided_slice %642 {offsets = [0, 32], sizes = [8, 32], strides = [1, 1]} : vector<8x128xf32> to vector<8x32xf32>
    %646 = vector.extract_strided_slice %643 {offsets = [0, 64], sizes = [8, 32], strides = [1, 1]} : vector<8x128xf32> to vector<8x32xf32>
    %647 = vector.extract_strided_slice %642 {offsets = [0, 96], sizes = [8, 32], strides = [1, 1]} : vector<8x128xf32> to vector<8x32xf32>
    %648 = arith.mulf %645, %630 : vector<8x32xf32>
    %649 = arith.mulf %644, %646 : vector<8x32xf32>
    %650 = arith.addf %648, %649 : vector<8x32xf32>
    %651 = math.tanh %650 : vector<8x32xf32>
    %652 = arith.mulf %647, %651 : vector<8x32xf32>
    %c40_272 = arith.constant 40 : index
    %c0_273 = arith.constant 0 : index
    %653 = vector.load %arg10[%c40_272, %c0_273] : memref<64x128xf32, #tpu.memory_space<vmem>>, vector<8x128xf32>
    %cst_274 = arith.constant dense<0.000000e+00> : vector<8x128xf32>
    %654 = tpu.matmul %652, %544, %cst_274 {dimension_numbers = #tpu.dot_dimension_numbers<[1], [0], [0], [1], [0, 0, 1, 1], [], []>, precision = #tpu.contract_precision<fp32>} : vector<8x32xf32>, vector<32x128xf32>, vector<8x128xf32> -> vector<8x128xf32>
    %655 = arith.addf %653, %654 : vector<8x128xf32>
    %cst_275 = arith.constant 5.000000e-01 : f32
    %656 = vector.broadcast %cst_275 : f32 to vector<8x128xf32>
    %657 = arith.mulf %656, %655 : vector<8x128xf32>
    %658 = math.tanh %657 : vector<8x128xf32>
    %cst_276 = arith.constant 5.000000e-01 : f32
    %659 = vector.broadcast %cst_276 : f32 to vector<8x128xf32>
    %660 = arith.mulf %659, %658 : vector<8x128xf32>
    %cst_277 = arith.constant 5.000000e-01 : f32
    %661 = vector.broadcast %cst_277 : f32 to vector<8x128xf32>
    %662 = arith.addf %661, %660 : vector<8x128xf32>
    %663 = math.tanh %655 : vector<8x128xf32>
    %664 = vector.extract_strided_slice %662 {offsets = [0, 0], sizes = [8, 32], strides = [1, 1]} : vector<8x128xf32> to vector<8x32xf32>
    %665 = vector.extract_strided_slice %662 {offsets = [0, 32], sizes = [8, 32], strides = [1, 1]} : vector<8x128xf32> to vector<8x32xf32>
    %666 = vector.extract_strided_slice %663 {offsets = [0, 64], sizes = [8, 32], strides = [1, 1]} : vector<8x128xf32> to vector<8x32xf32>
    %667 = vector.extract_strided_slice %662 {offsets = [0, 96], sizes = [8, 32], strides = [1, 1]} : vector<8x128xf32> to vector<8x32xf32>
    %668 = arith.mulf %665, %650 : vector<8x32xf32>
    %669 = arith.mulf %664, %666 : vector<8x32xf32>
    %670 = arith.addf %668, %669 : vector<8x32xf32>
    %671 = math.tanh %670 : vector<8x32xf32>
    %672 = arith.mulf %667, %671 : vector<8x32xf32>
    %c48_278 = arith.constant 48 : index
    %c0_279 = arith.constant 0 : index
    %673 = vector.load %arg10[%c48_278, %c0_279] : memref<64x128xf32, #tpu.memory_space<vmem>>, vector<8x128xf32>
    %cst_280 = arith.constant dense<0.000000e+00> : vector<8x128xf32>
    %674 = tpu.matmul %672, %544, %cst_280 {dimension_numbers = #tpu.dot_dimension_numbers<[1], [0], [0], [1], [0, 0, 1, 1], [], []>, precision = #tpu.contract_precision<fp32>} : vector<8x32xf32>, vector<32x128xf32>, vector<8x128xf32> -> vector<8x128xf32>
    %675 = arith.addf %673, %674 : vector<8x128xf32>
    %cst_281 = arith.constant 5.000000e-01 : f32
    %676 = vector.broadcast %cst_281 : f32 to vector<8x128xf32>
    %677 = arith.mulf %676, %675 : vector<8x128xf32>
    %678 = math.tanh %677 : vector<8x128xf32>
    %cst_282 = arith.constant 5.000000e-01 : f32
    %679 = vector.broadcast %cst_282 : f32 to vector<8x128xf32>
    %680 = arith.mulf %679, %678 : vector<8x128xf32>
    %cst_283 = arith.constant 5.000000e-01 : f32
    %681 = vector.broadcast %cst_283 : f32 to vector<8x128xf32>
    %682 = arith.addf %681, %680 : vector<8x128xf32>
    %683 = math.tanh %675 : vector<8x128xf32>
    %684 = vector.extract_strided_slice %682 {offsets = [0, 0], sizes = [8, 32], strides = [1, 1]} : vector<8x128xf32> to vector<8x32xf32>
    %685 = vector.extract_strided_slice %682 {offsets = [0, 32], sizes = [8, 32], strides = [1, 1]} : vector<8x128xf32> to vector<8x32xf32>
    %686 = vector.extract_strided_slice %683 {offsets = [0, 64], sizes = [8, 32], strides = [1, 1]} : vector<8x128xf32> to vector<8x32xf32>
    %687 = vector.extract_strided_slice %682 {offsets = [0, 96], sizes = [8, 32], strides = [1, 1]} : vector<8x128xf32> to vector<8x32xf32>
    %688 = arith.mulf %685, %670 : vector<8x32xf32>
    %689 = arith.mulf %684, %686 : vector<8x32xf32>
    %690 = arith.addf %688, %689 : vector<8x32xf32>
    %691 = math.tanh %690 : vector<8x32xf32>
    %692 = arith.mulf %687, %691 : vector<8x32xf32>
    %c56_284 = arith.constant 56 : index
    %c0_285 = arith.constant 0 : index
    %693 = vector.load %arg10[%c56_284, %c0_285] : memref<64x128xf32, #tpu.memory_space<vmem>>, vector<8x128xf32>
    %cst_286 = arith.constant dense<0.000000e+00> : vector<8x128xf32>
    %694 = tpu.matmul %692, %544, %cst_286 {dimension_numbers = #tpu.dot_dimension_numbers<[1], [0], [0], [1], [0, 0, 1, 1], [], []>, precision = #tpu.contract_precision<fp32>} : vector<8x32xf32>, vector<32x128xf32>, vector<8x128xf32> -> vector<8x128xf32>
    %695 = arith.addf %693, %694 : vector<8x128xf32>
    %cst_287 = arith.constant 5.000000e-01 : f32
    %696 = vector.broadcast %cst_287 : f32 to vector<8x128xf32>
    %697 = arith.mulf %696, %695 : vector<8x128xf32>
    %698 = math.tanh %697 : vector<8x128xf32>
    %cst_288 = arith.constant 5.000000e-01 : f32
    %699 = vector.broadcast %cst_288 : f32 to vector<8x128xf32>
    %700 = arith.mulf %699, %698 : vector<8x128xf32>
    %cst_289 = arith.constant 5.000000e-01 : f32
    %701 = vector.broadcast %cst_289 : f32 to vector<8x128xf32>
    %702 = arith.addf %701, %700 : vector<8x128xf32>
    %703 = math.tanh %695 : vector<8x128xf32>
    %704 = vector.extract_strided_slice %702 {offsets = [0, 0], sizes = [8, 32], strides = [1, 1]} : vector<8x128xf32> to vector<8x32xf32>
    %705 = vector.extract_strided_slice %702 {offsets = [0, 32], sizes = [8, 32], strides = [1, 1]} : vector<8x128xf32> to vector<8x32xf32>
    %706 = vector.extract_strided_slice %703 {offsets = [0, 64], sizes = [8, 32], strides = [1, 1]} : vector<8x128xf32> to vector<8x32xf32>
    %707 = vector.extract_strided_slice %702 {offsets = [0, 96], sizes = [8, 32], strides = [1, 1]} : vector<8x128xf32> to vector<8x32xf32>
    %708 = arith.mulf %705, %690 : vector<8x32xf32>
    %709 = arith.mulf %704, %706 : vector<8x32xf32>
    %710 = arith.addf %708, %709 : vector<8x32xf32>
    %711 = math.tanh %710 : vector<8x32xf32>
    %712 = arith.mulf %707, %711 : vector<8x32xf32>
    %713 = arith.mulf %572, %712 : vector<8x32xf32>
    %cst_290 = arith.constant dense<0.000000e+00> : vector<8xf32>
    %714 = vector.multi_reduction <add>, %713, %cst_290 [1] : vector<8x32xf32> to vector<8xf32>
    %715 = vector.shape_cast %714 : vector<8xf32> to vector<8x1xf32>
    %716 = arith.mulf %592, %712 : vector<8x32xf32>
    %cst_291 = arith.constant dense<0.000000e+00> : vector<8xf32>
    %717 = vector.multi_reduction <add>, %716, %cst_291 [1] : vector<8x32xf32> to vector<8xf32>
    %718 = vector.shape_cast %717 : vector<8xf32> to vector<8x1xf32>
    %719 = arith.mulf %612, %712 : vector<8x32xf32>
    %cst_292 = arith.constant dense<0.000000e+00> : vector<8xf32>
    %720 = vector.multi_reduction <add>, %719, %cst_292 [1] : vector<8x32xf32> to vector<8xf32>
    %721 = vector.shape_cast %720 : vector<8xf32> to vector<8x1xf32>
    %722 = arith.mulf %632, %712 : vector<8x32xf32>
    %cst_293 = arith.constant dense<0.000000e+00> : vector<8xf32>
    %723 = vector.multi_reduction <add>, %722, %cst_293 [1] : vector<8x32xf32> to vector<8xf32>
    %724 = vector.shape_cast %723 : vector<8xf32> to vector<8x1xf32>
    %725 = arith.mulf %652, %712 : vector<8x32xf32>
    %cst_294 = arith.constant dense<0.000000e+00> : vector<8xf32>
    %726 = vector.multi_reduction <add>, %725, %cst_294 [1] : vector<8x32xf32> to vector<8xf32>
    %727 = vector.shape_cast %726 : vector<8xf32> to vector<8x1xf32>
    %728 = arith.mulf %672, %712 : vector<8x32xf32>
    %cst_295 = arith.constant dense<0.000000e+00> : vector<8xf32>
    %729 = vector.multi_reduction <add>, %728, %cst_295 [1] : vector<8x32xf32> to vector<8xf32>
    %730 = vector.shape_cast %729 : vector<8xf32> to vector<8x1xf32>
    %731 = arith.mulf %692, %712 : vector<8x32xf32>
    %cst_296 = arith.constant dense<0.000000e+00> : vector<8xf32>
    %732 = vector.multi_reduction <add>, %731, %cst_296 [1] : vector<8x32xf32> to vector<8xf32>
    %733 = vector.shape_cast %732 : vector<8xf32> to vector<8x1xf32>
    %734 = arith.mulf %712, %712 : vector<8x32xf32>
    %cst_297 = arith.constant dense<0.000000e+00> : vector<8xf32>
    %735 = vector.multi_reduction <add>, %734, %cst_297 [1] : vector<8x32xf32> to vector<8xf32>
    %736 = vector.shape_cast %735 : vector<8xf32> to vector<8x1xf32>
    %737 = arith.maximumf %715, %718 : vector<8x1xf32>
    %738 = arith.maximumf %737, %721 : vector<8x1xf32>
    %739 = arith.maximumf %738, %724 : vector<8x1xf32>
    %740 = arith.maximumf %739, %727 : vector<8x1xf32>
    %741 = arith.maximumf %740, %730 : vector<8x1xf32>
    %742 = arith.maximumf %741, %733 : vector<8x1xf32>
    %743 = arith.maximumf %742, %736 : vector<8x1xf32>
    %744 = arith.subf %715, %743 : vector<8x1xf32>
    %745 = math.exp %744 : vector<8x1xf32>
    %746 = arith.subf %718, %743 : vector<8x1xf32>
    %747 = math.exp %746 : vector<8x1xf32>
    %748 = arith.subf %721, %743 : vector<8x1xf32>
    %749 = math.exp %748 : vector<8x1xf32>
    %750 = arith.subf %724, %743 : vector<8x1xf32>
    %751 = math.exp %750 : vector<8x1xf32>
    %752 = arith.subf %727, %743 : vector<8x1xf32>
    %753 = math.exp %752 : vector<8x1xf32>
    %754 = arith.subf %730, %743 : vector<8x1xf32>
    %755 = math.exp %754 : vector<8x1xf32>
    %756 = arith.subf %733, %743 : vector<8x1xf32>
    %757 = math.exp %756 : vector<8x1xf32>
    %758 = arith.subf %736, %743 : vector<8x1xf32>
    %759 = math.exp %758 : vector<8x1xf32>
    %760 = arith.addf %745, %747 : vector<8x1xf32>
    %761 = arith.addf %760, %749 : vector<8x1xf32>
    %762 = arith.addf %761, %751 : vector<8x1xf32>
    %763 = arith.addf %762, %753 : vector<8x1xf32>
    %764 = arith.addf %763, %755 : vector<8x1xf32>
    %765 = arith.addf %764, %757 : vector<8x1xf32>
    %766 = arith.addf %765, %759 : vector<8x1xf32>
    %767 = tpu.reciprocal %766 {approx = true} : vector<8x1xf32> -> vector<8x1xf32>
    %768 = vector.broadcast %745 : vector<8x1xf32> to vector<8x32xf32>
    %769 = arith.mulf %768, %572 : vector<8x32xf32>
    %770 = vector.broadcast %747 : vector<8x1xf32> to vector<8x32xf32>
    %771 = arith.mulf %770, %592 : vector<8x32xf32>
    %772 = arith.addf %769, %771 : vector<8x32xf32>
    %773 = vector.broadcast %749 : vector<8x1xf32> to vector<8x32xf32>
    %774 = arith.mulf %773, %612 : vector<8x32xf32>
    %775 = arith.addf %772, %774 : vector<8x32xf32>
    %776 = vector.broadcast %751 : vector<8x1xf32> to vector<8x32xf32>
    %777 = arith.mulf %776, %632 : vector<8x32xf32>
    %778 = arith.addf %775, %777 : vector<8x32xf32>
    %779 = vector.broadcast %753 : vector<8x1xf32> to vector<8x32xf32>
    %780 = arith.mulf %779, %652 : vector<8x32xf32>
    %781 = arith.addf %778, %780 : vector<8x32xf32>
    %782 = vector.broadcast %755 : vector<8x1xf32> to vector<8x32xf32>
    %783 = arith.mulf %782, %672 : vector<8x32xf32>
    %784 = arith.addf %781, %783 : vector<8x32xf32>
    %785 = vector.broadcast %757 : vector<8x1xf32> to vector<8x32xf32>
    %786 = arith.mulf %785, %692 : vector<8x32xf32>
    %787 = arith.addf %784, %786 : vector<8x32xf32>
    %788 = vector.broadcast %759 : vector<8x1xf32> to vector<8x32xf32>
    %789 = arith.mulf %788, %712 : vector<8x32xf32>
    %790 = arith.addf %787, %789 : vector<8x32xf32>
    %791 = vector.broadcast %767 : vector<8x1xf32> to vector<8x32xf32>
    %792 = arith.mulf %790, %791 : vector<8x32xf32>
    %c0_298 = arith.constant 0 : index
    %c0_299 = arith.constant 0 : index
    %793 = vector.load %arg7[%c0_298, %c0_299] : memref<32x128xf32, #tpu.memory_space<vmem>>, vector<32x128xf32>
    %cst_300 = arith.constant dense<0.000000e+00> : vector<8x128xf32>
    %794 = tpu.matmul %792, %793, %cst_300 {dimension_numbers = #tpu.dot_dimension_numbers<[1], [0], [0], [1], [0, 0, 1, 1], [], []>, precision = #tpu.contract_precision<fp32>} : vector<8x32xf32>, vector<32x128xf32>, vector<8x128xf32> -> vector<8x128xf32>
    %c0_301 = arith.constant 0 : index
    %c0_302 = arith.constant 0 : index
    %795 = vector.load %arg8[%c0_301, %c0_302] : memref<1x128xf32, #tpu.memory_space<vmem>>, vector<1x128xf32>
    %796 = vector.broadcast %795 : vector<1x128xf32> to vector<8x128xf32>
    %797 = arith.addf %794, %796 : vector<8x128xf32>
    %c0_303 = arith.constant 0 : index
    %c0_304 = arith.constant 0 : index
    %798 = vector.load %arg9[%c0_303, %c0_304] : memref<8x128xf32, #tpu.memory_space<vmem>>, vector<8x128xf32>
    tpu.vector_store %arg9[%c0_303, %c0_304], %797 {strides = array<i32>} : memref<8x128xf32, #tpu.memory_space<vmem>>, vector<8x128xf32>,
    return
  }
}

</mosaic_0001>

<bundles_post_ra>
// kernel: tpu_custom_call.1
= control target key start
LH: loop header
LB: loop body
LE: loop exit
PB: predicated region body
PF: predicated region fallthrough
CT: control target
= control target key end

     0   :  { %14 = vsyncpa [#allocation5], 0  ;;  %s29580_s0 = inlined_call_operand.vmem [shape: f32[64,32], index: 0, kind: input, shape index: {}]   ;;  %s29581_s1 = inlined_call_operand.hbm [shape: f32[32,128], index: 1, kind: input, shape index: {}]   ;;  %s29582_s2 = inlined_call_operand.hbm [shape: f32[32,128], index: 2, kind: input, shape index: {}]   ;;  %s29583_s3 = inlined_call_operand.vmem [shape: f32[1,128], index: 3, kind: input, shape index: {}]   ;;  %s29584_s4 = inlined_call_operand.vmem [shape: f32[3,32,128], index: 4, kind: input, shape index: {}]   ;;  %s29585_s5 = inlined_call_operand.hbm [shape: f32[3,32,128], index: 5, kind: input, shape index: {}]   ;;  %s29586_s6 = inlined_call_operand.vmem [shape: f32[3,1,128], index: 6, kind: input, shape index: {}]   ;;  %s29587_s7 = inlined_call_operand.hbm [shape: f32[32,128], index: 7, kind: input, shape index: {}]   ;;  %s29588_s8 = inlined_call_operand.vmem [shape: f32[1,128], index: 8, kind: input, shape index: {}]   ;;  %s29589_s9 = inlined_call_operand.hbm [shape: f32[8,128], index: 9, kind: output, shape index: {}]  }
   0x1   :  { %15 = vsyncpa [#allocation8], 0 }
   0x2   :  { %16 = vsyncpa [#allocation11], 0 }
   0x3   :  { %17 = vsyncpa [#allocation6], 0  ;;  %s26783_s30 = smov [#allocation7]   ;;  %s26784_s11 = smov [#allocation4]  }
   0x4   :  { %s37_s10 = sshll.u32 %s26783_s30, 4  ;;  %s25_s12 = sshll.u32 %s26784_s11, 4  ;;  %s38_s10 = int_to_ptr.vmem [resolvable:$true] %s37_s10  ;;  %s26845_s12 = int_to_ptr.vmem [resolvable:$true] %s25_s12 }
   0x5   :  { %s26665_s15 = scalar_lea.hbm %s29582_s2, 512 }
   0x6   :  { %p26666_p0 = scmp.ne.s32.totalorder %s29582_s2, %s26665_s15  ;;  %p26669_p1 = scmp.lt.u32.totalorder %s26665_s15, %s29582_s2 }
   0x8   :  { %p26671_p2 = pnand %p26669_p1, %p26666_p0 }
   0xa   :  { %26674 = shalt.err (!%p26671_p2)
}
   0xb   :  { %s26675_s20 = scalar_lea.vmem %s38_s10, 512  ;;  %p26680_p4 = scmp.lt.s32.totalorder %s38_s10, %s38_s10 }
   0xc   :  { %p26676_p3 = scmp.ne.s32.totalorder %s38_s10, %s26675_s20  ;;  %p26681_p5 = scmp.lt.s32.totalorder %s26675_s20, %s26675_s20 }
   0xe   :  { %p26682_p6 = por %p26681_p5, %p26680_p4 }
  0x10   :  { %p26683_p7 = pnand %p26682_p6, %p26676_p3 }
  0x12   :  { %26686 = shalt.err (!%p26683_p7)
}
  0x13   :  { %s26785_s21 = smov 128   ;;  %s26786_s22 = smov 8  }
  0x14   :  { %43 = dma.hbm_to_vmem [thread:$0]  %s29582_s2, 512, %s38_s10, [#allocation8], %s26785_s21, %s26785_s21, %s26786_s22  }
  0x15   :  { %s26687_s27 = scalar_lea.hbm %s29581_s1, 512 }
  0x16   :  { %p26688_p8 = scmp.ne.s32.totalorder %s29581_s1, %s26687_s27  ;;  %p26691_p9 = scmp.lt.u32.totalorder %s26687_s27, %s29581_s1 }
  0x18   :  { %p26693_p10 = pnand %p26691_p9, %p26688_p8 }
  0x1a   :  { %26696 = shalt.err (!%p26693_p10)
}
  0x1b   :  { %s26697_s13 = scalar_lea.vmem %s26845_s12, 512  ;;  %p26702_p12 = scmp.lt.s32.totalorder %s26845_s12, %s26845_s12 }
  0x1c   :  { %p26698_p11 = scmp.ne.s32.totalorder %s26845_s12, %s26697_s13  ;;  %p26703_p13 = scmp.lt.s32.totalorder %s26697_s13, %s26697_s13 }
  0x1e   :  { %p26704_p0 = por %p26703_p13, %p26702_p12 }
  0x20   :  { %p26705_p1 = pnand %p26704_p0, %p26698_p11 }
  0x22   :  { %26708 = shalt.err (!%p26705_p1)
}
  0x23   :  { %31 = dma.hbm_to_vmem [thread:$0]  %s29581_s1, 512, %s26845_s12, [#allocation5], %s26785_s21, %s26785_s21, %s26786_s22  }
  0x24   :  { %s26787_s14 = smov [#allocation9]   ;;  %s26788_s16 = smov [#allocation10]  }
  0x25   :  { %s53_s15 = sshll.u32 %s26787_s14, 4  ;;  %s67_s17 = sshll.u32 %s26788_s16, 4  ;;  %s54_s15 = int_to_ptr.vmem [resolvable:$true] %s53_s15  ;;  %s26882_s17 = int_to_ptr.vmem [resolvable:$true] %s67_s17 }
  0x26   :  { %s26709_s20 = scalar_lea.hbm %s29585_s5, 1536 }
  0x27   :  { %p26710_p2 = scmp.ne.s32.totalorder %s29585_s5, %s26709_s20  ;;  %p26713_p3 = scmp.lt.u32.totalorder %s26709_s20, %s29585_s5 }
  0x29   :  { %p26715_p4 = pnand %p26713_p3, %p26710_p2 }
  0x2b   :  { %26718 = shalt.err (!%p26715_p4)
}
  0x2c   :  { %s26719_s1 = scalar_lea.vmem %s54_s15, 1536  ;;  %p26724_p6 = scmp.lt.s32.totalorder %s54_s15, %s54_s15 }
  0x2d   :  { %p26720_p5 = scmp.ne.s32.totalorder %s54_s15, %s26719_s1  ;;  %p26725_p7 = scmp.lt.s32.totalorder %s26719_s1, %s26719_s1 }
  0x2f   :  { %p26726_p8 = por %p26725_p7, %p26724_p6 }
  0x31   :  { %p26727_p9 = pnand %p26726_p8, %p26720_p5 }
  0x33   :  { %26730 = shalt.err (!%p26727_p9)
}
  0x34   :  { %59 = dma.hbm_to_vmem [thread:$0]  %s29585_s5, 1536, %s54_s15, [#allocation8], %s26785_s21, %s26785_s21, %s26786_s22  }
  0x35   :  { %s26731_s30 = scalar_lea.hbm %s29587_s7, 512 }
  0x36   :  { %p26732_p10 = scmp.ne.s32.totalorder %s29587_s7, %s26731_s30  ;;  %p26735_p11 = scmp.lt.u32.totalorder %s26731_s30, %s29587_s7 }
  0x38   :  { %p26737_p12 = pnand %p26735_p11, %p26732_p10 }
  0x3a   :  { %26740 = shalt.err (!%p26737_p12)
}
  0x3b   :  { %s26741_s14 = scalar_lea.vmem %s26882_s17, 512  ;;  %p26746_p0 = scmp.lt.s32.totalorder %s26882_s17, %s26882_s17 }
  0x3c   :  { %p26742_p13 = scmp.ne.s32.totalorder %s26882_s17, %s26741_s14  ;;  %p26747_p1 = scmp.lt.s32.totalorder %s26741_s14, %s26741_s14 }
  0x3e   :  { %p26748_p2 = por %p26747_p1, %p26746_p0 }
  0x40   :  { %p26749_p3 = pnand %p26748_p2, %p26742_p13 }
  0x42   :  { %26752 = shalt.err (!%p26749_p3)
}
  0x43   :  { %73 = dma.hbm_to_vmem [thread:$0]  %s29587_s7, 512, %s26882_s17, [#allocation11], %s26785_s21, %s26785_s21, %s26786_s22  }
  0x44   :  { %26775 = dma.done.wait [#allocation5], 512  }
  0x45   :  { %26776 = vsyncadd [#allocation5], 4294966784 }
  0x46   :  { %26777 = dma.done.wait [#allocation8], 2048  }
  0x47   :  { %26778 = vsyncadd [#allocation8], 4294965248 }
  0x48   :  { %26779 = dma.done.wait [#allocation11], 512  }
  0x49   :  { %26780 = vsyncadd [#allocation11], 4294966784  ;;  %vm111_vm0 = vcmask 261120   ;;  %v96_v0 = vld [vmem:[#allocation4] sm:$0xff]  ;;  %v97_v1 = vld [vmem:[#allocation4 + $0x8] sm:$0xff]  ;;  %vm26790_vm1 = vmmov 0  }
  0x4a   :  { %v98_v2 = vld [vmem:[#allocation4 + $0x10] sm:$0xff]  ;;  %v137_v3 = vand.u32 4294901760, %v96_v0  ;;  %v140_v4 = vand.u32 4294901760, %v97_v1  ;;  %v99_v5 = vld [vmem:[#allocation4 + $0x18] sm:$0xff]  ;;  %v88_v7 = vld [vmem:[%s29580_s0] sm:$0xff]  ;;  %s26793_s30 = smov 32  }
  0x4b   :  { %v143_v6 = vand.u32 4294901760, %v98_v2  ;;  %v89_v8 = vld [vmem:[%s29580_s0 + $0x8] sm:$0xff]  ;;  %v146_v9 = vand.u32 4294901760, %v99_v5  ;;  %v113_v10 = vsel %vm111_vm0, %v88_v7, 0  ;;  %v90_v12 = vld [vmem:[%s29580_s0 + $0x10] sm:$0xff]  ;;  %v91_v13 = vld [vmem:[%s29580_s0 + $0x18] sm:$0xff] }
  0x4c   :  { %v116_v11 = vsel %vm111_vm0, %v89_v8, 0  ;;  %v26933_v14 = vpack.c.bf16 %v140_v4, %v137_v3  ;;  %v26935_v15 = vand.u32 4294901760, %v113_v10  ;;  %v26939_v17 = vsub.f32 %v96_v0, %v137_v3  ;;  %v92_v38 = vld [vmem:[%s29580_s0 + $0x20] sm:$0xff]  ;;  %v93_v47 = vld [vmem:[%s29580_s0 + $0x28] sm:$0xff]  ;;  %v94_v52 = vld [vmem:[%s29580_s0 + $0x30] sm:$0xff] }
  0x4d   :  { %v26937_v16 = vand.u32 4294901760, %v116_v11  ;;  %v26941_v18 = vpack.c.bf16 %v146_v9, %v143_v6  ;;  %v26943_v19 = vsub.f32 %v97_v1, %v140_v4  ;;  %v119_v20 = vsel %vm111_vm0, %v90_v12, 0  ;;  %v95_v57 = vld [vmem:[%s29580_s0 + $0x38] sm:$0xff]  ;;  %v100_v1 = vld [vmem:[#allocation7] sm:$0xff] }
  0x4e   :  { %v122_v21 = vsel %vm111_vm0, %v91_v13, 0  ;;  %24537 = vmatprep.subr.bf16.mxu1 %v26933_v14  ;;  %v26949_v22 = vsub.f32 %v113_v10, %v26935_v15  ;;  %v288_v24 = vand.u32 4294901760, %v26939_v17  ;;  %v26955_v25 = vand.u32 4294901760, %v119_v20  ;;  %21906 = vmatprep.mubr.f32.mxu0 %v26935_v15  ;;  %v102_v13 = vld [vmem:[#allocation7 + $0x10] sm:$0xff] }
  0x4f   :  { %v26952_v23 = vsub.f32 %v116_v11, %v26937_v16  ;;  %24539 = vmatpush3.bf16.msra.mxu1 %v26933_v14  ;;  %v295_v26 = vand.u32 4294901760, %v26943_v19  ;;  %v26960_v27 = vand.u32 4294901760, %v122_v21  ;;  %v26962_v28 = vsub.f32 %v98_v2, %v143_v6  ;;  %v101_v2 = vld [vmem:[#allocation7 + $0x8] sm:$0xff] }
  0x50   :  { %v26964_v29 = vsub.f32 %v99_v5, %v146_v9  ;;  %24541 = vmatprep.subr.bf16.mxu1 %v26941_v18  ;;  %v207_v30 = vand.u32 4294901760, %v26949_v22  ;;  %v289_v32 = vsub.f32 %v26939_v17, %v288_v24  ;;  %v26973_v33 = vsub.f32 %v119_v20, %v26955_v25  ;;  %v103_v20 = vld [vmem:[#allocation7 + $0x18] sm:$0xff] }
  0x51   :  { %v217_v31 = vand.u32 4294901760, %v26952_v23  ;;  %v296_v34 = vsub.f32 %v26943_v19, %v295_v26  ;;  %v26979_v35 = vsub.f32 %v122_v21, %v26960_v27  ;;  %v302_v36 = vand.u32 4294901760, %v26962_v28 }
  0x52   :  { %v309_v37 = vand.u32 4294901760, %v26964_v29  ;;  %v208_v39 = vsub.f32 %v26949_v22, %v207_v30  ;;  %v290_v41 = vand.u32 4294901760, %v289_v32  ;;  %v227_v42 = vand.u32 4294901760, %v26973_v33 }
  0x53   :  { %v218_v40 = vsub.f32 %v26952_v23, %v217_v31  ;;  %24543 = vmatpush3.bf16.msra.mxu1 %v26941_v18  ;;  %v297_v43 = vand.u32 4294901760, %v296_v34  ;;  %v237_v44 = vand.u32 4294901760, %v26979_v35  ;;  %v303_v45 = vsub.f32 %v26962_v28, %v302_v36 }
  0x54   :  { %v310_v46 = vsub.f32 %v26964_v29, %v309_v37  ;;  %v209_v48 = vand.u32 4294901760, %v208_v39  ;;  %v228_v50 = vsub.f32 %v26973_v33, %v227_v42  ;;  %v125_v51 = vsel %vm111_vm0, %v92_v38, 0 }
  0x55   :  { %v219_v49 = vand.u32 4294901760, %v218_v40  ;;  %v24544_v53 = vpack.c.bf16 %v297_v43, %v290_v41  ;;  %v238_v54 = vsub.f32 %v26979_v35, %v237_v44  ;;  %v304_v55 = vand.u32 4294901760, %v303_v45 }
  0x56   :  { %v311_v56 = vand.u32 4294901760, %v310_v46  ;;  %21886 = vmatprep.mubr.f32.mxu1 %v209_v48  ;;  %v229_v58 = vand.u32 4294901760, %v228_v50  ;;  %v27017_v59 = vand.u32 4294901760, %v125_v51  ;;  %v128_v60 = vsel %vm111_vm0, %v93_v47, 0 }
  0x57   :  { %21887 = vmatmul.mubr.f32.vlgmr.msra.gmra.mrb[0].mxu1 %v219_v49  ;;  %24545 = vmatprep.subr.bf16.mxu0 %v24544_v53  ;;  %v239_v61 = vand.u32 4294901760, %v238_v54  ;;  %v27020_v63 = vand.u32 4294901760, %v128_v60  ;;  %v131_v0 = vsel %vm111_vm0, %v94_v52, 0  ;;  %v134_v5 = vsel %vm111_vm0, %v95_v57, 0 }
  0x58   :  { %v24548_v62 = vpack.c.bf16 %v311_v56, %v304_v55  ;;  %24547 = vmatpush3.bf16.msra.mxu0 %v24544_v53  ;;  %21889 = vmatprep.mubr.f32.mxu1 %v229_v58  ;;  %v27024_v3 = vsub.f32 %v125_v51, %v27017_v59  ;;  %v27026_v4 = vand.u32 4294901760, %v131_v0  ;;  %v24552_v7 = vpack.c.bf16 %v26943_v19, %v26939_v17 }
  0x59   :  { %25916 = vmatprep.subr.bf16.mxu1 %v24544_v53  ;;  %v27030_v6 = vsub.f32 %v128_v60, %v27020_v63  ;;  %v27034_v8 = vand.u32 4294901760, %v134_v5  ;;  %v935_v11 = vand.u32 4294901760, %v100_v1  ;;  %v938_v12 = vand.u32 4294901760, %v101_v2 }
  0x5a   :  { %24549 = vmatprep.subr.bf16.mxu0 %v24548_v62  ;;  %25918 = vmatpush3.bf16.msra.mxu1 %v24544_v53  ;;  %v247_v9 = vand.u32 4294901760, %v27024_v3  ;;  %v27038_v10 = vsub.f32 %v131_v0, %v27026_v4  ;;  %v24556_v39 = vpack.c.bf16 %v26964_v29, %v26962_v28  ;;  %v941_v43 = vand.u32 4294901760, %v102_v13 }
  0x5b   :  { %21890 = vmatmul.mubr.f32.gmra.mrb[2].mxu1 %v239_v61  ;;  %v257_v21 = vand.u32 4294901760, %v27030_v6  ;;  %25917 = vmatprep.subr.bf16.mxu1 %v24548_v62  ;;  %v27042_v32 = vsub.f32 %v134_v5, %v27034_v8  ;;  %v944_v45 = vand.u32 4294901760, %v103_v20  ;;  %v27057_v48 = vsub.f32 %v100_v1, %v935_v11 }
  0x5c   :  { %24551 = vmatpush3.bf16.msra.mxu0 %v24548_v62  ;;  %v248_v34 = vsub.f32 %v27024_v3, %v247_v9  ;;  %v267_v38 = vand.u32 4294901760, %v27038_v10  ;;  %v27059_v49 = vsub.f32 %v101_v2, %v938_v12  ;;  %v26789_v52 = vmov 0.0|0.0  }
  0x5d   :  { %v258_v40 = vsub.f32 %v27030_v6, %v257_v21  ;;  %24553 = vmatprep.subr.bf16.mxu0 %v24552_v7  ;;  %v277_v41 = vand.u32 4294901760, %v27042_v32  ;;  %v1016_v55 = vand.u32 4294901760, %v27057_v48  ;;  %v27069_v57 = vsub.f32 %v102_v13, %v941_v43 }
  0x5e   :  { %v249_v46 = vand.u32 4294901760, %v248_v34  ;;  %v268_v47 = vsub.f32 %v27038_v10, %v267_v38  ;;  %25919 = vmatpush3.bf16.msra.mxu1 %v24548_v62  ;;  %v1023_v56 = vand.u32 4294901760, %v27059_v49  ;;  %v27071_v58 = vsub.f32 %v103_v20, %v944_v45 }
  0x5f   :  { %v259_v50 = vand.u32 4294901760, %v258_v40  ;;  %21907 = vmatmul.mubr.f32.vlgmr.msra.gmra.mrb[0].mxu0 %v26937_v16  ;;  %v278_v51 = vsub.f32 %v27042_v32, %v277_v41  ;;  %24584 = vmatprep.subr.bf16.mxu1 %v26789_v52  ;;  %v27076_v60 = vpack.c.bf16 %v938_v12, %v935_v11  ;;  %v1017_v61 = vsub.f32 %v27057_v48, %v1016_v55 }
  0x60   :  { %21892 = vmatprep.mubr.f32.mxu1 %v249_v46  ;;  %24555 = vmatpush3.bf16.msra.mxu0 %v24552_v7  ;;  %v269_v53 = vand.u32 4294901760, %v268_v47  ;;  %v1024_v62 = vsub.f32 %v27059_v49, %v1023_v56  ;;  %v1030_v0 = vand.u32 4294901760, %v27069_v57  ;;  %v1037_v1 = vand.u32 4294901760, %v27071_v58 }
  0x61   :  { %21893 = vmatmul.mubr.f32.gmra.mrb[4].mxu1 %v259_v50  ;;  %21909 = vmatprep.mubr.f32.mxu0 %v26955_v25  ;;  %v279_v54 = vand.u32 4294901760, %v278_v51  ;;  %v27091_v2 = vpack.c.bf16 %v944_v45, %v941_v43  ;;  %v24568_v5 = vpack.c.bf16 %v295_v26, %v288_v24  ;;  %v1018_v7 = vand.u32 4294901760, %v1017_v61 }
  0x62   :  { %21895 = vmatprep.mubr.f32.mxu1 %v269_v53  ;;  %24557 = vmatprep.subr.bf16.mxu0 %v24556_v39  ;;  %v1025_v11 = vand.u32 4294901760, %v1024_v62  ;;  %v1031_v12 = vsub.f32 %v27069_v57, %v1030_v0  ;;  %v1038_v13 = vsub.f32 %v27071_v58, %v1037_v1  ;;  %v26791_v17 = vmov 0.0  }
  0x63   :  { %21910 = vmatmul.mubr.f32.gmra.mrb[2].mxu0 %v26960_v27  ;;  %v24572_v34 = vpack.c.bf16 %v309_v37, %v302_v36  ;;  %v27189_v28 = vpack.c.bf16 %v1037_v1, %v1030_v0 }
  0x64   :  { %24559 = vmatpush3.bf16.msra.mxu0 %v24556_v39  ;;  %21926 = vmatprep.mubr.f32.mxu0 %v26949_v22  ;;  %v27114_v19 = vpack.c.bf16 %v1025_v11, %v1018_v7  ;;  %v1032_v24 = vand.u32 4294901760, %v1031_v12  ;;  %v1039_v26 = vand.u32 4294901760, %v1038_v13  ;;  %v27136_v39 = vpack.c.bf16 %v27059_v49, %v27057_v48 }
  0x65   :  { %21896 = vmatmul.mubr.f32.gmra.mrb[6].mxu1 %v279_v54  ;;  %24561 = vmatprep.subr.bf16.mxu0 %v26933_v14  ;;  %v27147_v22 = vpack.c.bf16 %v27071_v58, %v27069_v57 }
  0x66   :  { %21912 = vmatprep.mubr.f32.mxu1 %v27017_v59  ;;  %v27121_v20 = vpack.c.bf16 %v1039_v26, %v1032_v24 }
  0x67   :  { %21927 = vmatmul.mubr.f32.vlgmr.msra.gmra.mrb[0].mxu0 %v26952_v23  ;;  %v27176_v23 = vpack.c.bf16 %v1023_v56, %v1016_v55 }
  0x68   :  { %24563 = vmatpush3.bf16.msra.mxu0 %v26933_v14  ;;  %21929 = vmatprep.mubr.f32.mxu0 %v26973_v33 }
  0x69   :  { %21913 = vmatmul.mubr.f32.vlgmr.msra.gmra.mrb[4].mxu1 %v27020_v63  ;;  %24565 = vmatprep.subr.bf16.mxu0 %v26941_v18 }
  0x6a   :  { %24586 = vmatpush3.bf16.msra.mxu1 %v27076_v60  ;;  %21915 = vmatprep.mubr.f32.mxu1 %v27026_v4 }
  0x6b   :  { %21930 = vmatmul.mubr.f32.gmra.mrb[2].mxu0 %v26979_v35  ;;  %24587 = vmatprep.subr.bf16.mxu1 %v26789_v52 }
  0x6c   :  { %21932 = vmatprep.mubr.f32.mxu0 %v27024_v3  ;;  %24567 = vmatpush3.bf16.msra.mxu0 %v26941_v18 }
  0x6d   :  { %21916 = vmatmul.mubr.f32.gmra.mrb[6].mxu1 %v27034_v8  ;;  %24569 = vmatprep.subr.bf16.mxu0 %v24568_v5 }
  0x6e   :  { %24589 = vmatpush3.bf16.msra.mxu1 %v27091_v2  ;;  %22006 = vmatprep.mubr.msk.f32.mxu1 %vm26790_vm1, %v26791_v17 }
  0x6f   :  { %21933 = vmatmul.mubr.f32.gmra.mrb[4].mxu0 %v27030_v6  ;;  %24590 = vmatprep.subr.bf16.mxu1 %v26789_v52 }
  0x70   :  { %21935 = vmatprep.mubr.f32.mxu0 %v27038_v10 }
  0x71   :  { %22007 = vmatmul.mubr.f32.vlgmr.msra.gmra.mrb[8].mxu1 %v26791_v17 }
  0x72   :  { %24592 = vmatpush3.bf16.msra.mxu1 %v27114_v19  ;;  %22017 = vmatprep.mubr.msk.f32.mxu1 %vm26790_vm1, %v26791_v17 }
  0x73   :  { %21936 = vmatmul.mubr.f32.gmra.mrb[6].mxu0 %v27042_v32  ;;  %24593 = vmatprep.subr.bf16.mxu1 %v26789_v52 }
  0x74   :  { %21946 = vmatprep.mubr.f32.mxu0 %v207_v30 }
  0x76   :  { %24595 = vmatpush3.bf16.msra.mxu1 %v27121_v20 }
  0x77   :  { %21947 = vmatmul.mubr.f32.vlgmr.msra.gmra.mrb[0].mxu0 %v217_v31  ;;  %24596 = vmatprep.subr.bf16.mxu1 %v26789_v52 }
  0x78   :  { %24571 = vmatpush3.bf16.msra.mxu0 %v24568_v5  ;;  %21949 = vmatprep.mubr.f32.mxu0 %v227_v42 }
  0x79   :  { %22018 = vmatmul.mubr.f32.vlgmr.msra.gmra.mrb[8].mxu1 %v26791_v17  ;;  %24573 = vmatprep.subr.bf16.mxu0 %v24572_v34 }
  0x7a   :  { %24598 = vmatpush3.bf16.msra.mxu1 %v27136_v39  ;;  %22028 = vmatprep.mubr.msk.f32.mxu1 %vm26790_vm1, %v26791_v17 }
  0x7b   :  { %21950 = vmatmul.mubr.f32.gmra.mrb[2].mxu0 %v237_v44  ;;  %24599 = vmatprep.subr.bf16.mxu1 %v26789_v52 }
  0x7c   :  { %21952 = vmatprep.mubr.f32.mxu0 %v247_v9  ;;  %24575 = vmatpush3.bf16.msra.mxu0 %v24572_v34 }
  0x7d   :  { %24577 = vmatprep.subr.bf16.mxu0 %v26933_v14 }
  0x7e   :  { %24601 = vmatpush3.bf16.msra.mxu1 %v27147_v22 }
  0x7f   :  { %21953 = vmatmul.mubr.f32.gmra.mrb[4].mxu0 %v257_v21  ;;  %24602 = vmatprep.subr.bf16.mxu1 %v26789_v52 }
  0x80   :  { %21955 = vmatprep.mubr.f32.mxu0 %v267_v38 }
  0x81   :  { %22029 = vmatmul.mubr.f32.vlgmr.msra.gmra.mrb[8].mxu1 %v26791_v17 }
  0x82   :  { %24604 = vmatpush3.bf16.msra.mxu1 %v27076_v60  ;;  %22039 = vmatprep.mubr.msk.f32.mxu1 %vm26790_vm1, %v26791_v17 }
  0x83   :  { %21956 = vmatmul.mubr.f32.gmra.mrb[6].mxu0 %v277_v41  ;;  %24605 = vmatprep.subr.bf16.mxu1 %v26789_v52 }
  0x84   :  { %21966 = vmatprep.mubr.f32.mxu0 %v26935_v15 }
  0x86   :  { %24607 = vmatpush3.bf16.msra.mxu1 %v27091_v2 }
  0x87   :  { %21967 = vmatmul.mubr.f32.vlgmr.msra.gmra.mrb[0].mxu0 %v26937_v16  ;;  %24608 = vmatprep.subr.bf16.mxu1 %v26789_v52 }
  0x88   :  { %24579 = vmatpush3.bf16.msra.mxu0 %v26933_v14  ;;  %21969 = vmatprep.mubr.f32.mxu0 %v26955_v25  ;;  %v20585_v14 = vld [vmem:[%s29583_s3] ss:$0 sm:$0xff]  ;;  %s26792_s3 = smov 64  }
  0x89   :  { %22040 = vmatmul.mubr.f32.vlgmr.msra.gmra.mrb[8].mxu1 %v26791_v17  ;;  %24581 = vmatprep.subr.bf16.mxu0 %v26941_v18 }
  0x8a   :  { %24610 = vmatpush3.bf16.msra.mxu1 %v27176_v23  ;;  %22050 = vmatprep.mubr.msk.f32.mxu1 %vm26790_vm1, %v26791_v17 }
  0x8b   :  { %21970 = vmatmul.mubr.f32.gmra.mrb[2].mxu0 %v26960_v27  ;;  %24611 = vmatprep.subr.bf16.mxu1 %v26789_v52 }
  0x8c   :  { %21972 = vmatprep.mubr.f32.mxu0 %v27017_v59  ;;  %24583 = vmatpush3.bf16.msra.mxu0 %v26941_v18 }
  0x8d   :  { %24656 = vmatprep.subr.bf16.mxu0 %v26789_v52 }
  0x8e   :  { %24613 = vmatpush3.bf16.msra.mxu1 %v27189_v28 }
  0x8f   :  { %21973 = vmatmul.mubr.f32.gmra.mrb[4].mxu0 %v27020_v63  ;;  %24614 = vmatprep.subr.bf16.mxu1 %v26789_v52 }
  0x90   :  { %21975 = vmatprep.mubr.f32.mxu0 %v27026_v4 }
  0x91   :  { %22051 = vmatmul.mubr.f32.vlgmr.msra.gmra.mrb[8].mxu1 %v26791_v17 }
  0x92   :  { %24616 = vmatpush3.bf16.msra.mxu1 %v27076_v60  ;;  %22061 = vmatprep.mubr.msk.f32.mxu1 %vm26790_vm1, %v26791_v17 }
  0x93   :  { %21976 = vmatmul.mubr.f32.gmra.mrb[6].mxu0 %v27034_v8  ;;  %24617 = vmatprep.subr.bf16.mxu1 %v26789_v52 }
  0x94   :  { %21986 = vmatprep.mubr.f32.mxu0 %v26935_v15 }
  0x96   :  { %24619 = vmatpush3.bf16.msra.mxu1 %v27091_v2 }
  0x97   :  { %21987 = vmatmul.mubr.f32.vlgmr.msra.gmra.mrb[0].mxu0 %v26937_v16  ;;  %24620 = vmatprep.subr.bf16.mxu1 %v26789_v52 }
  0x98   :  { %21989 = vmatprep.mubr.f32.mxu0 %v26955_v25  ;;  %24658 = vmatpush3.bf16.msra.mxu0 %v27076_v60 }
  0x99   :  { %22062 = vmatmul.mubr.f32.vlgmr.msra.gmra.mrb[8].mxu1 %v26791_v17  ;;  %24659 = vmatprep.subr.bf16.mxu0 %v26789_v52 }
  0x9a   :  { %24622 = vmatpush3.bf16.msra.mxu1 %v27076_v60  ;;  %22072 = vmatprep.mubr.msk.f32.mxu1 %vm26790_vm1, %v26791_v17 }
  0x9b   :  { %21990 = vmatmul.mubr.f32.gmra.mrb[2].mxu0 %v26960_v27  ;;  %24623 = vmatprep.subr.bf16.mxu1 %v26789_v52 }
  0x9c   :  { %21992 = vmatprep.mubr.f32.mxu0 %v27017_v59  ;;  %24661 = vmatpush3.bf16.msra.mxu0 %v27091_v2 }
  0x9d   :  { %24662 = vmatprep.subr.bf16.mxu0 %v26789_v52 }
  0x9e   :  { %24625 = vmatpush3.bf16.msra.mxu1 %v27091_v2 }
  0x9f   :  { %21993 = vmatmul.mubr.f32.gmra.mrb[4].mxu0 %v27020_v63  ;;  %24626 = vmatprep.subr.bf16.mxu1 %v26789_v52 }
  0xa0   :  { %21995 = vmatprep.mubr.f32.mxu0 %v27026_v4 }
  0xa3   :  { %21996 = vmatmul.mubr.f32.gmra.mrb[6].mxu0 %v27034_v8 }
  0xa4   :  { %22138 = vmatprep.mubr.msk.f32.mxu0 %vm26790_vm1, %v26791_v17 }
 0x12a   :  { %v21888_v15 = vpop.f32.mrb[0].mxu1 }
 0x12b   :  { %v222_v16 = vadd.f32 %v21888_v15, %v20585_v14  ;;  %v211_v18 = vpop.f32.mrb[1].mxu1 }
 0x12c   :  { %v212_v63 = vadd.f32 %v20585_v14, %v211_v18 }
 0x12e   :  { %v21891_v25 = vpop.f32.mrb[2].mxu1 }
 0x12f   :  { %v242_v27 = vadd.f32 %v21891_v25, %v20585_v14  ;;  %v231_v29 = vpop.f32.mrb[3].mxu1 }
 0x130   :  { %v232_v30 = vadd.f32 %v20585_v14, %v231_v29 }
 0x13c   :  { %v21914_v31 = vpop.f32.mrb[4].mxu1 }
 0x13d   :  { %v25928_v33 = vadd.f32 %v21914_v31, %v20585_v14  ;;  %v396_v35 = vpop.f32.mrb[5].mxu1 }
 0x13e   :  { %v25930_v36 = vadd.f32 %v20585_v14, %v396_v35 }
 0x140   :  { %v21917_v37 = vpop.f32.mrb[6].mxu1 }
 0x141   :  { %v25932_v42 = vadd.f32 %v21917_v37, %v20585_v14  ;;  %v408_v44 = vpop.f32.mrb[7].mxu1 }
 0x142   :  { %v25934_v59 = vadd.f32 %v20585_v14, %v408_v44 }
 0x16a   :  { %v21988_v3 = vpop.f32.mrb[0].mxu0 }
 0x16b   :  { %v27234_v4 = vadd.f32 %v21988_v3, %v222_v16  ;;  %v876_v6 = vpop.f32.mrb[1].mxu0 }
 0x16c   :  { %v1415_v8 = vpop.f32.mrb[8].mxu1  ;;  %v25923_v9 = vadd.f32 %v876_v6, %v212_v63 }
 0x16d   :  { %v22063_v10 = vpop.f32.mrb[9].mxu1 }
 0x16e   :  { %v1419_v21 = vadd.f32 %v25923_v9, %v1415_v8  ;;  %v21991_v32 = vpop.f32.mrb[2].mxu0 }
 0x16f   :  { %v27236_v38 = vadd.f32 %v21991_v32, %v242_v27  ;;  %v888_v40 = vpop.f32.mrb[3].mxu0 }
 0x170   :  { %26455 = vtanh.f32 %v1419_v21  ;;  %v27238_v41 = vadd.f32 %v888_v40, %v232_v30  ;;  %v1420_v54 = vmul.f32 0.5, %v1419_v21 }
 0x172   :  { %v21994_v43 = vpop.f32.mrb[4].mxu0  ;;  %26457 = vtanh.f32 %v1420_v54 }
 0x173   :  { %v27240_v45 = vadd.f32 %v25928_v33, %v21994_v43  ;;  %v900_v46 = vpop.f32.mrb[5].mxu0 }
 0x174   :  { %v27242_v47 = vadd.f32 %v25930_v36, %v900_v46 }
 0x176   :  { %v21997_v48 = vpop.f32.mrb[6].mxu0 }
 0x177   :  { %v27244_v49 = vadd.f32 %v25932_v42, %v21997_v48  ;;  %v912_v50 = vpop.f32.mrb[7].mxu0 }
 0x178   :  { %v27246_v51 = vadd.f32 %v25934_v59, %v912_v50 }
 0x17a   :  { %v26456_v53 = vpop.eup %26455 }
 0x17b   :  { %1427 = vrot.lane.b32.xlu0 %v26456_v53, %s26792_s3 }
 0x17c   :  { %v26458_v55 = vpop.eup %26457 }
 0x17d   :  { %v1422_v56 = vmul.f32 0.5, %v26458_v55 }
 0x17f   :  { %v1423_v57 = vadd.f32 0.5, %v1422_v56 }
 0x181   :  { %v1425_v62 = vmul.f32 0.0, %v1423_v57 }
 0x1ed   :  { %v1428_v58 = vpop.permute.xlu0 %1427 }
 0x1ee   :  { %v1430_v61 = vmul.f32 %v1428_v58, %v1423_v57 }
 0x1f0   :  { %1432 = vrot.lane.b32.xlu0 %v1430_v61, %s26793_s30 }
 0x262   :  { %v1433_v0 = vpop.permute.xlu0 %1432 }
 0x263   :  { %v27250_v1 = vadd.f32 %v1433_v0, %v1425_v62 }
 0x265   :  { %26459 = vtanh.f32 %v27250_v1 }
 0x26f   :  { %v26460_v5 = vpop.eup %26459 }
 0x270   :  { %1438 = vrot.lane.b32.xlu1 %v26460_v5, %s26792_s3 }
 0x2e2   :  { %v1439_v7 = vpop.permute.xlu1 %1438 }
 0x2e3   :  { %v1441_v11 = vmul.f32 %v1439_v7, %v1423_v57 }
 0x2e5   :  { %1443 = vrot.lane.b32.xlu1 %v1441_v11, %s26793_s30 }
 0x357   :  { %v1444_v12 = vpop.permute.xlu1 %1443 }
 0x358   :  { %1446 = vst.msk [vmem:[#allocation3] sm:$0xff] %vm111_vm0, %v1444_v12  ;;  %v1448_v13 = vsel %vm111_vm0, %v1444_v12, 0 }
 0x359   :  { %v1519_v24 = vand.u32 4294901760, %v1448_v13 }
 0x35b   :  { %v1520_v26 = vsub.f32 %v1448_v13, %v1519_v24 }
 0x35d   :  { %v1521_v34 = vand.u32 4294901760, %v1520_v26 }
 0x35f   :  { %v1522_v14 = vsub.f32 %v1520_v26, %v1521_v34 }
 0x361   :  { %v1523_v15 = vand.u32 4294901760, %v1522_v14 }
 0x363   :  { %22073 = vmatmul.mubr.f32.vlgmr.msra.gmra.mrb[10].mxu1 %v1523_v15 }
 0x364   :  { %24628 = vmatpush3.bf16.msra.mxu1 %v27114_v19  ;;  %22083 = vmatprep.mubr.msk.f32.mxu1 %vm26790_vm1, %v26791_v17 }
 0x365   :  { %24629 = vmatprep.subr.bf16.mxu1 %v26789_v52 }
 0x368   :  { %24631 = vmatpush3.bf16.msra.mxu1 %v27121_v20 }
 0x369   :  { %24632 = vmatprep.subr.bf16.mxu1 %v26789_v52 }
 0x36b   :  { %22084 = vmatmul.mubr.f32.vlgmr.msra.gmra.mrb[10].mxu1 %v1519_v24 }
 0x36c   :  { %24634 = vmatpush3.bf16.msra.mxu1 %v27136_v39  ;;  %22094 = vmatprep.mubr.msk.f32.mxu1 %vm26790_vm1, %v26791_v17 }
 0x36d   :  { %24635 = vmatprep.subr.bf16.mxu1 %v26789_v52 }
 0x370   :  { %24637 = vmatpush3.bf16.msra.mxu1 %v27147_v22 }
 0x371   :  { %24638 = vmatprep.subr.bf16.mxu1 %v26789_v52 }
 0x373   :  { %22095 = vmatmul.mubr.f32.vlgmr.msra.gmra.mrb[10].mxu1 %v1520_v26 }
 0x374   :  { %24640 = vmatpush3.bf16.msra.mxu1 %v27076_v60  ;;  %22105 = vmatprep.mubr.msk.f32.mxu1 %vm26790_vm1, %v26791_v17 }
 0x375   :  { %24641 = vmatprep.subr.bf16.mxu1 %v26789_v52 }
 0x378   :  { %24643 = vmatpush3.bf16.msra.mxu1 %v27091_v2 }
 0x379   :  { %24644 = vmatprep.subr.bf16.mxu1 %v26789_v52 }
 0x37b   :  { %22106 = vmatmul.mubr.f32.vlgmr.msra.gmra.mrb[10].mxu1 %v1521_v34 }
 0x37c   :  { %24646 = vmatpush3.bf16.msra.mxu1 %v27176_v23  ;;  %22116 = vmatprep.mubr.msk.f32.mxu1 %vm26790_vm1, %v26791_v17 }
 0x37d   :  { %24647 = vmatprep.subr.bf16.mxu1 %v26789_v52 }
 0x380   :  { %24649 = vmatpush3.bf16.msra.mxu1 %v27189_v28 }
 0x381   :  { %24650 = vmatprep.subr.bf16.mxu1 %v26789_v52 }
 0x383   :  { %22117 = vmatmul.mubr.f32.vlgmr.msra.gmra.mrb[10].mxu1 %v1519_v24 }
 0x384   :  { %24652 = vmatpush3.bf16.msra.mxu1 %v27076_v60  ;;  %22127 = vmatprep.mubr.msk.f32.mxu1 %vm26790_vm1, %v26791_v17 }
 0x385   :  { %24653 = vmatprep.subr.bf16.mxu1 %v26789_v52 }
 0x388   :  { %24655 = vmatpush3.bf16.msra.mxu1 %v27091_v2 }
 0x389   :  { %24692 = vmatprep.subr.bf16.mxu1 %v26789_v52 }
 0x38b   :  { %22128 = vmatmul.mubr.f32.vlgmr.msra.gmra.mrb[10].mxu1 %v1519_v24 }
 0x38c   :  { %24694 = vmatpush3.bf16.msra.mxu1 %v27076_v60  ;;  %22204 = vmatprep.mubr.msk.f32.mxu1 %vm26790_vm1, %v26791_v17 }
 0x38d   :  { %24695 = vmatprep.subr.bf16.mxu1 %v26789_v52 }
 0x390   :  { %24697 = vmatpush3.bf16.msra.mxu1 %v27091_v2 }
 0x391   :  { %24698 = vmatprep.subr.bf16.mxu1 %v26789_v52 }
 0x45e   :  { %v1931_v16 = vpop.f32.mrb[10].mxu1 }
 0x45f   :  { %v1935_v18 = vadd.f32 %v27234_v4, %v1931_v16  ;;  %v22129_v25 = vpop.f32.mrb[11].mxu1 }
 0x461   :  { %26461 = vtanh.f32 %v1935_v18  ;;  %v1936_v29 = vmul.f32 0.5, %v1935_v18 }
 0x463   :  { %26463 = vtanh.f32 %v1936_v29 }
 0x46b   :  { %v26462_v27 = vpop.eup %26461 }
 0x46c   :  { %1943 = vrot.lane.b32.xlu0 %v26462_v27, %s26792_s3 }
 0x46d   :  { %v26464_v30 = vpop.eup %26463 }
 0x46e   :  { %v1938_v31 = vmul.f32 0.5, %v26464_v30 }
 0x470   :  { %v1939_v33 = vadd.f32 0.5, %v1938_v31 }
 0x472   :  { %v1941_v37 = vmul.f32 %v1939_v33, %v27250_v1 }
 0x4de   :  { %v1944_v35 = vpop.permute.xlu0 %1943 }
 0x4df   :  { %v1946_v36 = vmul.f32 %v1944_v35, %v1939_v33 }
 0x4e1   :  { %1948 = vrot.lane.b32.xlu1 %v1946_v36, %s26793_s30 }
 0x553   :  { %v1949_v42 = vpop.permute.xlu1 %1948 }
 0x554   :  { %v27297_v44 = vadd.f32 %v1949_v42, %v1941_v37 }
 0x556   :  { %26465 = vtanh.f32 %v27297_v44 }
 0x560   :  { %v26466_v59 = vpop.eup %26465 }
 0x561   :  { %1954 = vrot.lane.b32.xlu0 %v26466_v59, %s26792_s3 }
 0x5d3   :  { %v1955_v63 = vpop.permute.xlu0 %1954 }
 0x5d4   :  { %v1957_v3 = vmul.f32 %v1955_v63, %v1939_v33 }
 0x5d6   :  { %1959 = vrot.lane.b32.xlu1 %v1957_v3, %s26793_s30 }
 0x648   :  { %v1960_v4 = vpop.permute.xlu1 %1959 }
 0x649   :  { %1962 = vst.msk [vmem:[#allocation3 + $0x8] sm:$0xff] %vm111_vm0, %v1960_v4  ;;  %v1964_v6 = vsel %vm111_vm0, %v1960_v4, 0 }
 0x64a   :  { %v2035_v8 = vand.u32 4294901760, %v1964_v6 }
 0x64c   :  { %v2036_v9 = vsub.f32 %v1964_v6, %v2035_v8 }
 0x64e   :  { %v2037_v10 = vand.u32 4294901760, %v2036_v9 }
 0x650   :  { %v2038_v21 = vsub.f32 %v2036_v9, %v2037_v10 }
 0x652   :  { %v2039_v32 = vand.u32 4294901760, %v2038_v21 }
 0x654   :  { %22139 = vmatmul.mubr.f32.vlgmr.msra.gmra.mrb[8].mxu0 %v2039_v32 }
 0x655   :  { %24664 = vmatpush3.bf16.msra.mxu0 %v27114_v19  ;;  %22149 = vmatprep.mubr.msk.f32.mxu0 %vm26790_vm1, %v26791_v17 }
 0x656   :  { %24665 = vmatprep.subr.bf16.mxu0 %v26789_v52 }
 0x659   :  { %24667 = vmatpush3.bf16.msra.mxu0 %v27121_v20 }
 0x65a   :  { %24668 = vmatprep.subr.bf16.mxu0 %v26789_v52 }
 0x65c   :  { %22150 = vmatmul.mubr.f32.vlgmr.msra.gmra.mrb[8].mxu0 %v2035_v8 }
 0x65d   :  { %24670 = vmatpush3.bf16.msra.mxu0 %v27136_v39  ;;  %22160 = vmatprep.mubr.msk.f32.mxu0 %vm26790_vm1, %v26791_v17 }
 0x65e   :  { %24671 = vmatprep.subr.bf16.mxu0 %v26789_v52 }
 0x661   :  { %24673 = vmatpush3.bf16.msra.mxu0 %v27147_v22 }
 0x662   :  { %24674 = vmatprep.subr.bf16.mxu0 %v26789_v52 }
 0x664   :  { %22161 = vmatmul.mubr.f32.vlgmr.msra.gmra.mrb[8].mxu0 %v2036_v9 }
 0x665   :  { %24676 = vmatpush3.bf16.msra.mxu0 %v27076_v60  ;;  %22171 = vmatprep.mubr.msk.f32.mxu0 %vm26790_vm1, %v26791_v17 }
 0x666   :  { %24677 = vmatprep.subr.bf16.mxu0 %v26789_v52 }
 0x669   :  { %24679 = vmatpush3.bf16.msra.mxu0 %v27091_v2 }
 0x66a   :  { %24680 = vmatprep.subr.bf16.mxu0 %v26789_v52 }
 0x66c   :  { %22172 = vmatmul.mubr.f32.vlgmr.msra.gmra.mrb[8].mxu0 %v2037_v10 }
 0x66d   :  { %24682 = vmatpush3.bf16.msra.mxu0 %v27176_v23  ;;  %22182 = vmatprep.mubr.msk.f32.mxu0 %vm26790_vm1, %v26791_v17 }
 0x66e   :  { %24683 = vmatprep.subr.bf16.mxu0 %v26789_v52 }
 0x671   :  { %24685 = vmatpush3.bf16.msra.mxu0 %v27189_v28 }
 0x672   :  { %24686 = vmatprep.subr.bf16.mxu0 %v26789_v52 }
 0x674   :  { %22183 = vmatmul.mubr.f32.vlgmr.msra.gmra.mrb[8].mxu0 %v2035_v8 }
 0x675   :  { %24688 = vmatpush3.bf16.msra.mxu0 %v27076_v60  ;;  %22193 = vmatprep.mubr.msk.f32.mxu0 %vm26790_vm1, %v26791_v17 }
 0x676   :  { %24689 = vmatprep.subr.bf16.mxu0 %v26789_v52 }
 0x679   :  { %24691 = vmatpush3.bf16.msra.mxu0 %v27091_v2 }
 0x67a   :  { %24728 = vmatprep.subr.bf16.mxu0 %v26789_v52 }
 0x67c   :  { %22194 = vmatmul.mubr.f32.vlgmr.msra.gmra.mrb[8].mxu0 %v2035_v8 }
 0x67d   :  { %24730 = vmatpush3.bf16.msra.mxu0 %v27076_v60  ;;  %22270 = vmatprep.mubr.msk.f32.mxu0 %vm26790_vm1, %v26791_v17 }
 0x67e   :  { %24731 = vmatprep.subr.bf16.mxu0 %v26789_v52 }
 0x681   :  { %24733 = vmatpush3.bf16.msra.mxu0 %v27091_v2 }
 0x682   :  { %24734 = vmatprep.subr.bf16.mxu0 %v26789_v52 }
 0x74f   :  { %v2447_v40 = vpop.f32.mrb[8].mxu0 }
 0x750   :  { %v2451_v43 = vadd.f32 %v27238_v41, %v2447_v40  ;;  %v22195_v46 = vpop.f32.mrb[9].mxu0 }
 0x752   :  { %26467 = vtanh.f32 %v2451_v43  ;;  %v2452_v50 = vmul.f32 0.5, %v2451_v43 }
 0x754   :  { %26469 = vtanh.f32 %v2452_v50 }
 0x75c   :  { %v26468_v48 = vpop.eup %26467 }
 0x75d   :  { %2459 = vrot.lane.b32.xlu0 %v26468_v48, %s26792_s3 }
 0x75e   :  { %v26470_v53 = vpop.eup %26469 }
 0x75f   :  { %v2454_v54 = vmul.f32 0.5, %v26470_v53 }
 0x761   :  { %v2455_v55 = vadd.f32 0.5, %v2454_v54 }
 0x763   :  { %v2457_v58 = vmul.f32 %v2455_v55, %v27297_v44 }
 0x7cf   :  { %v2460_v56 = vpop.permute.xlu0 %2459 }
 0x7d0   :  { %v2462_v57 = vmul.f32 %v2460_v56, %v2455_v55 }
 0x7d2   :  { %2464 = vrot.lane.b32.xlu1 %v2462_v57, %s26793_s30 }
 0x844   :  { %v2465_v61 = vpop.permute.xlu1 %2464 }
 0x845   :  { %v27344_v62 = vadd.f32 %v2465_v61, %v2457_v58 }
 0x847   :  { %26471 = vtanh.f32 %v27344_v62 }
 0x851   :  { %v26472_v41 = vpop.eup %26471 }
 0x852   :  { %2470 = vrot.lane.b32.xlu0 %v26472_v41, %s26792_s3 }
 0x8c4   :  { %v2471_v0 = vpop.permute.xlu0 %2470 }
 0x8c5   :  { %v2473_v1 = vmul.f32 %v2471_v0, %v2455_v55 }
 0x8c7   :  { %2475 = vrot.lane.b32.xlu1 %v2473_v1, %s26793_s30 }
 0x939   :  { %v2476_v5 = vpop.permute.xlu1 %2475 }
 0x93a   :  { %2478 = vst.msk [vmem:[#allocation3 + $0x10] sm:$0xff] %vm111_vm0, %v2476_v5  ;;  %v2480_v7 = vsel %vm111_vm0, %v2476_v5, 0 }
 0x93b   :  { %v2551_v11 = vand.u32 4294901760, %v2480_v7 }
 0x93d   :  { %v2552_v12 = vsub.f32 %v2480_v7, %v2551_v11 }
 0x93f   :  { %v2553_v13 = vand.u32 4294901760, %v2552_v12 }
 0x941   :  { %v2554_v24 = vsub.f32 %v2552_v12, %v2553_v13 }
 0x943   :  { %v2555_v26 = vand.u32 4294901760, %v2554_v24 }
 0x945   :  { %22205 = vmatmul.mubr.f32.vlgmr.msra.gmra.mrb[12].mxu1 %v2555_v26 }
 0x946   :  { %24700 = vmatpush3.bf16.msra.mxu1 %v27114_v19  ;;  %22215 = vmatprep.mubr.msk.f32.mxu1 %vm26790_vm1, %v26791_v17 }
 0x947   :  { %24701 = vmatprep.subr.bf16.mxu1 %v26789_v52 }
 0x94a   :  { %24703 = vmatpush3.bf16.msra.mxu1 %v27121_v20 }
 0x94b   :  { %24704 = vmatprep.subr.bf16.mxu1 %v26789_v52 }
 0x94d   :  { %22216 = vmatmul.mubr.f32.vlgmr.msra.gmra.mrb[12].mxu1 %v2551_v11 }
 0x94e   :  { %24706 = vmatpush3.bf16.msra.mxu1 %v27136_v39  ;;  %22226 = vmatprep.mubr.msk.f32.mxu1 %vm26790_vm1, %v26791_v17 }
 0x94f   :  { %24707 = vmatprep.subr.bf16.mxu1 %v26789_v52 }
 0x952   :  { %24709 = vmatpush3.bf16.msra.mxu1 %v27147_v22 }
 0x953   :  { %24710 = vmatprep.subr.bf16.mxu1 %v26789_v52 }
 0x955   :  { %22227 = vmatmul.mubr.f32.vlgmr.msra.gmra.mrb[12].mxu1 %v2552_v12 }
 0x956   :  { %24712 = vmatpush3.bf16.msra.mxu1 %v27076_v60  ;;  %22237 = vmatprep.mubr.msk.f32.mxu1 %vm26790_vm1, %v26791_v17 }
 0x957   :  { %24713 = vmatprep.subr.bf16.mxu1 %v26789_v52 }
 0x95a   :  { %24715 = vmatpush3.bf16.msra.mxu1 %v27091_v2 }
 0x95b   :  { %24716 = vmatprep.subr.bf16.mxu1 %v26789_v52 }
 0x95d   :  { %22238 = vmatmul.mubr.f32.vlgmr.msra.gmra.mrb[12].mxu1 %v2553_v13 }
 0x95e   :  { %24718 = vmatpush3.bf16.msra.mxu1 %v27176_v23  ;;  %22248 = vmatprep.mubr.msk.f32.mxu1 %vm26790_vm1, %v26791_v17 }
 0x95f   :  { %24719 = vmatprep.subr.bf16.mxu1 %v26789_v52 }
 0x962   :  { %24721 = vmatpush3.bf16.msra.mxu1 %v27189_v28 }
 0x963   :  { %24722 = vmatprep.subr.bf16.mxu1 %v26789_v52 }
 0x965   :  { %22249 = vmatmul.mubr.f32.vlgmr.msra.gmra.mrb[12].mxu1 %v2551_v11 }
 0x966   :  { %24724 = vmatpush3.bf16.msra.mxu1 %v27076_v60  ;;  %22259 = vmatprep.mubr.msk.f32.mxu1 %vm26790_vm1, %v26791_v17 }
 0x967   :  { %24725 = vmatprep.subr.bf16.mxu1 %v26789_v52 }
 0x96a   :  { %24727 = vmatpush3.bf16.msra.mxu1 %v27091_v2 }
 0x96b   :  { %24764 = vmatprep.subr.bf16.mxu1 %v26789_v52 }
 0x96d   :  { %22260 = vmatmul.mubr.f32.vlgmr.msra.gmra.mrb[12].mxu1 %v2551_v11 }
 0x96e   :  { %24766 = vmatpush3.bf16.msra.mxu1 %v27076_v60  ;;  %22336 = vmatprep.mubr.msk.f32.mxu1 %vm26790_vm1, %v26791_v17 }
 0x96f   :  { %24767 = vmatprep.subr.bf16.mxu1 %v26789_v52 }
 0x972   :  { %24769 = vmatpush3.bf16.msra.mxu1 %v27091_v2 }
 0x973   :  { %24770 = vmatprep.subr.bf16.mxu1 %v26789_v52 }
 0xa40   :  { %v2963_v34 = vpop.f32.mrb[12].mxu1 }
 0xa41   :  { %v2967_v14 = vadd.f32 %v27236_v38, %v2963_v34  ;;  %v22261_v15 = vpop.f32.mrb[13].mxu1 }
 0xa43   :  { %26473 = vtanh.f32 %v2967_v14  ;;  %v2968_v18 = vmul.f32 0.5, %v2967_v14 }
 0xa45   :  { %26475 = vtanh.f32 %v2968_v18 }
 0xa4d   :  { %v26474_v16 = vpop.eup %26473 }
 0xa4e   :  { %2975 = vrot.lane.b32.xlu0 %v26474_v16, %s26792_s3 }
 0xa4f   :  { %v26476_v25 = vpop.eup %26475 }
 0xa50   :  { %v2970_v27 = vmul.f32 0.5, %v26476_v25 }
 0xa52   :  { %v2971_v29 = vadd.f32 0.5, %v2970_v27 }
 0xa54   :  { %v2973_v33 = vmul.f32 %v2971_v29, %v27344_v62 }
 0xac0   :  { %v2976_v30 = vpop.permute.xlu0 %2975 }
 0xac1   :  { %v2978_v31 = vmul.f32 %v2976_v30, %v2971_v29 }
 0xac3   :  { %2980 = vrot.lane.b32.xlu1 %v2978_v31, %s26793_s30 }
 0xb35   :  { %v2981_v35 = vpop.permute.xlu1 %2980 }
 0xb36   :  { %v27391_v36 = vadd.f32 %v2981_v35, %v2973_v33 }
 0xb38   :  { %26477 = vtanh.f32 %v27391_v36 }
 0xb42   :  { %v26478_v38 = vpop.eup %26477 }
 0xb43   :  { %2986 = vrot.lane.b32.xlu0 %v26478_v38, %s26792_s3 }
 0xbb5   :  { %v2987_v37 = vpop.permute.xlu0 %2986 }
 0xbb6   :  { %v2989_v42 = vmul.f32 %v2987_v37, %v2971_v29 }
 0xbb8   :  { %2991 = vrot.lane.b32.xlu1 %v2989_v42, %s26793_s30 }
 0xc2a   :  { %v2992_v44 = vpop.permute.xlu1 %2991 }
 0xc2b   :  { %2994 = vst.msk [vmem:[#allocation3 + $0x18] sm:$0xff] %vm111_vm0, %v2992_v44  ;;  %v2996_v59 = vsel %vm111_vm0, %v2992_v44, 0 }
 0xc2c   :  { %v3067_v63 = vand.u32 4294901760, %v2996_v59 }
 0xc2e   :  { %v3068_v3 = vsub.f32 %v2996_v59, %v3067_v63  ;;  %v5059_v59 = vld [vmem:[#allocation3] sm:$0xff] }
 0xc30   :  { %v3069_v4 = vand.u32 4294901760, %v3068_v3 }
 0xc32   :  { %v3070_v6 = vsub.f32 %v3068_v3, %v3069_v4 }
 0xc34   :  { %v3071_v8 = vand.u32 4294901760, %v3070_v6  ;;  %v5061_v6 = vld [vmem:[#allocation3 + $0x10] sm:$0xff] }
 0xc36   :  { %22271 = vmatmul.mubr.f32.vlgmr.msra.gmra.mrb[10].mxu0 %v3071_v8 }
 0xc37   :  { %24736 = vmatpush3.bf16.msra.mxu0 %v27114_v19  ;;  %22281 = vmatprep.mubr.msk.f32.mxu0 %vm26790_vm1, %v26791_v17 }
 0xc38   :  { %24737 = vmatprep.subr.bf16.mxu0 %v26789_v52 }
 0xc3b   :  { %24739 = vmatpush3.bf16.msra.mxu0 %v27121_v20 }
 0xc3c   :  { %24740 = vmatprep.subr.bf16.mxu0 %v26789_v52 }
 0xc3e   :  { %22282 = vmatmul.mubr.f32.vlgmr.msra.gmra.mrb[10].mxu0 %v3067_v63 }
 0xc3f   :  { %24742 = vmatpush3.bf16.msra.mxu0 %v27136_v39  ;;  %22292 = vmatprep.mubr.msk.f32.mxu0 %vm26790_vm1, %v26791_v17 }
 0xc40   :  { %24743 = vmatprep.subr.bf16.mxu0 %v26789_v52 }
 0xc43   :  { %24745 = vmatpush3.bf16.msra.mxu0 %v27147_v22 }
 0xc44   :  { %24746 = vmatprep.subr.bf16.mxu0 %v26789_v52 }
 0xc46   :  { %22293 = vmatmul.mubr.f32.vlgmr.msra.gmra.mrb[10].mxu0 %v3068_v3 }
 0xc47   :  { %24748 = vmatpush3.bf16.msra.mxu0 %v27076_v60  ;;  %22303 = vmatprep.mubr.msk.f32.mxu0 %vm26790_vm1, %v26791_v17 }
 0xc48   :  { %24749 = vmatprep.subr.bf16.mxu0 %v26789_v52 }
 0xc4b   :  { %24751 = vmatpush3.bf16.msra.mxu0 %v27091_v2 }
 0xc4c   :  { %24752 = vmatprep.subr.bf16.mxu0 %v26789_v52 }
 0xc4e   :  { %22304 = vmatmul.mubr.f32.vlgmr.msra.gmra.mrb[10].mxu0 %v3069_v4  ;;  %v5060_v4 = vld [vmem:[#allocation3 + $0x8] sm:$0xff] }
 0xc4f   :  { %24754 = vmatpush3.bf16.msra.mxu0 %v27176_v23  ;;  %22314 = vmatprep.mubr.msk.f32.mxu0 %vm26790_vm1, %v26791_v17  ;;  %v5086_v8 = vsel %vm111_vm0, %v5060_v4, 0 }
 0xc50   :  { %24755 = vmatprep.subr.bf16.mxu0 %v26789_v52 }
 0xc53   :  { %24757 = vmatpush3.bf16.msra.mxu0 %v27189_v28 }
 0xc54   :  { %24758 = vmatprep.subr.bf16.mxu0 %v26789_v52 }
 0xc56   :  { %22315 = vmatmul.mubr.f32.vlgmr.msra.gmra.mrb[10].mxu0 %v3067_v63 }
 0xc57   :  { %24760 = vmatpush3.bf16.msra.mxu0 %v27076_v60  ;;  %22325 = vmatprep.mubr.msk.f32.mxu0 %vm26790_vm1, %v26791_v17 }
 0xc58   :  { %24761 = vmatprep.subr.bf16.mxu0 %v26789_v52 }
 0xc5b   :  { %24763 = vmatpush3.bf16.msra.mxu0 %v27091_v2 }
 0xc5c   :  { %24800 = vmatprep.subr.bf16.mxu0 %v26789_v52 }
 0xc5e   :  { %22326 = vmatmul.mubr.f32.vlgmr.msra.gmra.mrb[10].mxu0 %v3067_v63  ;;  %v5083_v63 = vsel %vm111_vm0, %v5059_v59, 0 }
 0xc5f   :  { %24802 = vmatpush3.bf16.msra.mxu0 %v27076_v60  ;;  %22402 = vmatprep.mubr.msk.f32.mxu0 %vm26790_vm1, %v26791_v17  ;;  %v27515_v3 = vand.u32 4294901760, %v5083_v63 }
 0xc60   :  { %24803 = vmatprep.subr.bf16.mxu0 %v26789_v52 }
 0xc63   :  { %24805 = vmatpush3.bf16.msra.mxu0 %v27091_v2 }
 0xc64   :  { %24806 = vmatprep.subr.bf16.mxu0 %v26789_v52 }
 0xd31   :  { %v3479_v9 = vpop.f32.mrb[10].mxu0 }
 0xd32   :  { %v3483_v10 = vadd.f32 %v27242_v47, %v3479_v9  ;;  %v22327_v21 = vpop.f32.mrb[11].mxu0  ;;  %v27525_v9 = vld [vmem:[%s29584_s4] sm:$0xff] }
 0xd33   :  { %v27533_v21 = vsub.f32 %v5083_v63, %v27515_v3 }
 0xd34   :  { %26479 = vtanh.f32 %v3483_v10  ;;  %v3484_v40 = vmul.f32 0.5, %v3483_v10  ;;  %v27530_v10 = vld [vmem:[%s29584_s4 + $0x8] sm:$0xff] }
 0xd36   :  { %26481 = vtanh.f32 %v3484_v40  ;;  %v5062_v40 = vld [vmem:[#allocation3 + $0x18] sm:$0xff] }
 0xd3e   :  { %v26480_v32 = vpop.eup %26479 }
 0xd3f   :  { %3491 = vrot.lane.b32.xlu0 %v26480_v32, %s26792_s3  ;;  %v5089_v32 = vsel %vm111_vm0, %v5061_v6, 0 }
 0xd40   :  { %v26482_v43 = vpop.eup %26481 }
 0xd41   :  { %v3486_v46 = vmul.f32 0.5, %v26482_v43  ;;  %v27537_v43 = vand.u32 4294901760, %v5086_v8 }
 0xd43   :  { %v3487_v48 = vadd.f32 0.5, %v3486_v46 }
 0xd45   :  { %v3489_v54 = vmul.f32 %v3487_v48, %v27391_v36 }
 0xdb1   :  { %v3492_v50 = vpop.permute.xlu0 %3491 }
 0xdb2   :  { %v3494_v53 = vmul.f32 %v3492_v50, %v3487_v48  ;;  %v5110_v50 = vand.u32 4294901760, %v27530_v10 }
 0xdb4   :  { %3496 = vrot.lane.b32.xlu1 %v3494_v53, %s26793_s30  ;;  %v5177_v53 = vand.u32 4294901760, %v27533_v21 }
 0xe26   :  { %v3497_v55 = vpop.permute.xlu1 %3496 }
 0xe27   :  { %v27438_v56 = vadd.f32 %v3497_v55, %v3489_v54  ;;  %v27546_v54 = vld [vmem:[%s29584_s4 + $0x10] sm:$0xff]  ;;  %v27551_v55 = vld [vmem:[%s29584_s4 + $0x18] sm:$0xff] }
 0xe29   :  { %26483 = vtanh.f32 %v27438_v56 }
 0xe33   :  { %v26484_v47 = vpop.eup %26483 }
 0xe34   :  { %3502 = vrot.lane.b32.xlu0 %v26484_v47, %s26792_s3  ;;  %v5092_v47 = vsel %vm111_vm0, %v5062_v40, 0 }
 0xea6   :  { %v3503_v57 = vpop.permute.xlu0 %3502 }
 0xea7   :  { %v3505_v58 = vmul.f32 %v3503_v57, %v3487_v48  ;;  %v5107_v48 = vand.u32 4294901760, %v27525_v9 }
 0xea9   :  { %3507 = vrot.lane.b32.xlu1 %v3505_v58, %s26793_s30 }
 0xf1b   :  { %v3508_v61 = vpop.permute.xlu1 %3507 }
 0xf1c   :  { %3510 = vst.msk [vmem:[#allocation3 + $0x20] sm:$0xff] %vm111_vm0, %v3508_v61  ;;  %v3512_v62 = vsel %vm111_vm0, %v3508_v61, 0  ;;  %v27562_v61 = vsub.f32 %v5086_v8, %v27537_v43 }
 0xf1d   :  { %v3583_v41 = vand.u32 4294901760, %v3512_v62 }
 0xf1f   :  { %v3584_v0 = vsub.f32 %v3512_v62, %v3583_v41  ;;  %v27569_v62 = vpack.c.bf16 %v5110_v50, %v5107_v48 }
 0xf21   :  { %v3585_v1 = vand.u32 4294901760, %v3584_v0 }
 0xf23   :  { %v3586_v5 = vsub.f32 %v3584_v0, %v3585_v1  ;;  %v5063_v46 = vld [vmem:[#allocation3 + $0x20] sm:$0xff] }
 0xf24   :  { %v5095_v57 = vsel %vm111_vm0, %v5063_v46, 0 }
 0xf25   :  { %v3587_v7 = vand.u32 4294901760, %v3586_v5  ;;  %v5178_v5 = vsub.f32 %v27533_v21, %v5177_v53 }
 0xf27   :  { %22337 = vmatmul.mubr.f32.vlgmr.msra.gmra.mrb[14].mxu1 %v3587_v7 }
 0xf28   :  { %24772 = vmatpush3.bf16.msra.mxu1 %v27114_v19  ;;  %22347 = vmatprep.mubr.msk.f32.mxu1 %vm26790_vm1, %v26791_v17 }
 0xf29   :  { %24773 = vmatprep.subr.bf16.mxu1 %v26789_v52 }
 0xf2c   :  { %24775 = vmatpush3.bf16.msra.mxu1 %v27121_v20 }
 0xf2d   :  { %24776 = vmatprep.subr.bf16.mxu1 %v26789_v52 }
 0xf2f   :  { %22348 = vmatmul.mubr.f32.vlgmr.msra.gmra.mrb[14].mxu1 %v3583_v41 }
 0xf30   :  { %24778 = vmatpush3.bf16.msra.mxu1 %v27136_v39  ;;  %22358 = vmatprep.mubr.msk.f32.mxu1 %vm26790_vm1, %v26791_v17 }
 0xf31   :  { %24779 = vmatprep.subr.bf16.mxu1 %v26789_v52 }
 0xf34   :  { %24781 = vmatpush3.bf16.msra.mxu1 %v27147_v22 }
 0xf35   :  { %24782 = vmatprep.subr.bf16.mxu1 %v26789_v52 }
 0xf37   :  { %22359 = vmatmul.mubr.f32.vlgmr.msra.gmra.mrb[14].mxu1 %v3584_v0  ;;  %v5116_v0 = vand.u32 4294901760, %v27551_v55 }
 0xf38   :  { %24784 = vmatpush3.bf16.msra.mxu1 %v27076_v60  ;;  %22369 = vmatprep.mubr.msk.f32.mxu1 %vm26790_vm1, %v26791_v17 }
 0xf39   :  { %24785 = vmatprep.subr.bf16.mxu1 %v26789_v52 }
 0xf3c   :  { %24787 = vmatpush3.bf16.msra.mxu1 %v27091_v2 }
 0xf3d   :  { %24788 = vmatprep.subr.bf16.mxu1 %v26789_v52 }
 0xf3f   :  { %22370 = vmatmul.mubr.f32.vlgmr.msra.gmra.mrb[14].mxu1 %v3585_v1  ;;  %v27573_v1 = vand.u32 4294901760, %v5092_v47 }
 0xf40   :  { %24790 = vmatpush3.bf16.msra.mxu1 %v27176_v23  ;;  %22380 = vmatprep.mubr.msk.f32.mxu1 %vm26790_vm1, %v26791_v17 }
 0xf41   :  { %24791 = vmatprep.subr.bf16.mxu1 %v26789_v52 }
 0xf44   :  { %24793 = vmatpush3.bf16.msra.mxu1 %v27189_v28 }
 0xf45   :  { %24794 = vmatprep.subr.bf16.mxu1 %v26789_v52 }
 0xf47   :  { %22381 = vmatmul.mubr.f32.vlgmr.msra.gmra.mrb[14].mxu1 %v3583_v41 }
 0xf48   :  { %24796 = vmatpush3.bf16.msra.mxu1 %v27076_v60  ;;  %22391 = vmatprep.mubr.msk.f32.mxu1 %vm26790_vm1, %v26791_v17 }
 0xf49   :  { %24797 = vmatprep.subr.bf16.mxu1 %v26789_v52 }
 0xf4c   :  { %24799 = vmatpush3.bf16.msra.mxu1 %v27091_v2 }
 0xf4d   :  { %24836 = vmatprep.subr.bf16.mxu1 %v26789_v52 }
 0xf4f   :  { %22392 = vmatmul.mubr.f32.vlgmr.msra.gmra.mrb[14].mxu1 %v3583_v41  ;;  %v5113_v41 = vand.u32 4294901760, %v27546_v54 }
 0xf50   :  { %24838 = vmatpush3.bf16.msra.mxu1 %v27076_v60  ;;  %22468 = vmatprep.mubr.msk.f32.mxu1 %vm26790_vm1, %v26791_v17 }
 0xf51   :  { %24839 = vmatprep.subr.bf16.mxu1 %v26789_v52 }
 0xf54   :  { %24841 = vmatpush3.bf16.msra.mxu1 %v27091_v2 }
 0xf55   :  { %24842 = vmatprep.subr.bf16.mxu1 %v26789_v52 }
0x1022   :  { %v3995_v11 = vpop.f32.mrb[14].mxu1 }
0x1023   :  { %v3999_v12 = vadd.f32 %v27240_v45, %v3995_v11  ;;  %v22393_v13 = vpop.f32.mrb[15].mxu1  ;;  %v27581_v11 = vand.u32 4294901760, %v5095_v57 }
0x1024   :  { %v27590_v13 = vpack.c.bf16 %v5116_v0, %v5113_v41 }
0x1025   :  { %26485 = vtanh.f32 %v3999_v12  ;;  %v4000_v26 = vmul.f32 0.5, %v3999_v12 }
0x1027   :  { %26487 = vtanh.f32 %v4000_v26  ;;  %v27594_v26 = vsub.f32 %v5092_v47, %v27573_v1 }
0x102f   :  { %v26486_v24 = vpop.eup %26485 }
0x1030   :  { %4007 = vrot.lane.b32.xlu0 %v26486_v24, %s26792_s3  ;;  %v5187_v24 = vand.u32 4294901760, %v27562_v61 }
0x1031   :  { %v26488_v34 = vpop.eup %26487 }
0x1032   :  { %v4002_v14 = vmul.f32 0.5, %v26488_v34 }
0x1034   :  { %v4003_v15 = vadd.f32 0.5, %v4002_v14  ;;  %v5179_v14 = vand.u32 4294901760, %v5178_v5 }
0x1036   :  { %v4005_v25 = vmul.f32 %v4003_v15, %v27438_v56  ;;  %v27553_v56 = vand.u32 4294901760, %v5089_v32 }
0x1038   :  { %v27579_v7 = vsub.f32 %v5089_v32, %v27553_v56 }
0x10a2   :  { %v4008_v16 = vpop.permute.xlu0 %4007 }
0x10a3   :  { %v4010_v18 = vmul.f32 %v4008_v16, %v4003_v15  ;;  %v27600_v16 = vsub.f32 %v5095_v57, %v27581_v11 }
0x10a5   :  { %4012 = vrot.lane.b32.xlu1 %v4010_v18, %s26793_s30  ;;  %v5188_v18 = vsub.f32 %v27562_v61, %v5187_v24 }
0x1117   :  { %v4013_v27 = vpop.permute.xlu1 %4012 }
0x1118   :  { %v27485_v29 = vadd.f32 %v4013_v27, %v4005_v25  ;;  %v5207_v25 = vand.u32 4294901760, %v27594_v26 }
0x111a   :  { %26489 = vtanh.f32 %v27485_v29 }
0x1124   :  { %v26490_v45 = vpop.eup %26489 }
0x1125   :  { %4018 = vrot.lane.b32.xlu0 %v26490_v45, %s26792_s3 }
0x1197   :  { %v4019_v30 = vpop.permute.xlu0 %4018 }
0x1198   :  { %v4021_v31 = vmul.f32 %v4019_v30, %v4003_v15  ;;  %v5197_v15 = vand.u32 4294901760, %v27579_v7  ;;  %v5217_v30 = vand.u32 4294901760, %v27600_v16 }
0x119a   :  { %4023 = vrot.lane.b32.xlu1 %v4021_v31, %s26793_s30  ;;  %v5198_v45 = vsub.f32 %v27579_v7, %v5197_v15  ;;  %v5189_v31 = vand.u32 4294901760, %v5188_v18 }
0x120c   :  { %v4024_v33 = vpop.permute.xlu1 %4023 }
0x120d   :  { %4026 = vst.msk [vmem:[#allocation3 + $0x28] sm:$0xff] %vm111_vm0, %v4024_v33  ;;  %v4028_v35 = vsel %vm111_vm0, %v4024_v33, 0  ;;  %v5208_v33 = vsub.f32 %v27594_v26, %v5207_v25 }
0x120e   :  { %v27492_v36 = vand.u32 4294901760, %v4028_v35 }
0x1210   :  { %v4100_v38 = vsub.f32 %v4028_v35, %v27492_v36 }
0x1212   :  { %v4101_v37 = vand.u32 4294901760, %v4100_v38 }
0x1214   :  { %v4102_v42 = vsub.f32 %v4100_v38, %v4101_v37  ;;  %v5064_v58 = vld [vmem:[#allocation3 + $0x28] sm:$0xff] }
0x1215   :  { %v5098_v12 = vsel %vm111_vm0, %v5064_v58, 0 }
0x1216   :  { %v4103_v44 = vand.u32 4294901760, %v4102_v42  ;;  %v27596_v34 = vand.u32 4294901760, %v5098_v12 }
0x1218   :  { %22403 = vmatmul.mubr.f32.vlgmr.msra.gmra.mrb[12].mxu0 %v4103_v44  ;;  %v27610_v27 = vsub.f32 %v5098_v12, %v27596_v34 }
0x1219   :  { %24808 = vmatpush3.bf16.msra.mxu0 %v27114_v19  ;;  %22413 = vmatprep.mubr.msk.f32.mxu0 %vm26790_vm1, %v26791_v17 }
0x121a   :  { %24809 = vmatprep.subr.bf16.mxu0 %v26789_v52  ;;  %v5227_v35 = vand.u32 4294901760, %v27610_v27 }
0x121c   :  { %v5228_v42 = vsub.f32 %v27610_v27, %v5227_v35 }
0x121d   :  { %24811 = vmatpush3.bf16.msra.mxu0 %v27121_v20 }
0x121e   :  { %24812 = vmatprep.subr.bf16.mxu0 %v26789_v52  ;;  %v5229_v59 = vand.u32 4294901760, %v5228_v42 }
0x1220   :  { %22414 = vmatmul.mubr.f32.vlgmr.msra.gmra.mrb[12].mxu0 %v27492_v36 }
0x1221   :  { %24814 = vmatpush3.bf16.msra.mxu0 %v27136_v39  ;;  %22424 = vmatprep.mubr.msk.f32.mxu0 %vm26790_vm1, %v26791_v17 }
0x1222   :  { %24815 = vmatprep.subr.bf16.mxu0 %v26789_v52 }
0x1225   :  { %24817 = vmatpush3.bf16.msra.mxu0 %v27147_v22 }
0x1226   :  { %24818 = vmatprep.subr.bf16.mxu0 %v26789_v52 }
0x1228   :  { %22425 = vmatmul.mubr.f32.vlgmr.msra.gmra.mrb[12].mxu0 %v4100_v38  ;;  %v5218_v38 = vsub.f32 %v27600_v16, %v5217_v30 }
0x1229   :  { %24820 = vmatpush3.bf16.msra.mxu0 %v27076_v60  ;;  %22435 = vmatprep.mubr.msk.f32.mxu0 %vm26790_vm1, %v26791_v17 }
0x122a   :  { %24821 = vmatprep.subr.bf16.mxu0 %v26789_v52  ;;  %v5219_v44 = vand.u32 4294901760, %v5218_v38 }
0x122d   :  { %24823 = vmatpush3.bf16.msra.mxu0 %v27091_v2 }
0x122e   :  { %24824 = vmatprep.subr.bf16.mxu0 %v26789_v52 }
0x1230   :  { %22436 = vmatmul.mubr.f32.vlgmr.msra.gmra.mrb[12].mxu0 %v4101_v37  ;;  %v5209_v37 = vand.u32 4294901760, %v5208_v33 }
0x1231   :  { %24826 = vmatpush3.bf16.msra.mxu0 %v27176_v23  ;;  %22446 = vmatprep.mubr.msk.f32.mxu0 %vm26790_vm1, %v26791_v17 }
0x1232   :  { %24827 = vmatprep.subr.bf16.mxu0 %v26789_v52 }
0x1235   :  { %24829 = vmatpush3.bf16.msra.mxu0 %v27189_v28 }
0x1236   :  { %24830 = vmatprep.subr.bf16.mxu0 %v26789_v52 }
0x1238   :  { %22447 = vmatmul.mubr.f32.vlgmr.msra.gmra.mrb[12].mxu0 %v27492_v36 }
0x1239   :  { %24832 = vmatpush3.bf16.msra.mxu0 %v27076_v60  ;;  %22457 = vmatprep.mubr.msk.f32.mxu0 %vm26790_vm1, %v26791_v17 }
0x123a   :  { %24833 = vmatprep.subr.bf16.mxu0 %v26789_v52 }
0x123d   :  { %24835 = vmatpush3.bf16.msra.mxu0 %v27091_v2 }
0x123e   :  { %24873 = vmatprep.subr.bf16.mxu0 %v27569_v62 }
0x1240   :  { %22458 = vmatmul.mubr.f32.vlgmr.msra.gmra.mrb[12].mxu0 %v27492_v36  ;;  %v5199_v36 = vand.u32 4294901760, %v5198_v45 }
0x1241   :  { %24875 = vmatpush3.bf16.msra.mxu0 %v27569_v62  ;;  %22534 = vmatprep.mubr.f32.mxu0 %v5179_v14 }
0x1242   :  { %24877 = vmatprep.subr.bf16.mxu0 %v27590_v13 }
0x1245   :  { %24879 = vmatpush3.bf16.msra.mxu0 %v27590_v13 }
0x1248   :  { %22535 = vmatmul.mubr.f32.vlgmr.msra.gmra.mrb[14].mxu0 %v5189_v31 }
0x1249   :  { %22537 = vmatprep.mubr.f32.mxu0 %v5199_v36 }
0x124c   :  { %22538 = vmatmul.mubr.f32.gmra.mrb[16].mxu0 %v5209_v37 }
0x124d   :  { %22540 = vmatprep.mubr.f32.mxu0 %v5219_v44 }
0x1250   :  { %22541 = vmatmul.mubr.f32.gmra.mrb[18].mxu0 %v5229_v59 }
0x1313   :  { %v4511_v63 = vpop.f32.mrb[12].mxu0 }
0x1314   :  { %v4515_v4 = vadd.f32 %v27246_v51, %v4511_v63  ;;  %v22459_v6 = vpop.f32.mrb[13].mxu0 }
0x1316   :  { %26491 = vtanh.f32 %v4515_v4  ;;  %v4516_v32 = vmul.f32 0.5, %v4515_v4 }
0x1318   :  { %26493 = vtanh.f32 %v4516_v32 }
0x1320   :  { %v26492_v8 = vpop.eup %26491 }
0x1321   :  { %4523 = vrot.lane.b32.xlu0 %v26492_v8, %s26792_s3 }
0x1322   :  { %v26494_v40 = vpop.eup %26493 }
0x1323   :  { %v4518_v46 = vmul.f32 0.5, %v26494_v40 }
0x1325   :  { %v4519_v47 = vadd.f32 0.5, %v4518_v46 }
0x1327   :  { %v4521_v5 = vmul.f32 %v4519_v47, %v27485_v29 }
0x1393   :  { %v4524_v57 = vpop.permute.xlu0 %4523 }
0x1394   :  { %v4526_v58 = vmul.f32 %v4524_v57, %v4519_v47 }
0x1396   :  { %4528 = vrot.lane.b32.xlu1 %v4526_v58, %s26793_s30 }
0x1408   :  { %v4529_v12 = vpop.permute.xlu1 %4528 }
0x1409   :  { %v27631_v14 = vadd.f32 %v4529_v12, %v4521_v5  ;;  %v5071_v5 = vld [vmem:[#allocation9] sm:$0xff]  ;;  %v5072_v12 = vld [vmem:[#allocation9 + $0x8] sm:$0xff] }
0x140b   :  { %26495 = vtanh.f32 %v27631_v14 }
0x1415   :  { %v26496_v51 = vpop.eup %26495 }
0x1416   :  { %4534 = vrot.lane.b32.xlu0 %v26496_v51, %s26792_s3  ;;  %v5902_v51 = vand.u32 4294901760, %v5071_v5 }
0x1488   :  { %v4535_v18 = vpop.permute.xlu0 %4534 }
0x1489   :  { %v4537_v45 = vmul.f32 %v4535_v18, %v4519_v47  ;;  %v5905_v18 = vand.u32 4294901760, %v5072_v12 }
0x148b   :  { %4539 = vrot.lane.b32.xlu1 %v4537_v45, %s26793_s30  ;;  %v27688_v45 = vsub.f32 %v27525_v9, %v5107_v48  ;;  %v27705_v9 = vpack.c.bf16 %v5905_v18, %v5902_v51 }
0x148d   :  { %v5258_v48 = vand.u32 4294901760, %v27688_v45 }
0x14fd   :  { %v4540_v31 = vpop.permute.xlu1 %4539 }
0x14fe   :  { %4542 = vst.msk [vmem:[#allocation3 + $0x30] sm:$0xff] %vm111_vm0, %v4540_v31  ;;  %v4544_v33 = vsel %vm111_vm0, %v4540_v31, 0  ;;  %v27693_v31 = vsub.f32 %v27530_v10, %v5110_v50  ;;  %v27709_v50 = vsub.f32 %v5071_v5, %v5902_v51 }
0x14ff   :  { %v4615_v36 = vand.u32 4294901760, %v4544_v33 }
0x1500   :  { %v5265_v10 = vand.u32 4294901760, %v27693_v31 }
0x1501   :  { %v4616_v38 = vsub.f32 %v4544_v33, %v4615_v36  ;;  %v5074_v33 = vld [vmem:[#allocation9 + $0x18] sm:$0xff] }
0x1503   :  { %v4617_v29 = vand.u32 4294901760, %v4616_v38 }
0x1505   :  { %v4618_v37 = vsub.f32 %v4616_v38, %v4617_v29  ;;  %v5065_v42 = vld [vmem:[#allocation3 + $0x30] sm:$0xff] }
0x1506   :  { %v5101_v44 = vsel %vm111_vm0, %v5065_v42, 0 }
0x1507   :  { %v4619_v59 = vand.u32 4294901760, %v4618_v37  ;;  %v27639_v63 = vand.u32 4294901760, %v5101_v44  ;;  %v27703_v37 = vsub.f32 %v27551_v55, %v5116_v0  ;;  %v5259_v55 = vsub.f32 %v27688_v45, %v5258_v48 }
0x1508   :  { %v5266_v0 = vsub.f32 %v27693_v31, %v5265_v10 }
0x1509   :  { %22469 = vmatmul.mubr.f32.vlgmr.msra.gmra.mrb[16].mxu1 %v4619_v59  ;;  %v27642_v4 = vsub.f32 %v5101_v44, %v27639_v63  ;;  %v27713_v44 = vsub.f32 %v5072_v12, %v5905_v18  ;;  %v5983_v59 = vand.u32 4294901760, %v27709_v50 }
0x150a   :  { %24844 = vmatpush3.bf16.msra.mxu1 %v27114_v19  ;;  %22479 = vmatprep.mubr.msk.f32.mxu1 %vm26790_vm1, %v26791_v17 }
0x150b   :  { %24845 = vmatprep.subr.bf16.mxu1 %v26789_v52  ;;  %v5237_v6 = vand.u32 4294901760, %v27642_v4 }
0x150d   :  { %v5238_v8 = vsub.f32 %v27642_v4, %v5237_v6 }
0x150e   :  { %24847 = vmatpush3.bf16.msra.mxu1 %v27121_v20 }
0x150f   :  { %24848 = vmatprep.subr.bf16.mxu1 %v26789_v52  ;;  %v5239_v32 = vand.u32 4294901760, %v5238_v8 }
0x1511   :  { %22480 = vmatmul.mubr.f32.vlgmr.msra.gmra.mrb[16].mxu1 %v4615_v36  ;;  %22543 = vmatprep.mubr.f32.mxu0 %v5239_v32  ;;  %v5990_v32 = vand.u32 4294901760, %v27713_v44 }
0x1512   :  { %24850 = vmatpush3.bf16.msra.mxu1 %v27136_v39  ;;  %22490 = vmatprep.mubr.msk.f32.mxu1 %vm26790_vm1, %v26791_v17 }
0x1513   :  { %24851 = vmatprep.subr.bf16.mxu1 %v26789_v52 }
0x1516   :  { %24853 = vmatpush3.bf16.msra.mxu1 %v27147_v22 }
0x1517   :  { %24854 = vmatprep.subr.bf16.mxu1 %v26789_v52 }
0x1519   :  { %22491 = vmatmul.mubr.f32.vlgmr.msra.gmra.mrb[16].mxu1 %v4616_v38  ;;  %v5911_v38 = vand.u32 4294901760, %v5074_v33 }
0x151a   :  { %24856 = vmatpush3.bf16.msra.mxu1 %v27076_v60  ;;  %22501 = vmatprep.mubr.msk.f32.mxu1 %vm26790_vm1, %v26791_v17 }
0x151b   :  { %24857 = vmatprep.subr.bf16.mxu1 %v26789_v52 }
0x151e   :  { %24859 = vmatpush3.bf16.msra.mxu1 %v27091_v2 }
0x151f   :  { %24860 = vmatprep.subr.bf16.mxu1 %v26789_v52 }
0x1521   :  { %22502 = vmatmul.mubr.f32.vlgmr.msra.gmra.mrb[16].mxu1 %v4617_v29  ;;  %v27698_v29 = vsub.f32 %v27546_v54, %v5113_v41  ;;  %v5279_v41 = vand.u32 4294901760, %v27703_v37 }
0x1522   :  { %24862 = vmatpush3.bf16.msra.mxu1 %v27176_v23  ;;  %22512 = vmatprep.mubr.msk.f32.mxu1 %vm26790_vm1, %v26791_v17 }
0x1523   :  { %24863 = vmatprep.subr.bf16.mxu1 %v26789_v52  ;;  %v5272_v54 = vand.u32 4294901760, %v27698_v29 }
0x1526   :  { %24865 = vmatpush3.bf16.msra.mxu1 %v27189_v28 }
0x1527   :  { %24866 = vmatprep.subr.bf16.mxu1 %v26789_v52 }
0x1529   :  { %22513 = vmatmul.mubr.f32.vlgmr.msra.gmra.mrb[16].mxu1 %v4615_v36 }
0x152a   :  { %24868 = vmatpush3.bf16.msra.mxu1 %v27076_v60  ;;  %22523 = vmatprep.mubr.msk.f32.mxu1 %vm26790_vm1, %v26791_v17 }
0x152b   :  { %24869 = vmatprep.subr.bf16.mxu1 %v26789_v52 }
0x152e   :  { %24871 = vmatpush3.bf16.msra.mxu1 %v27091_v2 }
0x152f   :  { %24920 = vmatprep.subr.bf16.mxu1 %v26789_v52 }
0x1531   :  { %22524 = vmatmul.mubr.f32.vlgmr.msra.gmra.mrb[16].mxu1 %v4615_v36 }
0x1532   :  { %22654 = vmatprep.mubr.msk.f32.mxu1 %vm26790_vm1, %v26791_v17  ;;  %24922 = vmatpush3.bf16.msra.mxu1 %v27705_v9 }
0x1533   :  { %24923 = vmatprep.subr.bf16.mxu1 %v26789_v52 }
0x1604   :  { %v5027_v19 = vpop.f32.mrb[16].mxu1 }
0x1605   :  { %v5031_v20 = vadd.f32 %v27244_v49, %v5027_v19  ;;  %v22525_v39 = vpop.f32.mrb[17].mxu1  ;;  %v5273_v19 = vsub.f32 %v27698_v29, %v5272_v54 }
0x1606   :  { %v6003_v39 = vsub.f32 %v5074_v33, %v5911_v38 }
0x1607   :  { %26497 = vtanh.f32 %v5031_v20  ;;  %v5032_v60 = vmul.f32 0.5, %v5031_v20  ;;  %v5280_v20 = vsub.f32 %v27703_v37, %v5279_v41 }
0x1609   :  { %26499 = vtanh.f32 %v5032_v60  ;;  %v5267_v60 = vand.u32 4294901760, %v5266_v0 }
0x1611   :  { %v26498_v22 = vpop.eup %26497 }
0x1612   :  { %5039 = vrot.lane.b32.xlu0 %v26498_v22, %s26792_s3  ;;  %v5260_v22 = vand.u32 4294901760, %v5259_v55 }
0x1613   :  { %v26500_v23 = vpop.eup %26499 }
0x1614   :  { %v5034_v28 = vmul.f32 0.5, %v26500_v23  ;;  %v5984_v23 = vsub.f32 %v27709_v50, %v5983_v59 }
0x1616   :  { %v5035_v40 = vadd.f32 0.5, %v5034_v28 }
0x1618   :  { %v5037_v47 = vmul.f32 %v5035_v40, %v27631_v14  ;;  %v5073_v14 = vld [vmem:[#allocation9 + $0x10] sm:$0xff] }
0x1619   :  { %v5908_v36 = vand.u32 4294901760, %v5073_v14 }
0x161b   :  { %v27711_v42 = vpack.c.bf16 %v5911_v38, %v5908_v36  ;;  %v5996_v8 = vsub.f32 %v5073_v14, %v5908_v36 }
0x161d   :  { %v5997_v28 = vand.u32 4294901760, %v5996_v8  ;;  %24925 = vmatpush3.bf16.msra.mxu1 %v27711_v42 }
0x161e   :  { %24926 = vmatprep.subr.bf16.mxu1 %v26789_v52 }
0x161f   :  { %v5998_v5 = vsub.f32 %v5996_v8, %v5997_v28 }
0x1620   :  { %22655 = vmatmul.mubr.f32.vlgmr.msra.gmra.mrb[18].mxu1 %v26791_v17 }
0x1621   :  { %v5999_v33 = vand.u32 4294901760, %v5998_v5  ;;  %22665 = vmatprep.mubr.msk.f32.mxu1 %vm26790_vm1, %v26791_v17 }
0x1684   :  { %v5040_v2 = vpop.permute.xlu0 %5039 }
0x1685   :  { %v5042_v46 = vmul.f32 %v5040_v2, %v5035_v40  ;;  %v5991_v2 = vsub.f32 %v27713_v44, %v5990_v32 }
0x1687   :  { %5044 = vrot.lane.b32.xlu1 %v5042_v46, %s26793_s30  ;;  %v5274_v46 = vand.u32 4294901760, %v5273_v19  ;;  %v5992_v12 = vand.u32 4294901760, %v5991_v2  ;;  %v27758_v19 = vpack.c.bf16 %v6003_v39, %v5996_v8 }
0x16f9   :  { %v5045_v57 = vpop.permute.xlu1 %5044 }
0x16fa   :  { %v5047_v58 = vadd.f32 %v5045_v57, %v5037_v47  ;;  %v5281_v47 = vand.u32 4294901760, %v5280_v20  ;;  %v6004_v57 = vand.u32 4294901760, %v6003_v39  ;;  %v24888_v20 = vpack.c.bf16 %v27693_v31, %v27688_v45 }
0x16fc   :  { %26501 = vtanh.f32 %v5047_v58  ;;  %v24880_v58 = vpack.c.bf16 %v5267_v60, %v5260_v22  ;;  %v24884_v51 = vpack.c.bf16 %v5281_v47, %v5274_v46  ;;  %v6005_v18 = vsub.f32 %v6003_v39, %v6004_v57 }
0x16fd   :  { %v27780_v8 = vpack.c.bf16 %v6004_v57, %v5997_v28 }
0x16fe   :  { %24881 = vmatprep.subr.bf16.mxu0 %v24880_v58  ;;  %v6006_v55 = vand.u32 4294901760, %v6005_v18 }
0x16ff   :  { %24883 = vmatpush3.bf16.msra.mxu0 %v24880_v58 }
0x1700   :  { %24885 = vmatprep.subr.bf16.mxu0 %v24884_v51  ;;  %v27744_v0 = vpack.c.bf16 %v6006_v55, %v5999_v33 }
0x1703   :  { %24887 = vmatpush3.bf16.msra.mxu0 %v24884_v51 }
0x1704   :  { %24889 = vmatprep.subr.bf16.mxu0 %v24888_v20 }
0x1706   :  { %v26502_v49 = vpop.eup %26501 }
0x1707   :  { %5050 = vrot.lane.b32.xlu0 %v26502_v49, %s26792_s3  ;;  %v5985_v49 = vand.u32 4294901760, %v5984_v23 }
0x1709   :  { %v27738_v38 = vpack.c.bf16 %v5992_v12, %v5985_v49 }
0x170b   :  { %24928 = vmatpush3.bf16.msra.mxu1 %v27738_v38 }
0x170c   :  { %24929 = vmatprep.subr.bf16.mxu1 %v26789_v52 }
0x170f   :  { %24931 = vmatpush3.bf16.msra.mxu1 %v27744_v0 }
0x1710   :  { %24932 = vmatprep.subr.bf16.mxu1 %v26789_v52 }
0x1712   :  { %22666 = vmatmul.mubr.f32.vlgmr.msra.gmra.mrb[18].mxu1 %v26791_v17 }
0x1713   :  { %22676 = vmatprep.mubr.msk.f32.mxu1 %vm26790_vm1, %v26791_v17 }
0x1779   :  { %v5051_v14 = vpop.permute.xlu0 %5050 }
0x177a   :  { %v5053_v36 = vmul.f32 %v5051_v14, %v5035_v40  ;;  %v27751_v40 = vpack.c.bf16 %v27713_v44, %v27709_v50  ;;  %v24892_v50 = vpack.c.bf16 %v27703_v37, %v27698_v29  ;;  %v27773_v44 = vpack.c.bf16 %v5990_v32, %v5983_v59 }
0x177b   :  { %v24904_v59 = vpack.c.bf16 %v5265_v10, %v5258_v48  ;;  %v24908_v32 = vpack.c.bf16 %v5279_v41, %v5272_v54 }
0x177c   :  { %5055 = vrot.lane.b32.xlu1 %v5053_v36, %s26793_s30  ;;  %24934 = vmatpush3.bf16.msra.mxu1 %v27751_v40 }
0x177d   :  { %24935 = vmatprep.subr.bf16.mxu1 %v26789_v52 }
0x1780   :  { %24937 = vmatpush3.bf16.msra.mxu1 %v27758_v19 }
0x1781   :  { %24938 = vmatprep.subr.bf16.mxu1 %v26789_v52 }
0x1783   :  { %22677 = vmatmul.mubr.f32.vlgmr.msra.gmra.mrb[18].mxu1 %v26791_v17 }
0x1784   :  { %24940 = vmatpush3.bf16.msra.mxu1 %v27705_v9  ;;  %22687 = vmatprep.mubr.msk.f32.mxu1 %vm26790_vm1, %v26791_v17 }
0x1785   :  { %24941 = vmatprep.subr.bf16.mxu1 %v26789_v52 }
0x1788   :  { %24943 = vmatpush3.bf16.msra.mxu1 %v27711_v42 }
0x1789   :  { %24944 = vmatprep.subr.bf16.mxu1 %v26789_v52 }
0x178b   :  { %22688 = vmatmul.mubr.f32.vlgmr.msra.gmra.mrb[18].mxu1 %v26791_v17 }
0x178c   :  { %24946 = vmatpush3.bf16.msra.mxu1 %v27773_v44  ;;  %22698 = vmatprep.mubr.msk.f32.mxu1 %vm26790_vm1, %v26791_v17 }
0x178d   :  { %24947 = vmatprep.subr.bf16.mxu1 %v26789_v52 }
0x1790   :  { %24949 = vmatpush3.bf16.msra.mxu1 %v27780_v8 }
0x1791   :  { %24950 = vmatprep.subr.bf16.mxu1 %v26789_v52 }
0x1793   :  { %22699 = vmatmul.mubr.f32.vlgmr.msra.gmra.mrb[18].mxu1 %v26791_v17 }
0x1794   :  { %24952 = vmatpush3.bf16.msra.mxu1 %v27705_v9  ;;  %22709 = vmatprep.mubr.msk.f32.mxu1 %vm26790_vm1, %v26791_v17 }
0x1795   :  { %24953 = vmatprep.subr.bf16.mxu1 %v26789_v52 }
0x1798   :  { %24955 = vmatpush3.bf16.msra.mxu1 %v27711_v42 }
0x1799   :  { %24956 = vmatprep.subr.bf16.mxu1 %v26789_v52 }
0x179b   :  { %22710 = vmatmul.mubr.f32.vlgmr.msra.gmra.mrb[18].mxu1 %v26791_v17 }
0x179c   :  { %24958 = vmatpush3.bf16.msra.mxu1 %v27705_v9  ;;  %22720 = vmatprep.mubr.msk.f32.mxu1 %vm26790_vm1, %v26791_v17 }
0x179d   :  { %24959 = vmatprep.subr.bf16.mxu1 %v26789_v52 }
0x17a0   :  { %24961 = vmatpush3.bf16.msra.mxu1 %v27711_v42 }
0x17a1   :  { %24962 = vmatprep.subr.bf16.mxu1 %v26789_v52 }
0x17ee   :  { %v5056_v39 = vpop.permute.xlu1 %5055 }
0x17ef   :  { %5058 = vst.msk [vmem:[#allocation3 + $0x38] sm:$0xff] %vm111_vm0, %v5056_v39 }
0x17f6   :  { %v5066_v22 = vld [vmem:[#allocation3 + $0x38] sm:$0xff] }
0x17f7   :  { %v5104_v60 = vsel %vm111_vm0, %v5066_v22, 0 }
0x17f8   :  { %v27808_v23 = vand.u32 4294901760, %v5104_v60 }
0x17fa   :  { %v5246_v45 = vsub.f32 %v5104_v60, %v27808_v23 }
0x17fc   :  { %v5247_v31 = vand.u32 4294901760, %v5246_v45 }
0x17fe   :  { %v5248_v48 = vsub.f32 %v5246_v45, %v5247_v31 }
0x1800   :  { %v5249_v10 = vand.u32 4294901760, %v5248_v48 }
0x1802   :  { %22544 = vmatmul.mubr.f32.gmra.mrb[20].mxu0 %v5249_v10 }
0x1803   :  { %22554 = vmatprep.mubr.f32.mxu0 %v27515_v3 }
0x1806   :  { %22555 = vmatmul.mubr.f32.vlgmr.msra.gmra.mrb[14].mxu0 %v27537_v43 }
0x1807   :  { %22557 = vmatprep.mubr.f32.mxu0 %v27553_v56  ;;  %24891 = vmatpush3.bf16.msra.mxu0 %v24888_v20 }
0x1808   :  { %24893 = vmatprep.subr.bf16.mxu0 %v24892_v50 }
0x180a   :  { %22558 = vmatmul.mubr.f32.gmra.mrb[16].mxu0 %v27573_v1 }
0x180b   :  { %22560 = vmatprep.mubr.f32.mxu0 %v27581_v11  ;;  %24895 = vmatpush3.bf16.msra.mxu0 %v24892_v50 }
0x180c   :  { %24897 = vmatprep.subr.bf16.mxu0 %v27569_v62 }
0x180e   :  { %22561 = vmatmul.mubr.f32.gmra.mrb[18].mxu0 %v27596_v34 }
0x180f   :  { %22563 = vmatprep.mubr.f32.mxu0 %v27639_v63 }
0x1812   :  { %22564 = vmatmul.mubr.f32.gmra.mrb[20].mxu0 %v27808_v23 }
0x1813   :  { %22574 = vmatprep.mubr.f32.mxu0 %v27533_v21 }
0x1816   :  { %22575 = vmatmul.mubr.f32.vlgmr.msra.gmra.mrb[14].mxu0 %v27562_v61 }
0x1817   :  { %22577 = vmatprep.mubr.f32.mxu0 %v27579_v7  ;;  %24899 = vmatpush3.bf16.msra.mxu0 %v27569_v62 }
0x1818   :  { %24901 = vmatprep.subr.bf16.mxu0 %v27590_v13 }
0x181a   :  { %22578 = vmatmul.mubr.f32.gmra.mrb[16].mxu0 %v27594_v26 }
0x181b   :  { %22580 = vmatprep.mubr.f32.mxu0 %v27600_v16  ;;  %24903 = vmatpush3.bf16.msra.mxu0 %v27590_v13 }
0x181c   :  { %24905 = vmatprep.subr.bf16.mxu0 %v24904_v59 }
0x181e   :  { %22581 = vmatmul.mubr.f32.gmra.mrb[18].mxu0 %v27610_v27 }
0x181f   :  { %22583 = vmatprep.mubr.f32.mxu0 %v27642_v4 }
0x1822   :  { %22584 = vmatmul.mubr.f32.gmra.mrb[20].mxu0 %v5246_v45 }
0x1823   :  { %22594 = vmatprep.mubr.f32.mxu0 %v5177_v53 }
0x1826   :  { %22595 = vmatmul.mubr.f32.vlgmr.msra.gmra.mrb[14].mxu0 %v5187_v24 }
0x1827   :  { %22597 = vmatprep.mubr.f32.mxu0 %v5197_v15  ;;  %24907 = vmatpush3.bf16.msra.mxu0 %v24904_v59 }
0x1828   :  { %24909 = vmatprep.subr.bf16.mxu0 %v24908_v32 }
0x182a   :  { %22598 = vmatmul.mubr.f32.gmra.mrb[16].mxu0 %v5207_v25 }
0x182b   :  { %22600 = vmatprep.mubr.f32.mxu0 %v5217_v30  ;;  %24911 = vmatpush3.bf16.msra.mxu0 %v24908_v32 }
0x182c   :  { %24913 = vmatprep.subr.bf16.mxu0 %v27569_v62 }
0x182e   :  { %22601 = vmatmul.mubr.f32.gmra.mrb[18].mxu0 %v5227_v35 }
0x182f   :  { %22603 = vmatprep.mubr.f32.mxu0 %v5237_v6 }
0x1832   :  { %22604 = vmatmul.mubr.f32.gmra.mrb[20].mxu0 %v5247_v31 }
0x1833   :  { %22614 = vmatprep.mubr.f32.mxu0 %v27515_v3 }
0x1836   :  { %22615 = vmatmul.mubr.f32.vlgmr.msra.gmra.mrb[14].mxu0 %v27537_v43 }
0x1837   :  { %22617 = vmatprep.mubr.f32.mxu0 %v27553_v56  ;;  %24915 = vmatpush3.bf16.msra.mxu0 %v27569_v62 }
0x1838   :  { %24917 = vmatprep.subr.bf16.mxu0 %v27590_v13 }
0x183a   :  { %22618 = vmatmul.mubr.f32.gmra.mrb[16].mxu0 %v27573_v1 }
0x183b   :  { %22620 = vmatprep.mubr.f32.mxu0 %v27581_v11  ;;  %24919 = vmatpush3.bf16.msra.mxu0 %v27590_v13 }
0x183c   :  { %24992 = vmatprep.subr.bf16.mxu0 %v26789_v52 }
0x183e   :  { %22621 = vmatmul.mubr.f32.gmra.mrb[18].mxu0 %v27596_v34 }
0x183f   :  { %22623 = vmatprep.mubr.f32.mxu0 %v27639_v63 }
0x1842   :  { %22624 = vmatmul.mubr.f32.gmra.mrb[20].mxu0 %v27808_v23 }
0x1843   :  { %22634 = vmatprep.mubr.f32.mxu0 %v27515_v3 }
0x1846   :  { %22635 = vmatmul.mubr.f32.vlgmr.msra.gmra.mrb[14].mxu0 %v27537_v43  ;;  %v20586_v43 = vld [vmem:[%s29586_s6] ss:$0 sm:$0xff] }
0x1847   :  { %22637 = vmatprep.mubr.f32.mxu0 %v27553_v56  ;;  %24994 = vmatpush3.bf16.msra.mxu0 %v27705_v9 }
0x1848   :  { %24995 = vmatprep.subr.bf16.mxu0 %v26789_v52 }
0x184a   :  { %22638 = vmatmul.mubr.f32.gmra.mrb[16].mxu0 %v27573_v1 }
0x184b   :  { %22640 = vmatprep.mubr.f32.mxu0 %v27581_v11  ;;  %24997 = vmatpush3.bf16.msra.mxu0 %v27711_v42 }
0x184c   :  { %24998 = vmatprep.subr.bf16.mxu0 %v26789_v52 }
0x184e   :  { %22641 = vmatmul.mubr.f32.gmra.mrb[18].mxu0 %v27596_v34 }
0x184f   :  { %22643 = vmatprep.mubr.f32.mxu0 %v27639_v63 }
0x1852   :  { %22644 = vmatmul.mubr.f32.gmra.mrb[20].mxu0 %v27808_v23 }
0x1853   :  { %22786 = vmatprep.mubr.msk.f32.mxu0 %vm26790_vm1, %v26791_v17 }
0x186e   :  { %v6382_v3 = vpop.f32.mrb[18].mxu1 }
0x186f   :  { %v22711_v21 = vpop.f32.mrb[19].mxu1 }
0x1919   :  { %v22636_v53 = vpop.f32.mrb[14].mxu0 }
0x191a   :  { %v27874_v56 = vadd.f32 %v22636_v53, %v20586_v43  ;;  %v5846_v61 = vpop.f32.mrb[15].mxu0 }
0x191b   :  { %v25937_v62 = vadd.f32 %v20586_v43, %v5846_v61 }
0x191d   :  { %v6386_v1 = vadd.f32 %v25937_v62, %v6382_v3  ;;  %v22639_v7 = vpop.f32.mrb[16].mxu0 }
0x191e   :  { %v27876_v11 = vadd.f32 %v22639_v7, %v20586_v43  ;;  %v5858_v13 = vpop.f32.mrb[17].mxu0 }
0x191f   :  { %26503 = vtanh.f32 %v6386_v1  ;;  %v27878_v24 = vadd.f32 %v20586_v43, %v5858_v13  ;;  %v6387_v4 = vmul.f32 0.5, %v6386_v1 }
0x1921   :  { %v22642_v26 = vpop.f32.mrb[18].mxu0  ;;  %26505 = vtanh.f32 %v6387_v4 }
0x1922   :  { %v27880_v34 = vadd.f32 %v22642_v26, %v20586_v43  ;;  %v5870_v15 = vpop.f32.mrb[19].mxu0 }
0x1923   :  { %v27882_v16 = vadd.f32 %v20586_v43, %v5870_v15 }
0x1925   :  { %v22645_v25 = vpop.f32.mrb[20].mxu0 }
0x1926   :  { %v27884_v27 = vadd.f32 %v22645_v25, %v20586_v43  ;;  %v5882_v30 = vpop.f32.mrb[21].mxu0 }
0x1927   :  { %v27886_v35 = vadd.f32 %v20586_v43, %v5882_v30 }
0x1929   :  { %v26504_v63 = vpop.eup %26503 }
0x192a   :  { %6394 = vrot.lane.b32.xlu0 %v26504_v63, %s26792_s3 }
0x192b   :  { %v26506_v6 = vpop.eup %26505 }
0x192c   :  { %v6389_v29 = vmul.f32 0.5, %v26506_v6 }
0x192e   :  { %v6390_v37 = vadd.f32 0.5, %v6389_v29 }
0x1930   :  { %v6392_v28 = vmul.f32 0.0, %v6390_v37 }
0x199c   :  { %v6395_v54 = vpop.permute.xlu0 %6394 }
0x199d   :  { %v6397_v41 = vmul.f32 %v6395_v54, %v6390_v37 }
0x199f   :  { %6399 = vrot.lane.b32.xlu1 %v6397_v41, %s26793_s30 }
0x1a11   :  { %v6400_v2 = vpop.permute.xlu1 %6399 }
0x1a12   :  { %v27890_v46 = vadd.f32 %v6400_v2, %v6392_v28 }
0x1a14   :  { %26507 = vtanh.f32 %v27890_v46 }
0x1a1e   :  { %v26508_v47 = vpop.eup %26507 }
0x1a1f   :  { %6405 = vrot.lane.b32.xlu0 %v26508_v47, %s26792_s3 }
0x1a91   :  { %v6406_v57 = vpop.permute.xlu0 %6405 }
0x1a92   :  { %v6408_v58 = vmul.f32 %v6406_v57, %v6390_v37 }
0x1a94   :  { %6410 = vrot.lane.b32.xlu1 %v6408_v58, %s26793_s30 }
0x1b06   :  { %v6411_v49 = vpop.permute.xlu1 %6410 }
0x1b07   :  { %6413 = vst.msk [vmem:[#allocation3] sm:$0xff] %vm111_vm0, %v6411_v49  ;;  %v6415_v5 = vsel %vm111_vm0, %v6411_v49, 0 }
0x1b08   :  { %v6486_v12 = vand.u32 4294901760, %v6415_v5 }
0x1b0a   :  { %v6487_v51 = vsub.f32 %v6415_v5, %v6486_v12 }
0x1b0c   :  { %v6488_v18 = vand.u32 4294901760, %v6487_v51 }
0x1b0e   :  { %v6489_v14 = vsub.f32 %v6487_v51, %v6488_v18 }
0x1b10   :  { %v6490_v33 = vand.u32 4294901760, %v6489_v14 }
0x1b12   :  { %22721 = vmatmul.mubr.f32.vlgmr.msra.gmra.mrb[20].mxu1 %v6490_v33 }
0x1b13   :  { %24964 = vmatpush3.bf16.msra.mxu1 %v27738_v38  ;;  %22731 = vmatprep.mubr.msk.f32.mxu1 %vm26790_vm1, %v26791_v17 }
0x1b14   :  { %24965 = vmatprep.subr.bf16.mxu1 %v26789_v52 }
0x1b17   :  { %24967 = vmatpush3.bf16.msra.mxu1 %v27744_v0 }
0x1b18   :  { %24968 = vmatprep.subr.bf16.mxu1 %v26789_v52 }
0x1b1a   :  { %22732 = vmatmul.mubr.f32.vlgmr.msra.gmra.mrb[20].mxu1 %v6486_v12 }
0x1b1b   :  { %24970 = vmatpush3.bf16.msra.mxu1 %v27751_v40  ;;  %22742 = vmatprep.mubr.msk.f32.mxu1 %vm26790_vm1, %v26791_v17 }
0x1b1c   :  { %24971 = vmatprep.subr.bf16.mxu1 %v26789_v52 }
0x1b1f   :  { %24973 = vmatpush3.bf16.msra.mxu1 %v27758_v19 }
0x1b20   :  { %24974 = vmatprep.subr.bf16.mxu1 %v26789_v52 }
0x1b22   :  { %22743 = vmatmul.mubr.f32.vlgmr.msra.gmra.mrb[20].mxu1 %v6487_v51 }
0x1b23   :  { %24976 = vmatpush3.bf16.msra.mxu1 %v27705_v9  ;;  %22753 = vmatprep.mubr.msk.f32.mxu1 %vm26790_vm1, %v26791_v17 }
0x1b24   :  { %24977 = vmatprep.subr.bf16.mxu1 %v26789_v52 }
0x1b27   :  { %24979 = vmatpush3.bf16.msra.mxu1 %v27711_v42 }
0x1b28   :  { %24980 = vmatprep.subr.bf16.mxu1 %v26789_v52 }
0x1b2a   :  { %22754 = vmatmul.mubr.f32.vlgmr.msra.gmra.mrb[20].mxu1 %v6488_v18 }
0x1b2b   :  { %24982 = vmatpush3.bf16.msra.mxu1 %v27773_v44  ;;  %22764 = vmatprep.mubr.msk.f32.mxu1 %vm26790_vm1, %v26791_v17 }
0x1b2c   :  { %24983 = vmatprep.subr.bf16.mxu1 %v26789_v52 }
0x1b2f   :  { %24985 = vmatpush3.bf16.msra.mxu1 %v27780_v8 }
0x1b30   :  { %24986 = vmatprep.subr.bf16.mxu1 %v26789_v52 }
0x1b32   :  { %22765 = vmatmul.mubr.f32.vlgmr.msra.gmra.mrb[20].mxu1 %v6486_v12 }
0x1b33   :  { %24988 = vmatpush3.bf16.msra.mxu1 %v27705_v9  ;;  %22775 = vmatprep.mubr.msk.f32.mxu1 %vm26790_vm1, %v26791_v17 }
0x1b34   :  { %24989 = vmatprep.subr.bf16.mxu1 %v26789_v52 }
0x1b37   :  { %24991 = vmatpush3.bf16.msra.mxu1 %v27711_v42 }
0x1b38   :  { %25028 = vmatprep.subr.bf16.mxu1 %v26789_v52 }
0x1b3a   :  { %22776 = vmatmul.mubr.f32.vlgmr.msra.gmra.mrb[20].mxu1 %v6486_v12 }
0x1b3b   :  { %25030 = vmatpush3.bf16.msra.mxu1 %v27705_v9  ;;  %22852 = vmatprep.mubr.msk.f32.mxu1 %vm26790_vm1, %v26791_v17 }
0x1b3c   :  { %25031 = vmatprep.subr.bf16.mxu1 %v26789_v52 }
0x1b3f   :  { %25033 = vmatpush3.bf16.msra.mxu1 %v27711_v42 }
0x1b40   :  { %25034 = vmatprep.subr.bf16.mxu1 %v26789_v52 }
0x1c0d   :  { %v6898_v36 = vpop.f32.mrb[20].mxu1 }
0x1c0e   :  { %v6902_v55 = vadd.f32 %v27874_v56, %v6898_v36  ;;  %v22777_v20 = vpop.f32.mrb[21].mxu1 }
0x1c10   :  { %26509 = vtanh.f32 %v6902_v55  ;;  %v6903_v59 = vmul.f32 0.5, %v6902_v55 }
0x1c12   :  { %26511 = vtanh.f32 %v6903_v59 }
0x1c1a   :  { %v26510_v50 = vpop.eup %26509 }
0x1c1b   :  { %6910 = vrot.lane.b32.xlu0 %v26510_v50, %s26792_s3 }
0x1c1c   :  { %v26512_v32 = vpop.eup %26511 }
0x1c1d   :  { %v6905_v39 = vmul.f32 0.5, %v26512_v32 }
0x1c1f   :  { %v6906_v22 = vadd.f32 0.5, %v6905_v39 }
0x1c21   :  { %v6908_v45 = vmul.f32 %v6906_v22, %v27890_v46 }
0x1c8d   :  { %v6911_v60 = vpop.permute.xlu0 %6910 }
0x1c8e   :  { %v6913_v23 = vmul.f32 %v6911_v60, %v6906_v22 }
0x1c90   :  { %6915 = vrot.lane.b32.xlu1 %v6913_v23, %s26793_s30 }
0x1d02   :  { %v6916_v31 = vpop.permute.xlu1 %6915 }
0x1d03   :  { %v27937_v48 = vadd.f32 %v6916_v31, %v6908_v45 }
0x1d05   :  { %26513 = vtanh.f32 %v27937_v48 }
0x1d0f   :  { %v26514_v10 = vpop.eup %26513 }
0x1d10   :  { %6921 = vrot.lane.b32.xlu0 %v26514_v10, %s26792_s3 }
0x1d82   :  { %v6922_v3 = vpop.permute.xlu0 %6921 }
0x1d83   :  { %v6924_v21 = vmul.f32 %v6922_v3, %v6906_v22 }
0x1d85   :  { %6926 = vrot.lane.b32.xlu1 %v6924_v21, %s26793_s30 }
0x1df7   :  { %v6927_v43 = vpop.permute.xlu1 %6926 }
0x1df8   :  { %6929 = vst.msk [vmem:[#allocation3 + $0x8] sm:$0xff] %vm111_vm0, %v6927_v43  ;;  %v6931_v53 = vsel %vm111_vm0, %v6927_v43, 0 }
0x1df9   :  { %v7002_v56 = vand.u32 4294901760, %v6931_v53 }
0x1dfb   :  { %v7003_v61 = vsub.f32 %v6931_v53, %v7002_v56 }
0x1dfd   :  { %v7004_v62 = vand.u32 4294901760, %v7003_v61 }
0x1dff   :  { %v7005_v1 = vsub.f32 %v7003_v61, %v7004_v62 }
0x1e01   :  { %v7006_v7 = vand.u32 4294901760, %v7005_v1 }
0x1e03   :  { %22787 = vmatmul.mubr.f32.vlgmr.msra.gmra.mrb[22].mxu0 %v7006_v7 }
0x1e04   :  { %25000 = vmatpush3.bf16.msra.mxu0 %v27738_v38  ;;  %22797 = vmatprep.mubr.msk.f32.mxu0 %vm26790_vm1, %v26791_v17 }
0x1e05   :  { %25001 = vmatprep.subr.bf16.mxu0 %v26789_v52 }
0x1e08   :  { %25003 = vmatpush3.bf16.msra.mxu0 %v27744_v0 }
0x1e09   :  { %25004 = vmatprep.subr.bf16.mxu0 %v26789_v52 }
0x1e0b   :  { %22798 = vmatmul.mubr.f32.vlgmr.msra.gmra.mrb[22].mxu0 %v7002_v56 }
0x1e0c   :  { %25006 = vmatpush3.bf16.msra.mxu0 %v27751_v40  ;;  %22808 = vmatprep.mubr.msk.f32.mxu0 %vm26790_vm1, %v26791_v17 }
0x1e0d   :  { %25007 = vmatprep.subr.bf16.mxu0 %v26789_v52 }
0x1e10   :  { %25009 = vmatpush3.bf16.msra.mxu0 %v27758_v19 }
0x1e11   :  { %25010 = vmatprep.subr.bf16.mxu0 %v26789_v52 }
0x1e13   :  { %22809 = vmatmul.mubr.f32.vlgmr.msra.gmra.mrb[22].mxu0 %v7003_v61 }
0x1e14   :  { %25012 = vmatpush3.bf16.msra.mxu0 %v27705_v9  ;;  %22819 = vmatprep.mubr.msk.f32.mxu0 %vm26790_vm1, %v26791_v17 }
0x1e15   :  { %25013 = vmatprep.subr.bf16.mxu0 %v26789_v52 }
0x1e18   :  { %25015 = vmatpush3.bf16.msra.mxu0 %v27711_v42 }
0x1e19   :  { %25016 = vmatprep.subr.bf16.mxu0 %v26789_v52 }
0x1e1b   :  { %22820 = vmatmul.mubr.f32.vlgmr.msra.gmra.mrb[22].mxu0 %v7004_v62 }
0x1e1c   :  { %25018 = vmatpush3.bf16.msra.mxu0 %v27773_v44  ;;  %22830 = vmatprep.mubr.msk.f32.mxu0 %vm26790_vm1, %v26791_v17 }
0x1e1d   :  { %25019 = vmatprep.subr.bf16.mxu0 %v26789_v52 }
0x1e20   :  { %25021 = vmatpush3.bf16.msra.mxu0 %v27780_v8 }
0x1e21   :  { %25022 = vmatprep.subr.bf16.mxu0 %v26789_v52 }
0x1e23   :  { %22831 = vmatmul.mubr.f32.vlgmr.msra.gmra.mrb[22].mxu0 %v7002_v56 }
0x1e24   :  { %25024 = vmatpush3.bf16.msra.mxu0 %v27705_v9  ;;  %22841 = vmatprep.mubr.msk.f32.mxu0 %vm26790_vm1, %v26791_v17 }
0x1e25   :  { %25025 = vmatprep.subr.bf16.mxu0 %v26789_v52 }
0x1e28   :  { %25027 = vmatpush3.bf16.msra.mxu0 %v27711_v42 }
0x1e29   :  { %25064 = vmatprep.subr.bf16.mxu0 %v26789_v52 }
0x1e2b   :  { %22842 = vmatmul.mubr.f32.vlgmr.msra.gmra.mrb[22].mxu0 %v7002_v56 }
0x1e2c   :  { %25066 = vmatpush3.bf16.msra.mxu0 %v27705_v9  ;;  %22918 = vmatprep.mubr.msk.f32.mxu0 %vm26790_vm1, %v26791_v17 }
0x1e2d   :  { %25067 = vmatprep.subr.bf16.mxu0 %v26789_v52 }
0x1e30   :  { %25069 = vmatpush3.bf16.msra.mxu0 %v27711_v42 }
0x1e31   :  { %25070 = vmatprep.subr.bf16.mxu0 %v26789_v52 }
0x1efe   :  { %v7414_v13 = vpop.f32.mrb[22].mxu0 }
0x1eff   :  { %v7418_v26 = vadd.f32 %v27878_v24, %v7414_v13  ;;  %v22843_v15 = vpop.f32.mrb[23].mxu0 }
0x1f01   :  { %26515 = vtanh.f32 %v7418_v26  ;;  %v7419_v30 = vmul.f32 0.5, %v7418_v26 }
0x1f03   :  { %26517 = vtanh.f32 %v7419_v30 }
0x1f0b   :  { %v26516_v25 = vpop.eup %26515 }
0x1f0c   :  { %7426 = vrot.lane.b32.xlu0 %v26516_v25, %s26792_s3 }
0x1f0d   :  { %v26518_v63 = vpop.eup %26517 }
0x1f0e   :  { %v7421_v4 = vmul.f32 0.5, %v26518_v63 }
0x1f10   :  { %v7422_v6 = vadd.f32 0.5, %v7421_v4 }
0x1f12   :  { %v7424_v54 = vmul.f32 %v7422_v6, %v27937_v48 }
0x1f7e   :  { %v7427_v29 = vpop.permute.xlu0 %7426 }
0x1f7f   :  { %v7429_v37 = vmul.f32 %v7427_v29, %v7422_v6 }
0x1f81   :  { %7431 = vrot.lane.b32.xlu1 %v7429_v37, %s26793_s30 }
0x1ff3   :  { %v7432_v41 = vpop.permute.xlu1 %7431 }
0x1ff4   :  { %v27984_v28 = vadd.f32 %v7432_v41, %v7424_v54 }
0x1ff6   :  { %26519 = vtanh.f32 %v27984_v28 }
0x2000   :  { %v26520_v24 = vpop.eup %26519 }
0x2001   :  { %7437 = vrot.lane.b32.xlu0 %v26520_v24, %s26792_s3 }
0x2073   :  { %v7438_v2 = vpop.permute.xlu0 %7437 }
0x2074   :  { %v7440_v46 = vmul.f32 %v7438_v2, %v7422_v6 }
0x2076   :  { %7442 = vrot.lane.b32.xlu1 %v7440_v46, %s26793_s30 }
0x20e8   :  { %v7443_v47 = vpop.permute.xlu1 %7442 }
0x20e9   :  { %7445 = vst.msk [vmem:[#allocation3 + $0x10] sm:$0xff] %vm111_vm0, %v7443_v47  ;;  %v7447_v57 = vsel %vm111_vm0, %v7443_v47, 0 }
0x20ea   :  { %v7518_v58 = vand.u32 4294901760, %v7447_v57 }
0x20ec   :  { %v7519_v49 = vsub.f32 %v7447_v57, %v7518_v58 }
0x20ee   :  { %v7520_v5 = vand.u32 4294901760, %v7519_v49 }
0x20f0   :  { %v7521_v12 = vsub.f32 %v7519_v49, %v7520_v5 }
0x20f2   :  { %v7522_v51 = vand.u32 4294901760, %v7521_v12 }
0x20f4   :  { %22853 = vmatmul.mubr.f32.vlgmr.msra.gmra.mrb[22].mxu1 %v7522_v51 }
0x20f5   :  { %25036 = vmatpush3.bf16.msra.mxu1 %v27738_v38  ;;  %22863 = vmatprep.mubr.msk.f32.mxu1 %vm26790_vm1, %v26791_v17 }
0x20f6   :  { %25037 = vmatprep.subr.bf16.mxu1 %v26789_v52 }
0x20f9   :  { %25039 = vmatpush3.bf16.msra.mxu1 %v27744_v0 }
0x20fa   :  { %25040 = vmatprep.subr.bf16.mxu1 %v26789_v52 }
0x20fc   :  { %22864 = vmatmul.mubr.f32.vlgmr.msra.gmra.mrb[22].mxu1 %v7518_v58 }
0x20fd   :  { %25042 = vmatpush3.bf16.msra.mxu1 %v27751_v40  ;;  %22874 = vmatprep.mubr.msk.f32.mxu1 %vm26790_vm1, %v26791_v17 }
0x20fe   :  { %25043 = vmatprep.subr.bf16.mxu1 %v26789_v52 }
0x2101   :  { %25045 = vmatpush3.bf16.msra.mxu1 %v27758_v19 }
0x2102   :  { %25046 = vmatprep.subr.bf16.mxu1 %v26789_v52 }
0x2104   :  { %22875 = vmatmul.mubr.f32.vlgmr.msra.gmra.mrb[22].mxu1 %v7519_v49 }
0x2105   :  { %25048 = vmatpush3.bf16.msra.mxu1 %v27705_v9  ;;  %22885 = vmatprep.mubr.msk.f32.mxu1 %vm26790_vm1, %v26791_v17 }
0x2106   :  { %25049 = vmatprep.subr.bf16.mxu1 %v26789_v52 }
0x2109   :  { %25051 = vmatpush3.bf16.msra.mxu1 %v27711_v42 }
0x210a   :  { %25052 = vmatprep.subr.bf16.mxu1 %v26789_v52 }
0x210c   :  { %22886 = vmatmul.mubr.f32.vlgmr.msra.gmra.mrb[22].mxu1 %v7520_v5 }
0x210d   :  { %25054 = vmatpush3.bf16.msra.mxu1 %v27773_v44  ;;  %22896 = vmatprep.mubr.msk.f32.mxu1 %vm26790_vm1, %v26791_v17 }
0x210e   :  { %25055 = vmatprep.subr.bf16.mxu1 %v26789_v52 }
0x2111   :  { %25057 = vmatpush3.bf16.msra.mxu1 %v27780_v8 }
0x2112   :  { %25058 = vmatprep.subr.bf16.mxu1 %v26789_v52 }
0x2114   :  { %22897 = vmatmul.mubr.f32.vlgmr.msra.gmra.mrb[22].mxu1 %v7518_v58 }
0x2115   :  { %25060 = vmatpush3.bf16.msra.mxu1 %v27705_v9  ;;  %22907 = vmatprep.mubr.msk.f32.mxu1 %vm26790_vm1, %v26791_v17 }
0x2116   :  { %25061 = vmatprep.subr.bf16.mxu1 %v26789_v52 }
0x2119   :  { %25063 = vmatpush3.bf16.msra.mxu1 %v27711_v42 }
0x211a   :  { %25100 = vmatprep.subr.bf16.mxu1 %v26789_v52 }
0x211c   :  { %22908 = vmatmul.mubr.f32.vlgmr.msra.gmra.mrb[22].mxu1 %v7518_v58 }
0x211d   :  { %25102 = vmatpush3.bf16.msra.mxu1 %v27705_v9  ;;  %22984 = vmatprep.mubr.msk.f32.mxu1 %vm26790_vm1, %v26791_v17 }
0x211e   :  { %25103 = vmatprep.subr.bf16.mxu1 %v26789_v52 }
0x2121   :  { %25105 = vmatpush3.bf16.msra.mxu1 %v27711_v42 }
0x2122   :  { %25106 = vmatprep.subr.bf16.mxu1 %v26789_v52 }
0x21ef   :  { %v7930_v18 = vpop.f32.mrb[22].mxu1 }
0x21f0   :  { %v7934_v14 = vadd.f32 %v27876_v11, %v7930_v18  ;;  %v22909_v33 = vpop.f32.mrb[23].mxu1 }
0x21f2   :  { %26521 = vtanh.f32 %v7934_v14  ;;  %v7935_v55 = vmul.f32 0.5, %v7934_v14 }
0x21f4   :  { %26523 = vtanh.f32 %v7935_v55 }
0x21fc   :  { %v26522_v36 = vpop.eup %26521 }
0x21fd   :  { %7942 = vrot.lane.b32.xlu0 %v26522_v36, %s26792_s3 }
0x21fe   :  { %v26524_v20 = vpop.eup %26523 }
0x21ff   :  { %v7937_v50 = vmul.f32 0.5, %v26524_v20 }
0x2201   :  { %v7938_v59 = vadd.f32 0.5, %v7937_v50 }
0x2203   :  { %v7940_v22 = vmul.f32 %v7938_v59, %v27984_v28 }
0x226f   :  { %v7943_v32 = vpop.permute.xlu0 %7942 }
0x2270   :  { %v7945_v39 = vmul.f32 %v7943_v32, %v7938_v59 }
0x2272   :  { %7947 = vrot.lane.b32.xlu1 %v7945_v39, %s26793_s30 }
0x22e4   :  { %v7948_v60 = vpop.permute.xlu1 %7947 }
0x22e5   :  { %v28031_v23 = vadd.f32 %v7948_v60, %v7940_v22 }
0x22e7   :  { %26525 = vtanh.f32 %v28031_v23 }
0x22f1   :  { %v26526_v11 = vpop.eup %26525 }
0x22f2   :  { %7953 = vrot.lane.b32.xlu0 %v26526_v11, %s26792_s3 }
0x2364   :  { %v7954_v45 = vpop.permute.xlu0 %7953 }
0x2365   :  { %v7956_v31 = vmul.f32 %v7954_v45, %v7938_v59 }
0x2367   :  { %7958 = vrot.lane.b32.xlu1 %v7956_v31, %s26793_s30 }
0x23d9   :  { %v7959_v48 = vpop.permute.xlu1 %7958 }
0x23da   :  { %7961 = vst.msk [vmem:[#allocation3 + $0x18] sm:$0xff] %vm111_vm0, %v7959_v48  ;;  %v7963_v10 = vsel %vm111_vm0, %v7959_v48, 0 }
0x23db   :  { %v8034_v3 = vand.u32 4294901760, %v7963_v10 }
0x23dd   :  { %v8035_v21 = vsub.f32 %v7963_v10, %v8034_v3  ;;  %v10026_v10 = vld [vmem:[#allocation3] sm:$0xff] }
0x23df   :  { %v8036_v43 = vand.u32 4294901760, %v8035_v21 }
0x23e1   :  { %v8037_v53 = vsub.f32 %v8035_v21, %v8036_v43 }
0x23e3   :  { %v8038_v56 = vand.u32 4294901760, %v8037_v53  ;;  %v10028_v53 = vld [vmem:[#allocation3 + $0x10] sm:$0xff] }
0x23e5   :  { %22919 = vmatmul.mubr.f32.vlgmr.msra.gmra.mrb[24].mxu0 %v8038_v56 }
0x23e6   :  { %25072 = vmatpush3.bf16.msra.mxu0 %v27738_v38  ;;  %22929 = vmatprep.mubr.msk.f32.mxu0 %vm26790_vm1, %v26791_v17 }
0x23e7   :  { %25073 = vmatprep.subr.bf16.mxu0 %v26789_v52 }
0x23ea   :  { %25075 = vmatpush3.bf16.msra.mxu0 %v27744_v0 }
0x23eb   :  { %25076 = vmatprep.subr.bf16.mxu0 %v26789_v52 }
0x23ed   :  { %22930 = vmatmul.mubr.f32.vlgmr.msra.gmra.mrb[24].mxu0 %v8034_v3 }
0x23ee   :  { %25078 = vmatpush3.bf16.msra.mxu0 %v27751_v40  ;;  %22940 = vmatprep.mubr.msk.f32.mxu0 %vm26790_vm1, %v26791_v17 }
0x23ef   :  { %25079 = vmatprep.subr.bf16.mxu0 %v26789_v52 }
0x23f2   :  { %25081 = vmatpush3.bf16.msra.mxu0 %v27758_v19 }
0x23f3   :  { %25082 = vmatprep.subr.bf16.mxu0 %v26789_v52 }
0x23f5   :  { %22941 = vmatmul.mubr.f32.vlgmr.msra.gmra.mrb[24].mxu0 %v8035_v21 }
0x23f6   :  { %25084 = vmatpush3.bf16.msra.mxu0 %v27705_v9  ;;  %22951 = vmatprep.mubr.msk.f32.mxu0 %vm26790_vm1, %v26791_v17 }
0x23f7   :  { %25085 = vmatprep.subr.bf16.mxu0 %v26789_v52 }
0x23fa   :  { %25087 = vmatpush3.bf16.msra.mxu0 %v27711_v42 }
0x23fb   :  { %25088 = vmatprep.subr.bf16.mxu0 %v26789_v52 }
0x23fd   :  { %22952 = vmatmul.mubr.f32.vlgmr.msra.gmra.mrb[24].mxu0 %v8036_v43  ;;  %v10027_v43 = vld [vmem:[#allocation3 + $0x8] sm:$0xff] }
0x23fe   :  { %25090 = vmatpush3.bf16.msra.mxu0 %v27773_v44  ;;  %22962 = vmatprep.mubr.msk.f32.mxu0 %vm26790_vm1, %v26791_v17  ;;  %v10056_v56 = vsel %vm111_vm0, %v10027_v43, 0 }
0x23ff   :  { %25091 = vmatprep.subr.bf16.mxu0 %v26789_v52 }
0x2402   :  { %25093 = vmatpush3.bf16.msra.mxu0 %v27780_v8 }
0x2403   :  { %25094 = vmatprep.subr.bf16.mxu0 %v26789_v52 }
0x2405   :  { %22963 = vmatmul.mubr.f32.vlgmr.msra.gmra.mrb[24].mxu0 %v8034_v3 }
0x2406   :  { %25096 = vmatpush3.bf16.msra.mxu0 %v27705_v9  ;;  %22973 = vmatprep.mubr.msk.f32.mxu0 %vm26790_vm1, %v26791_v17 }
0x2407   :  { %25097 = vmatprep.subr.bf16.mxu0 %v26789_v52 }
0x240a   :  { %25099 = vmatpush3.bf16.msra.mxu0 %v27711_v42 }
0x240b   :  { %25136 = vmatprep.subr.bf16.mxu0 %v26789_v52 }
0x240d   :  { %22974 = vmatmul.mubr.f32.vlgmr.msra.gmra.mrb[24].mxu0 %v8034_v3  ;;  %v10053_v3 = vsel %vm111_vm0, %v10026_v10, 0 }
0x240e   :  { %25138 = vmatpush3.bf16.msra.mxu0 %v27705_v9  ;;  %23050 = vmatprep.mubr.msk.f32.mxu0 %vm26790_vm1, %v26791_v17  ;;  %v28155_v21 = vand.u32 4294901760, %v10053_v3 }
0x240f   :  { %25139 = vmatprep.subr.bf16.mxu0 %v26789_v52 }
0x2412   :  { %25141 = vmatpush3.bf16.msra.mxu0 %v27711_v42 }
0x2413   :  { %25142 = vmatprep.subr.bf16.mxu0 %v26789_v52 }
0x24e0   :  { %v8446_v61 = vpop.f32.mrb[24].mxu0 }
0x24e1   :  { %v8450_v62 = vadd.f32 %v27882_v16, %v8446_v61  ;;  %v22975_v1 = vpop.f32.mrb[25].mxu0  ;;  %v28165_v61 = vld [vmem:[%s29584_s4 + $0x20] sm:$0xff] }
0x24e2   :  { %v28173_v1 = vsub.f32 %v10053_v3, %v28155_v21 }
0x24e3   :  { %26527 = vtanh.f32 %v8450_v62  ;;  %v8451_v13 = vmul.f32 0.5, %v8450_v62  ;;  %v28170_v62 = vld [vmem:[%s29584_s4 + $0x28] sm:$0xff] }
0x24e5   :  { %26529 = vtanh.f32 %v8451_v13  ;;  %v10029_v13 = vld [vmem:[#allocation3 + $0x18] sm:$0xff] }
0x24ed   :  { %v26528_v7 = vpop.eup %26527 }
0x24ee   :  { %8458 = vrot.lane.b32.xlu0 %v26528_v7, %s26792_s3  ;;  %v10059_v7 = vsel %vm111_vm0, %v10028_v53, 0 }
0x24ef   :  { %v26530_v26 = vpop.eup %26529 }
0x24f0   :  { %v8453_v15 = vmul.f32 0.5, %v26530_v26  ;;  %v28177_v26 = vand.u32 4294901760, %v10056_v56 }
0x24f2   :  { %v8454_v25 = vadd.f32 0.5, %v8453_v15 }
0x24f4   :  { %v8456_v4 = vmul.f32 %v8454_v25, %v28031_v23 }
0x2560   :  { %v8459_v30 = vpop.permute.xlu0 %8458 }
0x2561   :  { %v8461_v63 = vmul.f32 %v8459_v30, %v8454_v25  ;;  %v10080_v30 = vand.u32 4294901760, %v28170_v62 }
0x2563   :  { %8463 = vrot.lane.b32.xlu1 %v8461_v63, %s26793_s30  ;;  %v10147_v63 = vand.u32 4294901760, %v28173_v1 }
0x25d5   :  { %v8464_v6 = vpop.permute.xlu1 %8463 }
0x25d6   :  { %v28078_v29 = vadd.f32 %v8464_v6, %v8456_v4  ;;  %v28186_v4 = vld [vmem:[%s29584_s4 + $0x30] sm:$0xff]  ;;  %v28191_v6 = vld [vmem:[%s29584_s4 + $0x38] sm:$0xff] }
0x25d8   :  { %26531 = vtanh.f32 %v28078_v29 }
0x25e2   :  { %v26532_v16 = vpop.eup %26531 }
0x25e3   :  { %8469 = vrot.lane.b32.xlu0 %v26532_v16, %s26792_s3  ;;  %v10062_v16 = vsel %vm111_vm0, %v10029_v13, 0 }
0x2655   :  { %v8470_v37 = vpop.permute.xlu0 %8469 }
0x2656   :  { %v8472_v54 = vmul.f32 %v8470_v37, %v8454_v25  ;;  %v10077_v25 = vand.u32 4294901760, %v28165_v61 }
0x2658   :  { %8474 = vrot.lane.b32.xlu1 %v8472_v54, %s26793_s30 }
0x26ca   :  { %v8475_v41 = vpop.permute.xlu1 %8474 }
0x26cb   :  { %8477 = vst.msk [vmem:[#allocation3 + $0x20] sm:$0xff] %vm111_vm0, %v8475_v41  ;;  %v8479_v28 = vsel %vm111_vm0, %v8475_v41, 0  ;;  %v28202_v41 = vsub.f32 %v10056_v56, %v28177_v26 }
0x26cc   :  { %v8550_v24 = vand.u32 4294901760, %v8479_v28 }
0x26ce   :  { %v8551_v2 = vsub.f32 %v8479_v28, %v8550_v24  ;;  %v28209_v28 = vpack.c.bf16 %v10080_v30, %v10077_v25 }
0x26d0   :  { %v8552_v46 = vand.u32 4294901760, %v8551_v2 }
0x26d2   :  { %v8553_v47 = vsub.f32 %v8551_v2, %v8552_v46  ;;  %v10030_v15 = vld [vmem:[#allocation3 + $0x20] sm:$0xff] }
0x26d3   :  { %v10065_v37 = vsel %vm111_vm0, %v10030_v15, 0 }
0x26d4   :  { %v8554_v57 = vand.u32 4294901760, %v8553_v47  ;;  %v10148_v47 = vsub.f32 %v28173_v1, %v10147_v63 }
0x26d6   :  { %22985 = vmatmul.mubr.f32.vlgmr.msra.gmra.mrb[24].mxu1 %v8554_v57 }
0x26d7   :  { %25108 = vmatpush3.bf16.msra.mxu1 %v27738_v38  ;;  %22995 = vmatprep.mubr.msk.f32.mxu1 %vm26790_vm1, %v26791_v17 }
0x26d8   :  { %25109 = vmatprep.subr.bf16.mxu1 %v26789_v52 }
0x26db   :  { %25111 = vmatpush3.bf16.msra.mxu1 %v27744_v0 }
0x26dc   :  { %25112 = vmatprep.subr.bf16.mxu1 %v26789_v52 }
0x26de   :  { %22996 = vmatmul.mubr.f32.vlgmr.msra.gmra.mrb[24].mxu1 %v8550_v24 }
0x26df   :  { %25114 = vmatpush3.bf16.msra.mxu1 %v27751_v40  ;;  %23006 = vmatprep.mubr.msk.f32.mxu1 %vm26790_vm1, %v26791_v17 }
0x26e0   :  { %25115 = vmatprep.subr.bf16.mxu1 %v26789_v52 }
0x26e3   :  { %25117 = vmatpush3.bf16.msra.mxu1 %v27758_v19 }
0x26e4   :  { %25118 = vmatprep.subr.bf16.mxu1 %v26789_v52 }
0x26e6   :  { %23007 = vmatmul.mubr.f32.vlgmr.msra.gmra.mrb[24].mxu1 %v8551_v2  ;;  %v10086_v2 = vand.u32 4294901760, %v28191_v6 }
0x26e7   :  { %25120 = vmatpush3.bf16.msra.mxu1 %v27705_v9  ;;  %23017 = vmatprep.mubr.msk.f32.mxu1 %vm26790_vm1, %v26791_v17 }
0x26e8   :  { %25121 = vmatprep.subr.bf16.mxu1 %v26789_v52 }
0x26eb   :  { %25123 = vmatpush3.bf16.msra.mxu1 %v27711_v42 }
0x26ec   :  { %25124 = vmatprep.subr.bf16.mxu1 %v26789_v52 }
0x26ee   :  { %23018 = vmatmul.mubr.f32.vlgmr.msra.gmra.mrb[24].mxu1 %v8552_v46  ;;  %v28213_v46 = vand.u32 4294901760, %v10062_v16 }
0x26ef   :  { %25126 = vmatpush3.bf16.msra.mxu1 %v27773_v44  ;;  %23028 = vmatprep.mubr.msk.f32.mxu1 %vm26790_vm1, %v26791_v17 }
0x26f0   :  { %25127 = vmatprep.subr.bf16.mxu1 %v26789_v52 }
0x26f3   :  { %25129 = vmatpush3.bf16.msra.mxu1 %v27780_v8 }
0x26f4   :  { %25130 = vmatprep.subr.bf16.mxu1 %v26789_v52 }
0x26f6   :  { %23029 = vmatmul.mubr.f32.vlgmr.msra.gmra.mrb[24].mxu1 %v8550_v24 }
0x26f7   :  { %25132 = vmatpush3.bf16.msra.mxu1 %v27705_v9  ;;  %23039 = vmatprep.mubr.msk.f32.mxu1 %vm26790_vm1, %v26791_v17 }
0x26f8   :  { %25133 = vmatprep.subr.bf16.mxu1 %v26789_v52 }
0x26fb   :  { %25135 = vmatpush3.bf16.msra.mxu1 %v27711_v42 }
0x26fc   :  { %25172 = vmatprep.subr.bf16.mxu1 %v26789_v52 }
0x26fe   :  { %23040 = vmatmul.mubr.f32.vlgmr.msra.gmra.mrb[24].mxu1 %v8550_v24  ;;  %v10083_v24 = vand.u32 4294901760, %v28186_v4 }
0x26ff   :  { %25174 = vmatpush3.bf16.msra.mxu1 %v27705_v9  ;;  %23116 = vmatprep.mubr.msk.f32.mxu1 %vm26790_vm1, %v26791_v17 }
0x2700   :  { %25175 = vmatprep.subr.bf16.mxu1 %v26789_v52 }
0x2703   :  { %25177 = vmatpush3.bf16.msra.mxu1 %v27711_v42 }
0x2704   :  { %25178 = vmatprep.subr.bf16.mxu1 %v26789_v52 }
0x27d1   :  { %v8962_v58 = vpop.f32.mrb[24].mxu1 }
0x27d2   :  { %v8966_v49 = vadd.f32 %v27880_v34, %v8962_v58  ;;  %v23041_v5 = vpop.f32.mrb[25].mxu1  ;;  %v28221_v58 = vand.u32 4294901760, %v10065_v37 }
0x27d3   :  { %v28230_v5 = vpack.c.bf16 %v10086_v2, %v10083_v24 }
0x27d4   :  { %26533 = vtanh.f32 %v8966_v49  ;;  %v8967_v51 = vmul.f32 0.5, %v8966_v49 }
0x27d6   :  { %26535 = vtanh.f32 %v8967_v51  ;;  %v28234_v51 = vsub.f32 %v10062_v16, %v28213_v46 }
0x27de   :  { %v26534_v12 = vpop.eup %26533 }
0x27df   :  { %8974 = vrot.lane.b32.xlu0 %v26534_v12, %s26792_s3  ;;  %v10157_v12 = vand.u32 4294901760, %v28202_v41 }
0x27e0   :  { %v26536_v18 = vpop.eup %26535 }
0x27e1   :  { %v8969_v14 = vmul.f32 0.5, %v26536_v18 }
0x27e3   :  { %v8970_v33 = vadd.f32 0.5, %v8969_v14  ;;  %v10149_v14 = vand.u32 4294901760, %v10148_v47 }
0x27e5   :  { %v8972_v20 = vmul.f32 %v8970_v33, %v28078_v29  ;;  %v28193_v29 = vand.u32 4294901760, %v10059_v7 }
0x27e7   :  { %v28219_v57 = vsub.f32 %v10059_v7, %v28193_v29 }
0x2851   :  { %v8975_v36 = vpop.permute.xlu0 %8974 }
0x2852   :  { %v8977_v55 = vmul.f32 %v8975_v36, %v8970_v33  ;;  %v28240_v36 = vsub.f32 %v10065_v37, %v28221_v58 }
0x2854   :  { %8979 = vrot.lane.b32.xlu1 %v8977_v55, %s26793_s30  ;;  %v10158_v55 = vsub.f32 %v28202_v41, %v10157_v12 }
0x28c6   :  { %v8980_v50 = vpop.permute.xlu1 %8979 }
0x28c7   :  { %v28125_v59 = vadd.f32 %v8980_v50, %v8972_v20  ;;  %v10177_v20 = vand.u32 4294901760, %v28234_v51 }
0x28c9   :  { %26537 = vtanh.f32 %v28125_v59 }
0x28d3   :  { %v26538_v34 = vpop.eup %26537 }
0x28d4   :  { %8985 = vrot.lane.b32.xlu0 %v26538_v34, %s26792_s3 }
0x2946   :  { %v8986_v32 = vpop.permute.xlu0 %8985 }
0x2947   :  { %v8988_v39 = vmul.f32 %v8986_v32, %v8970_v33  ;;  %v10167_v33 = vand.u32 4294901760, %v28219_v57  ;;  %v10187_v32 = vand.u32 4294901760, %v28240_v36 }
0x2949   :  { %8990 = vrot.lane.b32.xlu1 %v8988_v39, %s26793_s30  ;;  %v10168_v34 = vsub.f32 %v28219_v57, %v10167_v33  ;;  %v10159_v39 = vand.u32 4294901760, %v10158_v55 }
0x29bb   :  { %v8991_v22 = vpop.permute.xlu1 %8990 }
0x29bc   :  { %8993 = vst.msk [vmem:[#allocation3 + $0x28] sm:$0xff] %vm111_vm0, %v8991_v22  ;;  %v8995_v60 = vsel %vm111_vm0, %v8991_v22, 0  ;;  %v10178_v22 = vsub.f32 %v28234_v51, %v10177_v20 }
0x29bd   :  { %v28132_v23 = vand.u32 4294901760, %v8995_v60 }
0x29bf   :  { %v9067_v11 = vsub.f32 %v8995_v60, %v28132_v23 }
0x29c1   :  { %v9068_v45 = vand.u32 4294901760, %v9067_v11 }
0x29c3   :  { %v9069_v31 = vsub.f32 %v9067_v11, %v9068_v45  ;;  %v10031_v54 = vld [vmem:[#allocation3 + $0x28] sm:$0xff] }
0x29c4   :  { %v10068_v49 = vsel %vm111_vm0, %v10031_v54, 0 }
0x29c5   :  { %v9070_v48 = vand.u32 4294901760, %v9069_v31  ;;  %v28236_v18 = vand.u32 4294901760, %v10068_v49 }
0x29c7   :  { %23051 = vmatmul.mubr.f32.vlgmr.msra.gmra.mrb[26].mxu0 %v9070_v48  ;;  %v28250_v50 = vsub.f32 %v10068_v49, %v28236_v18 }
0x29c8   :  { %25144 = vmatpush3.bf16.msra.mxu0 %v27738_v38  ;;  %23061 = vmatprep.mubr.msk.f32.mxu0 %vm26790_vm1, %v26791_v17 }
0x29c9   :  { %25145 = vmatprep.subr.bf16.mxu0 %v26789_v52  ;;  %v10197_v60 = vand.u32 4294901760, %v28250_v50 }
0x29cb   :  { %v10198_v31 = vsub.f32 %v28250_v50, %v10197_v60 }
0x29cc   :  { %25147 = vmatpush3.bf16.msra.mxu0 %v27744_v0 }
0x29cd   :  { %25148 = vmatprep.subr.bf16.mxu0 %v26789_v52  ;;  %v10199_v10 = vand.u32 4294901760, %v10198_v31 }
0x29cf   :  { %23062 = vmatmul.mubr.f32.vlgmr.msra.gmra.mrb[26].mxu0 %v28132_v23 }
0x29d0   :  { %25150 = vmatpush3.bf16.msra.mxu0 %v27751_v40  ;;  %23072 = vmatprep.mubr.msk.f32.mxu0 %vm26790_vm1, %v26791_v17 }
0x29d1   :  { %25151 = vmatprep.subr.bf16.mxu0 %v26789_v52 }
0x29d4   :  { %25153 = vmatpush3.bf16.msra.mxu0 %v27758_v19 }
0x29d5   :  { %25154 = vmatprep.subr.bf16.mxu0 %v26789_v52 }
0x29d7   :  { %23073 = vmatmul.mubr.f32.vlgmr.msra.gmra.mrb[26].mxu0 %v9067_v11  ;;  %v10188_v11 = vsub.f32 %v28240_v36, %v10187_v32 }
0x29d8   :  { %25156 = vmatpush3.bf16.msra.mxu0 %v27705_v9  ;;  %23083 = vmatprep.mubr.msk.f32.mxu0 %vm26790_vm1, %v26791_v17 }
0x29d9   :  { %25157 = vmatprep.subr.bf16.mxu0 %v26789_v52  ;;  %v10189_v48 = vand.u32 4294901760, %v10188_v11 }
0x29dc   :  { %25159 = vmatpush3.bf16.msra.mxu0 %v27711_v42 }
0x29dd   :  { %25160 = vmatprep.subr.bf16.mxu0 %v26789_v52 }
0x29df   :  { %23084 = vmatmul.mubr.f32.vlgmr.msra.gmra.mrb[26].mxu0 %v9068_v45  ;;  %v10179_v45 = vand.u32 4294901760, %v10178_v22 }
0x29e0   :  { %25162 = vmatpush3.bf16.msra.mxu0 %v27773_v44  ;;  %23094 = vmatprep.mubr.msk.f32.mxu0 %vm26790_vm1, %v26791_v17 }
0x29e1   :  { %25163 = vmatprep.subr.bf16.mxu0 %v26789_v52 }
0x29e4   :  { %25165 = vmatpush3.bf16.msra.mxu0 %v27780_v8 }
0x29e5   :  { %25166 = vmatprep.subr.bf16.mxu0 %v26789_v52 }
0x29e7   :  { %23095 = vmatmul.mubr.f32.vlgmr.msra.gmra.mrb[26].mxu0 %v28132_v23 }
0x29e8   :  { %25168 = vmatpush3.bf16.msra.mxu0 %v27705_v9  ;;  %23105 = vmatprep.mubr.msk.f32.mxu0 %vm26790_vm1, %v26791_v17 }
0x29e9   :  { %25169 = vmatprep.subr.bf16.mxu0 %v26789_v52 }
0x29ec   :  { %25171 = vmatpush3.bf16.msra.mxu0 %v27711_v42 }
0x29ed   :  { %25209 = vmatprep.subr.bf16.mxu0 %v28209_v28 }
0x29ef   :  { %23106 = vmatmul.mubr.f32.vlgmr.msra.gmra.mrb[26].mxu0 %v28132_v23  ;;  %v10169_v23 = vand.u32 4294901760, %v10168_v34 }
0x29f0   :  { %25211 = vmatpush3.bf16.msra.mxu0 %v28209_v28  ;;  %23182 = vmatprep.mubr.f32.mxu0 %v10149_v14 }
0x29f1   :  { %25213 = vmatprep.subr.bf16.mxu0 %v28230_v5 }
0x29f4   :  { %25215 = vmatpush3.bf16.msra.mxu0 %v28230_v5 }
0x29f7   :  { %23183 = vmatmul.mubr.f32.vlgmr.msra.gmra.mrb[28].mxu0 %v10159_v39 }
0x29f8   :  { %23185 = vmatprep.mubr.f32.mxu0 %v10169_v23 }
0x29fb   :  { %23186 = vmatmul.mubr.f32.gmra.mrb[30].mxu0 %v10179_v45 }
0x29fc   :  { %23188 = vmatprep.mubr.f32.mxu0 %v10189_v48 }
0x29ff   :  { %23189 = vmatmul.mubr.f32.gmra.mrb[32].mxu0 %v10199_v10 }
0x2ac2   :  { %v9478_v3 = vpop.f32.mrb[26].mxu0 }
0x2ac3   :  { %v9482_v43 = vadd.f32 %v27886_v35, %v9478_v3  ;;  %v23107_v53 = vpop.f32.mrb[27].mxu0 }
0x2ac5   :  { %26539 = vtanh.f32 %v9482_v43  ;;  %v9483_v7 = vmul.f32 0.5, %v9482_v43 }
0x2ac7   :  { %26541 = vtanh.f32 %v9483_v7 }
0x2acf   :  { %v26540_v56 = vpop.eup %26539 }
0x2ad0   :  { %9490 = vrot.lane.b32.xlu0 %v26540_v56, %s26792_s3 }
0x2ad1   :  { %v26542_v13 = vpop.eup %26541 }
0x2ad2   :  { %v9485_v15 = vmul.f32 0.5, %v26542_v13 }
0x2ad4   :  { %v9486_v16 = vadd.f32 0.5, %v9485_v15 }
0x2ad6   :  { %v9488_v47 = vmul.f32 %v9486_v16, %v28125_v59 }
0x2b42   :  { %v9491_v37 = vpop.permute.xlu0 %9490 }
0x2b43   :  { %v9493_v54 = vmul.f32 %v9491_v37, %v9486_v16 }
0x2b45   :  { %9495 = vrot.lane.b32.xlu1 %v9493_v54, %s26793_s30 }
0x2bb7   :  { %v9496_v49 = vpop.permute.xlu1 %9495 }
0x2bb8   :  { %v28271_v14 = vadd.f32 %v9496_v49, %v9488_v47  ;;  %v10040_v47 = vld [vmem:[#allocation9 + $0x20] sm:$0xff]  ;;  %v10041_v49 = vld [vmem:[#allocation9 + $0x28] sm:$0xff] }
0x2bba   :  { %26543 = vtanh.f32 %v28271_v14 }
0x2bc4   :  { %v26544_v35 = vpop.eup %26543 }
0x2bc5   :  { %9501 = vrot.lane.b32.xlu0 %v26544_v35, %s26792_s3  ;;  %v10872_v35 = vand.u32 4294901760, %v10040_v47 }
0x2c37   :  { %v9502_v55 = vpop.permute.xlu0 %9501 }
0x2c38   :  { %v9504_v34 = vmul.f32 %v9502_v55, %v9486_v16  ;;  %v10875_v55 = vand.u32 4294901760, %v10041_v49 }
0x2c3a   :  { %9506 = vrot.lane.b32.xlu1 %v9504_v34, %s26793_s30  ;;  %v28328_v34 = vsub.f32 %v28165_v61, %v10077_v25  ;;  %v28345_v61 = vpack.c.bf16 %v10875_v55, %v10872_v35 }
0x2c3c   :  { %v10228_v25 = vand.u32 4294901760, %v28328_v34 }
0x2cac   :  { %v9507_v39 = vpop.permute.xlu1 %9506 }
0x2cad   :  { %9509 = vst.msk [vmem:[#allocation3 + $0x30] sm:$0xff] %vm111_vm0, %v9507_v39  ;;  %v9511_v22 = vsel %vm111_vm0, %v9507_v39, 0  ;;  %v28333_v39 = vsub.f32 %v28170_v62, %v10080_v30  ;;  %v28349_v30 = vsub.f32 %v10040_v47, %v10872_v35 }
0x2cae   :  { %v9582_v23 = vand.u32 4294901760, %v9511_v22 }
0x2caf   :  { %v10235_v62 = vand.u32 4294901760, %v28333_v39 }
0x2cb0   :  { %v9583_v11 = vsub.f32 %v9511_v22, %v9582_v23  ;;  %v10043_v22 = vld [vmem:[#allocation9 + $0x38] sm:$0xff] }
0x2cb2   :  { %v9584_v59 = vand.u32 4294901760, %v9583_v11 }
0x2cb4   :  { %v9585_v45 = vsub.f32 %v9583_v11, %v9584_v59  ;;  %v10032_v31 = vld [vmem:[#allocation3 + $0x30] sm:$0xff] }
0x2cb5   :  { %v10071_v48 = vsel %vm111_vm0, %v10032_v31, 0 }
0x2cb6   :  { %v9586_v10 = vand.u32 4294901760, %v9585_v45  ;;  %v28279_v3 = vand.u32 4294901760, %v10071_v48  ;;  %v28343_v45 = vsub.f32 %v28191_v6, %v10086_v2  ;;  %v10229_v6 = vsub.f32 %v28328_v34, %v10228_v25 }
0x2cb7   :  { %v10236_v2 = vsub.f32 %v28333_v39, %v10235_v62 }
0x2cb8   :  { %23117 = vmatmul.mubr.f32.vlgmr.msra.gmra.mrb[26].mxu1 %v9586_v10  ;;  %v28282_v43 = vsub.f32 %v10071_v48, %v28279_v3  ;;  %v28353_v48 = vsub.f32 %v10041_v49, %v10875_v55  ;;  %v10953_v10 = vand.u32 4294901760, %v28349_v30 }
0x2cb9   :  { %25180 = vmatpush3.bf16.msra.mxu1 %v27738_v38  ;;  %23127 = vmatprep.mubr.msk.f32.mxu1 %vm26790_vm1, %v26791_v17 }
0x2cba   :  { %25181 = vmatprep.subr.bf16.mxu1 %v26789_v52  ;;  %v10207_v53 = vand.u32 4294901760, %v28282_v43 }
0x2cbc   :  { %v10208_v56 = vsub.f32 %v28282_v43, %v10207_v53 }
0x2cbd   :  { %25183 = vmatpush3.bf16.msra.mxu1 %v27744_v0 }
0x2cbe   :  { %25184 = vmatprep.subr.bf16.mxu1 %v26789_v52  ;;  %v10209_v7 = vand.u32 4294901760, %v10208_v56 }
0x2cc0   :  { %23128 = vmatmul.mubr.f32.vlgmr.msra.gmra.mrb[26].mxu1 %v9582_v23  ;;  %23191 = vmatprep.mubr.f32.mxu0 %v10209_v7  ;;  %v10960_v7 = vand.u32 4294901760, %v28353_v48 }
0x2cc1   :  { %25186 = vmatpush3.bf16.msra.mxu1 %v27751_v40  ;;  %23138 = vmatprep.mubr.msk.f32.mxu1 %vm26790_vm1, %v26791_v17 }
0x2cc2   :  { %25187 = vmatprep.subr.bf16.mxu1 %v26789_v52 }
0x2cc5   :  { %25189 = vmatpush3.bf16.msra.mxu1 %v27758_v19 }
0x2cc6   :  { %25190 = vmatprep.subr.bf16.mxu1 %v26789_v52 }
0x2cc8   :  { %23139 = vmatmul.mubr.f32.vlgmr.msra.gmra.mrb[26].mxu1 %v9583_v11  ;;  %v10881_v11 = vand.u32 4294901760, %v10043_v22 }
0x2cc9   :  { %25192 = vmatpush3.bf16.msra.mxu1 %v27705_v9  ;;  %23149 = vmatprep.mubr.msk.f32.mxu1 %vm26790_vm1, %v26791_v17 }
0x2cca   :  { %25193 = vmatprep.subr.bf16.mxu1 %v26789_v52 }
0x2ccd   :  { %25195 = vmatpush3.bf16.msra.mxu1 %v27711_v42 }
0x2cce   :  { %25196 = vmatprep.subr.bf16.mxu1 %v26789_v52 }
0x2cd0   :  { %23150 = vmatmul.mubr.f32.vlgmr.msra.gmra.mrb[26].mxu1 %v9584_v59  ;;  %v28338_v59 = vsub.f32 %v28186_v4, %v10083_v24  ;;  %v10249_v24 = vand.u32 4294901760, %v28343_v45 }
0x2cd1   :  { %25198 = vmatpush3.bf16.msra.mxu1 %v27773_v44  ;;  %23160 = vmatprep.mubr.msk.f32.mxu1 %vm26790_vm1, %v26791_v17 }
0x2cd2   :  { %25199 = vmatprep.subr.bf16.mxu1 %v26789_v52  ;;  %v10242_v4 = vand.u32 4294901760, %v28338_v59 }
0x2cd5   :  { %25201 = vmatpush3.bf16.msra.mxu1 %v27780_v8 }
0x2cd6   :  { %25202 = vmatprep.subr.bf16.mxu1 %v26789_v52 }
0x2cd8   :  { %23161 = vmatmul.mubr.f32.vlgmr.msra.gmra.mrb[26].mxu1 %v9582_v23 }
0x2cd9   :  { %25204 = vmatpush3.bf16.msra.mxu1 %v27705_v9  ;;  %23171 = vmatprep.mubr.msk.f32.mxu1 %vm26790_vm1, %v26791_v17 }
0x2cda   :  { %25205 = vmatprep.subr.bf16.mxu1 %v26789_v52 }
0x2cdd   :  { %25207 = vmatpush3.bf16.msra.mxu1 %v27711_v42 }
0x2cde   :  { %25256 = vmatprep.subr.bf16.mxu1 %v26789_v52 }
0x2ce0   :  { %23172 = vmatmul.mubr.f32.vlgmr.msra.gmra.mrb[26].mxu1 %v9582_v23 }
0x2ce1   :  { %23302 = vmatprep.mubr.msk.f32.mxu1 %vm26790_vm1, %v26791_v17  ;;  %25258 = vmatpush3.bf16.msra.mxu1 %v28345_v61 }
0x2ce2   :  { %25259 = vmatprep.subr.bf16.mxu1 %v26789_v52 }
0x2db3   :  { %v9994_v38 = vpop.f32.mrb[26].mxu1 }
0x2db4   :  { %v9998_v0 = vadd.f32 %v27884_v27, %v9994_v38  ;;  %v23173_v40 = vpop.f32.mrb[27].mxu1  ;;  %v10243_v38 = vsub.f32 %v28338_v59, %v10242_v4 }
0x2db5   :  { %v10973_v40 = vsub.f32 %v10043_v22, %v10881_v11 }
0x2db6   :  { %26545 = vtanh.f32 %v9998_v0  ;;  %v9999_v9 = vmul.f32 0.5, %v9998_v0  ;;  %v10250_v0 = vsub.f32 %v28343_v45, %v10249_v24 }
0x2db8   :  { %26547 = vtanh.f32 %v9999_v9  ;;  %v10237_v9 = vand.u32 4294901760, %v10236_v2 }
0x2dc0   :  { %v26546_v19 = vpop.eup %26545 }
0x2dc1   :  { %10006 = vrot.lane.b32.xlu0 %v26546_v19, %s26792_s3  ;;  %v10230_v19 = vand.u32 4294901760, %v10229_v6 }
0x2dc2   :  { %v26548_v44 = vpop.eup %26547 }
0x2dc3   :  { %v10001_v8 = vmul.f32 0.5, %v26548_v44  ;;  %v10954_v44 = vsub.f32 %v28349_v30, %v10953_v10 }
0x2dc5   :  { %v10002_v13 = vadd.f32 0.5, %v10001_v8 }
0x2dc7   :  { %v10004_v16 = vmul.f32 %v10002_v13, %v28271_v14  ;;  %v10042_v14 = vld [vmem:[#allocation9 + $0x30] sm:$0xff] }
0x2dc8   :  { %v10878_v23 = vand.u32 4294901760, %v10042_v14 }
0x2dca   :  { %v28351_v31 = vpack.c.bf16 %v10881_v11, %v10878_v23  ;;  %v10966_v56 = vsub.f32 %v10042_v14, %v10878_v23 }
0x2dcc   :  { %v10967_v8 = vand.u32 4294901760, %v10966_v56  ;;  %25261 = vmatpush3.bf16.msra.mxu1 %v28351_v31 }
0x2dcd   :  { %25262 = vmatprep.subr.bf16.mxu1 %v26789_v52 }
0x2dce   :  { %v10968_v47 = vsub.f32 %v10966_v56, %v10967_v8 }
0x2dcf   :  { %23303 = vmatmul.mubr.f32.vlgmr.msra.gmra.mrb[28].mxu1 %v26791_v17 }
0x2dd0   :  { %v10969_v22 = vand.u32 4294901760, %v10968_v47  ;;  %23313 = vmatprep.mubr.msk.f32.mxu1 %vm26790_vm1, %v26791_v17 }
0x2e33   :  { %v10007_v42 = vpop.permute.xlu0 %10006 }
0x2e34   :  { %v10009_v15 = vmul.f32 %v10007_v42, %v10002_v13  ;;  %v10961_v42 = vsub.f32 %v28353_v48, %v10960_v7 }
0x2e36   :  { %10011 = vrot.lane.b32.xlu1 %v10009_v15, %s26793_s30  ;;  %v10244_v15 = vand.u32 4294901760, %v10243_v38  ;;  %v10962_v49 = vand.u32 4294901760, %v10961_v42  ;;  %v28398_v38 = vpack.c.bf16 %v10973_v40, %v10966_v56 }
0x2ea8   :  { %v10012_v37 = vpop.permute.xlu1 %10011 }
0x2ea9   :  { %v10014_v54 = vadd.f32 %v10012_v37, %v10004_v16  ;;  %v10251_v16 = vand.u32 4294901760, %v10250_v0  ;;  %v10974_v37 = vand.u32 4294901760, %v10973_v40  ;;  %v25224_v0 = vpack.c.bf16 %v28333_v39, %v28328_v34 }
0x2eab   :  { %26549 = vtanh.f32 %v10014_v54  ;;  %v25216_v54 = vpack.c.bf16 %v10237_v9, %v10230_v19  ;;  %v25220_v35 = vpack.c.bf16 %v10251_v16, %v10244_v15  ;;  %v10975_v55 = vsub.f32 %v10973_v40, %v10974_v37 }
0x2eac   :  { %v28420_v56 = vpack.c.bf16 %v10974_v37, %v10967_v8 }
0x2ead   :  { %25217 = vmatprep.subr.bf16.mxu0 %v25216_v54  ;;  %v10976_v6 = vand.u32 4294901760, %v10975_v55 }
0x2eae   :  { %25219 = vmatpush3.bf16.msra.mxu0 %v25216_v54 }
0x2eaf   :  { %25221 = vmatprep.subr.bf16.mxu0 %v25220_v35  ;;  %v28384_v2 = vpack.c.bf16 %v10976_v6, %v10969_v22 }
0x2eb2   :  { %25223 = vmatpush3.bf16.msra.mxu0 %v25220_v35 }
0x2eb3   :  { %25225 = vmatprep.subr.bf16.mxu0 %v25224_v0 }
0x2eb5   :  { %v26550_v27 = vpop.eup %26549 }
0x2eb6   :  { %10017 = vrot.lane.b32.xlu0 %v26550_v27, %s26792_s3  ;;  %v10955_v27 = vand.u32 4294901760, %v10954_v44 }
0x2eb8   :  { %v28378_v11 = vpack.c.bf16 %v10962_v49, %v10955_v27 }
0x2eba   :  { %25264 = vmatpush3.bf16.msra.mxu1 %v28378_v11 }
0x2ebb   :  { %25265 = vmatprep.subr.bf16.mxu1 %v26789_v52 }
0x2ebe   :  { %25267 = vmatpush3.bf16.msra.mxu1 %v28384_v2 }
0x2ebf   :  { %25268 = vmatprep.subr.bf16.mxu1 %v26789_v52 }
0x2ec1   :  { %23314 = vmatmul.mubr.f32.vlgmr.msra.gmra.mrb[28].mxu1 %v26791_v17 }
0x2ec2   :  { %23324 = vmatprep.mubr.msk.f32.mxu1 %vm26790_vm1, %v26791_v17 }
0x2f28   :  { %v10018_v14 = vpop.permute.xlu0 %10017 }
0x2f29   :  { %v10020_v23 = vmul.f32 %v10018_v14, %v10002_v13  ;;  %v28391_v13 = vpack.c.bf16 %v28353_v48, %v28349_v30  ;;  %v25228_v30 = vpack.c.bf16 %v28343_v45, %v28338_v59  ;;  %v28413_v48 = vpack.c.bf16 %v10960_v7, %v10953_v10 }
0x2f2a   :  { %v25240_v10 = vpack.c.bf16 %v10235_v62, %v10228_v25  ;;  %v25244_v7 = vpack.c.bf16 %v10249_v24, %v10242_v4 }
0x2f2b   :  { %10022 = vrot.lane.b32.xlu1 %v10020_v23, %s26793_s30  ;;  %25270 = vmatpush3.bf16.msra.mxu1 %v28391_v13 }
0x2f2c   :  { %25271 = vmatprep.subr.bf16.mxu1 %v26789_v52 }
0x2f2f   :  { %25273 = vmatpush3.bf16.msra.mxu1 %v28398_v38 }
0x2f30   :  { %25274 = vmatprep.subr.bf16.mxu1 %v26789_v52 }
0x2f32   :  { %23325 = vmatmul.mubr.f32.vlgmr.msra.gmra.mrb[28].mxu1 %v26791_v17 }
0x2f33   :  { %25276 = vmatpush3.bf16.msra.mxu1 %v28345_v61  ;;  %23335 = vmatprep.mubr.msk.f32.mxu1 %vm26790_vm1, %v26791_v17 }
0x2f34   :  { %25277 = vmatprep.subr.bf16.mxu1 %v26789_v52 }
0x2f37   :  { %25279 = vmatpush3.bf16.msra.mxu1 %v28351_v31 }
0x2f38   :  { %25280 = vmatprep.subr.bf16.mxu1 %v26789_v52 }
0x2f3a   :  { %23336 = vmatmul.mubr.f32.vlgmr.msra.gmra.mrb[28].mxu1 %v26791_v17 }
0x2f3b   :  { %25282 = vmatpush3.bf16.msra.mxu1 %v28413_v48  ;;  %23346 = vmatprep.mubr.msk.f32.mxu1 %vm26790_vm1, %v26791_v17 }
0x2f3c   :  { %25283 = vmatprep.subr.bf16.mxu1 %v26789_v52 }
0x2f3f   :  { %25285 = vmatpush3.bf16.msra.mxu1 %v28420_v56 }
0x2f40   :  { %25286 = vmatprep.subr.bf16.mxu1 %v26789_v52 }
0x2f42   :  { %23347 = vmatmul.mubr.f32.vlgmr.msra.gmra.mrb[28].mxu1 %v26791_v17 }
0x2f43   :  { %25288 = vmatpush3.bf16.msra.mxu1 %v28345_v61  ;;  %23357 = vmatprep.mubr.msk.f32.mxu1 %vm26790_vm1, %v26791_v17 }
0x2f44   :  { %25289 = vmatprep.subr.bf16.mxu1 %v26789_v52 }
0x2f47   :  { %25291 = vmatpush3.bf16.msra.mxu1 %v28351_v31 }
0x2f48   :  { %25292 = vmatprep.subr.bf16.mxu1 %v26789_v52 }
0x2f4a   :  { %23358 = vmatmul.mubr.f32.vlgmr.msra.gmra.mrb[28].mxu1 %v26791_v17 }
0x2f4b   :  { %25294 = vmatpush3.bf16.msra.mxu1 %v28345_v61  ;;  %23368 = vmatprep.mubr.msk.f32.mxu1 %vm26790_vm1, %v26791_v17 }
0x2f4c   :  { %25295 = vmatprep.subr.bf16.mxu1 %v26789_v52 }
0x2f4f   :  { %25297 = vmatpush3.bf16.msra.mxu1 %v28351_v31 }
0x2f50   :  { %25298 = vmatprep.subr.bf16.mxu1 %v26789_v52 }
0x2f9d   :  { %v10023_v40 = vpop.permute.xlu1 %10022 }
0x2f9e   :  { %10025 = vst.msk [vmem:[#allocation3 + $0x38] sm:$0xff] %vm111_vm0, %v10023_v40 }
0x2fa5   :  { %v10033_v19 = vld [vmem:[#allocation3 + $0x38] sm:$0xff] }
0x2fa6   :  { %v10074_v9 = vsel %vm111_vm0, %v10033_v19, 0 }
0x2fa7   :  { %v28448_v44 = vand.u32 4294901760, %v10074_v9 }
0x2fa9   :  { %v10216_v34 = vsub.f32 %v10074_v9, %v28448_v44 }
0x2fab   :  { %v10217_v39 = vand.u32 4294901760, %v10216_v34 }
0x2fad   :  { %v10218_v25 = vsub.f32 %v10216_v34, %v10217_v39 }
0x2faf   :  { %v10219_v62 = vand.u32 4294901760, %v10218_v25 }
0x2fb1   :  { %23192 = vmatmul.mubr.f32.gmra.mrb[34].mxu0 %v10219_v62 }
0x2fb2   :  { %23202 = vmatprep.mubr.f32.mxu0 %v28155_v21 }
0x2fb5   :  { %23203 = vmatmul.mubr.f32.vlgmr.msra.gmra.mrb[28].mxu0 %v28177_v26 }
0x2fb6   :  { %23205 = vmatprep.mubr.f32.mxu0 %v28193_v29  ;;  %25227 = vmatpush3.bf16.msra.mxu0 %v25224_v0 }
0x2fb7   :  { %25229 = vmatprep.subr.bf16.mxu0 %v25228_v30 }
0x2fb9   :  { %23206 = vmatmul.mubr.f32.gmra.mrb[30].mxu0 %v28213_v46 }
0x2fba   :  { %23208 = vmatprep.mubr.f32.mxu0 %v28221_v58  ;;  %25231 = vmatpush3.bf16.msra.mxu0 %v25228_v30 }
0x2fbb   :  { %25233 = vmatprep.subr.bf16.mxu0 %v28209_v28 }
0x2fbd   :  { %23209 = vmatmul.mubr.f32.gmra.mrb[32].mxu0 %v28236_v18 }
0x2fbe   :  { %23211 = vmatprep.mubr.f32.mxu0 %v28279_v3 }
0x2fc1   :  { %23212 = vmatmul.mubr.f32.gmra.mrb[34].mxu0 %v28448_v44 }
0x2fc2   :  { %23222 = vmatprep.mubr.f32.mxu0 %v28173_v1 }
0x2fc5   :  { %23223 = vmatmul.mubr.f32.vlgmr.msra.gmra.mrb[28].mxu0 %v28202_v41 }
0x2fc6   :  { %23225 = vmatprep.mubr.f32.mxu0 %v28219_v57  ;;  %25235 = vmatpush3.bf16.msra.mxu0 %v28209_v28 }
0x2fc7   :  { %25237 = vmatprep.subr.bf16.mxu0 %v28230_v5 }
0x2fc9   :  { %23226 = vmatmul.mubr.f32.gmra.mrb[30].mxu0 %v28234_v51 }
0x2fca   :  { %23228 = vmatprep.mubr.f32.mxu0 %v28240_v36  ;;  %25239 = vmatpush3.bf16.msra.mxu0 %v28230_v5 }
0x2fcb   :  { %25241 = vmatprep.subr.bf16.mxu0 %v25240_v10 }
0x2fcd   :  { %23229 = vmatmul.mubr.f32.gmra.mrb[32].mxu0 %v28250_v50 }
0x2fce   :  { %23231 = vmatprep.mubr.f32.mxu0 %v28282_v43 }
0x2fd1   :  { %23232 = vmatmul.mubr.f32.gmra.mrb[34].mxu0 %v10216_v34 }
0x2fd2   :  { %23242 = vmatprep.mubr.f32.mxu0 %v10147_v63 }
0x2fd5   :  { %23243 = vmatmul.mubr.f32.vlgmr.msra.gmra.mrb[28].mxu0 %v10157_v12 }
0x2fd6   :  { %23245 = vmatprep.mubr.f32.mxu0 %v10167_v33  ;;  %25243 = vmatpush3.bf16.msra.mxu0 %v25240_v10 }
0x2fd7   :  { %25245 = vmatprep.subr.bf16.mxu0 %v25244_v7 }
0x2fd9   :  { %23246 = vmatmul.mubr.f32.gmra.mrb[30].mxu0 %v10177_v20 }
0x2fda   :  { %23248 = vmatprep.mubr.f32.mxu0 %v10187_v32  ;;  %25247 = vmatpush3.bf16.msra.mxu0 %v25244_v7 }
0x2fdb   :  { %25249 = vmatprep.subr.bf16.mxu0 %v28209_v28 }
0x2fdd   :  { %23249 = vmatmul.mubr.f32.gmra.mrb[32].mxu0 %v10197_v60 }
0x2fde   :  { %23251 = vmatprep.mubr.f32.mxu0 %v10207_v53 }
0x2fe1   :  { %23252 = vmatmul.mubr.f32.gmra.mrb[34].mxu0 %v10217_v39 }
0x2fe2   :  { %23262 = vmatprep.mubr.f32.mxu0 %v28155_v21 }
0x2fe5   :  { %23263 = vmatmul.mubr.f32.vlgmr.msra.gmra.mrb[28].mxu0 %v28177_v26 }
0x2fe6   :  { %23265 = vmatprep.mubr.f32.mxu0 %v28193_v29  ;;  %25251 = vmatpush3.bf16.msra.mxu0 %v28209_v28 }
0x2fe7   :  { %25253 = vmatprep.subr.bf16.mxu0 %v28230_v5 }
0x2fe9   :  { %23266 = vmatmul.mubr.f32.gmra.mrb[30].mxu0 %v28213_v46 }
0x2fea   :  { %23268 = vmatprep.mubr.f32.mxu0 %v28221_v58  ;;  %25255 = vmatpush3.bf16.msra.mxu0 %v28230_v5 }
0x2feb   :  { %25328 = vmatprep.subr.bf16.mxu0 %v26789_v52 }
0x2fed   :  { %23269 = vmatmul.mubr.f32.gmra.mrb[32].mxu0 %v28236_v18 }
0x2fee   :  { %23271 = vmatprep.mubr.f32.mxu0 %v28279_v3 }
0x2ff1   :  { %23272 = vmatmul.mubr.f32.gmra.mrb[34].mxu0 %v28448_v44 }
0x2ff2   :  { %23282 = vmatprep.mubr.f32.mxu0 %v28155_v21 }
0x2ff5   :  { %23283 = vmatmul.mubr.f32.vlgmr.msra.gmra.mrb[28].mxu0 %v28177_v26  ;;  %v20592_v26 = vld [vmem:[%s29586_s6 + $0x1] ss:$0 sm:$0xff] }
0x2ff6   :  { %23285 = vmatprep.mubr.f32.mxu0 %v28193_v29  ;;  %25330 = vmatpush3.bf16.msra.mxu0 %v28345_v61 }
0x2ff7   :  { %25331 = vmatprep.subr.bf16.mxu0 %v26789_v52 }
0x2ff9   :  { %23286 = vmatmul.mubr.f32.gmra.mrb[30].mxu0 %v28213_v46 }
0x2ffa   :  { %23288 = vmatprep.mubr.f32.mxu0 %v28221_v58  ;;  %25333 = vmatpush3.bf16.msra.mxu0 %v28351_v31 }
0x2ffb   :  { %25334 = vmatprep.subr.bf16.mxu0 %v26789_v52 }
0x2ffd   :  { %23289 = vmatmul.mubr.f32.gmra.mrb[32].mxu0 %v28236_v18 }
0x2ffe   :  { %23291 = vmatprep.mubr.f32.mxu0 %v28279_v3 }
0x3001   :  { %23292 = vmatmul.mubr.f32.gmra.mrb[34].mxu0 %v28448_v44 }
0x3002   :  { %23434 = vmatprep.mubr.msk.f32.mxu0 %vm26790_vm1, %v26791_v17 }
0x301d   :  { %v11352_v21 = vpop.f32.mrb[28].mxu1 }
0x301e   :  { %v23359_v1 = vpop.f32.mrb[29].mxu1 }
0x30c8   :  { %v23284_v63 = vpop.f32.mrb[28].mxu0 }
0x30c9   :  { %v28514_v29 = vadd.f32 %v23284_v63, %v20592_v26  ;;  %v10816_v41 = vpop.f32.mrb[29].mxu0 }
0x30ca   :  { %v25945_v28 = vadd.f32 %v20592_v26, %v10816_v41 }
0x30cc   :  { %v11356_v46 = vadd.f32 %v25945_v28, %v11352_v21  ;;  %v23287_v57 = vpop.f32.mrb[30].mxu0 }
0x30cd   :  { %v28516_v58 = vadd.f32 %v23287_v57, %v20592_v26  ;;  %v10828_v5 = vpop.f32.mrb[31].mxu0 }
0x30ce   :  { %26551 = vtanh.f32 %v11356_v46  ;;  %v28518_v12 = vadd.f32 %v20592_v26, %v10828_v5  ;;  %v11357_v43 = vmul.f32 0.5, %v11356_v46 }
0x30d0   :  { %v23290_v51 = vpop.f32.mrb[32].mxu0  ;;  %26553 = vtanh.f32 %v11357_v43 }
0x30d1   :  { %v28520_v18 = vadd.f32 %v23290_v51, %v20592_v26  ;;  %v10840_v33 = vpop.f32.mrb[33].mxu0 }
0x30d2   :  { %v28522_v36 = vadd.f32 %v20592_v26, %v10840_v33 }
0x30d4   :  { %v23293_v20 = vpop.f32.mrb[34].mxu0 }
0x30d5   :  { %v28524_v50 = vadd.f32 %v23293_v20, %v20592_v26  ;;  %v10852_v32 = vpop.f32.mrb[35].mxu0 }
0x30d6   :  { %v28526_v60 = vadd.f32 %v20592_v26, %v10852_v32 }
0x30d8   :  { %v26552_v3 = vpop.eup %26551 }
0x30d9   :  { %11364 = vrot.lane.b32.xlu0 %v26552_v3, %s26792_s3 }
0x30da   :  { %v26554_v53 = vpop.eup %26553 }
0x30db   :  { %v11359_v59 = vmul.f32 0.5, %v26554_v53 }
0x30dd   :  { %v11360_v45 = vadd.f32 0.5, %v11359_v59 }
0x30df   :  { %v11362_v8 = vmul.f32 0.0, %v11360_v45 }
0x314b   :  { %v11365_v4 = vpop.permute.xlu0 %11364 }
0x314c   :  { %v11367_v24 = vmul.f32 %v11365_v4, %v11360_v45 }
0x314e   :  { %11369 = vrot.lane.b32.xlu1 %v11367_v24, %s26793_s30 }
0x31c0   :  { %v11370_v42 = vpop.permute.xlu1 %11369 }
0x31c1   :  { %v28530_v15 = vadd.f32 %v11370_v42, %v11362_v8 }
0x31c3   :  { %26555 = vtanh.f32 %v28530_v15 }
0x31cd   :  { %v26556_v16 = vpop.eup %26555 }
0x31ce   :  { %11375 = vrot.lane.b32.xlu0 %v26556_v16, %s26792_s3 }
0x3240   :  { %v11376_v37 = vpop.permute.xlu0 %11375 }
0x3241   :  { %v11378_v54 = vmul.f32 %v11376_v37, %v11360_v45 }
0x3243   :  { %11380 = vrot.lane.b32.xlu1 %v11378_v54, %s26793_s30 }
0x32b5   :  { %v11381_v27 = vpop.permute.xlu1 %11380 }
0x32b6   :  { %11383 = vst.msk [vmem:[#allocation3] sm:$0xff] %vm111_vm0, %v11381_v27  ;;  %v11385_v47 = vsel %vm111_vm0, %v11381_v27, 0 }
0x32b7   :  { %v11456_v49 = vand.u32 4294901760, %v11385_v47 }
0x32b9   :  { %v11457_v35 = vsub.f32 %v11385_v47, %v11456_v49 }
0x32bb   :  { %v11458_v55 = vand.u32 4294901760, %v11457_v35 }
0x32bd   :  { %v11459_v14 = vsub.f32 %v11457_v35, %v11458_v55 }
0x32bf   :  { %v11460_v22 = vand.u32 4294901760, %v11459_v14 }
0x32c1   :  { %23369 = vmatmul.mubr.f32.vlgmr.msra.gmra.mrb[30].mxu1 %v11460_v22 }
0x32c2   :  { %25300 = vmatpush3.bf16.msra.mxu1 %v28378_v11  ;;  %23379 = vmatprep.mubr.msk.f32.mxu1 %vm26790_vm1, %v26791_v17 }
0x32c3   :  { %25301 = vmatprep.subr.bf16.mxu1 %v26789_v52 }
0x32c6   :  { %25303 = vmatpush3.bf16.msra.mxu1 %v28384_v2 }
0x32c7   :  { %25304 = vmatprep.subr.bf16.mxu1 %v26789_v52 }
0x32c9   :  { %23380 = vmatmul.mubr.f32.vlgmr.msra.gmra.mrb[30].mxu1 %v11456_v49 }
0x32ca   :  { %25306 = vmatpush3.bf16.msra.mxu1 %v28391_v13  ;;  %23390 = vmatprep.mubr.msk.f32.mxu1 %vm26790_vm1, %v26791_v17 }
0x32cb   :  { %25307 = vmatprep.subr.bf16.mxu1 %v26789_v52 }
0x32ce   :  { %25309 = vmatpush3.bf16.msra.mxu1 %v28398_v38 }
0x32cf   :  { %25310 = vmatprep.subr.bf16.mxu1 %v26789_v52 }
0x32d1   :  { %23391 = vmatmul.mubr.f32.vlgmr.msra.gmra.mrb[30].mxu1 %v11457_v35 }
0x32d2   :  { %25312 = vmatpush3.bf16.msra.mxu1 %v28345_v61  ;;  %23401 = vmatprep.mubr.msk.f32.mxu1 %vm26790_vm1, %v26791_v17 }
0x32d3   :  { %25313 = vmatprep.subr.bf16.mxu1 %v26789_v52 }
0x32d6   :  { %25315 = vmatpush3.bf16.msra.mxu1 %v28351_v31 }
0x32d7   :  { %25316 = vmatprep.subr.bf16.mxu1 %v26789_v52 }
0x32d9   :  { %23402 = vmatmul.mubr.f32.vlgmr.msra.gmra.mrb[30].mxu1 %v11458_v55 }
0x32da   :  { %25318 = vmatpush3.bf16.msra.mxu1 %v28413_v48  ;;  %23412 = vmatprep.mubr.msk.f32.mxu1 %vm26790_vm1, %v26791_v17 }
0x32db   :  { %25319 = vmatprep.subr.bf16.mxu1 %v26789_v52 }
0x32de   :  { %25321 = vmatpush3.bf16.msra.mxu1 %v28420_v56 }
0x32df   :  { %25322 = vmatprep.subr.bf16.mxu1 %v26789_v52 }
0x32e1   :  { %23413 = vmatmul.mubr.f32.vlgmr.msra.gmra.mrb[30].mxu1 %v11456_v49 }
0x32e2   :  { %25324 = vmatpush3.bf16.msra.mxu1 %v28345_v61  ;;  %23423 = vmatprep.mubr.msk.f32.mxu1 %vm26790_vm1, %v26791_v17 }
0x32e3   :  { %25325 = vmatprep.subr.bf16.mxu1 %v26789_v52 }
0x32e6   :  { %25327 = vmatpush3.bf16.msra.mxu1 %v28351_v31 }
0x32e7   :  { %25364 = vmatprep.subr.bf16.mxu1 %v26789_v52 }
0x32e9   :  { %23424 = vmatmul.mubr.f32.vlgmr.msra.gmra.mrb[30].mxu1 %v11456_v49 }
0x32ea   :  { %25366 = vmatpush3.bf16.msra.mxu1 %v28345_v61  ;;  %23500 = vmatprep.mubr.msk.f32.mxu1 %vm26790_vm1, %v26791_v17 }
0x32eb   :  { %25367 = vmatprep.subr.bf16.mxu1 %v26789_v52 }
0x32ee   :  { %25369 = vmatpush3.bf16.msra.mxu1 %v28351_v31 }
0x32ef   :  { %25370 = vmatprep.subr.bf16.mxu1 %v26789_v52 }
0x33bc   :  { %v11868_v23 = vpop.f32.mrb[30].mxu1 }
0x33bd   :  { %v11872_v6 = vadd.f32 %v28514_v29, %v11868_v23  ;;  %v23425_v0 = vpop.f32.mrb[31].mxu1 }
0x33bf   :  { %26557 = vtanh.f32 %v11872_v6  ;;  %v11873_v10 = vmul.f32 0.5, %v11872_v6 }
0x33c1   :  { %26559 = vtanh.f32 %v11873_v10 }
0x33c9   :  { %v26558_v30 = vpop.eup %26557 }
0x33ca   :  { %11880 = vrot.lane.b32.xlu0 %v26558_v30, %s26792_s3 }
0x33cb   :  { %v26560_v7 = vpop.eup %26559 }
0x33cc   :  { %v11875_v40 = vmul.f32 0.5, %v26560_v7 }
0x33ce   :  { %v11876_v19 = vadd.f32 0.5, %v11875_v40 }
0x33d0   :  { %v11878_v34 = vmul.f32 %v11876_v19, %v28530_v15 }
0x343c   :  { %v11881_v9 = vpop.permute.xlu0 %11880 }
0x343d   :  { %v11883_v44 = vmul.f32 %v11881_v9, %v11876_v19 }
0x343f   :  { %11885 = vrot.lane.b32.xlu1 %v11883_v44, %s26793_s30 }
0x34b1   :  { %v11886_v39 = vpop.permute.xlu1 %11885 }
0x34b2   :  { %v28577_v25 = vadd.f32 %v11886_v39, %v11878_v34 }
0x34b4   :  { %26561 = vtanh.f32 %v28577_v25 }
0x34be   :  { %v26562_v62 = vpop.eup %26561 }
0x34bf   :  { %11891 = vrot.lane.b32.xlu0 %v26562_v62, %s26792_s3 }
0x3531   :  { %v11892_v21 = vpop.permute.xlu0 %11891 }
0x3532   :  { %v11894_v1 = vmul.f32 %v11892_v21, %v11876_v19 }
0x3534   :  { %11896 = vrot.lane.b32.xlu1 %v11894_v1, %s26793_s30 }
0x35a6   :  { %v11897_v26 = vpop.permute.xlu1 %11896 }
0x35a7   :  { %11899 = vst.msk [vmem:[#allocation3 + $0x8] sm:$0xff] %vm111_vm0, %v11897_v26  ;;  %v11901_v63 = vsel %vm111_vm0, %v11897_v26, 0 }
0x35a8   :  { %v11972_v29 = vand.u32 4294901760, %v11901_v63 }
0x35aa   :  { %v11973_v41 = vsub.f32 %v11901_v63, %v11972_v29 }
0x35ac   :  { %v11974_v28 = vand.u32 4294901760, %v11973_v41 }
0x35ae   :  { %v11975_v46 = vsub.f32 %v11973_v41, %v11974_v28 }
0x35b0   :  { %v11976_v57 = vand.u32 4294901760, %v11975_v46 }
0x35b2   :  { %23435 = vmatmul.mubr.f32.vlgmr.msra.gmra.mrb[36].mxu0 %v11976_v57 }
0x35b3   :  { %25336 = vmatpush3.bf16.msra.mxu0 %v28378_v11  ;;  %23445 = vmatprep.mubr.msk.f32.mxu0 %vm26790_vm1, %v26791_v17 }
0x35b4   :  { %25337 = vmatprep.subr.bf16.mxu0 %v26789_v52 }
0x35b7   :  { %25339 = vmatpush3.bf16.msra.mxu0 %v28384_v2 }
0x35b8   :  { %25340 = vmatprep.subr.bf16.mxu0 %v26789_v52 }
0x35ba   :  { %23446 = vmatmul.mubr.f32.vlgmr.msra.gmra.mrb[36].mxu0 %v11972_v29 }
0x35bb   :  { %25342 = vmatpush3.bf16.msra.mxu0 %v28391_v13  ;;  %23456 = vmatprep.mubr.msk.f32.mxu0 %vm26790_vm1, %v26791_v17 }
0x35bc   :  { %25343 = vmatprep.subr.bf16.mxu0 %v26789_v52 }
0x35bf   :  { %25345 = vmatpush3.bf16.msra.mxu0 %v28398_v38 }
0x35c0   :  { %25346 = vmatprep.subr.bf16.mxu0 %v26789_v52 }
0x35c2   :  { %23457 = vmatmul.mubr.f32.vlgmr.msra.gmra.mrb[36].mxu0 %v11973_v41 }
0x35c3   :  { %25348 = vmatpush3.bf16.msra.mxu0 %v28345_v61  ;;  %23467 = vmatprep.mubr.msk.f32.mxu0 %vm26790_vm1, %v26791_v17 }
0x35c4   :  { %25349 = vmatprep.subr.bf16.mxu0 %v26789_v52 }
0x35c7   :  { %25351 = vmatpush3.bf16.msra.mxu0 %v28351_v31 }
0x35c8   :  { %25352 = vmatprep.subr.bf16.mxu0 %v26789_v52 }
0x35ca   :  { %23468 = vmatmul.mubr.f32.vlgmr.msra.gmra.mrb[36].mxu0 %v11974_v28 }
0x35cb   :  { %25354 = vmatpush3.bf16.msra.mxu0 %v28413_v48  ;;  %23478 = vmatprep.mubr.msk.f32.mxu0 %vm26790_vm1, %v26791_v17 }
0x35cc   :  { %25355 = vmatprep.subr.bf16.mxu0 %v26789_v52 }
0x35cf   :  { %25357 = vmatpush3.bf16.msra.mxu0 %v28420_v56 }
0x35d0   :  { %25358 = vmatprep.subr.bf16.mxu0 %v26789_v52 }
0x35d2   :  { %23479 = vmatmul.mubr.f32.vlgmr.msra.gmra.mrb[36].mxu0 %v11972_v29 }
0x35d3   :  { %25360 = vmatpush3.bf16.msra.mxu0 %v28345_v61  ;;  %23489 = vmatprep.mubr.msk.f32.mxu0 %vm26790_vm1, %v26791_v17 }
0x35d4   :  { %25361 = vmatprep.subr.bf16.mxu0 %v26789_v52 }
0x35d7   :  { %25363 = vmatpush3.bf16.msra.mxu0 %v28351_v31 }
0x35d8   :  { %25400 = vmatprep.subr.bf16.mxu0 %v26789_v52 }
0x35da   :  { %23490 = vmatmul.mubr.f32.vlgmr.msra.gmra.mrb[36].mxu0 %v11972_v29 }
0x35db   :  { %25402 = vmatpush3.bf16.msra.mxu0 %v28345_v61  ;;  %23566 = vmatprep.mubr.msk.f32.mxu0 %vm26790_vm1, %v26791_v17 }
0x35dc   :  { %25403 = vmatprep.subr.bf16.mxu0 %v26789_v52 }
0x35df   :  { %25405 = vmatpush3.bf16.msra.mxu0 %v28351_v31 }
0x35e0   :  { %25406 = vmatprep.subr.bf16.mxu0 %v26789_v52 }
0x36ad   :  { %v12384_v5 = vpop.f32.mrb[36].mxu0 }
0x36ae   :  { %v12388_v51 = vadd.f32 %v28518_v12, %v12384_v5  ;;  %v23491_v33 = vpop.f32.mrb[37].mxu0 }
0x36b0   :  { %26563 = vtanh.f32 %v12388_v51  ;;  %v12389_v32 = vmul.f32 0.5, %v12388_v51 }
0x36b2   :  { %26565 = vtanh.f32 %v12389_v32 }
0x36ba   :  { %v26564_v20 = vpop.eup %26563 }
0x36bb   :  { %12396 = vrot.lane.b32.xlu0 %v26564_v20, %s26792_s3 }
0x36bc   :  { %v26566_v3 = vpop.eup %26565 }
0x36bd   :  { %v12391_v43 = vmul.f32 0.5, %v26566_v3 }
0x36bf   :  { %v12392_v53 = vadd.f32 0.5, %v12391_v43 }
0x36c1   :  { %v12394_v4 = vmul.f32 %v12392_v53, %v28577_v25 }
0x372d   :  { %v12397_v59 = vpop.permute.xlu0 %12396 }
0x372e   :  { %v12399_v45 = vmul.f32 %v12397_v59, %v12392_v53 }
0x3730   :  { %12401 = vrot.lane.b32.xlu1 %v12399_v45, %s26793_s30 }
0x37a2   :  { %v12402_v24 = vpop.permute.xlu1 %12401 }
0x37a3   :  { %v28624_v8 = vadd.f32 %v12402_v24, %v12394_v4 }
0x37a5   :  { %26567 = vtanh.f32 %v28624_v8 }
0x37af   :  { %v26568_v12 = vpop.eup %26567 }
0x37b0   :  { %12407 = vrot.lane.b32.xlu0 %v26568_v12, %s26792_s3 }
0x3822   :  { %v12408_v42 = vpop.permute.xlu0 %12407 }
0x3823   :  { %v12410_v15 = vmul.f32 %v12408_v42, %v12392_v53 }
0x3825   :  { %12412 = vrot.lane.b32.xlu1 %v12410_v15, %s26793_s30 }
0x3897   :  { %v12413_v16 = vpop.permute.xlu1 %12412 }
0x3898   :  { %12415 = vst.msk [vmem:[#allocation3 + $0x10] sm:$0xff] %vm111_vm0, %v12413_v16  ;;  %v12417_v37 = vsel %vm111_vm0, %v12413_v16, 0 }
0x3899   :  { %v12488_v54 = vand.u32 4294901760, %v12417_v37 }
0x389b   :  { %v12489_v27 = vsub.f32 %v12417_v37, %v12488_v54 }
0x389d   :  { %v12490_v47 = vand.u32 4294901760, %v12489_v27 }
0x389f   :  { %v12491_v49 = vsub.f32 %v12489_v27, %v12490_v47 }
0x38a1   :  { %v12492_v35 = vand.u32 4294901760, %v12491_v49 }
0x38a3   :  { %23501 = vmatmul.mubr.f32.vlgmr.msra.gmra.mrb[32].mxu1 %v12492_v35 }
0x38a4   :  { %25372 = vmatpush3.bf16.msra.mxu1 %v28378_v11  ;;  %23511 = vmatprep.mubr.msk.f32.mxu1 %vm26790_vm1, %v26791_v17 }
0x38a5   :  { %25373 = vmatprep.subr.bf16.mxu1 %v26789_v52 }
0x38a8   :  { %25375 = vmatpush3.bf16.msra.mxu1 %v28384_v2 }
0x38a9   :  { %25376 = vmatprep.subr.bf16.mxu1 %v26789_v52 }
0x38ab   :  { %23512 = vmatmul.mubr.f32.vlgmr.msra.gmra.mrb[32].mxu1 %v12488_v54 }
0x38ac   :  { %25378 = vmatpush3.bf16.msra.mxu1 %v28391_v13  ;;  %23522 = vmatprep.mubr.msk.f32.mxu1 %vm26790_vm1, %v26791_v17 }
0x38ad   :  { %25379 = vmatprep.subr.bf16.mxu1 %v26789_v52 }
0x38b0   :  { %25381 = vmatpush3.bf16.msra.mxu1 %v28398_v38 }
0x38b1   :  { %25382 = vmatprep.subr.bf16.mxu1 %v26789_v52 }
0x38b3   :  { %23523 = vmatmul.mubr.f32.vlgmr.msra.gmra.mrb[32].mxu1 %v12489_v27 }
0x38b4   :  { %25384 = vmatpush3.bf16.msra.mxu1 %v28345_v61  ;;  %23533 = vmatprep.mubr.msk.f32.mxu1 %vm26790_vm1, %v26791_v17 }
0x38b5   :  { %25385 = vmatprep.subr.bf16.mxu1 %v26789_v52 }
0x38b8   :  { %25387 = vmatpush3.bf16.msra.mxu1 %v28351_v31 }
0x38b9   :  { %25388 = vmatprep.subr.bf16.mxu1 %v26789_v52 }
0x38bb   :  { %23534 = vmatmul.mubr.f32.vlgmr.msra.gmra.mrb[32].mxu1 %v12490_v47 }
0x38bc   :  { %25390 = vmatpush3.bf16.msra.mxu1 %v28413_v48  ;;  %23544 = vmatprep.mubr.msk.f32.mxu1 %vm26790_vm1, %v26791_v17 }
0x38bd   :  { %25391 = vmatprep.subr.bf16.mxu1 %v26789_v52 }
0x38c0   :  { %25393 = vmatpush3.bf16.msra.mxu1 %v28420_v56 }
0x38c1   :  { %25394 = vmatprep.subr.bf16.mxu1 %v26789_v52 }
0x38c3   :  { %23545 = vmatmul.mubr.f32.vlgmr.msra.gmra.mrb[32].mxu1 %v12488_v54 }
0x38c4   :  { %25396 = vmatpush3.bf16.msra.mxu1 %v28345_v61  ;;  %23555 = vmatprep.mubr.msk.f32.mxu1 %vm26790_vm1, %v26791_v17 }
0x38c5   :  { %25397 = vmatprep.subr.bf16.mxu1 %v26789_v52 }
0x38c8   :  { %25399 = vmatpush3.bf16.msra.mxu1 %v28351_v31 }
0x38c9   :  { %25436 = vmatprep.subr.bf16.mxu1 %v26789_v52 }
0x38cb   :  { %23556 = vmatmul.mubr.f32.vlgmr.msra.gmra.mrb[32].mxu1 %v12488_v54 }
0x38cc   :  { %25438 = vmatpush3.bf16.msra.mxu1 %v28345_v61  ;;  %23632 = vmatprep.mubr.msk.f32.mxu1 %vm26790_vm1, %v26791_v17 }
0x38cd   :  { %25439 = vmatprep.subr.bf16.mxu1 %v26789_v52 }
0x38d0   :  { %25441 = vmatpush3.bf16.msra.mxu1 %v28351_v31 }
0x38d1   :  { %25442 = vmatprep.subr.bf16.mxu1 %v26789_v52 }
0x399e   :  { %v12900_v55 = vpop.f32.mrb[32].mxu1 }
0x399f   :  { %v12904_v14 = vadd.f32 %v28516_v58, %v12900_v55  ;;  %v23557_v22 = vpop.f32.mrb[33].mxu1 }
0x39a1   :  { %26569 = vtanh.f32 %v12904_v14  ;;  %v12905_v6 = vmul.f32 0.5, %v12904_v14 }
0x39a3   :  { %26571 = vtanh.f32 %v12905_v6 }
0x39ab   :  { %v26570_v23 = vpop.eup %26569 }
0x39ac   :  { %12912 = vrot.lane.b32.xlu0 %v26570_v23, %s26792_s3 }
0x39ad   :  { %v26572_v0 = vpop.eup %26571 }
0x39ae   :  { %v12907_v30 = vmul.f32 0.5, %v26572_v0 }
0x39b0   :  { %v12908_v10 = vadd.f32 0.5, %v12907_v30 }
0x39b2   :  { %v12910_v19 = vmul.f32 %v12908_v10, %v28624_v8 }
0x3a1e   :  { %v12913_v7 = vpop.permute.xlu0 %12912 }
0x3a1f   :  { %v12915_v40 = vmul.f32 %v12913_v7, %v12908_v10 }
0x3a21   :  { %12917 = vrot.lane.b32.xlu1 %v12915_v40, %s26793_s30 }
0x3a93   :  { %v12918_v9 = vpop.permute.xlu1 %12917 }
0x3a94   :  { %v28671_v44 = vadd.f32 %v12918_v9, %v12910_v19 }
0x3a96   :  { %26573 = vtanh.f32 %v28671_v44 }
0x3aa0   :  { %v26574_v58 = vpop.eup %26573 }
0x3aa1   :  { %12923 = vrot.lane.b32.xlu0 %v26574_v58, %s26792_s3 }
0x3b13   :  { %v12924_v34 = vpop.permute.xlu0 %12923 }
0x3b14   :  { %v12926_v39 = vmul.f32 %v12924_v34, %v12908_v10 }
0x3b16   :  { %12928 = vrot.lane.b32.xlu1 %v12926_v39, %s26793_s30 }
0x3b88   :  { %v12929_v25 = vpop.permute.xlu1 %12928 }
0x3b89   :  { %12931 = vst.msk [vmem:[#allocation3 + $0x18] sm:$0xff] %vm111_vm0, %v12929_v25  ;;  %v12933_v62 = vsel %vm111_vm0, %v12929_v25, 0 }
0x3b8a   :  { %v13004_v21 = vand.u32 4294901760, %v12933_v62 }
0x3b8c   :  { %v13005_v1 = vsub.f32 %v12933_v62, %v13004_v21  ;;  %v14996_v62 = vld [vmem:[#allocation3] sm:$0xff] }
0x3b8e   :  { %v13006_v26 = vand.u32 4294901760, %v13005_v1 }
0x3b90   :  { %v13007_v63 = vsub.f32 %v13005_v1, %v13006_v26 }
0x3b92   :  { %v13008_v29 = vand.u32 4294901760, %v13007_v63  ;;  %v14998_v63 = vld [vmem:[#allocation3 + $0x10] sm:$0xff] }
0x3b94   :  { %23567 = vmatmul.mubr.f32.vlgmr.msra.gmra.mrb[38].mxu0 %v13008_v29 }
0x3b95   :  { %25408 = vmatpush3.bf16.msra.mxu0 %v28378_v11  ;;  %23577 = vmatprep.mubr.msk.f32.mxu0 %vm26790_vm1, %v26791_v17 }
0x3b96   :  { %25409 = vmatprep.subr.bf16.mxu0 %v26789_v52 }
0x3b99   :  { %25411 = vmatpush3.bf16.msra.mxu0 %v28384_v2 }
0x3b9a   :  { %25412 = vmatprep.subr.bf16.mxu0 %v26789_v52 }
0x3b9c   :  { %23578 = vmatmul.mubr.f32.vlgmr.msra.gmra.mrb[38].mxu0 %v13004_v21 }
0x3b9d   :  { %25414 = vmatpush3.bf16.msra.mxu0 %v28391_v13  ;;  %23588 = vmatprep.mubr.msk.f32.mxu0 %vm26790_vm1, %v26791_v17 }
0x3b9e   :  { %25415 = vmatprep.subr.bf16.mxu0 %v26789_v52 }
0x3ba1   :  { %25417 = vmatpush3.bf16.msra.mxu0 %v28398_v38 }
0x3ba2   :  { %25418 = vmatprep.subr.bf16.mxu0 %v26789_v52 }
0x3ba4   :  { %23589 = vmatmul.mubr.f32.vlgmr.msra.gmra.mrb[38].mxu0 %v13005_v1 }
0x3ba5   :  { %25420 = vmatpush3.bf16.msra.mxu0 %v28345_v61  ;;  %23599 = vmatprep.mubr.msk.f32.mxu0 %vm26790_vm1, %v26791_v17 }
0x3ba6   :  { %25421 = vmatprep.subr.bf16.mxu0 %v26789_v52 }
0x3ba9   :  { %25423 = vmatpush3.bf16.msra.mxu0 %v28351_v31 }
0x3baa   :  { %25424 = vmatprep.subr.bf16.mxu0 %v26789_v52 }
0x3bac   :  { %23600 = vmatmul.mubr.f32.vlgmr.msra.gmra.mrb[38].mxu0 %v13006_v26  ;;  %v14997_v26 = vld [vmem:[#allocation3 + $0x8] sm:$0xff] }
0x3bad   :  { %25426 = vmatpush3.bf16.msra.mxu0 %v28413_v48  ;;  %23610 = vmatprep.mubr.msk.f32.mxu0 %vm26790_vm1, %v26791_v17  ;;  %v15026_v29 = vsel %vm111_vm0, %v14997_v26, 0 }
0x3bae   :  { %25427 = vmatprep.subr.bf16.mxu0 %v26789_v52 }
0x3bb1   :  { %25429 = vmatpush3.bf16.msra.mxu0 %v28420_v56 }
0x3bb2   :  { %25430 = vmatprep.subr.bf16.mxu0 %v26789_v52 }
0x3bb4   :  { %23611 = vmatmul.mubr.f32.vlgmr.msra.gmra.mrb[38].mxu0 %v13004_v21 }
0x3bb5   :  { %25432 = vmatpush3.bf16.msra.mxu0 %v28345_v61  ;;  %23621 = vmatprep.mubr.msk.f32.mxu0 %vm26790_vm1, %v26791_v17 }
0x3bb6   :  { %25433 = vmatprep.subr.bf16.mxu0 %v26789_v52 }
0x3bb9   :  { %25435 = vmatpush3.bf16.msra.mxu0 %v28351_v31 }
0x3bba   :  { %25472 = vmatprep.subr.bf16.mxu0 %v26789_v52 }
0x3bbc   :  { %23622 = vmatmul.mubr.f32.vlgmr.msra.gmra.mrb[38].mxu0 %v13004_v21  ;;  %v15023_v21 = vsel %vm111_vm0, %v14996_v62, 0 }
0x3bbd   :  { %25474 = vmatpush3.bf16.msra.mxu0 %v28345_v61  ;;  %23698 = vmatprep.mubr.msk.f32.mxu0 %vm26790_vm1, %v26791_v17  ;;  %v28795_v1 = vand.u32 4294901760, %v15023_v21 }
0x3bbe   :  { %25475 = vmatprep.subr.bf16.mxu0 %v26789_v52 }
0x3bc1   :  { %25477 = vmatpush3.bf16.msra.mxu0 %v28351_v31 }
0x3bc2   :  { %25478 = vmatprep.subr.bf16.mxu0 %v26789_v52 }
0x3c8f   :  { %v13416_v41 = vpop.f32.mrb[38].mxu0 }
0x3c90   :  { %v13420_v28 = vadd.f32 %v28522_v36, %v13416_v41  ;;  %v23623_v46 = vpop.f32.mrb[39].mxu0  ;;  %v28805_v41 = vld [vmem:[%s29584_s4 + $0x40] sm:$0xff] }
0x3c91   :  { %v28813_v46 = vsub.f32 %v15023_v21, %v28795_v1 }
0x3c92   :  { %26575 = vtanh.f32 %v13420_v28  ;;  %v13421_v5 = vmul.f32 0.5, %v13420_v28  ;;  %v28810_v28 = vld [vmem:[%s29584_s4 + $0x48] sm:$0xff] }
0x3c94   :  { %26577 = vtanh.f32 %v13421_v5  ;;  %v14999_v5 = vld [vmem:[#allocation3 + $0x18] sm:$0xff] }
0x3c9c   :  { %v26576_v57 = vpop.eup %26575 }
0x3c9d   :  { %13428 = vrot.lane.b32.xlu0 %v26576_v57, %s26792_s3  ;;  %v15029_v57 = vsel %vm111_vm0, %v14998_v63, 0 }
0x3c9e   :  { %v26578_v51 = vpop.eup %26577 }
0x3c9f   :  { %v13423_v33 = vmul.f32 0.5, %v26578_v51  ;;  %v28817_v51 = vand.u32 4294901760, %v15026_v29 }
0x3ca1   :  { %v13424_v20 = vadd.f32 0.5, %v13423_v33 }
0x3ca3   :  { %v13426_v43 = vmul.f32 %v13424_v20, %v28671_v44 }
0x3d0f   :  { %v13429_v32 = vpop.permute.xlu0 %13428 }
0x3d10   :  { %v13431_v3 = vmul.f32 %v13429_v32, %v13424_v20  ;;  %v15050_v32 = vand.u32 4294901760, %v28810_v28 }
0x3d12   :  { %13433 = vrot.lane.b32.xlu1 %v13431_v3, %s26793_s30  ;;  %v15117_v3 = vand.u32 4294901760, %v28813_v46 }
0x3d84   :  { %v13434_v53 = vpop.permute.xlu1 %13433 }
0x3d85   :  { %v28718_v59 = vadd.f32 %v13434_v53, %v13426_v43  ;;  %v28826_v43 = vld [vmem:[%s29584_s4 + $0x50] sm:$0xff]  ;;  %v28831_v53 = vld [vmem:[%s29584_s4 + $0x58] sm:$0xff] }
0x3d87   :  { %26579 = vtanh.f32 %v28718_v59 }
0x3d91   :  { %v26580_v36 = vpop.eup %26579 }
0x3d92   :  { %13439 = vrot.lane.b32.xlu0 %v26580_v36, %s26792_s3  ;;  %v15032_v36 = vsel %vm111_vm0, %v14999_v5, 0 }
0x3e04   :  { %v13440_v45 = vpop.permute.xlu0 %13439 }
0x3e05   :  { %v13442_v4 = vmul.f32 %v13440_v45, %v13424_v20  ;;  %v15047_v20 = vand.u32 4294901760, %v28805_v41 }
0x3e07   :  { %13444 = vrot.lane.b32.xlu1 %v13442_v4, %s26793_s30 }
0x3e79   :  { %v13445_v24 = vpop.permute.xlu1 %13444 }
0x3e7a   :  { %13447 = vst.msk [vmem:[#allocation3 + $0x20] sm:$0xff] %vm111_vm0, %v13445_v24  ;;  %v13449_v8 = vsel %vm111_vm0, %v13445_v24, 0  ;;  %v28842_v24 = vsub.f32 %v15026_v29, %v28817_v51 }
0x3e7b   :  { %v13520_v12 = vand.u32 4294901760, %v13449_v8 }
0x3e7d   :  { %v13521_v42 = vsub.f32 %v13449_v8, %v13520_v12  ;;  %v28849_v8 = vpack.c.bf16 %v15050_v32, %v15047_v20 }
0x3e7f   :  { %v13522_v15 = vand.u32 4294901760, %v13521_v42 }
0x3e81   :  { %v13523_v16 = vsub.f32 %v13521_v42, %v13522_v15  ;;  %v15000_v33 = vld [vmem:[#allocation3 + $0x20] sm:$0xff] }
0x3e82   :  { %v15035_v45 = vsel %vm111_vm0, %v15000_v33, 0 }
0x3e83   :  { %v13524_v37 = vand.u32 4294901760, %v13523_v16  ;;  %v15118_v16 = vsub.f32 %v28813_v46, %v15117_v3 }
0x3e85   :  { %23633 = vmatmul.mubr.f32.vlgmr.msra.gmra.mrb[34].mxu1 %v13524_v37 }
0x3e86   :  { %25444 = vmatpush3.bf16.msra.mxu1 %v28378_v11  ;;  %23643 = vmatprep.mubr.msk.f32.mxu1 %vm26790_vm1, %v26791_v17 }
0x3e87   :  { %25445 = vmatprep.subr.bf16.mxu1 %v26789_v52 }
0x3e8a   :  { %25447 = vmatpush3.bf16.msra.mxu1 %v28384_v2 }
0x3e8b   :  { %25448 = vmatprep.subr.bf16.mxu1 %v26789_v52 }
0x3e8d   :  { %23644 = vmatmul.mubr.f32.vlgmr.msra.gmra.mrb[34].mxu1 %v13520_v12 }
0x3e8e   :  { %25450 = vmatpush3.bf16.msra.mxu1 %v28391_v13  ;;  %23654 = vmatprep.mubr.msk.f32.mxu1 %vm26790_vm1, %v26791_v17 }
0x3e8f   :  { %25451 = vmatprep.subr.bf16.mxu1 %v26789_v52 }
0x3e92   :  { %25453 = vmatpush3.bf16.msra.mxu1 %v28398_v38 }
0x3e93   :  { %25454 = vmatprep.subr.bf16.mxu1 %v26789_v52 }
0x3e95   :  { %23655 = vmatmul.mubr.f32.vlgmr.msra.gmra.mrb[34].mxu1 %v13521_v42  ;;  %v15056_v42 = vand.u32 4294901760, %v28831_v53 }
0x3e96   :  { %25456 = vmatpush3.bf16.msra.mxu1 %v28345_v61  ;;  %23665 = vmatprep.mubr.msk.f32.mxu1 %vm26790_vm1, %v26791_v17 }
0x3e97   :  { %25457 = vmatprep.subr.bf16.mxu1 %v26789_v52 }
0x3e9a   :  { %25459 = vmatpush3.bf16.msra.mxu1 %v28351_v31 }
0x3e9b   :  { %25460 = vmatprep.subr.bf16.mxu1 %v26789_v52 }
0x3e9d   :  { %23666 = vmatmul.mubr.f32.vlgmr.msra.gmra.mrb[34].mxu1 %v13522_v15  ;;  %v28853_v15 = vand.u32 4294901760, %v15032_v36 }
0x3e9e   :  { %25462 = vmatpush3.bf16.msra.mxu1 %v28413_v48  ;;  %23676 = vmatprep.mubr.msk.f32.mxu1 %vm26790_vm1, %v26791_v17 }
0x3e9f   :  { %25463 = vmatprep.subr.bf16.mxu1 %v26789_v52 }
0x3ea2   :  { %25465 = vmatpush3.bf16.msra.mxu1 %v28420_v56 }
0x3ea3   :  { %25466 = vmatprep.subr.bf16.mxu1 %v26789_v52 }
0x3ea5   :  { %23677 = vmatmul.mubr.f32.vlgmr.msra.gmra.mrb[34].mxu1 %v13520_v12 }
0x3ea6   :  { %25468 = vmatpush3.bf16.msra.mxu1 %v28345_v61  ;;  %23687 = vmatprep.mubr.msk.f32.mxu1 %vm26790_vm1, %v26791_v17 }
0x3ea7   :  { %25469 = vmatprep.subr.bf16.mxu1 %v26789_v52 }
0x3eaa   :  { %25471 = vmatpush3.bf16.msra.mxu1 %v28351_v31 }
0x3eab   :  { %25508 = vmatprep.subr.bf16.mxu1 %v26789_v52 }
0x3ead   :  { %23688 = vmatmul.mubr.f32.vlgmr.msra.gmra.mrb[34].mxu1 %v13520_v12  ;;  %v15053_v12 = vand.u32 4294901760, %v28826_v43 }
0x3eae   :  { %25510 = vmatpush3.bf16.msra.mxu1 %v28345_v61  ;;  %23764 = vmatprep.mubr.msk.f32.mxu1 %vm26790_vm1, %v26791_v17 }
0x3eaf   :  { %25511 = vmatprep.subr.bf16.mxu1 %v26789_v52 }
0x3eb2   :  { %25513 = vmatpush3.bf16.msra.mxu1 %v28351_v31 }
0x3eb3   :  { %25514 = vmatprep.subr.bf16.mxu1 %v26789_v52 }
0x3f80   :  { %v13932_v54 = vpop.f32.mrb[34].mxu1 }
0x3f81   :  { %v13936_v27 = vadd.f32 %v28520_v18, %v13932_v54  ;;  %v23689_v47 = vpop.f32.mrb[35].mxu1  ;;  %v28861_v54 = vand.u32 4294901760, %v15035_v45 }
0x3f82   :  { %v28870_v47 = vpack.c.bf16 %v15056_v42, %v15053_v12 }
0x3f83   :  { %26581 = vtanh.f32 %v13936_v27  ;;  %v13937_v35 = vmul.f32 0.5, %v13936_v27 }
0x3f85   :  { %26583 = vtanh.f32 %v13937_v35  ;;  %v28874_v35 = vsub.f32 %v15032_v36, %v28853_v15 }
0x3f8d   :  { %v26582_v49 = vpop.eup %26581 }
0x3f8e   :  { %13944 = vrot.lane.b32.xlu0 %v26582_v49, %s26792_s3  ;;  %v15127_v49 = vand.u32 4294901760, %v28842_v24 }
0x3f8f   :  { %v26584_v55 = vpop.eup %26583 }
0x3f90   :  { %v13939_v14 = vmul.f32 0.5, %v26584_v55 }
0x3f92   :  { %v13940_v22 = vadd.f32 0.5, %v13939_v14  ;;  %v15119_v14 = vand.u32 4294901760, %v15118_v16 }
0x3f94   :  { %v13942_v0 = vmul.f32 %v13940_v22, %v28718_v59  ;;  %v28833_v59 = vand.u32 4294901760, %v15029_v57 }
0x3f96   :  { %v28859_v37 = vsub.f32 %v15029_v57, %v28833_v59 }
0x4000   :  { %v13945_v23 = vpop.permute.xlu0 %13944 }
0x4001   :  { %v13947_v6 = vmul.f32 %v13945_v23, %v13940_v22  ;;  %v28880_v23 = vsub.f32 %v15035_v45, %v28861_v54 }
0x4003   :  { %13949 = vrot.lane.b32.xlu1 %v13947_v6, %s26793_s30  ;;  %v15128_v6 = vsub.f32 %v28842_v24, %v15127_v49 }
0x4075   :  { %v13950_v30 = vpop.permute.xlu1 %13949 }
0x4076   :  { %v28765_v10 = vadd.f32 %v13950_v30, %v13942_v0  ;;  %v15147_v0 = vand.u32 4294901760, %v28874_v35 }
0x4078   :  { %26585 = vtanh.f32 %v28765_v10 }
0x4082   :  { %v26586_v18 = vpop.eup %26585 }
0x4083   :  { %13955 = vrot.lane.b32.xlu0 %v26586_v18, %s26792_s3 }
0x40f5   :  { %v13956_v7 = vpop.permute.xlu0 %13955 }
0x40f6   :  { %v13958_v40 = vmul.f32 %v13956_v7, %v13940_v22  ;;  %v15137_v22 = vand.u32 4294901760, %v28859_v37  ;;  %v15157_v7 = vand.u32 4294901760, %v28880_v23 }
0x40f8   :  { %13960 = vrot.lane.b32.xlu1 %v13958_v40, %s26793_s30  ;;  %v15138_v18 = vsub.f32 %v28859_v37, %v15137_v22  ;;  %v15129_v40 = vand.u32 4294901760, %v15128_v6 }
0x416a   :  { %v13961_v19 = vpop.permute.xlu1 %13960 }
0x416b   :  { %13963 = vst.msk [vmem:[#allocation3 + $0x28] sm:$0xff] %vm111_vm0, %v13961_v19  ;;  %v13965_v9 = vsel %vm111_vm0, %v13961_v19, 0  ;;  %v15148_v19 = vsub.f32 %v28874_v35, %v15147_v0 }
0x416c   :  { %v28772_v44 = vand.u32 4294901760, %v13965_v9 }
0x416e   :  { %v14037_v58 = vsub.f32 %v13965_v9, %v28772_v44 }
0x4170   :  { %v14038_v34 = vand.u32 4294901760, %v14037_v58 }
0x4172   :  { %v14039_v39 = vsub.f32 %v14037_v58, %v14038_v34  ;;  %v15001_v4 = vld [vmem:[#allocation3 + $0x28] sm:$0xff] }
0x4173   :  { %v15038_v27 = vsel %vm111_vm0, %v15001_v4, 0 }
0x4174   :  { %v14040_v25 = vand.u32 4294901760, %v14039_v39  ;;  %v28876_v55 = vand.u32 4294901760, %v15038_v27 }
0x4176   :  { %23699 = vmatmul.mubr.f32.vlgmr.msra.gmra.mrb[40].mxu0 %v14040_v25  ;;  %v28890_v30 = vsub.f32 %v15038_v27, %v28876_v55 }
0x4177   :  { %25480 = vmatpush3.bf16.msra.mxu0 %v28378_v11  ;;  %23709 = vmatprep.mubr.msk.f32.mxu0 %vm26790_vm1, %v26791_v17 }
0x4178   :  { %25481 = vmatprep.subr.bf16.mxu0 %v26789_v52  ;;  %v15167_v9 = vand.u32 4294901760, %v28890_v30 }
0x417a   :  { %v15168_v39 = vsub.f32 %v28890_v30, %v15167_v9 }
0x417b   :  { %25483 = vmatpush3.bf16.msra.mxu0 %v28384_v2 }
0x417c   :  { %25484 = vmatprep.subr.bf16.mxu0 %v26789_v52  ;;  %v15169_v62 = vand.u32 4294901760, %v15168_v39 }
0x417e   :  { %23710 = vmatmul.mubr.f32.vlgmr.msra.gmra.mrb[40].mxu0 %v28772_v44 }
0x417f   :  { %25486 = vmatpush3.bf16.msra.mxu0 %v28391_v13  ;;  %23720 = vmatprep.mubr.msk.f32.mxu0 %vm26790_vm1, %v26791_v17 }
0x4180   :  { %25487 = vmatprep.subr.bf16.mxu0 %v26789_v52 }
0x4183   :  { %25489 = vmatpush3.bf16.msra.mxu0 %v28398_v38 }
0x4184   :  { %25490 = vmatprep.subr.bf16.mxu0 %v26789_v52 }
0x4186   :  { %23721 = vmatmul.mubr.f32.vlgmr.msra.gmra.mrb[40].mxu0 %v14037_v58  ;;  %v15158_v58 = vsub.f32 %v28880_v23, %v15157_v7 }
0x4187   :  { %25492 = vmatpush3.bf16.msra.mxu0 %v28345_v61  ;;  %23731 = vmatprep.mubr.msk.f32.mxu0 %vm26790_vm1, %v26791_v17 }
0x4188   :  { %25493 = vmatprep.subr.bf16.mxu0 %v26789_v52  ;;  %v15159_v25 = vand.u32 4294901760, %v15158_v58 }
0x418b   :  { %25495 = vmatpush3.bf16.msra.mxu0 %v28351_v31 }
0x418c   :  { %25496 = vmatprep.subr.bf16.mxu0 %v26789_v52 }
0x418e   :  { %23732 = vmatmul.mubr.f32.vlgmr.msra.gmra.mrb[40].mxu0 %v14038_v34  ;;  %v15149_v34 = vand.u32 4294901760, %v15148_v19 }
0x418f   :  { %25498 = vmatpush3.bf16.msra.mxu0 %v28413_v48  ;;  %23742 = vmatprep.mubr.msk.f32.mxu0 %vm26790_vm1, %v26791_v17 }
0x4190   :  { %25499 = vmatprep.subr.bf16.mxu0 %v26789_v52 }
0x4193   :  { %25501 = vmatpush3.bf16.msra.mxu0 %v28420_v56 }
0x4194   :  { %25502 = vmatprep.subr.bf16.mxu0 %v26789_v52 }
0x4196   :  { %23743 = vmatmul.mubr.f32.vlgmr.msra.gmra.mrb[40].mxu0 %v28772_v44 }
0x4197   :  { %25504 = vmatpush3.bf16.msra.mxu0 %v28345_v61  ;;  %23753 = vmatprep.mubr.msk.f32.mxu0 %vm26790_vm1, %v26791_v17 }
0x4198   :  { %25505 = vmatprep.subr.bf16.mxu0 %v26789_v52 }
0x419b   :  { %25507 = vmatpush3.bf16.msra.mxu0 %v28351_v31 }
0x419c   :  { %25545 = vmatprep.subr.bf16.mxu0 %v28849_v8 }
0x419e   :  { %23754 = vmatmul.mubr.f32.vlgmr.msra.gmra.mrb[40].mxu0 %v28772_v44  ;;  %v15139_v44 = vand.u32 4294901760, %v15138_v18 }
0x419f   :  { %25547 = vmatpush3.bf16.msra.mxu0 %v28849_v8  ;;  %23830 = vmatprep.mubr.f32.mxu0 %v15119_v14 }
0x41a0   :  { %25549 = vmatprep.subr.bf16.mxu0 %v28870_v47 }
0x41a3   :  { %25551 = vmatpush3.bf16.msra.mxu0 %v28870_v47 }
0x41a6   :  { %23831 = vmatmul.mubr.f32.vlgmr.msra.gmra.mrb[42].mxu0 %v15129_v40 }
0x41a7   :  { %23833 = vmatprep.mubr.f32.mxu0 %v15139_v44 }
0x41aa   :  { %23834 = vmatmul.mubr.f32.gmra.mrb[44].mxu0 %v15149_v34 }
0x41ab   :  { %23836 = vmatprep.mubr.f32.mxu0 %v15159_v25 }
0x41ae   :  { %23837 = vmatmul.mubr.f32.gmra.mrb[46].mxu0 %v15169_v62 }
0x4271   :  { %v14448_v21 = vpop.f32.mrb[40].mxu0 }
0x4272   :  { %v14452_v26 = vadd.f32 %v28526_v60, %v14448_v21  ;;  %v23755_v63 = vpop.f32.mrb[41].mxu0 }
0x4274   :  { %26587 = vtanh.f32 %v14452_v26  ;;  %v14453_v57 = vmul.f32 0.5, %v14452_v26 }
0x4276   :  { %26589 = vtanh.f32 %v14453_v57 }
0x427e   :  { %v26588_v29 = vpop.eup %26587 }
0x427f   :  { %14460 = vrot.lane.b32.xlu0 %v26588_v29, %s26792_s3 }
0x4280   :  { %v26590_v5 = vpop.eup %26589 }
0x4281   :  { %v14455_v33 = vmul.f32 0.5, %v26590_v5 }
0x4283   :  { %v14456_v36 = vadd.f32 0.5, %v14455_v33 }
0x4285   :  { %v14458_v16 = vmul.f32 %v14456_v36, %v28765_v10 }
0x42f1   :  { %v14461_v45 = vpop.permute.xlu0 %14460 }
0x42f2   :  { %v14463_v4 = vmul.f32 %v14461_v45, %v14456_v36 }
0x42f4   :  { %14465 = vrot.lane.b32.xlu1 %v14463_v4, %s26793_s30 }
0x4366   :  { %v14466_v27 = vpop.permute.xlu1 %14465 }
0x4367   :  { %v28911_v14 = vadd.f32 %v14466_v27, %v14458_v16  ;;  %v15010_v16 = vld [vmem:[#allocation9 + $0x40] sm:$0xff]  ;;  %v15011_v27 = vld [vmem:[#allocation9 + $0x48] sm:$0xff] }
0x4369   :  { %26591 = vtanh.f32 %v28911_v14 }
0x4373   :  { %v26592_v60 = vpop.eup %26591 }
0x4374   :  { %14471 = vrot.lane.b32.xlu0 %v26592_v60, %s26792_s3  ;;  %v15842_v60 = vand.u32 4294901760, %v15010_v16 }
0x43e6   :  { %v14472_v6 = vpop.permute.xlu0 %14471 }
0x43e7   :  { %v14474_v18 = vmul.f32 %v14472_v6, %v14456_v36  ;;  %v15845_v6 = vand.u32 4294901760, %v15011_v27 }
0x43e9   :  { %14476 = vrot.lane.b32.xlu1 %v14474_v18, %s26793_s30  ;;  %v28968_v18 = vsub.f32 %v28805_v41, %v15047_v20  ;;  %v28985_v41 = vpack.c.bf16 %v15845_v6, %v15842_v60 }
0x43eb   :  { %v15198_v20 = vand.u32 4294901760, %v28968_v18 }
0x445b   :  { %v14477_v40 = vpop.permute.xlu1 %14476 }
0x445c   :  { %14479 = vst.msk [vmem:[#allocation3 + $0x30] sm:$0xff] %vm111_vm0, %v14477_v40  ;;  %v14481_v19 = vsel %vm111_vm0, %v14477_v40, 0  ;;  %v28973_v40 = vsub.f32 %v28810_v28, %v15050_v32  ;;  %v28989_v32 = vsub.f32 %v15010_v16, %v15842_v60 }
0x445d   :  { %v14552_v44 = vand.u32 4294901760, %v14481_v19 }
0x445e   :  { %v15205_v28 = vand.u32 4294901760, %v28973_v40 }
0x445f   :  { %v14553_v58 = vsub.f32 %v14481_v19, %v14552_v44  ;;  %v15013_v19 = vld [vmem:[#allocation9 + $0x58] sm:$0xff] }
0x4461   :  { %v14554_v10 = vand.u32 4294901760, %v14553_v58 }
0x4463   :  { %v14555_v34 = vsub.f32 %v14553_v58, %v14554_v10  ;;  %v15002_v39 = vld [vmem:[#allocation3 + $0x30] sm:$0xff] }
0x4464   :  { %v15041_v25 = vsel %vm111_vm0, %v15002_v39, 0 }
0x4465   :  { %v14556_v62 = vand.u32 4294901760, %v14555_v34  ;;  %v28919_v21 = vand.u32 4294901760, %v15041_v25  ;;  %v28983_v34 = vsub.f32 %v28831_v53, %v15056_v42  ;;  %v15199_v53 = vsub.f32 %v28968_v18, %v15198_v20 }
0x4466   :  { %v15206_v42 = vsub.f32 %v28973_v40, %v15205_v28 }
0x4467   :  { %23765 = vmatmul.mubr.f32.vlgmr.msra.gmra.mrb[36].mxu1 %v14556_v62  ;;  %v28922_v26 = vsub.f32 %v15041_v25, %v28919_v21  ;;  %v28993_v25 = vsub.f32 %v15011_v27, %v15845_v6  ;;  %v15923_v62 = vand.u32 4294901760, %v28989_v32 }
0x4468   :  { %25516 = vmatpush3.bf16.msra.mxu1 %v28378_v11  ;;  %23775 = vmatprep.mubr.msk.f32.mxu1 %vm26790_vm1, %v26791_v17 }
0x4469   :  { %25517 = vmatprep.subr.bf16.mxu1 %v26789_v52  ;;  %v15177_v63 = vand.u32 4294901760, %v28922_v26 }
0x446b   :  { %v15178_v29 = vsub.f32 %v28922_v26, %v15177_v63 }
0x446c   :  { %25519 = vmatpush3.bf16.msra.mxu1 %v28384_v2 }
0x446d   :  { %25520 = vmatprep.subr.bf16.mxu1 %v26789_v52  ;;  %v15179_v57 = vand.u32 4294901760, %v15178_v29 }
0x446f   :  { %23776 = vmatmul.mubr.f32.vlgmr.msra.gmra.mrb[36].mxu1 %v14552_v44  ;;  %23839 = vmatprep.mubr.f32.mxu0 %v15179_v57  ;;  %v15930_v57 = vand.u32 4294901760, %v28993_v25 }
0x4470   :  { %25522 = vmatpush3.bf16.msra.mxu1 %v28391_v13  ;;  %23786 = vmatprep.mubr.msk.f32.mxu1 %vm26790_vm1, %v26791_v17 }
0x4471   :  { %25523 = vmatprep.subr.bf16.mxu1 %v26789_v52 }
0x4474   :  { %25525 = vmatpush3.bf16.msra.mxu1 %v28398_v38 }
0x4475   :  { %25526 = vmatprep.subr.bf16.mxu1 %v26789_v52 }
0x4477   :  { %23787 = vmatmul.mubr.f32.vlgmr.msra.gmra.mrb[36].mxu1 %v14553_v58  ;;  %v15851_v58 = vand.u32 4294901760, %v15013_v19 }
0x4478   :  { %25528 = vmatpush3.bf16.msra.mxu1 %v28345_v61  ;;  %23797 = vmatprep.mubr.msk.f32.mxu1 %vm26790_vm1, %v26791_v17 }
0x4479   :  { %25529 = vmatprep.subr.bf16.mxu1 %v26789_v52 }
0x447c   :  { %25531 = vmatpush3.bf16.msra.mxu1 %v28351_v31 }
0x447d   :  { %25532 = vmatprep.subr.bf16.mxu1 %v26789_v52 }
0x447f   :  { %23798 = vmatmul.mubr.f32.vlgmr.msra.gmra.mrb[36].mxu1 %v14554_v10  ;;  %v28978_v10 = vsub.f32 %v28826_v43, %v15053_v12  ;;  %v15219_v12 = vand.u32 4294901760, %v28983_v34 }
0x4480   :  { %25534 = vmatpush3.bf16.msra.mxu1 %v28413_v48  ;;  %23808 = vmatprep.mubr.msk.f32.mxu1 %vm26790_vm1, %v26791_v17 }
0x4481   :  { %25535 = vmatprep.subr.bf16.mxu1 %v26789_v52  ;;  %v15212_v43 = vand.u32 4294901760, %v28978_v10 }
0x4484   :  { %25537 = vmatpush3.bf16.msra.mxu1 %v28420_v56 }
0x4485   :  { %25538 = vmatprep.subr.bf16.mxu1 %v26789_v52 }
0x4487   :  { %23809 = vmatmul.mubr.f32.vlgmr.msra.gmra.mrb[36].mxu1 %v14552_v44 }
0x4488   :  { %25540 = vmatpush3.bf16.msra.mxu1 %v28345_v61  ;;  %23819 = vmatprep.mubr.msk.f32.mxu1 %vm26790_vm1, %v26791_v17 }
0x4489   :  { %25541 = vmatprep.subr.bf16.mxu1 %v26789_v52 }
0x448c   :  { %25543 = vmatpush3.bf16.msra.mxu1 %v28351_v31 }
0x448d   :  { %25592 = vmatprep.subr.bf16.mxu1 %v26789_v52 }
0x448f   :  { %23820 = vmatmul.mubr.f32.vlgmr.msra.gmra.mrb[36].mxu1 %v14552_v44 }
0x4490   :  { %23950 = vmatprep.mubr.msk.f32.mxu1 %vm26790_vm1, %v26791_v17  ;;  %25594 = vmatpush3.bf16.msra.mxu1 %v28985_v41 }
0x4491   :  { %25595 = vmatprep.subr.bf16.mxu1 %v26789_v52 }
0x4562   :  { %v14964_v11 = vpop.f32.mrb[36].mxu1 }
0x4563   :  { %v14968_v2 = vadd.f32 %v28524_v50, %v14964_v11  ;;  %v23821_v13 = vpop.f32.mrb[37].mxu1  ;;  %v15213_v11 = vsub.f32 %v28978_v10, %v15212_v43 }
0x4564   :  { %v15943_v13 = vsub.f32 %v15013_v19, %v15851_v58 }
0x4565   :  { %26593 = vtanh.f32 %v14968_v2  ;;  %v14969_v61 = vmul.f32 0.5, %v14968_v2  ;;  %v15220_v2 = vsub.f32 %v28983_v34, %v15219_v12 }
0x4567   :  { %26595 = vtanh.f32 %v14969_v61  ;;  %v15207_v61 = vand.u32 4294901760, %v15206_v42 }
0x456f   :  { %v26594_v38 = vpop.eup %26593 }
0x4570   :  { %14976 = vrot.lane.b32.xlu0 %v26594_v38, %s26792_s3  ;;  %v15200_v38 = vand.u32 4294901760, %v15199_v53 }
0x4571   :  { %v26596_v48 = vpop.eup %26595 }
0x4572   :  { %v14971_v56 = vmul.f32 0.5, %v26596_v48  ;;  %v15924_v48 = vsub.f32 %v28989_v32, %v15923_v62 }
0x4574   :  { %v14972_v5 = vadd.f32 0.5, %v14971_v56 }
0x4576   :  { %v14974_v36 = vmul.f32 %v14972_v5, %v28911_v14  ;;  %v15012_v14 = vld [vmem:[#allocation9 + $0x50] sm:$0xff] }
0x4577   :  { %v15848_v44 = vand.u32 4294901760, %v15012_v14 }
0x4579   :  { %v28991_v39 = vpack.c.bf16 %v15851_v58, %v15848_v44  ;;  %v15936_v29 = vsub.f32 %v15012_v14, %v15848_v44 }
0x457b   :  { %v15937_v56 = vand.u32 4294901760, %v15936_v29  ;;  %25597 = vmatpush3.bf16.msra.mxu1 %v28991_v39 }
0x457c   :  { %25598 = vmatprep.subr.bf16.mxu1 %v26789_v52 }
0x457d   :  { %v15938_v16 = vsub.f32 %v15936_v29, %v15937_v56 }
0x457e   :  { %23951 = vmatmul.mubr.f32.vlgmr.msra.gmra.mrb[38].mxu1 %v26791_v17 }
0x457f   :  { %v15939_v19 = vand.u32 4294901760, %v15938_v16  ;;  %23961 = vmatprep.mubr.msk.f32.mxu1 %vm26790_vm1, %v26791_v17 }
0x45e2   :  { %v14977_v31 = vpop.permute.xlu0 %14976 }
0x45e3   :  { %v14979_v33 = vmul.f32 %v14977_v31, %v14972_v5  ;;  %v15931_v31 = vsub.f32 %v28993_v25, %v15930_v57 }
0x45e5   :  { %14981 = vrot.lane.b32.xlu1 %v14979_v33, %s26793_s30  ;;  %v15214_v33 = vand.u32 4294901760, %v15213_v11  ;;  %v15932_v27 = vand.u32 4294901760, %v15931_v31  ;;  %v29038_v11 = vpack.c.bf16 %v15943_v13, %v15936_v29 }
0x4657   :  { %v14982_v45 = vpop.permute.xlu1 %14981 }
0x4658   :  { %v14984_v4 = vadd.f32 %v14982_v45, %v14974_v36  ;;  %v15221_v36 = vand.u32 4294901760, %v15220_v2  ;;  %v15944_v45 = vand.u32 4294901760, %v15943_v13  ;;  %v25560_v2 = vpack.c.bf16 %v28973_v40, %v28968_v18 }
0x465a   :  { %26597 = vtanh.f32 %v14984_v4  ;;  %v25552_v4 = vpack.c.bf16 %v15207_v61, %v15200_v38  ;;  %v25556_v60 = vpack.c.bf16 %v15221_v36, %v15214_v33  ;;  %v15945_v6 = vsub.f32 %v15943_v13, %v15944_v45 }
0x465b   :  { %v29060_v29 = vpack.c.bf16 %v15944_v45, %v15937_v56 }
0x465c   :  { %25553 = vmatprep.subr.bf16.mxu0 %v25552_v4  ;;  %v15946_v53 = vand.u32 4294901760, %v15945_v6 }
0x465d   :  { %25555 = vmatpush3.bf16.msra.mxu0 %v25552_v4 }
0x465e   :  { %25557 = vmatprep.subr.bf16.mxu0 %v25556_v60  ;;  %v29024_v42 = vpack.c.bf16 %v15946_v53, %v15939_v19 }
0x4661   :  { %25559 = vmatpush3.bf16.msra.mxu0 %v25556_v60 }
0x4662   :  { %25561 = vmatprep.subr.bf16.mxu0 %v25560_v2 }
0x4664   :  { %v26598_v50 = vpop.eup %26597 }
0x4665   :  { %14987 = vrot.lane.b32.xlu0 %v26598_v50, %s26792_s3  ;;  %v15925_v50 = vand.u32 4294901760, %v15924_v48 }
0x4667   :  { %v29018_v58 = vpack.c.bf16 %v15932_v27, %v15925_v50 }
0x4669   :  { %25600 = vmatpush3.bf16.msra.mxu1 %v29018_v58 }
0x466a   :  { %25601 = vmatprep.subr.bf16.mxu1 %v26789_v52 }
0x466d   :  { %25603 = vmatpush3.bf16.msra.mxu1 %v29024_v42 }
0x466e   :  { %25604 = vmatprep.subr.bf16.mxu1 %v26789_v52 }
0x4670   :  { %23962 = vmatmul.mubr.f32.vlgmr.msra.gmra.mrb[38].mxu1 %v26791_v17 }
0x4671   :  { %23972 = vmatprep.mubr.msk.f32.mxu1 %vm26790_vm1, %v26791_v17 }
0x46d7   :  { %v14988_v14 = vpop.permute.xlu0 %14987 }
0x46d8   :  { %v14990_v44 = vmul.f32 %v14988_v14, %v14972_v5  ;;  %v29031_v5 = vpack.c.bf16 %v28993_v25, %v28989_v32  ;;  %v25564_v32 = vpack.c.bf16 %v28983_v34, %v28978_v10  ;;  %v29053_v25 = vpack.c.bf16 %v15930_v57, %v15923_v62 }
0x46d9   :  { %v25576_v62 = vpack.c.bf16 %v15205_v28, %v15198_v20  ;;  %v25580_v57 = vpack.c.bf16 %v15219_v12, %v15212_v43 }
0x46da   :  { %14992 = vrot.lane.b32.xlu1 %v14990_v44, %s26793_s30  ;;  %25606 = vmatpush3.bf16.msra.mxu1 %v29031_v5 }
0x46db   :  { %25607 = vmatprep.subr.bf16.mxu1 %v26789_v52 }
0x46de   :  { %25609 = vmatpush3.bf16.msra.mxu1 %v29038_v11 }
0x46df   :  { %25610 = vmatprep.subr.bf16.mxu1 %v26789_v52 }
0x46e1   :  { %23973 = vmatmul.mubr.f32.vlgmr.msra.gmra.mrb[38].mxu1 %v26791_v17 }
0x46e2   :  { %25612 = vmatpush3.bf16.msra.mxu1 %v28985_v41  ;;  %23983 = vmatprep.mubr.msk.f32.mxu1 %vm26790_vm1, %v26791_v17 }
0x46e3   :  { %25613 = vmatprep.subr.bf16.mxu1 %v26789_v52 }
0x46e6   :  { %25615 = vmatpush3.bf16.msra.mxu1 %v28991_v39 }
0x46e7   :  { %25616 = vmatprep.subr.bf16.mxu1 %v26789_v52 }
0x46e9   :  { %23984 = vmatmul.mubr.f32.vlgmr.msra.gmra.mrb[38].mxu1 %v26791_v17 }
0x46ea   :  { %25618 = vmatpush3.bf16.msra.mxu1 %v29053_v25  ;;  %23994 = vmatprep.mubr.msk.f32.mxu1 %vm26790_vm1, %v26791_v17 }
0x46eb   :  { %25619 = vmatprep.subr.bf16.mxu1 %v26789_v52 }
0x46ee   :  { %25621 = vmatpush3.bf16.msra.mxu1 %v29060_v29 }
0x46ef   :  { %25622 = vmatprep.subr.bf16.mxu1 %v26789_v52 }
0x46f1   :  { %23995 = vmatmul.mubr.f32.vlgmr.msra.gmra.mrb[38].mxu1 %v26791_v17 }
0x46f2   :  { %25624 = vmatpush3.bf16.msra.mxu1 %v28985_v41  ;;  %24005 = vmatprep.mubr.msk.f32.mxu1 %vm26790_vm1, %v26791_v17 }
0x46f3   :  { %25625 = vmatprep.subr.bf16.mxu1 %v26789_v52 }
0x46f6   :  { %25627 = vmatpush3.bf16.msra.mxu1 %v28991_v39 }
0x46f7   :  { %25628 = vmatprep.subr.bf16.mxu1 %v26789_v52 }
0x46f9   :  { %24006 = vmatmul.mubr.f32.vlgmr.msra.gmra.mrb[38].mxu1 %v26791_v17 }
0x46fa   :  { %25630 = vmatpush3.bf16.msra.mxu1 %v28985_v41  ;;  %24016 = vmatprep.mubr.msk.f32.mxu1 %vm26790_vm1, %v26791_v17 }
0x46fb   :  { %25631 = vmatprep.subr.bf16.mxu1 %v26789_v52 }
0x46fe   :  { %25633 = vmatpush3.bf16.msra.mxu1 %v28991_v39 }
0x46ff   :  { %25634 = vmatprep.subr.bf16.mxu1 %v26789_v52 }
0x474c   :  { %v14993_v13 = vpop.permute.xlu1 %14992 }
0x474d   :  { %14995 = vst.msk [vmem:[#allocation3 + $0x38] sm:$0xff] %vm111_vm0, %v14993_v13 }
0x4754   :  { %v15003_v38 = vld [vmem:[#allocation3 + $0x38] sm:$0xff] }
0x4755   :  { %v15044_v61 = vsel %vm111_vm0, %v15003_v38, 0 }
0x4756   :  { %v29088_v48 = vand.u32 4294901760, %v15044_v61 }
0x4758   :  { %v15186_v18 = vsub.f32 %v15044_v61, %v29088_v48 }
0x475a   :  { %v15187_v40 = vand.u32 4294901760, %v15186_v18 }
0x475c   :  { %v15188_v20 = vsub.f32 %v15186_v18, %v15187_v40 }
0x475e   :  { %v15189_v28 = vand.u32 4294901760, %v15188_v20 }
0x4760   :  { %23840 = vmatmul.mubr.f32.gmra.mrb[48].mxu0 %v15189_v28 }
0x4761   :  { %23850 = vmatprep.mubr.f32.mxu0 %v28795_v1 }
0x4764   :  { %23851 = vmatmul.mubr.f32.vlgmr.msra.gmra.mrb[42].mxu0 %v28817_v51 }
0x4765   :  { %23853 = vmatprep.mubr.f32.mxu0 %v28833_v59  ;;  %25563 = vmatpush3.bf16.msra.mxu0 %v25560_v2 }
0x4766   :  { %25565 = vmatprep.subr.bf16.mxu0 %v25564_v32 }
0x4768   :  { %23854 = vmatmul.mubr.f32.gmra.mrb[44].mxu0 %v28853_v15 }
0x4769   :  { %23856 = vmatprep.mubr.f32.mxu0 %v28861_v54  ;;  %25567 = vmatpush3.bf16.msra.mxu0 %v25564_v32 }
0x476a   :  { %25569 = vmatprep.subr.bf16.mxu0 %v28849_v8 }
0x476c   :  { %23857 = vmatmul.mubr.f32.gmra.mrb[46].mxu0 %v28876_v55 }
0x476d   :  { %23859 = vmatprep.mubr.f32.mxu0 %v28919_v21 }
0x4770   :  { %23860 = vmatmul.mubr.f32.gmra.mrb[48].mxu0 %v29088_v48 }
0x4771   :  { %23870 = vmatprep.mubr.f32.mxu0 %v28813_v46 }
0x4774   :  { %23871 = vmatmul.mubr.f32.vlgmr.msra.gmra.mrb[42].mxu0 %v28842_v24 }
0x4775   :  { %23873 = vmatprep.mubr.f32.mxu0 %v28859_v37  ;;  %25571 = vmatpush3.bf16.msra.mxu0 %v28849_v8 }
0x4776   :  { %25573 = vmatprep.subr.bf16.mxu0 %v28870_v47 }
0x4778   :  { %23874 = vmatmul.mubr.f32.gmra.mrb[44].mxu0 %v28874_v35 }
0x4779   :  { %23876 = vmatprep.mubr.f32.mxu0 %v28880_v23  ;;  %25575 = vmatpush3.bf16.msra.mxu0 %v28870_v47 }
0x477a   :  { %25577 = vmatprep.subr.bf16.mxu0 %v25576_v62 }
0x477c   :  { %23877 = vmatmul.mubr.f32.gmra.mrb[46].mxu0 %v28890_v30 }
0x477d   :  { %23879 = vmatprep.mubr.f32.mxu0 %v28922_v26 }
0x4780   :  { %23880 = vmatmul.mubr.f32.gmra.mrb[48].mxu0 %v15186_v18 }
0x4781   :  { %23890 = vmatprep.mubr.f32.mxu0 %v15117_v3 }
0x4784   :  { %23891 = vmatmul.mubr.f32.vlgmr.msra.gmra.mrb[42].mxu0 %v15127_v49 }
0x4785   :  { %23893 = vmatprep.mubr.f32.mxu0 %v15137_v22  ;;  %25579 = vmatpush3.bf16.msra.mxu0 %v25576_v62 }
0x4786   :  { %25581 = vmatprep.subr.bf16.mxu0 %v25580_v57 }
0x4788   :  { %23894 = vmatmul.mubr.f32.gmra.mrb[44].mxu0 %v15147_v0 }
0x4789   :  { %23896 = vmatprep.mubr.f32.mxu0 %v15157_v7  ;;  %25583 = vmatpush3.bf16.msra.mxu0 %v25580_v57 }
0x478a   :  { %25585 = vmatprep.subr.bf16.mxu0 %v28849_v8 }
0x478c   :  { %23897 = vmatmul.mubr.f32.gmra.mrb[46].mxu0 %v15167_v9 }
0x478d   :  { %23899 = vmatprep.mubr.f32.mxu0 %v15177_v63 }
0x4790   :  { %23900 = vmatmul.mubr.f32.gmra.mrb[48].mxu0 %v15187_v40 }
0x4791   :  { %23910 = vmatprep.mubr.f32.mxu0 %v28795_v1 }
0x4794   :  { %23911 = vmatmul.mubr.f32.vlgmr.msra.gmra.mrb[42].mxu0 %v28817_v51 }
0x4795   :  { %23913 = vmatprep.mubr.f32.mxu0 %v28833_v59  ;;  %25587 = vmatpush3.bf16.msra.mxu0 %v28849_v8 }
0x4796   :  { %25589 = vmatprep.subr.bf16.mxu0 %v28870_v47 }
0x4798   :  { %23914 = vmatmul.mubr.f32.gmra.mrb[44].mxu0 %v28853_v15 }
0x4799   :  { %23916 = vmatprep.mubr.f32.mxu0 %v28861_v54  ;;  %25591 = vmatpush3.bf16.msra.mxu0 %v28870_v47 }
0x479a   :  { %25664 = vmatprep.subr.bf16.mxu0 %v26789_v52 }
0x479c   :  { %23917 = vmatmul.mubr.f32.gmra.mrb[46].mxu0 %v28876_v55 }
0x479d   :  { %23919 = vmatprep.mubr.f32.mxu0 %v28919_v21 }
0x47a0   :  { %23920 = vmatmul.mubr.f32.gmra.mrb[48].mxu0 %v29088_v48 }
0x47a1   :  { %23930 = vmatprep.mubr.f32.mxu0 %v28795_v1 }
0x47a4   :  { %23931 = vmatmul.mubr.f32.vlgmr.msra.gmra.mrb[42].mxu0 %v28817_v51  ;;  %v20598_v51 = vld [vmem:[%s29586_s6 + $0x2] ss:$0 sm:$0xff] }
0x47a5   :  { %23933 = vmatprep.mubr.f32.mxu0 %v28833_v59  ;;  %25666 = vmatpush3.bf16.msra.mxu0 %v28985_v41 }
0x47a6   :  { %25667 = vmatprep.subr.bf16.mxu0 %v26789_v52 }
0x47a8   :  { %23934 = vmatmul.mubr.f32.gmra.mrb[44].mxu0 %v28853_v15 }
0x47a9   :  { %23936 = vmatprep.mubr.f32.mxu0 %v28861_v54  ;;  %25669 = vmatpush3.bf16.msra.mxu0 %v28991_v39 }
0x47aa   :  { %25670 = vmatprep.subr.bf16.mxu0 %v26789_v52 }
0x47ac   :  { %23937 = vmatmul.mubr.f32.gmra.mrb[46].mxu0 %v28876_v55 }
0x47ad   :  { %23939 = vmatprep.mubr.f32.mxu0 %v28919_v21 }
0x47b0   :  { %23940 = vmatmul.mubr.f32.gmra.mrb[48].mxu0 %v29088_v48 }
0x47b1   :  { %24082 = vmatprep.mubr.msk.f32.mxu0 %vm26790_vm1, %v26791_v17 }
0x47cc   :  { %v16322_v1 = vpop.f32.mrb[38].mxu1 }
0x47cd   :  { %v24007_v46 = vpop.f32.mrb[39].mxu1 }
0x4877   :  { %v23932_v3 = vpop.f32.mrb[42].mxu0 }
0x4878   :  { %v29154_v59 = vadd.f32 %v23932_v3, %v20598_v51  ;;  %v15786_v24 = vpop.f32.mrb[43].mxu0 }
0x4879   :  { %v25953_v8 = vadd.f32 %v20598_v51, %v15786_v24 }
0x487b   :  { %v16326_v15 = vadd.f32 %v25953_v8, %v16322_v1  ;;  %v23935_v37 = vpop.f32.mrb[44].mxu0 }
0x487c   :  { %v29156_v54 = vadd.f32 %v23935_v37, %v20598_v51  ;;  %v15798_v47 = vpop.f32.mrb[45].mxu0 }
0x487d   :  { %26599 = vtanh.f32 %v16326_v15  ;;  %v29158_v49 = vadd.f32 %v20598_v51, %v15798_v47  ;;  %v16327_v26 = vmul.f32 0.5, %v16326_v15 }
0x487f   :  { %v23938_v35 = vpop.f32.mrb[46].mxu0  ;;  %26601 = vtanh.f32 %v16327_v26 }
0x4880   :  { %v29160_v55 = vadd.f32 %v23938_v35, %v20598_v51  ;;  %v15810_v22 = vpop.f32.mrb[47].mxu0 }
0x4881   :  { %v29162_v23 = vadd.f32 %v20598_v51, %v15810_v22 }
0x4883   :  { %v23941_v0 = vpop.f32.mrb[48].mxu0 }
0x4884   :  { %v29164_v30 = vadd.f32 %v23941_v0, %v20598_v51  ;;  %v15822_v7 = vpop.f32.mrb[49].mxu0 }
0x4885   :  { %v29166_v9 = vadd.f32 %v20598_v51, %v15822_v7 }
0x4887   :  { %v26600_v21 = vpop.eup %26599 }
0x4888   :  { %16334 = vrot.lane.b32.xlu0 %v26600_v21, %s26792_s3 }
0x4889   :  { %v26602_v63 = vpop.eup %26601 }
0x488a   :  { %v16329_v10 = vmul.f32 0.5, %v26602_v63 }
0x488c   :  { %v16330_v34 = vadd.f32 0.5, %v16329_v10 }
0x488e   :  { %v16332_v56 = vmul.f32 0.0, %v16330_v34 }
0x48fa   :  { %v16335_v43 = vpop.permute.xlu0 %16334 }
0x48fb   :  { %v16337_v12 = vmul.f32 %v16335_v43, %v16330_v34 }
0x48fd   :  { %16339 = vrot.lane.b32.xlu1 %v16337_v12, %s26793_s30 }
0x496f   :  { %v16340_v31 = vpop.permute.xlu1 %16339 }
0x4970   :  { %v29170_v33 = vadd.f32 %v16340_v31, %v16332_v56 }
0x4972   :  { %26603 = vtanh.f32 %v29170_v33 }
0x497c   :  { %v26604_v36 = vpop.eup %26603 }
0x497d   :  { %16345 = vrot.lane.b32.xlu0 %v26604_v36, %s26792_s3 }
0x49ef   :  { %v16346_v45 = vpop.permute.xlu0 %16345 }
0x49f0   :  { %v29174_v4 = vmul.f32 %v16346_v45, %v16330_v34 }
0x49f2   :  { %16351 = vrot.lane.b32.xlu1 %v29174_v4, %s26793_s30 }
0x4a64   :  { %v16352_v50 = vpop.permute.xlu1 %16351 }
0x4a65   :  { %v16353_v16 = vsel %vm111_vm0, %v16352_v50, 0 }
0x4a66   :  { %v16424_v27 = vand.u32 4294901760, %v16353_v16 }
0x4a68   :  { %v16425_v60 = vsub.f32 %v16353_v16, %v16424_v27 }
0x4a6a   :  { %v16426_v6 = vand.u32 4294901760, %v16425_v60 }
0x4a6c   :  { %v16427_v14 = vsub.f32 %v16425_v60, %v16426_v6 }
0x4a6e   :  { %v16428_v19 = vand.u32 4294901760, %v16427_v14 }
0x4a70   :  { %24017 = vmatmul.mubr.f32.vlgmr.msra.gmra.mrb[40].mxu1 %v16428_v19 }
0x4a71   :  { %25636 = vmatpush3.bf16.msra.mxu1 %v29018_v58  ;;  %24027 = vmatprep.mubr.msk.f32.mxu1 %vm26790_vm1, %v26791_v17 }
0x4a72   :  { %25637 = vmatprep.subr.bf16.mxu1 %v26789_v52 }
0x4a75   :  { %25639 = vmatpush3.bf16.msra.mxu1 %v29024_v42 }
0x4a76   :  { %25640 = vmatprep.subr.bf16.mxu1 %v26789_v52 }
0x4a78   :  { %24028 = vmatmul.mubr.f32.vlgmr.msra.gmra.mrb[40].mxu1 %v16424_v27 }
0x4a79   :  { %25642 = vmatpush3.bf16.msra.mxu1 %v29031_v5  ;;  %24038 = vmatprep.mubr.msk.f32.mxu1 %vm26790_vm1, %v26791_v17 }
0x4a7a   :  { %25643 = vmatprep.subr.bf16.mxu1 %v26789_v52 }
0x4a7d   :  { %25645 = vmatpush3.bf16.msra.mxu1 %v29038_v11 }
0x4a7e   :  { %25646 = vmatprep.subr.bf16.mxu1 %v26789_v52 }
0x4a80   :  { %24039 = vmatmul.mubr.f32.vlgmr.msra.gmra.mrb[40].mxu1 %v16425_v60 }
0x4a81   :  { %25648 = vmatpush3.bf16.msra.mxu1 %v28985_v41  ;;  %24049 = vmatprep.mubr.msk.f32.mxu1 %vm26790_vm1, %v26791_v17 }
0x4a82   :  { %25649 = vmatprep.subr.bf16.mxu1 %v26789_v52 }
0x4a85   :  { %25651 = vmatpush3.bf16.msra.mxu1 %v28991_v39 }
0x4a86   :  { %25652 = vmatprep.subr.bf16.mxu1 %v26789_v52 }
0x4a88   :  { %24050 = vmatmul.mubr.f32.vlgmr.msra.gmra.mrb[40].mxu1 %v16426_v6 }
0x4a89   :  { %25654 = vmatpush3.bf16.msra.mxu1 %v29053_v25  ;;  %24060 = vmatprep.mubr.msk.f32.mxu1 %vm26790_vm1, %v26791_v17 }
0x4a8a   :  { %25655 = vmatprep.subr.bf16.mxu1 %v26789_v52 }
0x4a8d   :  { %25657 = vmatpush3.bf16.msra.mxu1 %v29060_v29 }
0x4a8e   :  { %25658 = vmatprep.subr.bf16.mxu1 %v26789_v52 }
0x4a90   :  { %24061 = vmatmul.mubr.f32.vlgmr.msra.gmra.mrb[40].mxu1 %v16424_v27 }
0x4a91   :  { %25660 = vmatpush3.bf16.msra.mxu1 %v28985_v41  ;;  %24071 = vmatprep.mubr.msk.f32.mxu1 %vm26790_vm1, %v26791_v17 }
0x4a92   :  { %25661 = vmatprep.subr.bf16.mxu1 %v26789_v52 }
0x4a95   :  { %25663 = vmatpush3.bf16.msra.mxu1 %v28991_v39 }
0x4a96   :  { %25700 = vmatprep.subr.bf16.mxu1 %v26789_v52 }
0x4a98   :  { %24072 = vmatmul.mubr.f32.vlgmr.msra.gmra.mrb[40].mxu1 %v16424_v27 }
0x4a99   :  { %25702 = vmatpush3.bf16.msra.mxu1 %v28985_v41  ;;  %24148 = vmatprep.mubr.msk.f32.mxu1 %vm26790_vm1, %v26791_v17 }
0x4a9a   :  { %25703 = vmatprep.subr.bf16.mxu1 %v26789_v52 }
0x4a9d   :  { %25705 = vmatpush3.bf16.msra.mxu1 %v28991_v39 }
0x4a9e   :  { %25706 = vmatprep.subr.bf16.mxu1 %v26789_v52 }
0x4b6b   :  { %v16836_v44 = vpop.f32.mrb[40].mxu1 }
0x4b6c   :  { %v16840_v53 = vadd.f32 %v29154_v59, %v16836_v44  ;;  %v24073_v2 = vpop.f32.mrb[41].mxu1 }
0x4b6e   :  { %26605 = vtanh.f32 %v16840_v53  ;;  %v16841_v62 = vmul.f32 0.5, %v16840_v53 }
0x4b70   :  { %26607 = vtanh.f32 %v16841_v62 }
0x4b78   :  { %v26606_v32 = vpop.eup %26605 }
0x4b79   :  { %16848 = vrot.lane.b32.xlu0 %v26606_v32, %s26792_s3 }
0x4b7a   :  { %v26608_v57 = vpop.eup %26607 }
0x4b7b   :  { %v16843_v13 = vmul.f32 0.5, %v26608_v57 }
0x4b7d   :  { %v16844_v38 = vadd.f32 0.5, %v16843_v13 }
0x4b7f   :  { %v16846_v18 = vmul.f32 %v16844_v38, %v29170_v33 }
0x4beb   :  { %v16849_v61 = vpop.permute.xlu0 %16848 }
0x4bec   :  { %v16851_v48 = vmul.f32 %v16849_v61, %v16844_v38 }
0x4bee   :  { %16853 = vrot.lane.b32.xlu1 %v16851_v48, %s26793_s30 }
0x4c60   :  { %v16854_v40 = vpop.permute.xlu1 %16853 }
0x4c61   :  { %v29219_v20 = vadd.f32 %v16854_v40, %v16846_v18 }
0x4c63   :  { %26609 = vtanh.f32 %v29219_v20 }
0x4c6d   :  { %v26610_v28 = vpop.eup %26609 }
0x4c6e   :  { %16859 = vrot.lane.b32.xlu0 %v26610_v28, %s26792_s3 }
0x4ce0   :  { %v16860_v1 = vpop.permute.xlu0 %16859 }
0x4ce1   :  { %v29223_v46 = vmul.f32 %v16860_v1, %v16844_v38 }
0x4ce3   :  { %16865 = vrot.lane.b32.xlu1 %v29223_v46, %s26793_s30 }
0x4d55   :  { %v16866_v51 = vpop.permute.xlu1 %16865 }
0x4d56   :  { %v16867_v3 = vsel %vm111_vm0, %v16866_v51, 0 }
0x4d57   :  { %v16938_v59 = vand.u32 4294901760, %v16867_v3 }
0x4d59   :  { %v16939_v24 = vsub.f32 %v16867_v3, %v16938_v59 }
0x4d5b   :  { %v16940_v8 = vand.u32 4294901760, %v16939_v24 }
0x4d5d   :  { %v16941_v15 = vsub.f32 %v16939_v24, %v16940_v8 }
0x4d5f   :  { %v16942_v37 = vand.u32 4294901760, %v16941_v15 }
0x4d61   :  { %24083 = vmatmul.mubr.f32.vlgmr.msra.gmra.mrb[50].mxu0 %v16942_v37 }
0x4d62   :  { %25672 = vmatpush3.bf16.msra.mxu0 %v29018_v58  ;;  %24093 = vmatprep.mubr.msk.f32.mxu0 %vm26790_vm1, %v26791_v17 }
0x4d63   :  { %25673 = vmatprep.subr.bf16.mxu0 %v26789_v52 }
0x4d66   :  { %25675 = vmatpush3.bf16.msra.mxu0 %v29024_v42 }
0x4d67   :  { %25676 = vmatprep.subr.bf16.mxu0 %v26789_v52 }
0x4d69   :  { %24094 = vmatmul.mubr.f32.vlgmr.msra.gmra.mrb[50].mxu0 %v16938_v59 }
0x4d6a   :  { %25678 = vmatpush3.bf16.msra.mxu0 %v29031_v5  ;;  %24104 = vmatprep.mubr.msk.f32.mxu0 %vm26790_vm1, %v26791_v17 }
0x4d6b   :  { %25679 = vmatprep.subr.bf16.mxu0 %v26789_v52 }
0x4d6e   :  { %25681 = vmatpush3.bf16.msra.mxu0 %v29038_v11 }
0x4d6f   :  { %25682 = vmatprep.subr.bf16.mxu0 %v26789_v52 }
0x4d71   :  { %24105 = vmatmul.mubr.f32.vlgmr.msra.gmra.mrb[50].mxu0 %v16939_v24 }
0x4d72   :  { %25684 = vmatpush3.bf16.msra.mxu0 %v28985_v41  ;;  %24115 = vmatprep.mubr.msk.f32.mxu0 %vm26790_vm1, %v26791_v17 }
0x4d73   :  { %25685 = vmatprep.subr.bf16.mxu0 %v26789_v52 }
0x4d76   :  { %25687 = vmatpush3.bf16.msra.mxu0 %v28991_v39 }
0x4d77   :  { %25688 = vmatprep.subr.bf16.mxu0 %v26789_v52 }
0x4d79   :  { %24116 = vmatmul.mubr.f32.vlgmr.msra.gmra.mrb[50].mxu0 %v16940_v8 }
0x4d7a   :  { %25690 = vmatpush3.bf16.msra.mxu0 %v29053_v25  ;;  %24126 = vmatprep.mubr.msk.f32.mxu0 %vm26790_vm1, %v26791_v17 }
0x4d7b   :  { %25691 = vmatprep.subr.bf16.mxu0 %v26789_v52 }
0x4d7e   :  { %25693 = vmatpush3.bf16.msra.mxu0 %v29060_v29 }
0x4d7f   :  { %25694 = vmatprep.subr.bf16.mxu0 %v26789_v52 }
0x4d81   :  { %24127 = vmatmul.mubr.f32.vlgmr.msra.gmra.mrb[50].mxu0 %v16938_v59 }
0x4d82   :  { %25696 = vmatpush3.bf16.msra.mxu0 %v28985_v41  ;;  %24137 = vmatprep.mubr.msk.f32.mxu0 %vm26790_vm1, %v26791_v17 }
0x4d83   :  { %25697 = vmatprep.subr.bf16.mxu0 %v26789_v52 }
0x4d86   :  { %25699 = vmatpush3.bf16.msra.mxu0 %v28991_v39 }
0x4d87   :  { %25736 = vmatprep.subr.bf16.mxu0 %v26789_v52 }
0x4d89   :  { %24138 = vmatmul.mubr.f32.vlgmr.msra.gmra.mrb[50].mxu0 %v16938_v59 }
0x4d8a   :  { %25738 = vmatpush3.bf16.msra.mxu0 %v28985_v41  ;;  %24214 = vmatprep.mubr.msk.f32.mxu0 %vm26790_vm1, %v26791_v17 }
0x4d8b   :  { %25739 = vmatprep.subr.bf16.mxu0 %v26789_v52 }
0x4d8e   :  { %25741 = vmatpush3.bf16.msra.mxu0 %v28991_v39 }
0x4d8f   :  { %25742 = vmatprep.subr.bf16.mxu0 %v26789_v52 }
0x4e5c   :  { %v17350_v47 = vpop.f32.mrb[50].mxu0 }
0x4e5d   :  { %v17354_v35 = vadd.f32 %v29158_v49, %v17350_v47  ;;  %v24139_v22 = vpop.f32.mrb[51].mxu0 }
0x4e5f   :  { %26611 = vtanh.f32 %v17354_v35  ;;  %v17355_v7 = vmul.f32 0.5, %v17354_v35 }
0x4e61   :  { %26613 = vtanh.f32 %v17355_v7 }
0x4e69   :  { %v26612_v0 = vpop.eup %26611 }
0x4e6a   :  { %17362 = vrot.lane.b32.xlu0 %v26612_v0, %s26792_s3 }
0x4e6b   :  { %v26614_v21 = vpop.eup %26613 }
0x4e6c   :  { %v17357_v26 = vmul.f32 0.5, %v26614_v21 }
0x4e6e   :  { %v17358_v63 = vadd.f32 0.5, %v17357_v26 }
0x4e70   :  { %v17360_v43 = vmul.f32 %v17358_v63, %v29219_v20 }
0x4edc   :  { %v17363_v10 = vpop.permute.xlu0 %17362 }
0x4edd   :  { %v17365_v34 = vmul.f32 %v17363_v10, %v17358_v63 }
0x4edf   :  { %17367 = vrot.lane.b32.xlu1 %v17365_v34, %s26793_s30 }
0x4f51   :  { %v17368_v12 = vpop.permute.xlu1 %17367 }
0x4f52   :  { %v29268_v56 = vadd.f32 %v17368_v12, %v17360_v43 }
0x4f54   :  { %26615 = vtanh.f32 %v29268_v56 }
0x4f5e   :  { %v26616_v49 = vpop.eup %26615 }
0x4f5f   :  { %17373 = vrot.lane.b32.xlu0 %v26616_v49, %s26792_s3 }
0x4fd1   :  { %v17374_v31 = vpop.permute.xlu0 %17373 }
0x4fd2   :  { %v29272_v33 = vmul.f32 %v17374_v31, %v17358_v63 }
0x4fd4   :  { %17379 = vrot.lane.b32.xlu1 %v29272_v33, %s26793_s30 }
0x5046   :  { %v17380_v36 = vpop.permute.xlu1 %17379 }
0x5047   :  { %v17381_v45 = vsel %vm111_vm0, %v17380_v36, 0 }
0x5048   :  { %v17452_v50 = vand.u32 4294901760, %v17381_v45 }
0x504a   :  { %v17453_v16 = vsub.f32 %v17381_v45, %v17452_v50 }
0x504c   :  { %v17454_v27 = vand.u32 4294901760, %v17453_v16 }
0x504e   :  { %v17455_v60 = vsub.f32 %v17453_v16, %v17454_v27 }
0x5050   :  { %v17456_v6 = vand.u32 4294901760, %v17455_v60 }
0x5052   :  { %24149 = vmatmul.mubr.f32.vlgmr.msra.gmra.mrb[42].mxu1 %v17456_v6 }
0x5053   :  { %25708 = vmatpush3.bf16.msra.mxu1 %v29018_v58  ;;  %24159 = vmatprep.mubr.msk.f32.mxu1 %vm26790_vm1, %v26791_v17 }
0x5054   :  { %25709 = vmatprep.subr.bf16.mxu1 %v26789_v52 }
0x5057   :  { %25711 = vmatpush3.bf16.msra.mxu1 %v29024_v42 }
0x5058   :  { %25712 = vmatprep.subr.bf16.mxu1 %v26789_v52 }
0x505a   :  { %24160 = vmatmul.mubr.f32.vlgmr.msra.gmra.mrb[42].mxu1 %v17452_v50 }
0x505b   :  { %25714 = vmatpush3.bf16.msra.mxu1 %v29031_v5  ;;  %24170 = vmatprep.mubr.msk.f32.mxu1 %vm26790_vm1, %v26791_v17 }
0x505c   :  { %25715 = vmatprep.subr.bf16.mxu1 %v26789_v52 }
0x505f   :  { %25717 = vmatpush3.bf16.msra.mxu1 %v29038_v11 }
0x5060   :  { %25718 = vmatprep.subr.bf16.mxu1 %v26789_v52 }
0x5062   :  { %24171 = vmatmul.mubr.f32.vlgmr.msra.gmra.mrb[42].mxu1 %v17453_v16 }
0x5063   :  { %25720 = vmatpush3.bf16.msra.mxu1 %v28985_v41  ;;  %24181 = vmatprep.mubr.msk.f32.mxu1 %vm26790_vm1, %v26791_v17 }
0x5064   :  { %25721 = vmatprep.subr.bf16.mxu1 %v26789_v52 }
0x5067   :  { %25723 = vmatpush3.bf16.msra.mxu1 %v28991_v39 }
0x5068   :  { %25724 = vmatprep.subr.bf16.mxu1 %v26789_v52 }
0x506a   :  { %24182 = vmatmul.mubr.f32.vlgmr.msra.gmra.mrb[42].mxu1 %v17454_v27 }
0x506b   :  { %25726 = vmatpush3.bf16.msra.mxu1 %v29053_v25  ;;  %24192 = vmatprep.mubr.msk.f32.mxu1 %vm26790_vm1, %v26791_v17 }
0x506c   :  { %25727 = vmatprep.subr.bf16.mxu1 %v26789_v52 }
0x506f   :  { %25729 = vmatpush3.bf16.msra.mxu1 %v29060_v29 }
0x5070   :  { %25730 = vmatprep.subr.bf16.mxu1 %v26789_v52 }
0x5072   :  { %24193 = vmatmul.mubr.f32.vlgmr.msra.gmra.mrb[42].mxu1 %v17452_v50 }
0x5073   :  { %25732 = vmatpush3.bf16.msra.mxu1 %v28985_v41  ;;  %24203 = vmatprep.mubr.msk.f32.mxu1 %vm26790_vm1, %v26791_v17 }
0x5074   :  { %25733 = vmatprep.subr.bf16.mxu1 %v26789_v52 }
0x5077   :  { %25735 = vmatpush3.bf16.msra.mxu1 %v28991_v39 }
0x5078   :  { %25772 = vmatprep.subr.bf16.mxu1 %v26789_v52 }
0x507a   :  { %24204 = vmatmul.mubr.f32.vlgmr.msra.gmra.mrb[42].mxu1 %v17452_v50 }
0x507b   :  { %25774 = vmatpush3.bf16.msra.mxu1 %v28985_v41  ;;  %24280 = vmatprep.mubr.msk.f32.mxu1 %vm26790_vm1, %v26791_v17 }
0x507c   :  { %25775 = vmatprep.subr.bf16.mxu1 %v26789_v52 }
0x507f   :  { %25777 = vmatpush3.bf16.msra.mxu1 %v28991_v39 }
0x5080   :  { %25778 = vmatprep.subr.bf16.mxu1 %v26789_v52 }
0x514d   :  { %v17864_v14 = vpop.f32.mrb[42].mxu1 }
0x514e   :  { %v17868_v19 = vadd.f32 %v29156_v54, %v17864_v14  ;;  %v24205_v44 = vpop.f32.mrb[43].mxu1 }
0x5150   :  { %26617 = vtanh.f32 %v17868_v19  ;;  %v17869_v2 = vmul.f32 0.5, %v17868_v19 }
0x5152   :  { %26619 = vtanh.f32 %v17869_v2 }
0x515a   :  { %v26618_v53 = vpop.eup %26617 }
0x515b   :  { %17876 = vrot.lane.b32.xlu0 %v26618_v53, %s26792_s3 }
0x515c   :  { %v26620_v32 = vpop.eup %26619 }
0x515d   :  { %v17871_v62 = vmul.f32 0.5, %v26620_v32 }
0x515f   :  { %v17872_v57 = vadd.f32 0.5, %v17871_v62 }
0x5161   :  { %v17874_v61 = vmul.f32 %v17872_v57, %v29268_v56 }
0x51cd   :  { %v17877_v13 = vpop.permute.xlu0 %17876 }
0x51ce   :  { %v17879_v38 = vmul.f32 %v17877_v13, %v17872_v57 }
0x51d0   :  { %17881 = vrot.lane.b32.xlu1 %v17879_v38, %s26793_s30 }
0x5242   :  { %v17882_v48 = vpop.permute.xlu1 %17881 }
0x5243   :  { %v29317_v18 = vadd.f32 %v17882_v48, %v17874_v61 }
0x5245   :  { %26621 = vtanh.f32 %v29317_v18 }
0x524f   :  { %v26622_v54 = vpop.eup %26621 }
0x5250   :  { %17887 = vrot.lane.b32.xlu0 %v26622_v54, %s26792_s3 }
0x52c2   :  { %v17888_v40 = vpop.permute.xlu0 %17887 }
0x52c3   :  { %v29321_v20 = vmul.f32 %v17888_v40, %v17872_v57 }
0x52c5   :  { %17893 = vrot.lane.b32.xlu1 %v29321_v20, %s26793_s30 }
0x5337   :  { %v17894_v28 = vpop.permute.xlu1 %17893 }
0x5338   :  { %v17895_v1 = vsel %vm111_vm0, %v17894_v28, 0 }
0x5339   :  { %v17966_v51 = vand.u32 4294901760, %v17895_v1 }
0x533b   :  { %v17967_v3 = vsub.f32 %v17895_v1, %v17966_v51 }
0x533d   :  { %v17968_v59 = vand.u32 4294901760, %v17967_v3 }
0x533f   :  { %v17969_v24 = vsub.f32 %v17967_v3, %v17968_v59 }
0x5341   :  { %v17970_v8 = vand.u32 4294901760, %v17969_v24 }
0x5343   :  { %24215 = vmatmul.mubr.f32.vlgmr.msra.gmra.mrb[52].mxu0 %v17970_v8 }
0x5344   :  { %25744 = vmatpush3.bf16.msra.mxu0 %v29018_v58  ;;  %24225 = vmatprep.mubr.msk.f32.mxu0 %vm26790_vm1, %v26791_v17 }
0x5345   :  { %25745 = vmatprep.subr.bf16.mxu0 %v26789_v52 }
0x5348   :  { %25747 = vmatpush3.bf16.msra.mxu0 %v29024_v42 }
0x5349   :  { %25748 = vmatprep.subr.bf16.mxu0 %v26789_v52 }
0x534b   :  { %24226 = vmatmul.mubr.f32.vlgmr.msra.gmra.mrb[52].mxu0 %v17966_v51 }
0x534c   :  { %25750 = vmatpush3.bf16.msra.mxu0 %v29031_v5  ;;  %24236 = vmatprep.mubr.msk.f32.mxu0 %vm26790_vm1, %v26791_v17 }
0x534d   :  { %25751 = vmatprep.subr.bf16.mxu0 %v26789_v52 }
0x5350   :  { %25753 = vmatpush3.bf16.msra.mxu0 %v29038_v11 }
0x5351   :  { %25754 = vmatprep.subr.bf16.mxu0 %v26789_v52 }
0x5353   :  { %24237 = vmatmul.mubr.f32.vlgmr.msra.gmra.mrb[52].mxu0 %v17967_v3 }
0x5354   :  { %25756 = vmatpush3.bf16.msra.mxu0 %v28985_v41  ;;  %24247 = vmatprep.mubr.msk.f32.mxu0 %vm26790_vm1, %v26791_v17 }
0x5355   :  { %25757 = vmatprep.subr.bf16.mxu0 %v26789_v52 }
0x5358   :  { %25759 = vmatpush3.bf16.msra.mxu0 %v28991_v39 }
0x5359   :  { %25760 = vmatprep.subr.bf16.mxu0 %v26789_v52 }
0x535b   :  { %24248 = vmatmul.mubr.f32.vlgmr.msra.gmra.mrb[52].mxu0 %v17968_v59 }
0x535c   :  { %25762 = vmatpush3.bf16.msra.mxu0 %v29053_v25  ;;  %24258 = vmatprep.mubr.msk.f32.mxu0 %vm26790_vm1, %v26791_v17 }
0x535d   :  { %25763 = vmatprep.subr.bf16.mxu0 %v26789_v52 }
0x5360   :  { %25765 = vmatpush3.bf16.msra.mxu0 %v29060_v29 }
0x5361   :  { %25766 = vmatprep.subr.bf16.mxu0 %v26789_v52 }
0x5363   :  { %24259 = vmatmul.mubr.f32.vlgmr.msra.gmra.mrb[52].mxu0 %v17966_v51 }
0x5364   :  { %25768 = vmatpush3.bf16.msra.mxu0 %v28985_v41  ;;  %24269 = vmatprep.mubr.msk.f32.mxu0 %vm26790_vm1, %v26791_v17 }
0x5365   :  { %25769 = vmatprep.subr.bf16.mxu0 %v26789_v52 }
0x5368   :  { %25771 = vmatpush3.bf16.msra.mxu0 %v28991_v39 }
0x5369   :  { %25808 = vmatprep.subr.bf16.mxu0 %v26789_v52 }
0x536b   :  { %24270 = vmatmul.mubr.f32.vlgmr.msra.gmra.mrb[52].mxu0 %v17966_v51 }
0x536c   :  { %25810 = vmatpush3.bf16.msra.mxu0 %v28985_v41  ;;  %24346 = vmatprep.mubr.msk.f32.mxu0 %vm26790_vm1, %v26791_v17 }
0x536d   :  { %25811 = vmatprep.subr.bf16.mxu0 %v26789_v52 }
0x5370   :  { %25813 = vmatpush3.bf16.msra.mxu0 %v28991_v39 }
0x5371   :  { %25814 = vmatprep.subr.bf16.mxu0 %v26789_v52 }
0x543e   :  { %v18378_v15 = vpop.f32.mrb[52].mxu0 }
0x543f   :  { %v18382_v37 = vadd.f32 %v29162_v23, %v18378_v15  ;;  %v24271_v47 = vpop.f32.mrb[53].mxu0 }
0x5441   :  { %26623 = vtanh.f32 %v18382_v37  ;;  %v18383_v22 = vmul.f32 0.5, %v18382_v37 }
0x5443   :  { %26625 = vtanh.f32 %v18383_v22 }
0x544b   :  { %v26624_v35 = vpop.eup %26623 }
0x544c   :  { %18390 = vrot.lane.b32.xlu0 %v26624_v35, %s26792_s3 }
0x544d   :  { %v26626_v0 = vpop.eup %26625 }
0x544e   :  { %v18385_v7 = vmul.f32 0.5, %v26626_v0 }
0x5450   :  { %v18386_v21 = vadd.f32 0.5, %v18385_v7 }
0x5452   :  { %v18388_v10 = vmul.f32 %v18386_v21, %v29317_v18 }
0x54be   :  { %v18391_v26 = vpop.permute.xlu0 %18390 }
0x54bf   :  { %v18393_v63 = vmul.f32 %v18391_v26, %v18386_v21 }
0x54c1   :  { %18395 = vrot.lane.b32.xlu1 %v18393_v63, %s26793_s30 }
0x5533   :  { %v18396_v34 = vpop.permute.xlu1 %18395 }
0x5534   :  { %v29366_v43 = vadd.f32 %v18396_v34, %v18388_v10 }
0x5536   :  { %26627 = vtanh.f32 %v29366_v43 }
0x5540   :  { %v26628_v23 = vpop.eup %26627 }
0x5541   :  { %18401 = vrot.lane.b32.xlu0 %v26628_v23, %s26792_s3 }
0x55b3   :  { %v18402_v12 = vpop.permute.xlu0 %18401 }
0x55b4   :  { %v29370_v56 = vmul.f32 %v18402_v12, %v18386_v21 }
0x55b6   :  { %18407 = vrot.lane.b32.xlu1 %v29370_v56, %s26793_s30 }
0x5628   :  { %v18408_v49 = vpop.permute.xlu1 %18407 }
0x5629   :  { %v18409_v31 = vsel %vm111_vm0, %v18408_v49, 0 }
0x562a   :  { %v18480_v36 = vand.u32 4294901760, %v18409_v31 }
0x562c   :  { %v18481_v45 = vsub.f32 %v18409_v31, %v18480_v36 }
0x562e   :  { %v18482_v50 = vand.u32 4294901760, %v18481_v45 }
0x5630   :  { %v18483_v16 = vsub.f32 %v18481_v45, %v18482_v50 }
0x5632   :  { %v18484_v27 = vand.u32 4294901760, %v18483_v16 }
0x5634   :  { %24281 = vmatmul.mubr.f32.vlgmr.msra.gmra.mrb[44].mxu1 %v18484_v27 }
0x5635   :  { %25780 = vmatpush3.bf16.msra.mxu1 %v29018_v58  ;;  %24291 = vmatprep.mubr.msk.f32.mxu1 %vm26790_vm1, %v26791_v17 }
0x5636   :  { %25781 = vmatprep.subr.bf16.mxu1 %v26789_v52 }
0x5639   :  { %25783 = vmatpush3.bf16.msra.mxu1 %v29024_v42 }
0x563a   :  { %25784 = vmatprep.subr.bf16.mxu1 %v26789_v52 }
0x563c   :  { %24292 = vmatmul.mubr.f32.vlgmr.msra.gmra.mrb[44].mxu1 %v18480_v36 }
0x563d   :  { %25786 = vmatpush3.bf16.msra.mxu1 %v29031_v5  ;;  %24302 = vmatprep.mubr.msk.f32.mxu1 %vm26790_vm1, %v26791_v17 }
0x563e   :  { %25787 = vmatprep.subr.bf16.mxu1 %v26789_v52 }
0x5641   :  { %25789 = vmatpush3.bf16.msra.mxu1 %v29038_v11 }
0x5642   :  { %25790 = vmatprep.subr.bf16.mxu1 %v26789_v52 }
0x5644   :  { %24303 = vmatmul.mubr.f32.vlgmr.msra.gmra.mrb[44].mxu1 %v18481_v45 }
0x5645   :  { %25792 = vmatpush3.bf16.msra.mxu1 %v28985_v41  ;;  %24313 = vmatprep.mubr.msk.f32.mxu1 %vm26790_vm1, %v26791_v17 }
0x5646   :  { %25793 = vmatprep.subr.bf16.mxu1 %v26789_v52 }
0x5649   :  { %25795 = vmatpush3.bf16.msra.mxu1 %v28991_v39 }
0x564a   :  { %25796 = vmatprep.subr.bf16.mxu1 %v26789_v52 }
0x564c   :  { %24314 = vmatmul.mubr.f32.vlgmr.msra.gmra.mrb[44].mxu1 %v18482_v50 }
0x564d   :  { %25798 = vmatpush3.bf16.msra.mxu1 %v29053_v25  ;;  %24324 = vmatprep.mubr.msk.f32.mxu1 %vm26790_vm1, %v26791_v17 }
0x564e   :  { %25799 = vmatprep.subr.bf16.mxu1 %v26789_v52 }
0x5651   :  { %25801 = vmatpush3.bf16.msra.mxu1 %v29060_v29 }
0x5652   :  { %25802 = vmatprep.subr.bf16.mxu1 %v26789_v52 }
0x5654   :  { %24325 = vmatmul.mubr.f32.vlgmr.msra.gmra.mrb[44].mxu1 %v18480_v36 }
0x5655   :  { %25804 = vmatpush3.bf16.msra.mxu1 %v28985_v41  ;;  %24335 = vmatprep.mubr.msk.f32.mxu1 %vm26790_vm1, %v26791_v17 }
0x5656   :  { %25805 = vmatprep.subr.bf16.mxu1 %v26789_v52 }
0x5659   :  { %25807 = vmatpush3.bf16.msra.mxu1 %v28991_v39 }
0x565a   :  { %25844 = vmatprep.subr.bf16.mxu1 %v26789_v52 }
0x565c   :  { %24336 = vmatmul.mubr.f32.vlgmr.msra.gmra.mrb[44].mxu1 %v18480_v36 }
0x565d   :  { %25846 = vmatpush3.bf16.msra.mxu1 %v28985_v41  ;;  %24412 = vmatprep.mubr.msk.f32.mxu1 %vm26790_vm1, %v26791_v17 }
0x565e   :  { %25847 = vmatprep.subr.bf16.mxu1 %v26789_v52 }
0x5661   :  { %25849 = vmatpush3.bf16.msra.mxu1 %v28991_v39 }
0x5662   :  { %25850 = vmatprep.subr.bf16.mxu1 %v26789_v52 }
0x572f   :  { %v18892_v60 = vpop.f32.mrb[44].mxu1 }
0x5730   :  { %v18896_v6 = vadd.f32 %v29160_v55, %v18892_v60  ;;  %v24337_v14 = vpop.f32.mrb[45].mxu1 }
0x5732   :  { %26629 = vtanh.f32 %v18896_v6  ;;  %v18897_v44 = vmul.f32 0.5, %v18896_v6 }
0x5734   :  { %26631 = vtanh.f32 %v18897_v44 }
0x573c   :  { %v26630_v19 = vpop.eup %26629 }
0x573d   :  { %18904 = vrot.lane.b32.xlu0 %v26630_v19, %s26792_s3 }
0x573e   :  { %v26632_v53 = vpop.eup %26631 }
0x573f   :  { %v18899_v2 = vmul.f32 0.5, %v26632_v53 }
0x5741   :  { %v18900_v32 = vadd.f32 0.5, %v18899_v2 }
0x5743   :  { %v18902_v13 = vmul.f32 %v18900_v32, %v29366_v43 }
0x57af   :  { %v18905_v62 = vpop.permute.xlu0 %18904 }
0x57b0   :  { %v18907_v57 = vmul.f32 %v18905_v62, %v18900_v32 }
0x57b2   :  { %18909 = vrot.lane.b32.xlu1 %v18907_v57, %s26793_s30 }
0x5824   :  { %v18910_v38 = vpop.permute.xlu1 %18909 }
0x5825   :  { %v18912_v61 = vadd.f32 %v18910_v38, %v18902_v13 }
0x5827   :  { %26633 = vtanh.f32 %v18912_v61 }
0x5831   :  { %v26634_v55 = vpop.eup %26633 }
0x5832   :  { %18915 = vrot.lane.b32.xlu0 %v26634_v55, %s26792_s3 }
0x58a4   :  { %v18916_v48 = vpop.permute.xlu0 %18915 }
0x58a5   :  { %v29416_v18 = vmul.f32 %v18916_v48, %v18900_v32 }
0x58a7   :  { %18921 = vrot.lane.b32.xlu1 %v29416_v18, %s26793_s30 }
0x5919   :  { %v18922_v54 = vpop.permute.xlu1 %18921 }
0x591a   :  { %v18923_v40 = vsel %vm111_vm0, %v18922_v54, 0 }
0x591b   :  { %v18994_v28 = vand.u32 4294901760, %v18923_v40 }
0x591d   :  { %v18995_v1 = vsub.f32 %v18923_v40, %v18994_v28 }
0x591f   :  { %v18996_v51 = vand.u32 4294901760, %v18995_v1 }
0x5921   :  { %v18997_v3 = vsub.f32 %v18995_v1, %v18996_v51 }
0x5923   :  { %v18998_v59 = vand.u32 4294901760, %v18997_v3 }
0x5925   :  { %24347 = vmatmul.mubr.f32.vlgmr.msra.gmra.mrb[54].mxu0 %v18998_v59 }
0x5926   :  { %25816 = vmatpush3.bf16.msra.mxu0 %v29018_v58  ;;  %24357 = vmatprep.mubr.msk.f32.mxu0 %vm26790_vm1, %v26791_v17 }
0x5927   :  { %25817 = vmatprep.subr.bf16.mxu0 %v26789_v52 }
0x592a   :  { %25819 = vmatpush3.bf16.msra.mxu0 %v29024_v42 }
0x592b   :  { %25820 = vmatprep.subr.bf16.mxu0 %v26789_v52 }
0x592d   :  { %24358 = vmatmul.mubr.f32.vlgmr.msra.gmra.mrb[54].mxu0 %v18994_v28 }
0x592e   :  { %25822 = vmatpush3.bf16.msra.mxu0 %v29031_v5  ;;  %24368 = vmatprep.mubr.msk.f32.mxu0 %vm26790_vm1, %v26791_v17 }
0x592f   :  { %25823 = vmatprep.subr.bf16.mxu0 %v26789_v52 }
0x5932   :  { %25825 = vmatpush3.bf16.msra.mxu0 %v29038_v11 }
0x5933   :  { %25826 = vmatprep.subr.bf16.mxu0 %v26789_v52 }
0x5935   :  { %24369 = vmatmul.mubr.f32.vlgmr.msra.gmra.mrb[54].mxu0 %v18995_v1 }
0x5936   :  { %25828 = vmatpush3.bf16.msra.mxu0 %v28985_v41  ;;  %24379 = vmatprep.mubr.msk.f32.mxu0 %vm26790_vm1, %v26791_v17 }
0x5937   :  { %25829 = vmatprep.subr.bf16.mxu0 %v26789_v52 }
0x593a   :  { %25831 = vmatpush3.bf16.msra.mxu0 %v28991_v39 }
0x593b   :  { %25832 = vmatprep.subr.bf16.mxu0 %v26789_v52 }
0x593d   :  { %24380 = vmatmul.mubr.f32.vlgmr.msra.gmra.mrb[54].mxu0 %v18996_v51 }
0x593e   :  { %25834 = vmatpush3.bf16.msra.mxu0 %v29053_v25  ;;  %24390 = vmatprep.mubr.msk.f32.mxu0 %vm26790_vm1, %v26791_v17 }
0x593f   :  { %25835 = vmatprep.subr.bf16.mxu0 %v26789_v52 }
0x5942   :  { %25837 = vmatpush3.bf16.msra.mxu0 %v29060_v29 }
0x5943   :  { %25838 = vmatprep.subr.bf16.mxu0 %v26789_v52 }
0x5945   :  { %24391 = vmatmul.mubr.f32.vlgmr.msra.gmra.mrb[54].mxu0 %v18994_v28 }
0x5946   :  { %25840 = vmatpush3.bf16.msra.mxu0 %v28985_v41  ;;  %24401 = vmatprep.mubr.msk.f32.mxu0 %vm26790_vm1, %v26791_v17 }
0x5947   :  { %25841 = vmatprep.subr.bf16.mxu0 %v26789_v52 }
0x594a   :  { %25843 = vmatpush3.bf16.msra.mxu0 %v28991_v39 }
0x594b   :  { %25880 = vmatprep.subr.bf16.mxu0 %v26789_v52 }
0x594d   :  { %24402 = vmatmul.mubr.f32.vlgmr.msra.gmra.mrb[54].mxu0 %v18994_v28 }
0x594e   :  { %24478 = vmatprep.mubr.msk.f32.mxu0 %vm26790_vm1, %v26791_v17 }
0x5a20   :  { %v19406_v24 = vpop.f32.mrb[54].mxu0 }
0x5a21   :  { %v19410_v8 = vadd.f32 %v29166_v9, %v19406_v24  ;;  %v24403_v15 = vpop.f32.mrb[55].mxu0 }
0x5a23   :  { %26635 = vtanh.f32 %v19410_v8  ;;  %v19411_v47 = vmul.f32 0.5, %v19410_v8 }
0x5a25   :  { %26637 = vtanh.f32 %v19411_v47 }
0x5a2d   :  { %v26636_v37 = vpop.eup %26635 }
0x5a2e   :  { %19418 = vrot.lane.b32.xlu0 %v26636_v37, %s26792_s3 }
0x5a2f   :  { %v26638_v35 = vpop.eup %26637 }
0x5a30   :  { %v19413_v22 = vmul.f32 0.5, %v26638_v35 }
0x5a32   :  { %v19414_v0 = vadd.f32 0.5, %v19413_v22 }
0x5a34   :  { %v19416_v26 = vmul.f32 %v19414_v0, %v18912_v61 }
0x5aa0   :  { %v19419_v7 = vpop.permute.xlu0 %19418 }
0x5aa1   :  { %v19421_v21 = vmul.f32 %v19419_v7, %v19414_v0 }
0x5aa3   :  { %19423 = vrot.lane.b32.xlu1 %v19421_v21, %s26793_s30 }
0x5b15   :  { %v19424_v63 = vpop.permute.xlu1 %19423 }
0x5b16   :  { %v19426_v10 = vadd.f32 %v19424_v63, %v19416_v26 }
0x5b18   :  { %26639 = vtanh.f32 %v19426_v10 }
0x5b22   :  { %v26640_v34 = vpop.eup %26639 }
0x5b23   :  { %19429 = vrot.lane.b32.xlu0 %v26640_v34, %s26792_s3 }
0x5b95   :  { %v19430_v9 = vpop.permute.xlu0 %19429 }
0x5b96   :  { %v29457_v43 = vmul.f32 %v19430_v9, %v19414_v0 }
0x5b98   :  { %19435 = vrot.lane.b32.xlu1 %v29457_v43, %s26793_s30 }
0x5c0a   :  { %v19436_v23 = vpop.permute.xlu1 %19435 }
0x5c0b   :  { %v19437_v12 = vsel %vm111_vm0, %v19436_v23, 0 }
0x5c0c   :  { %v19508_v49 = vand.u32 4294901760, %v19437_v12 }
0x5c0e   :  { %v19509_v31 = vsub.f32 %v19437_v12, %v19508_v49 }
0x5c10   :  { %v19510_v36 = vand.u32 4294901760, %v19509_v31 }
0x5c12   :  { %v19511_v45 = vsub.f32 %v19509_v31, %v19510_v36 }
0x5c14   :  { %v19512_v50 = vand.u32 4294901760, %v19511_v45 }
0x5c16   :  { %24413 = vmatmul.mubr.f32.vlgmr.msra.gmra.mrb[46].mxu1 %v19512_v50 }
0x5c17   :  { %25852 = vmatpush3.bf16.msra.mxu1 %v29018_v58  ;;  %24423 = vmatprep.mubr.msk.f32.mxu1 %vm26790_vm1, %v26791_v17 }
0x5c18   :  { %25853 = vmatprep.subr.bf16.mxu1 %v26789_v52 }
0x5c1b   :  { %25855 = vmatpush3.bf16.msra.mxu1 %v29024_v42 }
0x5c1c   :  { %25856 = vmatprep.subr.bf16.mxu1 %v26789_v52 }
0x5c1e   :  { %24424 = vmatmul.mubr.f32.vlgmr.msra.gmra.mrb[46].mxu1 %v19508_v49 }
0x5c1f   :  { %25858 = vmatpush3.bf16.msra.mxu1 %v29031_v5  ;;  %24434 = vmatprep.mubr.msk.f32.mxu1 %vm26790_vm1, %v26791_v17 }
0x5c20   :  { %25859 = vmatprep.subr.bf16.mxu1 %v26789_v52 }
0x5c23   :  { %25861 = vmatpush3.bf16.msra.mxu1 %v29038_v11 }
0x5c24   :  { %25862 = vmatprep.subr.bf16.mxu1 %v26789_v52 }
0x5c26   :  { %24435 = vmatmul.mubr.f32.vlgmr.msra.gmra.mrb[46].mxu1 %v19509_v31 }
0x5c27   :  { %25864 = vmatpush3.bf16.msra.mxu1 %v28985_v41  ;;  %24445 = vmatprep.mubr.msk.f32.mxu1 %vm26790_vm1, %v26791_v17 }
0x5c28   :  { %25865 = vmatprep.subr.bf16.mxu1 %v26789_v52 }
0x5c2b   :  { %25867 = vmatpush3.bf16.msra.mxu1 %v28991_v39 }
0x5c2c   :  { %25868 = vmatprep.subr.bf16.mxu1 %v26789_v52 }
0x5c2e   :  { %24446 = vmatmul.mubr.f32.vlgmr.msra.gmra.mrb[46].mxu1 %v19510_v36 }
0x5c2f   :  { %25870 = vmatpush3.bf16.msra.mxu1 %v29053_v25  ;;  %24456 = vmatprep.mubr.msk.f32.mxu1 %vm26790_vm1, %v26791_v17 }
0x5c30   :  { %25871 = vmatprep.subr.bf16.mxu1 %v26789_v52 }
0x5c33   :  { %25873 = vmatpush3.bf16.msra.mxu1 %v29060_v29 }
0x5c34   :  { %25874 = vmatprep.subr.bf16.mxu1 %v26789_v52 }
0x5c36   :  { %24457 = vmatmul.mubr.f32.vlgmr.msra.gmra.mrb[46].mxu1 %v19508_v49 }
0x5c37   :  { %25876 = vmatpush3.bf16.msra.mxu1 %v28985_v41  ;;  %24467 = vmatprep.mubr.msk.f32.mxu1 %vm26790_vm1, %v26791_v17 }
0x5c38   :  { %25877 = vmatprep.subr.bf16.mxu1 %v26789_v52 }
0x5c3b   :  { %25879 = vmatpush3.bf16.msra.mxu1 %v28991_v39 }
0x5c3e   :  { %24468 = vmatmul.mubr.f32.vlgmr.msra.gmra.mrb[46].mxu1 %v19508_v49 }
0x5d11   :  { %v19920_v58 = vpop.f32.mrb[46].mxu1 }
0x5d12   :  { %v19924_v42 = vadd.f32 %v29164_v30, %v19920_v58  ;;  %v24469_v5 = vpop.f32.mrb[47].mxu1 }
0x5d14   :  { %26641 = vtanh.f32 %v19924_v42  ;;  %v19925_v25 = vmul.f32 0.5, %v19924_v42 }
0x5d16   :  { %26643 = vtanh.f32 %v19925_v25 }
0x5d1e   :  { %v26642_v11 = vpop.eup %26641 }
0x5d1f   :  { %19932 = vrot.lane.b32.xlu0 %v26642_v11, %s26792_s3 }
0x5d20   :  { %v26644_v29 = vpop.eup %26643 }
0x5d21   :  { %v19927_v41 = vmul.f32 0.5, %v26644_v29 }
0x5d23   :  { %v19928_v16 = vadd.f32 0.5, %v19927_v41 }
0x5d25   :  { %v19930_v6 = vmul.f32 %v19928_v16, %v19426_v10 }
0x5d91   :  { %v19933_v27 = vpop.permute.xlu0 %19932 }
0x5d92   :  { %v19935_v60 = vmul.f32 %v19933_v27, %v19928_v16 }
0x5d94   :  { %19937 = vrot.lane.b32.xlu1 %v19935_v60, %s26793_s30 }
0x5e06   :  { %v19938_v39 = vpop.permute.xlu1 %19937 }
0x5e07   :  { %v19940_v14 = vadd.f32 %v19938_v39, %v19930_v6 }
0x5e09   :  { %26645 = vtanh.f32 %v19940_v14 }
0x5e13   :  { %v26646_v19 = vpop.eup %26645 }
0x5e14   :  { %19943 = vrot.lane.b32.xlu0 %v26646_v19, %s26792_s3 }
0x5e86   :  { %v19944_v30 = vpop.permute.xlu0 %19943 }
0x5e87   :  { %v29495_v44 = vmul.f32 %v19944_v30, %v19928_v16 }
0x5e89   :  { %v19955_v53 = vmul.f32 %v29495_v44, %v29223_v46  ;;  %v19947_v2 = vmul.f32 %v29495_v44, %v29174_v4  ;;  %v19971_v32 = vmul.f32 %v29495_v44, %v29321_v20  ;;  %v19963_v62 = vmul.f32 %v29495_v44, %v29272_v33 }
0x5e8a   :  { %v19987_v57 = vmul.f32 %v29495_v44, %v29416_v18  ;;  %v19979_v13 = vmul.f32 %v29495_v44, %v29370_v56  ;;  %v20003_v38 = vmul.f32 %v29495_v44, %v29495_v44  ;;  %v19995_v61 = vmul.f32 %v29495_v44, %v29457_v43 }
0x5e8b   :  { %19957 = vrot.lane.b32.xlu0 %v19955_v53, %s26793_s30  ;;  %19949 = vrot.lane.b32.xlu1 %v19947_v2, %s26793_s30 }
0x5e8f   :  { %19973 = vrot.lane.b32.xlu0 %v19971_v32, %s26793_s30  ;;  %19965 = vrot.lane.b32.xlu1 %v19963_v62, %s26793_s30 }
0x5e93   :  { %19989 = vrot.lane.b32.xlu0 %v19987_v57, %s26793_s30  ;;  %19981 = vrot.lane.b32.xlu1 %v19979_v13, %s26793_s30 }
0x5e97   :  { %20005 = vrot.lane.b32.xlu0 %v20003_v38, %s26793_s30  ;;  %19997 = vrot.lane.b32.xlu1 %v19995_v61, %s26793_s30 }
0x5efd   :  { %v19958_v55 = vpop.permute.xlu0 %19957  ;;  %v19950_v48 = vpop.permute.xlu1 %19949 }
0x5efe   :  { %v19960_v54 = vsel %vm111_vm0, %v19958_v55, 0.0  ;;  %v19952_v40 = vsel %vm111_vm0, %v19950_v48, 0.0 }
0x5eff   :  { %19961 = vadd.xlane.f32.xlu0 %v19960_v54  ;;  %19953 = vadd.xlane.f32.xlu1 %v19952_v40 }
0x5f01   :  { %v19974_v28 = vpop.permute.xlu0 %19973  ;;  %v19966_v1 = vpop.permute.xlu1 %19965 }
0x5f02   :  { %v19976_v51 = vsel %vm111_vm0, %v19974_v28, 0.0  ;;  %v19968_v3 = vsel %vm111_vm0, %v19966_v1, 0.0 }
0x5f03   :  { %19977 = vadd.xlane.f32.xlu1 %v19976_v51  ;;  %19969 = vadd.xlane.f32.xlu0 %v19968_v3 }
0x5f05   :  { %v19990_v59 = vpop.permute.xlu0 %19989  ;;  %v19982_v24 = vpop.permute.xlu1 %19981 }
0x5f06   :  { %v19992_v8 = vsel %vm111_vm0, %v19990_v59, 0.0  ;;  %v19984_v15 = vsel %vm111_vm0, %v19982_v24, 0.0 }
0x5f07   :  { %19993 = vadd.xlane.f32.xlu1 %v19992_v8  ;;  %19985 = vadd.xlane.f32.xlu0 %v19984_v15 }
0x5f09   :  { %v20006_v37 = vpop.permute.xlu0 %20005  ;;  %v19998_v47 = vpop.permute.xlu1 %19997 }
0x5f0a   :  { %v20008_v35 = vsel %vm111_vm0, %v20006_v37, 0.0  ;;  %v20000_v22 = vsel %vm111_vm0, %v19998_v47, 0.0 }
0x5f0b   :  { %20009 = vadd.xlane.f32.xlu1 %v20008_v35  ;;  %20001 = vadd.xlane.f32.xlu0 %v20000_v22 }
0x5f8c   :  { %v19962_v0 = vpop.xlane.xlu0 %19961  ;;  %v19954_v7 = vpop.xlane.xlu1 %19953 }
0x5f8d   :  { %v20011_v21 = vmax.f32 %v19954_v7, %v19962_v0 }
0x5f90   :  { %v19970_v26 = vpop.xlane.xlu0 %19969  ;;  %v19978_v63 = vpop.xlane.xlu1 %19977 }
0x5f91   :  { %v20012_v10 = vmax.f32 %v20011_v21, %v19970_v26  ;;  %v20066_v21 = vld [vmem:[#allocation10] sm:$0xff] }
0x5f93   :  { %v20013_v34 = vmax.f32 %v20012_v10, %v19978_v63 }
0x5f94   :  { %v19986_v9 = vpop.xlane.xlu0 %19985  ;;  %v19994_v23 = vpop.xlane.xlu1 %19993 }
0x5f95   :  { %v20014_v12 = vmax.f32 %v20013_v34, %v19986_v9 }
0x5f97   :  { %v20015_v49 = vmax.f32 %v20014_v12, %v19994_v23  ;;  %v20068_v12 = vld [vmem:[#allocation10 + $0x10] sm:$0xff] }
0x5f98   :  { %v20002_v31 = vpop.xlane.xlu0 %20001  ;;  %v20010_v45 = vpop.xlane.xlu1 %20009 }
0x5f99   :  { %v20016_v36 = vmax.f32 %v20015_v49, %v20002_v31  ;;  %v20069_v49 = vld [vmem:[#allocation10 + $0x18] sm:$0xff] }
0x5f9b   :  { %v20017_v50 = vmax.f32 %v20016_v36, %v20010_v45  ;;  %v20092_v36 = vand.u32 4294901760, %v20069_v49 }
0x5f9d   :  { %v20018_v58 = vsub.f32 %v19954_v7, %v20017_v50  ;;  %v20021_v42 = vsub.f32 %v19962_v0, %v20017_v50  ;;  %v20024_v5 = vsub.f32 %v19970_v26, %v20017_v50  ;;  %v20027_v11 = vsub.f32 %v19978_v63, %v20017_v50 }
0x5f9e   :  { %v20030_v16 = vsub.f32 %v19986_v9, %v20017_v50  ;;  %v20033_v60 = vsub.f32 %v19994_v23, %v20017_v50  ;;  %v20036_v39 = vsub.f32 %v20002_v31, %v20017_v50  ;;  %v20039_v19 = vsub.f32 %v20010_v45, %v20017_v50 }
0x5f9f   :  { %v20019_v25 = vmul.f32 1.442695, %v20018_v58  ;;  %v20022_v29 = vmul.f32 1.442695, %v20021_v42  ;;  %v20025_v41 = vmul.f32 1.442695, %v20024_v5 }
0x5fa0   :  { %v20028_v27 = vmul.f32 1.442695, %v20027_v11  ;;  %v20031_v6 = vmul.f32 1.442695, %v20030_v16  ;;  %v20034_v14 = vmul.f32 1.442695, %v20033_v60 }
0x5fa1   :  { %26647 = vpow2.f32 %v20019_v25  ;;  %v20037_v30 = vmul.f32 1.442695, %v20036_v39  ;;  %v20040_v53 = vmul.f32 1.442695, %v20039_v19  ;;  %v20083_v26 = vand.u32 4294901760, %v20066_v21 }
0x5fa2   :  { %26649 = vpow2.f32 %v20022_v29 }
0x5fa3   :  { %26651 = vpow2.f32 %v20025_v41 }
0x5fa4   :  { %26653 = vpow2.f32 %v20028_v27 }
0x5fa5   :  { %26655 = vpow2.f32 %v20031_v6 }
0x5fa6   :  { %26657 = vpow2.f32 %v20034_v14 }
0x5fa7   :  { %26659 = vpow2.f32 %v20037_v30 }
0x5fa8   :  { %26661 = vpow2.f32 %v20040_v53 }
0x5fab   :  { %v26648_v2 = vpop.eup %26647 }
0x5fac   :  { %v26650_v32 = vpop.eup %26649  ;;  %v20050_v62 = vmul.f32 %v26648_v2, %v29174_v4 }
0x5fad   :  { %v26652_v57 = vpop.eup %26651  ;;  %v20042_v13 = vadd.f32 %v26650_v32, %v26648_v2  ;;  %v20051_v38 = vmul.f32 %v26650_v32, %v29223_v46 }
0x5fae   :  { %v26654_v61 = vpop.eup %26653  ;;  %v20053_v54 = vmul.f32 %v26652_v57, %v29272_v33 }
0x5faf   :  { %v20043_v55 = vadd.f32 %v26652_v57, %v20042_v13  ;;  %v20052_v48 = vadd.f32 %v20051_v38, %v20050_v62  ;;  %v26656_v1 = vpop.eup %26655  ;;  %v20055_v51 = vmul.f32 %v26654_v61, %v29321_v20  ;;  %v20067_v20 = vld [vmem:[#allocation10 + $0x8] sm:$0xff] }
0x5fb0   :  { %v26658_v59 = vpop.eup %26657  ;;  %v20057_v15 = vmul.f32 %v26656_v1, %v29370_v56  ;;  %v20086_v63 = vand.u32 4294901760, %v20067_v20  ;;  %v20163_v56 = vsub.f32 %v20066_v21, %v20083_v26 }
0x5fb1   :  { %v20044_v40 = vadd.f32 %v26654_v61, %v20043_v55  ;;  %v20054_v28 = vadd.f32 %v20053_v54, %v20052_v48  ;;  %v26660_v4 = vpop.eup %26659  ;;  %v20059_v22 = vmul.f32 %v26658_v59, %v29416_v18  ;;  %v20089_v18 = vand.u32 4294901760, %v20068_v12  ;;  %v20599_v54 = vld [vmem:[%s29588_s8] ss:$0 sm:$0xff] }
0x5fb2   :  { %v26662_v46 = vpop.eup %26661  ;;  %v20061_v0 = vmul.f32 %v26660_v4, %v29457_v43  ;;  %v29537_v34 = vpack.c.bf16 %v20086_v63, %v20083_v26  ;;  %v20170_v9 = vsub.f32 %v20067_v20, %v20086_v63  ;;  %v20164_v43 = vand.u32 4294901760, %v20163_v56 }
0x5fb3   :  { %v20045_v3 = vadd.f32 %v26656_v1, %v20044_v40  ;;  %v20056_v24 = vadd.f32 %v20055_v51, %v20054_v28  ;;  %v20063_v10 = vmul.f32 %v26662_v46, %v29495_v44  ;;  %v25884_v58 = vpack.c.bf16 %v20092_v36, %v20089_v18 }
0x5fb4   :  { %25882 = vmatpush3.bf16.msra.mxu0 %v29537_v34  ;;  %v20171_v45 = vand.u32 4294901760, %v20170_v9  ;;  %v20177_v42 = vsub.f32 %v20068_v12, %v20089_v18  ;;  %v20184_v44 = vsub.f32 %v20069_v49, %v20092_v36  ;;  %v20165_v5 = vsub.f32 %v20163_v56, %v20164_v43 }
0x5fb5   :  { %v20046_v8 = vadd.f32 %v26658_v59, %v20045_v3  ;;  %v20058_v47 = vadd.f32 %v20057_v15, %v20056_v24  ;;  %25883 = vmatprep.subr.bf16.mxu0 %v26789_v52  ;;  %v25893_v19 = vpack.c.bf16 %v20170_v9, %v20163_v56 }
0x5fb6   :  { %v20172_v11 = vsub.f32 %v20170_v9, %v20171_v45  ;;  %v20166_v25 = vand.u32 4294901760, %v20165_v5  ;;  %v20178_v29 = vand.u32 4294901760, %v20177_v42  ;;  %v20185_v41 = vand.u32 4294901760, %v20184_v44 }
0x5fb7   :  { %v20047_v37 = vadd.f32 %v26660_v4, %v20046_v8  ;;  %v20060_v33 = vadd.f32 %v20059_v22, %v20058_v47  ;;  %v25896_v53 = vpack.c.bf16 %v20184_v44, %v20177_v42  ;;  %v25905_v2 = vpack.c.bf16 %v20171_v45, %v20164_v43 }
0x5fb8   :  { %25885 = vmatpush3.bf16.msra.mxu0 %v25884_v58  ;;  %v20173_v16 = vand.u32 4294901760, %v20172_v11  ;;  %v20179_v27 = vsub.f32 %v20177_v42, %v20178_v29  ;;  %v20186_v60 = vsub.f32 %v20184_v44, %v20185_v41  ;;  %v25908_v32 = vpack.c.bf16 %v20185_v41, %v20178_v29 }
0x5fb9   :  { %v20048_v35 = vadd.f32 %v26662_v46, %v20047_v37  ;;  %v20062_v7 = vadd.f32 %v20061_v0, %v20060_v33  ;;  %25886 = vmatprep.subr.bf16.mxu0 %v26789_v52 }
0x5fba   :  { %v25887_v6 = vpack.c.bf16 %v20173_v16, %v20166_v25  ;;  %v20180_v39 = vand.u32 4294901760, %v20179_v27  ;;  %v20187_v14 = vand.u32 4294901760, %v20186_v60 }
0x5fbb   :  { %26663 = vrcp.f32 %v20048_v35  ;;  %v20064_v23 = vadd.f32 %v20063_v10, %v20062_v7 }
0x5fbc   :  { %v25890_v30 = vpack.c.bf16 %v20187_v14, %v20180_v39 }
0x5fc5   :  { %v26664_v31 = vpop.eup %26663 }
0x5fc6   :  { %v20065_v50 = vmul.f32 %v26664_v31, %v20064_v23 }
0x5fc8   :  { %20078 = vrot.lane.b32.xlu0 %v20065_v50, %s26793_s30  ;;  %s26794_s30 = smov [#allocation12]  }
0x5fc9   :  { %s20574_s14 = sshll.u32 %s26794_s30, 4  ;;  %s20575_s14 = int_to_ptr.vmem [resolvable:$true] %s20574_s14 }
0x5fca   :  { %s26753_s5 = scalar_lea.vmem %s20575_s14, 128  ;;  %p26758_p5 = scmp.lt.s32.totalorder %s20575_s14, %s20575_s14 }
0x5fcb   :  { %p26754_p4 = scmp.ne.s32.totalorder %s20575_s14, %s26753_s5  ;;  %p26759_p6 = scmp.lt.s32.totalorder %s26753_s5, %s26753_s5 }
0x5fcd   :  { %p26760_p7 = por %p26759_p6, %p26758_p5 }
0x5fcf   :  { %p26761_p8 = pnand %p26760_p7, %p26754_p4 }
0x603a   :  { %v20079_v62 = vpop.permute.xlu0 %20078 }
0x603b   :  { %v20080_v57 = vsel %vm111_vm0, %v20079_v62, 0 }
0x603c   :  { %v20151_v13 = vand.u32 4294901760, %v20080_v57 }
0x603e   :  { %v20152_v38 = vsub.f32 %v20080_v57, %v20151_v13 }
0x6040   :  { %v20153_v61 = vand.u32 4294901760, %v20152_v38 }
0x6042   :  { %v20154_v55 = vsub.f32 %v20152_v38, %v20153_v61 }
0x6044   :  { %v20155_v48 = vand.u32 4294901760, %v20154_v55 }
0x6046   :  { %24479 = vmatmul.mubr.f32.vlgmr.msra.gmra.mrb[56].mxu0 %v20155_v48 }
0x6047   :  { %25888 = vmatpush3.bf16.msra.mxu0 %v25887_v6  ;;  %24489 = vmatprep.mubr.msk.f32.mxu0 %vm26790_vm1, %v26791_v17 }
0x6048   :  { %25889 = vmatprep.subr.bf16.mxu0 %v26789_v52 }
0x604b   :  { %25891 = vmatpush3.bf16.msra.mxu0 %v25890_v30 }
0x604c   :  { %25892 = vmatprep.subr.bf16.mxu0 %v26789_v52 }
0x604e   :  { %24490 = vmatmul.mubr.f32.vlgmr.msra.gmra.mrb[56].mxu0 %v20151_v13 }
0x604f   :  { %25894 = vmatpush3.bf16.msra.mxu0 %v25893_v19  ;;  %24500 = vmatprep.mubr.msk.f32.mxu0 %vm26790_vm1, %v26791_v17 }
0x6050   :  { %25895 = vmatprep.subr.bf16.mxu0 %v26789_v52 }
0x6053   :  { %25897 = vmatpush3.bf16.msra.mxu0 %v25896_v53 }
0x6054   :  { %25898 = vmatprep.subr.bf16.mxu0 %v26789_v52 }
0x6056   :  { %24501 = vmatmul.mubr.f32.vlgmr.msra.gmra.mrb[56].mxu0 %v20152_v38 }
0x6057   :  { %25900 = vmatpush3.bf16.msra.mxu0 %v29537_v34  ;;  %24511 = vmatprep.mubr.msk.f32.mxu0 %vm26790_vm1, %v26791_v17 }
0x6058   :  { %25901 = vmatprep.subr.bf16.mxu0 %v26789_v52 }
0x605b   :  { %25903 = vmatpush3.bf16.msra.mxu0 %v25884_v58 }
0x605c   :  { %25904 = vmatprep.subr.bf16.mxu0 %v26789_v52 }
0x605e   :  { %24512 = vmatmul.mubr.f32.vlgmr.msra.gmra.mrb[56].mxu0 %v20153_v61 }
0x605f   :  { %25906 = vmatpush3.bf16.msra.mxu0 %v25905_v2  ;;  %24522 = vmatprep.mubr.msk.f32.mxu0 %vm26790_vm1, %v26791_v17 }
0x6060   :  { %25907 = vmatprep.subr.bf16.mxu0 %v26789_v52 }
0x6063   :  { %25909 = vmatpush3.bf16.msra.mxu0 %v25908_v32 }
0x6064   :  { %25910 = vmatprep.subr.bf16.mxu0 %v26789_v52 }
0x6066   :  { %24523 = vmatmul.mubr.f32.vlgmr.msra.gmra.mrb[56].mxu0 %v20151_v13 }
0x6067   :  { %25912 = vmatpush3.bf16.msra.mxu0 %v29537_v34  ;;  %24533 = vmatprep.mubr.msk.f32.mxu0 %vm26790_vm1, %v26791_v17 }
0x6068   :  { %25913 = vmatprep.subr.bf16.mxu0 %v26789_v52 }
0x606b   :  { %25915 = vmatpush3.bf16.msra.mxu0 %v25884_v58 }
0x606e   :  { %24534 = vmatmul.mubr.f32.vlgmr.msra.gmra.mrb[56].mxu0 %v20151_v13 }
0x6141   :  { %v20563_v40 = vpop.f32.mrb[56].mxu0 }
0x6142   :  { %v25960_v28 = vadd.f32 %v20599_v54, %v20563_v40  ;;  %v24535_v1 = vpop.f32.mrb[57].mxu0 }
0x6144   :  { %20567 = vst [vmem:[#allocation12] sm:$0xff] %v25960_v28 }
0x6145   :  { %26764 = shalt.err (!%p26761_p8)
}
0x6146   :  { %s26765_s18 = scalar_lea.hbm %s29589_s9, 128 }
0x6147   :  { %p26766_p9 = scmp.ne.s32.totalorder %s29589_s9, %s26765_s18  ;;  %p26769_p10 = scmp.lt.u32.totalorder %s26765_s18, %s29589_s9 }
0x6149   :  { %p26771_p11 = pnand %p26769_p10, %p26766_p9 }
0x614b   :  { %26774 = shalt.err (!%p26771_p11)
}
0x614c   :  { %20577 = dma.vmem_to_hbm [thread:$0]  %s20575_s14, 128, %s29589_s9, [#allocation6]  }
0x614d   :  { %26781 = dma.done.wait [#allocation6], 128  }
0x614e   :  { %26782 = vsyncadd [#allocation6], 4294967168 }
0x614f   :  { %20581 = vsyncpa [#allocation5], 1 }
0x6150   :  { %20582 = vsyncpa [#allocation8], 1 }
0x6151   :  { %20583 = vsyncpa [#allocation11], 1 }
0x6152   :  { %20584 = vsyncpa [#allocation6], 1 }

</bundles_post_ra>
